<compile_context>
chip_gen: v6e
topology: v6e:2x2x1
jax: 0.10.0
libtpu: 0.0.40
codegen_flags: <defaults>
</compile_context>

<pallas_src>
import numpy as np
import jax
import jax.numpy as jnp
from jax import lax
from jax.experimental import pallas as pl
from jax.experimental.pallas import tpu as pltpu

NUM_FILTERS = 32   # num_filters in the PyTorch module
Z_DIM = 32         # z_dim
BATCH = 2


# --------------------------------------------------------------------------
# In-kernel 3x3 conv over a flat, zero-padded frame (channel-on-sublane,
# flat-spatial-on-lane).  kh taps are fused along K via a sublane-stacked
# scratch buffer; only 3 matmuls (one per kw) remain.
# --------------------------------------------------------------------------
def _conv3x3_fused(frame, xs_ref, w_ref, wp, span, cin):
    s2 = span + 2
    xs_ref[0:cin, :] = frame[:, 0:s2]                      # kh = 0 (row above)
    xs_ref[cin:2 * cin, :] = frame[:, wp:wp + s2]          # kh = 1 (center row)
    xs_ref[2 * cin:3 * cin, :] = frame[:, 2 * wp:2 * wp + s2]   # kh = 2 (row below)
    acc = jnp.dot(w_ref[0], xs_ref[:, 0:span],
                  preferred_element_type=jnp.float32)
    acc = acc + jnp.dot(w_ref[1], xs_ref[:, 1:span + 1],
                        preferred_element_type=jnp.float32)
    acc = acc + jnp.dot(w_ref[2], xs_ref[:, 2:span + 2],
                        preferred_element_type=jnp.float32)
    return acc


# --------------------------------------------------------------------------
# Fused decoder kernel (one grid step == one image)
# --------------------------------------------------------------------------
def _decoder_kernel(z_ref,
                    w0k_ref, b0_ref, zmask_ref, sel0_ref,
                    w1_ref, b1_ref, selp1_ref,
                    w2_ref, b2_ref, sd3_ref,
                    w3_ref, b3_ref, selp3_ref,
                    w4_ref, b4_ref, sd5_ref,
                    w5_ref, b5_ref, selo_ref,
                    o_ref,
                    xs12_ref, xs3_ref, xs4_ref, xs5_ref):
    f32 = jnp.float32

    # ---- Linear(z_dim -> 2*16*32) + ReLU as one Kronecker-form matmul ------
    z_col = z_ref[0]                                           # (Z, 1)
    zrep = jnp.concatenate([z_col] * 16, axis=0)               # (16*Z, 1)
    zblk = zmask_ref[...] * zrep                               # block-diag(z): (16*Z, 16)
    h0 = jnp.maximum(
        jnp.dot(w0k_ref[...], zblk, preferred_element_type=f32) + b0_ref[...],
        0.0)                                                   # (64, 16): 4x4 NCHW map
    # place the 4x4 map into the zero-dilated + padded 9x9 frame
    d1 = jnp.dot(h0, sel0_ref[...], preferred_element_type=f32)        # (64, 81)

    # ---- ConvT(64->64, k3, s2, p1, op0) + ReLU : 4x4 -> 7x7 ---------------
    h1 = jnp.maximum(_conv3x3_fused(d1, xs12_ref, w1_ref, 9, 61, 64)
                     + b1_ref[...], 0.0)                                # (64, 61)
    p1 = jnp.dot(h1, selp1_ref[...], preferred_element_type=f32)       # (64, 81)

    # ---- Conv(64->64, k3, p1) + ReLU : 7x7 ---------------------------------
    h2 = jnp.maximum(_conv3x3_fused(p1, xs12_ref, w2_ref, 9, 61, 64)
                     + b2_ref[...], 0.0)                                # (64, 61)
    d3 = jnp.dot(h2, sd3_ref[...], preferred_element_type=f32)         # (64, 256)

    # ---- ConvT(64->32, k3, s2, p1, op1) + ReLU : 7x7 -> 14x14 -------------
    h3 = jnp.maximum(_conv3x3_fused(d3, xs3_ref, w3_ref, 16, 222, 64)
                     + b3_ref[...], 0.0)                                # (32, 222)
    p3 = jnp.dot(h3, selp3_ref[...], preferred_element_type=f32)       # (32, 256)

    # ---- Conv(32->32, k3, p1) + ReLU : 14x14 --------------------------------
    h4 = jnp.maximum(_conv3x3_fused(p3, xs4_ref, w4_ref, 16, 222, 32)
                     + b4_ref[...], 0.0)                                # (32, 222)
    d5 = jnp.dot(h4, sd5_ref[...], preferred_element_type=f32)         # (32, 900)

    # ---- ConvT(32->1, k3, s2, p1, op1) + Tanh : 14x14 -> 28x28 --------------
    s5 = _conv3x3_fused(d5, xs5_ref, w5_ref, 30, 838, 32)               # (1, 838)
    out = jnp.tanh(jnp.dot(s5, selo_ref[...], preferred_element_type=f32)
                   + b5_ref[...])                                       # (1, 784)
    o_ref[...] = out.reshape(1, 1, 784)


# --------------------------------------------------------------------------
# Parameters (deterministic synthetic init; shapes from ConvDecoder.__init__)
# --------------------------------------------------------------------------
def init_params(key):
    nf = NUM_FILTERS
    scale = 0.05
    ks = jax.random.split(key, 12)
    p = {}
    p["w_lin"] = scale * jax.random.normal(ks[0], (Z_DIM, 2 * 16 * nf), jnp.float32)
    p["b_lin"] = scale * jax.random.normal(ks[1], (2 * 16 * nf,), jnp.float32)
    # ConvTranspose2d(64,64,k3,s2,p1,op0) -- stored in equivalent HWIO conv form
    p["w1"] = scale * jax.random.normal(ks[2], (3, 3, 2 * nf, 2 * nf), jnp.float32)
    p["b1"] = scale * jax.random.normal(ks[3], (2 * nf,), jnp.float32)
    # Conv2d(64,64,k3,p1)
    p["w2"] = scale * jax.random.normal(ks[4], (3, 3, 2 * nf, 2 * nf), jnp.float32)
    p["b2"] = scale * jax.random.normal(ks[5], (2 * nf,), jnp.float32)
    # ConvTranspose2d(64,32,k3,s2,p1,op1)
    p["w3"] = scale * jax.random.normal(ks[6], (3, 3, 2 * nf, nf), jnp.float32)
    p["b3"] = scale * jax.random.normal(ks[7], (nf,), jnp.float32)
    # Conv2d(32,32,k3,p1)
    p["w4"] = scale * jax.random.normal(ks[8], (3, 3, nf, nf), jnp.float32)
    p["b4"] = scale * jax.random.normal(ks[9], (nf,), jnp.float32)
    # ConvTranspose2d(32,1,k3,s2,p1,op1)
    p["w5"] = scale * jax.random.normal(ks[10], (3, 3, nf, 1), jnp.float32)
    p["b5"] = scale * jax.random.normal(ks[11], (1,), jnp.float32)
    return p


def prepare_params(p):
    """One-time host-side rearrangement of the module parameters into kernel layout:
    fused per-kw conv taps, Kronecker-form Linear weight, and all 0/1 selection
    matrices (dilation / padding / masking / output compaction)."""
    nf = NUM_FILTERS
    c0 = 2 * nf                                    # 64
    zd = Z_DIM
    w_lin = np.asarray(p["w_lin"], np.float32)     # (Z, 1024)
    b_lin = np.asarray(p["b_lin"], np.float32)     # (1024,)

    # Kronecker-form Linear weight: w0k[c, s*Z+zi] = w_lin[zi, c*16+s]
    w0k = np.ascontiguousarray(
        np.transpose(w_lin.reshape(zd, c0, 16), (1, 2, 0)).reshape(c0, 16 * zd))
    b0 = np.ascontiguousarray(b_lin.reshape(c0, 16))
    # 0/1 mask that turns a 16x-replicated z column into block-diag(z)
    zmask = np.zeros((16 * zd, 16), np.float32)
    for s in range(16):
        zmask[s * zd:(s + 1) * zd, s] = 1.0

    def conv_w_cat(w_hwio):
        """(3,3,Cin,Cout) HWIO -> (3, Cout, 3*Cin): per-kw weight with the 3 kh taps
        stacked along the contraction dim (matches the xs scratch layout)."""
        w = np.asarray(w_hwio, np.float32)
        cin, cout = w.shape[2], w.shape[3]
        return np.ascontiguousarray(
            np.transpose(w, (1, 3, 0, 2)).reshape(3, cout, 3 * cin))

    def col_bias(bv):
        return np.ascontiguousarray(np.asarray(bv, np.float32).reshape(-1, 1))

    # 4x4 spatial positions -> zero-dilated + padded 9x9 frame
    sel0 = np.zeros((16, 81), np.float32)
    for h in range(4):
        for w in range(4):
            sel0[4 * h + w, (1 + 2 * h) * 9 + (1 + 2 * w)] = 1.0

    def span_to_frame(wp):
        # conv-output span -> zero-padded frame; wrap-around garbage rows are zero
        # (folds the old padding masks in) and the border padding comes out as zeros.
        span = wp * wp - 2 * wp - 2
        sel = np.zeros((span, wp * wp), np.float32)
        for t in range(span):
            pos = wp + 1 + t
            if 1 <= (pos % wp) <= wp - 2:
                sel[t, pos] = 1.0
        return sel

    def span_to_dilated(wp_in, wp_out):
        # valid conv outputs (n x n, n = wp_in-2) -> stride-2 zero-dilated + padded
        # frame of the following ConvTranspose layer.
        n = wp_in - 2
        span = wp_in * wp_in - 2 * wp_in - 2
        sel = np.zeros((span, wp_out * wp_out), np.float32)
        for h in range(n):
            for w in range(n):
                sel[wp_in * h + w, (1 + 2 * h) * wp_out + (1 + 2 * w)] = 1.0
        return sel

    selp1 = span_to_frame(9)             # (61, 81)
    sd3 = span_to_dilated(9, 16)         # (61, 256)
    selp3 = span_to_frame(16)            # (222, 256)
    sd5 = span_to_dilated(16, 30)        # (222, 900)
    # 30-wide conv span -> dense 28x28 output row (drops wrapped columns)
    selo = np.zeros((838, 784), np.float32)
    for i in range(28):
        for j in range(28):
            selo[30 * i + j, 28 * i + j] = 1.0

    prep = dict(
        w0k=w0k, b0=b0, zmask=zmask, sel0=sel0,
        w1=conv_w_cat(p["w1"]), b1=col_bias(p["b1"]), selp1=selp1,
        w2=conv_w_cat(p["w2"]), b2=col_bias(p["b2"]), sd3=sd3,
        w3=conv_w_cat(p["w3"]), b3=col_bias(p["b3"]), selp3=selp3,
        w4=conv_w_cat(p["w4"]), b4=col_bias(p["b4"]), sd5=sd5,
        w5=conv_w_cat(p["w5"]), b5=col_bias(p["b5"]), selo=selo,
    )
    return {k: jnp.asarray(v) for k, v in prep.items()}


_CONST_NAMES = ["w0k", "b0", "zmask", "sel0",
                "w1", "b1", "selp1",
                "w2", "b2", "sd3",
                "w3", "b3", "selp3",
                "w4", "b4", "sd5",
                "w5", "b5", "selo"]


# --------------------------------------------------------------------------
# Forward pass (single fused Pallas kernel) -- mirrors ConvDecoder.forward
# --------------------------------------------------------------------------
def conv_decoder_forward(z, prep):
    B, zd = z.shape
    zc = z.reshape(B, zd, 1)              # per-image (Z, 1) latent column block

    consts = [prep[n] for n in _CONST_NAMES]

    def const_spec(arr):
        nd = arr.ndim
        return pl.BlockSpec(arr.shape, lambda b, _nd=nd: (0,) * _nd)

    # TODO(synk): for large batches, lane-batch several images per grid step so the
    # 61/222-lane conv spans grow toward multiples of 128 (keep grid >= 2 on v7x).
    out = pl.pallas_call(
        _decoder_kernel,
        out_shape=jax.ShapeDtypeStruct((B, 1, 784), jnp.float32),
        grid=(B,),
        in_specs=[pl.BlockSpec((1, zd, 1), lambda b: (b, 0, 0))]
                 + [const_spec(a) for a in consts],
        out_specs=pl.BlockSpec((1, 1, 784), lambda b: (b, 0, 0)),
        scratch_shapes=[
            pltpu.VMEM((192, 63), jnp.float32),    # xs12: layers 1/2 (Cin=64, 9x9 frame)
            pltpu.VMEM((192, 224), jnp.float32),   # xs3 : layer 3   (Cin=64, 16x16 frame)
            pltpu.VMEM((96, 224), jnp.float32),    # xs4 : layer 4   (Cin=32, 16x16 frame)
            pltpu.VMEM((96, 840), jnp.float32),    # xs5 : layer 5   (Cin=32, 30x30 frame)
        ],
        compiler_params=pltpu.CompilerParams(
            dimension_semantics=("parallel",)),
    )(zc, *consts)
    return out.reshape(B, 1, 28, 28)      # NCHW like PyTorch


# --------------------------------------------------------------------------
# Pure-JAX (XLA conv) reference for correctness checking
# --------------------------------------------------------------------------
def reference_forward(z, p):
    B = z.shape[0]
    nf = NUM_FILTERS

    def conv(x, w, b, pad, lhs_dil):
        dn = lax.conv_dimension_numbers(x.shape, w.shape, ("NHWC", "HWIO", "NHWC"))
        y = lax.conv_general_dilated(x, w, (1, 1), pad,
                                     lhs_dilation=(lhs_dil, lhs_dil),
                                     dimension_numbers=dn)
        return y + b

    x = jnp.maximum(z @ p["w_lin"] + p["b_lin"], 0.0)
    x = x.reshape(B, 2 * nf, 4, 4).transpose(0, 2, 3, 1)
    x = jnp.maximum(conv(x, p["w1"], p["b1"], ((1, 1), (1, 1)), 2), 0.0)
    x = jnp.maximum(conv(x, p["w2"], p["b2"], ((1, 1), (1, 1)), 1), 0.0)
    x = jnp.maximum(conv(x, p["w3"], p["b3"], ((1, 2), (1, 2)), 2), 0.0)
    x = jnp.maximum(conv(x, p["w4"], p["b4"], ((1, 1), (1, 1)), 1), 0.0)
    x = jnp.tanh(conv(x, p["w5"], p["b5"], ((1, 2), (1, 2)), 2))
    return x.transpose(0, 3, 1, 2)


if __name__ == "__main__":
    key = jax.random.PRNGKey(0)
    pkey, zkey = jax.random.split(key)
    params = init_params(pkey)
    prep = prepare_params(params)
    z = jax.random.normal(zkey, (BATCH, Z_DIM), jnp.float32)

    recon = jax.block_until_ready(jax.jit(conv_decoder_forward)(z, prep))
    assert recon.shape == (BATCH, 1, 28, 28), recon.shape

    ref = jax.block_until_ready(jax.jit(reference_forward)(z, params))
    assert np.allclose(np.asarray(recon), np.asarray(ref), atol=5e-4, rtol=5e-4), \
        "Pallas output mismatch vs XLA reference"

    print("KERNEL_OK")
</pallas_src>

<mosaic_0001>
module attributes {stable_mosaic.version = 11 : i64} {
  func.func @_decoder_kernel(%arg0: i32, %arg1: memref<1x32x1xf32, #tpu.memory_space<vmem>>, %arg2: memref<64x512xf32, #tpu.memory_space<vmem>>, %arg3: memref<64x16xf32, #tpu.memory_space<vmem>>, %arg4: memref<512x16xf32, #tpu.memory_space<vmem>>, %arg5: memref<16x81xf32, #tpu.memory_space<vmem>>, %arg6: memref<3x64x192xf32, #tpu.memory_space<vmem>>, %arg7: memref<64x1xf32, #tpu.memory_space<vmem>>, %arg8: memref<61x81xf32, #tpu.memory_space<vmem>>, %arg9: memref<3x64x192xf32, #tpu.memory_space<vmem>>, %arg10: memref<64x1xf32, #tpu.memory_space<vmem>>, %arg11: memref<61x256xf32, #tpu.memory_space<vmem>>, %arg12: memref<3x32x192xf32, #tpu.memory_space<vmem>>, %arg13: memref<32x1xf32, #tpu.memory_space<vmem>>, %arg14: memref<222x256xf32, #tpu.memory_space<vmem>>, %arg15: memref<3x32x96xf32, #tpu.memory_space<vmem>>, %arg16: memref<32x1xf32, #tpu.memory_space<vmem>>, %arg17: memref<222x900xf32, #tpu.memory_space<vmem>>, %arg18: memref<3x1x96xf32, #tpu.memory_space<vmem>>, %arg19: memref<1x1xf32, #tpu.memory_space<vmem>>, %arg20: memref<838x784xf32, #tpu.memory_space<vmem>>, %arg21: memref<1x1x784xf32, #tpu.memory_space<vmem>>, %arg22: memref<192x63xf32, #tpu.memory_space<vmem>>, %arg23: memref<192x224xf32, #tpu.memory_space<vmem>>, %arg24: memref<96x224xf32, #tpu.memory_space<vmem>>, %arg25: memref<96x840xf32, #tpu.memory_space<vmem>>) attributes {dimension_semantics = [#tpu.dimension_semantics<parallel>], iteration_bounds = array<i64: 2>, scalar_prefetch = 0 : i64, scratch_operands = 4 : i64, tpu.core_type = #tpu.core_type<tc>, window_params = [{transform_indices = @transform_0, window_bounds = array<i64: 1, 32, 1>}, {pipeline_mode = #tpu.pipeline_mode<synchronous>, transform_indices = @transform_1, window_bounds = array<i64: 64, 512>}, {pipeline_mode = #tpu.pipeline_mode<synchronous>, transform_indices = @transform_2, window_bounds = array<i64: 64, 16>}, {pipeline_mode = #tpu.pipeline_mode<synchronous>, transform_indices = @transform_3, window_bounds = array<i64: 512, 16>}, {pipeline_mode = #tpu.pipeline_mode<synchronous>, transform_indices = @transform_4, window_bounds = array<i64: 16, 81>}, {pipeline_mode = #tpu.pipeline_mode<synchronous>, transform_indices = @transform_5, window_bounds = array<i64: 3, 64, 192>}, {pipeline_mode = #tpu.pipeline_mode<synchronous>, transform_indices = @transform_6, window_bounds = array<i64: 64, 1>}, {pipeline_mode = #tpu.pipeline_mode<synchronous>, transform_indices = @transform_7, window_bounds = array<i64: 61, 81>}, {pipeline_mode = #tpu.pipeline_mode<synchronous>, transform_indices = @transform_8, window_bounds = array<i64: 3, 64, 192>}, {pipeline_mode = #tpu.pipeline_mode<synchronous>, transform_indices = @transform_9, window_bounds = array<i64: 64, 1>}, {pipeline_mode = #tpu.pipeline_mode<synchronous>, transform_indices = @transform_10, window_bounds = array<i64: 61, 256>}, {pipeline_mode = #tpu.pipeline_mode<synchronous>, transform_indices = @transform_11, window_bounds = array<i64: 3, 32, 192>}, {pipeline_mode = #tpu.pipeline_mode<synchronous>, transform_indices = @transform_12, window_bounds = array<i64: 32, 1>}, {pipeline_mode = #tpu.pipeline_mode<synchronous>, transform_indices = @transform_13, window_bounds = array<i64: 222, 256>}, {pipeline_mode = #tpu.pipeline_mode<synchronous>, transform_indices = @transform_14, window_bounds = array<i64: 3, 32, 96>}, {pipeline_mode = #tpu.pipeline_mode<synchronous>, transform_indices = @transform_15, window_bounds = array<i64: 32, 1>}, {pipeline_mode = #tpu.pipeline_mode<synchronous>, transform_indices = @transform_16, window_bounds = array<i64: 222, 900>}, {pipeline_mode = #tpu.pipeline_mode<synchronous>, transform_indices = @transform_17, window_bounds = array<i64: 3, 1, 96>}, {pipeline_mode = #tpu.pipeline_mode<synchronous>, transform_indices = @transform_18, window_bounds = array<i64: 1, 1>}, {pipeline_mode = #tpu.pipeline_mode<synchronous>, transform_indices = @transform_19, window_bounds = array<i64: 838, 784>}, {transform_indices = @transform_20, window_bounds = array<i64: 1, 1, 784>}]} {
    %c0 = arith.constant 0 : index
    %c0_0 = arith.constant 0 : index
    %c0_1 = arith.constant 0 : index
    %0 = vector.load %arg1[%c0, %c0_0, %c0_1] : memref<1x32x1xf32, #tpu.memory_space<vmem>>, vector<1x32x1xf32>
    %1 = vector.shape_cast %0 : vector<1x32x1xf32> to vector<32x1xf32>
    %2 = tpu.concatenate %1, %1, %1, %1, %1, %1, %1, %1, %1, %1, %1, %1, %1, %1, %1, %1 in 0 : vector<32x1xf32>, vector<32x1xf32>, vector<32x1xf32>, vector<32x1xf32>, vector<32x1xf32>, vector<32x1xf32>, vector<32x1xf32>, vector<32x1xf32>, vector<32x1xf32>, vector<32x1xf32>, vector<32x1xf32>, vector<32x1xf32>, vector<32x1xf32>, vector<32x1xf32>, vector<32x1xf32>, vector<32x1xf32> -> vector<512x1xf32>
    %c0_2 = arith.constant 0 : index
    %c0_3 = arith.constant 0 : index
    %3 = vector.load %arg4[%c0_2, %c0_3] : memref<512x16xf32, #tpu.memory_space<vmem>>, vector<512x16xf32>
    %4 = vector.broadcast %2 : vector<512x1xf32> to vector<512x16xf32>
    %5 = arith.mulf %3, %4 : vector<512x16xf32>
    %c0_4 = arith.constant 0 : index
    %c0_5 = arith.constant 0 : index
    %6 = vector.load %arg2[%c0_4, %c0_5] : memref<64x512xf32, #tpu.memory_space<vmem>>, vector<64x512xf32>
    %cst = arith.constant dense<0.000000e+00> : vector<64x16xf32>
    %7 = tpu.matmul %6, %5, %cst {dimension_numbers = #tpu.dot_dimension_numbers<[1], [0], [0], [1], [0, 0, 1, 1], [], []>} : vector<64x512xf32>, vector<512x16xf32>, vector<64x16xf32> -> vector<64x16xf32>
    %c0_6 = arith.constant 0 : index
    %c0_7 = arith.constant 0 : index
    %8 = vector.load %arg3[%c0_6, %c0_7] : memref<64x16xf32, #tpu.memory_space<vmem>>, vector<64x16xf32>
    %9 = arith.addf %7, %8 : vector<64x16xf32>
    %cst_8 = arith.constant 0.000000e+00 : f32
    %10 = vector.broadcast %cst_8 : f32 to vector<64x16xf32>
    %11 = arith.maximumf %9, %10 : vector<64x16xf32>
    %c0_9 = arith.constant 0 : index
    %c0_10 = arith.constant 0 : index
    %12 = vector.load %arg5[%c0_9, %c0_10] : memref<16x81xf32, #tpu.memory_space<vmem>>, vector<16x81xf32>
    %cst_11 = arith.constant dense<0.000000e+00> : vector<64x81xf32>
    %13 = tpu.matmul %11, %12, %cst_11 {dimension_numbers = #tpu.dot_dimension_numbers<[1], [0], [0], [1], [0, 0, 1, 1], [], []>} : vector<64x16xf32>, vector<16x81xf32>, vector<64x81xf32> -> vector<64x81xf32>
    %14 = vector.extract_strided_slice %13 {offsets = [0, 0], sizes = [64, 63], strides = [1, 1]} : vector<64x81xf32> to vector<64x63xf32>
    %c0_12 = arith.constant 0 : index
    %c0_13 = arith.constant 0 : index
    %15 = vector.load %arg22[%c0_12, %c0_13] : memref<192x63xf32, #tpu.memory_space<vmem>>, vector<64x63xf32>
    tpu.vector_store %arg22[%c0_12, %c0_13], %14 {strides = array<i32>} : memref<192x63xf32, #tpu.memory_space<vmem>>, vector<64x63xf32>,
    %16 = vector.extract_strided_slice %13 {offsets = [0, 9], sizes = [64, 63], strides = [1, 1]} : vector<64x81xf32> to vector<64x63xf32>
    %c64 = arith.constant 64 : index
    %c0_14 = arith.constant 0 : index
    %17 = vector.load %arg22[%c64, %c0_14] : memref<192x63xf32, #tpu.memory_space<vmem>>, vector<64x63xf32>
    tpu.vector_store %arg22[%c64, %c0_14], %16 {strides = array<i32>} : memref<192x63xf32, #tpu.memory_space<vmem>>, vector<64x63xf32>,
    %18 = vector.extract_strided_slice %13 {offsets = [0, 18], sizes = [64, 63], strides = [1, 1]} : vector<64x81xf32> to vector<64x63xf32>
    %c128 = arith.constant 128 : index
    %c0_15 = arith.constant 0 : index
    %19 = vector.load %arg22[%c128, %c0_15] : memref<192x63xf32, #tpu.memory_space<vmem>>, vector<64x63xf32>
    tpu.vector_store %arg22[%c128, %c0_15], %18 {strides = array<i32>} : memref<192x63xf32, #tpu.memory_space<vmem>>, vector<64x63xf32>,
    %c0_16 = arith.constant 0 : index
    %c0_17 = arith.constant 0 : index
    %c0_18 = arith.constant 0 : index
    %20 = vector.load %arg6[%c0_16, %c0_17, %c0_18] : memref<3x64x192xf32, #tpu.memory_space<vmem>>, vector<1x64x192xf32>
    %21 = vector.shape_cast %20 : vector<1x64x192xf32> to vector<64x192xf32>
    %c0_19 = arith.constant 0 : index
    %c0_20 = arith.constant 0 : index
    %22 = vector.load %arg22[%c0_19, %c0_20] : memref<192x63xf32, #tpu.memory_space<vmem>>, vector<192x61xf32>
    %cst_21 = arith.constant dense<0.000000e+00> : vector<64x61xf32>
    %23 = tpu.matmul %21, %22, %cst_21 {dimension_numbers = #tpu.dot_dimension_numbers<[1], [0], [0], [1], [0, 0, 1, 1], [], []>} : vector<64x192xf32>, vector<192x61xf32>, vector<64x61xf32> -> vector<64x61xf32>
    %c1 = arith.constant 1 : index
    %c0_22 = arith.constant 0 : index
    %c0_23 = arith.constant 0 : index
    %24 = vector.load %arg6[%c1, %c0_22, %c0_23] : memref<3x64x192xf32, #tpu.memory_space<vmem>>, vector<1x64x192xf32>
    %25 = vector.shape_cast %24 : vector<1x64x192xf32> to vector<64x192xf32>
    %c0_24 = arith.constant 0 : index
    %c1_25 = arith.constant 1 : index
    %26 = vector.load %arg22[%c0_24, %c1_25] : memref<192x63xf32, #tpu.memory_space<vmem>>, vector<192x61xf32>
    %cst_26 = arith.constant dense<0.000000e+00> : vector<64x61xf32>
    %27 = tpu.matmul %25, %26, %cst_26 {dimension_numbers = #tpu.dot_dimension_numbers<[1], [0], [0], [1], [0, 0, 1, 1], [], []>} : vector<64x192xf32>, vector<192x61xf32>, vector<64x61xf32> -> vector<64x61xf32>
    %28 = arith.addf %23, %27 : vector<64x61xf32>
    %c2 = arith.constant 2 : index
    %c0_27 = arith.constant 0 : index
    %c0_28 = arith.constant 0 : index
    %29 = vector.load %arg6[%c2, %c0_27, %c0_28] : memref<3x64x192xf32, #tpu.memory_space<vmem>>, vector<1x64x192xf32>
    %30 = vector.shape_cast %29 : vector<1x64x192xf32> to vector<64x192xf32>
    %c0_29 = arith.constant 0 : index
    %c2_30 = arith.constant 2 : index
    %31 = vector.load %arg22[%c0_29, %c2_30] : memref<192x63xf32, #tpu.memory_space<vmem>>, vector<192x61xf32>
    %cst_31 = arith.constant dense<0.000000e+00> : vector<64x61xf32>
    %32 = tpu.matmul %30, %31, %cst_31 {dimension_numbers = #tpu.dot_dimension_numbers<[1], [0], [0], [1], [0, 0, 1, 1], [], []>} : vector<64x192xf32>, vector<192x61xf32>, vector<64x61xf32> -> vector<64x61xf32>
    %33 = arith.addf %28, %32 : vector<64x61xf32>
    %c0_32 = arith.constant 0 : index
    %c0_33 = arith.constant 0 : index
    %34 = vector.load %arg7[%c0_32, %c0_33] : memref<64x1xf32, #tpu.memory_space<vmem>>, vector<64x1xf32>
    %35 = vector.broadcast %34 : vector<64x1xf32> to vector<64x61xf32>
    %36 = arith.addf %33, %35 : vector<64x61xf32>
    %cst_34 = arith.constant 0.000000e+00 : f32
    %37 = vector.broadcast %cst_34 : f32 to vector<64x61xf32>
    %38 = arith.maximumf %36, %37 : vector<64x61xf32>
    %c0_35 = arith.constant 0 : index
    %c0_36 = arith.constant 0 : index
    %39 = vector.load %arg8[%c0_35, %c0_36] : memref<61x81xf32, #tpu.memory_space<vmem>>, vector<61x81xf32>
    %cst_37 = arith.constant dense<0.000000e+00> : vector<64x81xf32>
    %40 = tpu.matmul %38, %39, %cst_37 {dimension_numbers = #tpu.dot_dimension_numbers<[1], [0], [0], [1], [0, 0, 1, 1], [], []>} : vector<64x61xf32>, vector<61x81xf32>, vector<64x81xf32> -> vector<64x81xf32>
    %41 = vector.extract_strided_slice %40 {offsets = [0, 0], sizes = [64, 63], strides = [1, 1]} : vector<64x81xf32> to vector<64x63xf32>
    %c0_38 = arith.constant 0 : index
    %c0_39 = arith.constant 0 : index
    %42 = vector.load %arg22[%c0_38, %c0_39] : memref<192x63xf32, #tpu.memory_space<vmem>>, vector<64x63xf32>
    tpu.vector_store %arg22[%c0_38, %c0_39], %41 {strides = array<i32>} : memref<192x63xf32, #tpu.memory_space<vmem>>, vector<64x63xf32>,
    %43 = vector.extract_strided_slice %40 {offsets = [0, 9], sizes = [64, 63], strides = [1, 1]} : vector<64x81xf32> to vector<64x63xf32>
    %c64_40 = arith.constant 64 : index
    %c0_41 = arith.constant 0 : index
    %44 = vector.load %arg22[%c64_40, %c0_41] : memref<192x63xf32, #tpu.memory_space<vmem>>, vector<64x63xf32>
    tpu.vector_store %arg22[%c64_40, %c0_41], %43 {strides = array<i32>} : memref<192x63xf32, #tpu.memory_space<vmem>>, vector<64x63xf32>,
    %45 = vector.extract_strided_slice %40 {offsets = [0, 18], sizes = [64, 63], strides = [1, 1]} : vector<64x81xf32> to vector<64x63xf32>
    %c128_42 = arith.constant 128 : index
    %c0_43 = arith.constant 0 : index
    %46 = vector.load %arg22[%c128_42, %c0_43] : memref<192x63xf32, #tpu.memory_space<vmem>>, vector<64x63xf32>
    tpu.vector_store %arg22[%c128_42, %c0_43], %45 {strides = array<i32>} : memref<192x63xf32, #tpu.memory_space<vmem>>, vector<64x63xf32>,
    %c0_44 = arith.constant 0 : index
    %c0_45 = arith.constant 0 : index
    %c0_46 = arith.constant 0 : index
    %47 = vector.load %arg9[%c0_44, %c0_45, %c0_46] : memref<3x64x192xf32, #tpu.memory_space<vmem>>, vector<1x64x192xf32>
    %48 = vector.shape_cast %47 : vector<1x64x192xf32> to vector<64x192xf32>
    %c0_47 = arith.constant 0 : index
    %c0_48 = arith.constant 0 : index
    %49 = vector.load %arg22[%c0_47, %c0_48] : memref<192x63xf32, #tpu.memory_space<vmem>>, vector<192x61xf32>
    %cst_49 = arith.constant dense<0.000000e+00> : vector<64x61xf32>
    %50 = tpu.matmul %48, %49, %cst_49 {dimension_numbers = #tpu.dot_dimension_numbers<[1], [0], [0], [1], [0, 0, 1, 1], [], []>} : vector<64x192xf32>, vector<192x61xf32>, vector<64x61xf32> -> vector<64x61xf32>
    %c1_50 = arith.constant 1 : index
    %c0_51 = arith.constant 0 : index
    %c0_52 = arith.constant 0 : index
    %51 = vector.load %arg9[%c1_50, %c0_51, %c0_52] : memref<3x64x192xf32, #tpu.memory_space<vmem>>, vector<1x64x192xf32>
    %52 = vector.shape_cast %51 : vector<1x64x192xf32> to vector<64x192xf32>
    %c0_53 = arith.constant 0 : index
    %c1_54 = arith.constant 1 : index
    %53 = vector.load %arg22[%c0_53, %c1_54] : memref<192x63xf32, #tpu.memory_space<vmem>>, vector<192x61xf32>
    %cst_55 = arith.constant dense<0.000000e+00> : vector<64x61xf32>
    %54 = tpu.matmul %52, %53, %cst_55 {dimension_numbers = #tpu.dot_dimension_numbers<[1], [0], [0], [1], [0, 0, 1, 1], [], []>} : vector<64x192xf32>, vector<192x61xf32>, vector<64x61xf32> -> vector<64x61xf32>
    %55 = arith.addf %50, %54 : vector<64x61xf32>
    %c2_56 = arith.constant 2 : index
    %c0_57 = arith.constant 0 : index
    %c0_58 = arith.constant 0 : index
    %56 = vector.load %arg9[%c2_56, %c0_57, %c0_58] : memref<3x64x192xf32, #tpu.memory_space<vmem>>, vector<1x64x192xf32>
    %57 = vector.shape_cast %56 : vector<1x64x192xf32> to vector<64x192xf32>
    %c0_59 = arith.constant 0 : index
    %c2_60 = arith.constant 2 : index
    %58 = vector.load %arg22[%c0_59, %c2_60] : memref<192x63xf32, #tpu.memory_space<vmem>>, vector<192x61xf32>
    %cst_61 = arith.constant dense<0.000000e+00> : vector<64x61xf32>
    %59 = tpu.matmul %57, %58, %cst_61 {dimension_numbers = #tpu.dot_dimension_numbers<[1], [0], [0], [1], [0, 0, 1, 1], [], []>} : vector<64x192xf32>, vector<192x61xf32>, vector<64x61xf32> -> vector<64x61xf32>
    %60 = arith.addf %55, %59 : vector<64x61xf32>
    %c0_62 = arith.constant 0 : index
    %c0_63 = arith.constant 0 : index
    %61 = vector.load %arg10[%c0_62, %c0_63] : memref<64x1xf32, #tpu.memory_space<vmem>>, vector<64x1xf32>
    %62 = vector.broadcast %61 : vector<64x1xf32> to vector<64x61xf32>
    %63 = arith.addf %60, %62 : vector<64x61xf32>
    %cst_64 = arith.constant 0.000000e+00 : f32
    %64 = vector.broadcast %cst_64 : f32 to vector<64x61xf32>
    %65 = arith.maximumf %63, %64 : vector<64x61xf32>
    %c0_65 = arith.constant 0 : index
    %c0_66 = arith.constant 0 : index
    %66 = vector.load %arg11[%c0_65, %c0_66] : memref<61x256xf32, #tpu.memory_space<vmem>>, vector<61x256xf32>
    %cst_67 = arith.constant dense<0.000000e+00> : vector<64x256xf32>
    %67 = tpu.matmul %65, %66, %cst_67 {dimension_numbers = #tpu.dot_dimension_numbers<[1], [0], [0], [1], [0, 0, 1, 1], [], []>} : vector<64x61xf32>, vector<61x256xf32>, vector<64x256xf32> -> vector<64x256xf32>
    %68 = vector.extract_strided_slice %67 {offsets = [0, 0], sizes = [64, 224], strides = [1, 1]} : vector<64x256xf32> to vector<64x224xf32>
    %c0_68 = arith.constant 0 : index
    %c0_69 = arith.constant 0 : index
    %69 = vector.load %arg23[%c0_68, %c0_69] : memref<192x224xf32, #tpu.memory_space<vmem>>, vector<64x224xf32>
    tpu.vector_store %arg23[%c0_68, %c0_69], %68 {strides = array<i32>} : memref<192x224xf32, #tpu.memory_space<vmem>>, vector<64x224xf32>,
    %70 = vector.extract_strided_slice %67 {offsets = [0, 16], sizes = [64, 224], strides = [1, 1]} : vector<64x256xf32> to vector<64x224xf32>
    %c64_70 = arith.constant 64 : index
    %c0_71 = arith.constant 0 : index
    %71 = vector.load %arg23[%c64_70, %c0_71] : memref<192x224xf32, #tpu.memory_space<vmem>>, vector<64x224xf32>
    tpu.vector_store %arg23[%c64_70, %c0_71], %70 {strides = array<i32>} : memref<192x224xf32, #tpu.memory_space<vmem>>, vector<64x224xf32>,
    %72 = vector.extract_strided_slice %67 {offsets = [0, 32], sizes = [64, 224], strides = [1, 1]} : vector<64x256xf32> to vector<64x224xf32>
    %c128_72 = arith.constant 128 : index
    %c0_73 = arith.constant 0 : index
    %73 = vector.load %arg23[%c128_72, %c0_73] : memref<192x224xf32, #tpu.memory_space<vmem>>, vector<64x224xf32>
    tpu.vector_store %arg23[%c128_72, %c0_73], %72 {strides = array<i32>} : memref<192x224xf32, #tpu.memory_space<vmem>>, vector<64x224xf32>,
    %c0_74 = arith.constant 0 : index
    %c0_75 = arith.constant 0 : index
    %c0_76 = arith.constant 0 : index
    %74 = vector.load %arg12[%c0_74, %c0_75, %c0_76] : memref<3x32x192xf32, #tpu.memory_space<vmem>>, vector<1x32x192xf32>
    %75 = vector.shape_cast %74 : vector<1x32x192xf32> to vector<32x192xf32>
    %c0_77 = arith.constant 0 : index
    %c0_78 = arith.constant 0 : index
    %76 = vector.load %arg23[%c0_77, %c0_78] : memref<192x224xf32, #tpu.memory_space<vmem>>, vector<192x222xf32>
    %cst_79 = arith.constant dense<0.000000e+00> : vector<32x222xf32>
    %77 = tpu.matmul %75, %76, %cst_79 {dimension_numbers = #tpu.dot_dimension_numbers<[1], [0], [0], [1], [0, 0, 1, 1], [], []>} : vector<32x192xf32>, vector<192x222xf32>, vector<32x222xf32> -> vector<32x222xf32>
    %c1_80 = arith.constant 1 : index
    %c0_81 = arith.constant 0 : index
    %c0_82 = arith.constant 0 : index
    %78 = vector.load %arg12[%c1_80, %c0_81, %c0_82] : memref<3x32x192xf32, #tpu.memory_space<vmem>>, vector<1x32x192xf32>
    %79 = vector.shape_cast %78 : vector<1x32x192xf32> to vector<32x192xf32>
    %c0_83 = arith.constant 0 : index
    %c1_84 = arith.constant 1 : index
    %80 = vector.load %arg23[%c0_83, %c1_84] : memref<192x224xf32, #tpu.memory_space<vmem>>, vector<192x222xf32>
    %cst_85 = arith.constant dense<0.000000e+00> : vector<32x222xf32>
    %81 = tpu.matmul %79, %80, %cst_85 {dimension_numbers = #tpu.dot_dimension_numbers<[1], [0], [0], [1], [0, 0, 1, 1], [], []>} : vector<32x192xf32>, vector<192x222xf32>, vector<32x222xf32> -> vector<32x222xf32>
    %82 = arith.addf %77, %81 : vector<32x222xf32>
    %c2_86 = arith.constant 2 : index
    %c0_87 = arith.constant 0 : index
    %c0_88 = arith.constant 0 : index
    %83 = vector.load %arg12[%c2_86, %c0_87, %c0_88] : memref<3x32x192xf32, #tpu.memory_space<vmem>>, vector<1x32x192xf32>
    %84 = vector.shape_cast %83 : vector<1x32x192xf32> to vector<32x192xf32>
    %c0_89 = arith.constant 0 : index
    %c2_90 = arith.constant 2 : index
    %85 = vector.load %arg23[%c0_89, %c2_90] : memref<192x224xf32, #tpu.memory_space<vmem>>, vector<192x222xf32>
    %cst_91 = arith.constant dense<0.000000e+00> : vector<32x222xf32>
    %86 = tpu.matmul %84, %85, %cst_91 {dimension_numbers = #tpu.dot_dimension_numbers<[1], [0], [0], [1], [0, 0, 1, 1], [], []>} : vector<32x192xf32>, vector<192x222xf32>, vector<32x222xf32> -> vector<32x222xf32>
    %87 = arith.addf %82, %86 : vector<32x222xf32>
    %c0_92 = arith.constant 0 : index
    %c0_93 = arith.constant 0 : index
    %88 = vector.load %arg13[%c0_92, %c0_93] : memref<32x1xf32, #tpu.memory_space<vmem>>, vector<32x1xf32>
    %89 = vector.broadcast %88 : vector<32x1xf32> to vector<32x222xf32>
    %90 = arith.addf %87, %89 : vector<32x222xf32>
    %cst_94 = arith.constant 0.000000e+00 : f32
    %91 = vector.broadcast %cst_94 : f32 to vector<32x222xf32>
    %92 = arith.maximumf %90, %91 : vector<32x222xf32>
    %c0_95 = arith.constant 0 : index
    %c0_96 = arith.constant 0 : index
    %93 = vector.load %arg14[%c0_95, %c0_96] : memref<222x256xf32, #tpu.memory_space<vmem>>, vector<222x256xf32>
    %cst_97 = arith.constant dense<0.000000e+00> : vector<32x256xf32>
    %94 = tpu.matmul %92, %93, %cst_97 {dimension_numbers = #tpu.dot_dimension_numbers<[1], [0], [0], [1], [0, 0, 1, 1], [], []>} : vector<32x222xf32>, vector<222x256xf32>, vector<32x256xf32> -> vector<32x256xf32>
    %95 = vector.extract_strided_slice %94 {offsets = [0, 0], sizes = [32, 224], strides = [1, 1]} : vector<32x256xf32> to vector<32x224xf32>
    %c0_98 = arith.constant 0 : index
    %c0_99 = arith.constant 0 : index
    %96 = vector.load %arg24[%c0_98, %c0_99] : memref<96x224xf32, #tpu.memory_space<vmem>>, vector<32x224xf32>
    tpu.vector_store %arg24[%c0_98, %c0_99], %95 {strides = array<i32>} : memref<96x224xf32, #tpu.memory_space<vmem>>, vector<32x224xf32>,
    %97 = vector.extract_strided_slice %94 {offsets = [0, 16], sizes = [32, 224], strides = [1, 1]} : vector<32x256xf32> to vector<32x224xf32>
    %c32 = arith.constant 32 : index
    %c0_100 = arith.constant 0 : index
    %98 = vector.load %arg24[%c32, %c0_100] : memref<96x224xf32, #tpu.memory_space<vmem>>, vector<32x224xf32>
    tpu.vector_store %arg24[%c32, %c0_100], %97 {strides = array<i32>} : memref<96x224xf32, #tpu.memory_space<vmem>>, vector<32x224xf32>,
    %99 = vector.extract_strided_slice %94 {offsets = [0, 32], sizes = [32, 224], strides = [1, 1]} : vector<32x256xf32> to vector<32x224xf32>
    %c64_101 = arith.constant 64 : index
    %c0_102 = arith.constant 0 : index
    %100 = vector.load %arg24[%c64_101, %c0_102] : memref<96x224xf32, #tpu.memory_space<vmem>>, vector<32x224xf32>
    tpu.vector_store %arg24[%c64_101, %c0_102], %99 {strides = array<i32>} : memref<96x224xf32, #tpu.memory_space<vmem>>, vector<32x224xf32>,
    %c0_103 = arith.constant 0 : index
    %c0_104 = arith.constant 0 : index
    %c0_105 = arith.constant 0 : index
    %101 = vector.load %arg15[%c0_103, %c0_104, %c0_105] : memref<3x32x96xf32, #tpu.memory_space<vmem>>, vector<1x32x96xf32>
    %102 = vector.shape_cast %101 : vector<1x32x96xf32> to vector<32x96xf32>
    %c0_106 = arith.constant 0 : index
    %c0_107 = arith.constant 0 : index
    %103 = vector.load %arg24[%c0_106, %c0_107] : memref<96x224xf32, #tpu.memory_space<vmem>>, vector<96x222xf32>
    %cst_108 = arith.constant dense<0.000000e+00> : vector<32x222xf32>
    %104 = tpu.matmul %102, %103, %cst_108 {dimension_numbers = #tpu.dot_dimension_numbers<[1], [0], [0], [1], [0, 0, 1, 1], [], []>} : vector<32x96xf32>, vector<96x222xf32>, vector<32x222xf32> -> vector<32x222xf32>
    %c1_109 = arith.constant 1 : index
    %c0_110 = arith.constant 0 : index
    %c0_111 = arith.constant 0 : index
    %105 = vector.load %arg15[%c1_109, %c0_110, %c0_111] : memref<3x32x96xf32, #tpu.memory_space<vmem>>, vector<1x32x96xf32>
    %106 = vector.shape_cast %105 : vector<1x32x96xf32> to vector<32x96xf32>
    %c0_112 = arith.constant 0 : index
    %c1_113 = arith.constant 1 : index
    %107 = vector.load %arg24[%c0_112, %c1_113] : memref<96x224xf32, #tpu.memory_space<vmem>>, vector<96x222xf32>
    %cst_114 = arith.constant dense<0.000000e+00> : vector<32x222xf32>
    %108 = tpu.matmul %106, %107, %cst_114 {dimension_numbers = #tpu.dot_dimension_numbers<[1], [0], [0], [1], [0, 0, 1, 1], [], []>} : vector<32x96xf32>, vector<96x222xf32>, vector<32x222xf32> -> vector<32x222xf32>
    %109 = arith.addf %104, %108 : vector<32x222xf32>
    %c2_115 = arith.constant 2 : index
    %c0_116 = arith.constant 0 : index
    %c0_117 = arith.constant 0 : index
    %110 = vector.load %arg15[%c2_115, %c0_116, %c0_117] : memref<3x32x96xf32, #tpu.memory_space<vmem>>, vector<1x32x96xf32>
    %111 = vector.shape_cast %110 : vector<1x32x96xf32> to vector<32x96xf32>
    %c0_118 = arith.constant 0 : index
    %c2_119 = arith.constant 2 : index
    %112 = vector.load %arg24[%c0_118, %c2_119] : memref<96x224xf32, #tpu.memory_space<vmem>>, vector<96x222xf32>
    %cst_120 = arith.constant dense<0.000000e+00> : vector<32x222xf32>
    %113 = tpu.matmul %111, %112, %cst_120 {dimension_numbers = #tpu.dot_dimension_numbers<[1], [0], [0], [1], [0, 0, 1, 1], [], []>} : vector<32x96xf32>, vector<96x222xf32>, vector<32x222xf32> -> vector<32x222xf32>
    %114 = arith.addf %109, %113 : vector<32x222xf32>
    %c0_121 = arith.constant 0 : index
    %c0_122 = arith.constant 0 : index
    %115 = vector.load %arg16[%c0_121, %c0_122] : memref<32x1xf32, #tpu.memory_space<vmem>>, vector<32x1xf32>
    %116 = vector.broadcast %115 : vector<32x1xf32> to vector<32x222xf32>
    %117 = arith.addf %114, %116 : vector<32x222xf32>
    %cst_123 = arith.constant 0.000000e+00 : f32
    %118 = vector.broadcast %cst_123 : f32 to vector<32x222xf32>
    %119 = arith.maximumf %117, %118 : vector<32x222xf32>
    %c0_124 = arith.constant 0 : index
    %c0_125 = arith.constant 0 : index
    %120 = vector.load %arg17[%c0_124, %c0_125] : memref<222x900xf32, #tpu.memory_space<vmem>>, vector<222x900xf32>
    %cst_126 = arith.constant dense<0.000000e+00> : vector<32x900xf32>
    %121 = tpu.matmul %119, %120, %cst_126 {dimension_numbers = #tpu.dot_dimension_numbers<[1], [0], [0], [1], [0, 0, 1, 1], [], []>} : vector<32x222xf32>, vector<222x900xf32>, vector<32x900xf32> -> vector<32x900xf32>
    %122 = vector.extract_strided_slice %121 {offsets = [0, 0], sizes = [32, 840], strides = [1, 1]} : vector<32x900xf32> to vector<32x840xf32>
    %c0_127 = arith.constant 0 : index
    %c0_128 = arith.constant 0 : index
    %123 = vector.load %arg25[%c0_127, %c0_128] : memref<96x840xf32, #tpu.memory_space<vmem>>, vector<32x840xf32>
    tpu.vector_store %arg25[%c0_127, %c0_128], %122 {strides = array<i32>} : memref<96x840xf32, #tpu.memory_space<vmem>>, vector<32x840xf32>,
    %124 = vector.extract_strided_slice %121 {offsets = [0, 30], sizes = [32, 840], strides = [1, 1]} : vector<32x900xf32> to vector<32x840xf32>
    %c32_129 = arith.constant 32 : index
    %c0_130 = arith.constant 0 : index
    %125 = vector.load %arg25[%c32_129, %c0_130] : memref<96x840xf32, #tpu.memory_space<vmem>>, vector<32x840xf32>
    tpu.vector_store %arg25[%c32_129, %c0_130], %124 {strides = array<i32>} : memref<96x840xf32, #tpu.memory_space<vmem>>, vector<32x840xf32>,
    %126 = vector.extract_strided_slice %121 {offsets = [0, 60], sizes = [32, 840], strides = [1, 1]} : vector<32x900xf32> to vector<32x840xf32>
    %c64_131 = arith.constant 64 : index
    %c0_132 = arith.constant 0 : index
    %127 = vector.load %arg25[%c64_131, %c0_132] : memref<96x840xf32, #tpu.memory_space<vmem>>, vector<32x840xf32>
    tpu.vector_store %arg25[%c64_131, %c0_132], %126 {strides = array<i32>} : memref<96x840xf32, #tpu.memory_space<vmem>>, vector<32x840xf32>,
    %c0_133 = arith.constant 0 : index
    %c0_134 = arith.constant 0 : index
    %c0_135 = arith.constant 0 : index
    %128 = vector.load %arg18[%c0_133, %c0_134, %c0_135] : memref<3x1x96xf32, #tpu.memory_space<vmem>>, vector<1x1x96xf32>
    %129 = vector.shape_cast %128 : vector<1x1x96xf32> to vector<1x96xf32>
    %c0_136 = arith.constant 0 : index
    %c0_137 = arith.constant 0 : index
    %130 = vector.load %arg25[%c0_136, %c0_137] : memref<96x840xf32, #tpu.memory_space<vmem>>, vector<96x838xf32>
    %cst_138 = arith.constant dense<0.000000e+00> : vector<1x838xf32>
    %131 = tpu.matmul %129, %130, %cst_138 {dimension_numbers = #tpu.dot_dimension_numbers<[1], [0], [0], [1], [0, 0, 1, 1], [], []>} : vector<1x96xf32>, vector<96x838xf32>, vector<1x838xf32> -> vector<1x838xf32>
    %c1_139 = arith.constant 1 : index
    %c0_140 = arith.constant 0 : index
    %c0_141 = arith.constant 0 : index
    %132 = vector.load %arg18[%c1_139, %c0_140, %c0_141] : memref<3x1x96xf32, #tpu.memory_space<vmem>>, vector<1x1x96xf32>
    %133 = vector.shape_cast %132 : vector<1x1x96xf32> to vector<1x96xf32>
    %c0_142 = arith.constant 0 : index
    %c1_143 = arith.constant 1 : index
    %134 = vector.load %arg25[%c0_142, %c1_143] : memref<96x840xf32, #tpu.memory_space<vmem>>, vector<96x838xf32>
    %cst_144 = arith.constant dense<0.000000e+00> : vector<1x838xf32>
    %135 = tpu.matmul %133, %134, %cst_144 {dimension_numbers = #tpu.dot_dimension_numbers<[1], [0], [0], [1], [0, 0, 1, 1], [], []>} : vector<1x96xf32>, vector<96x838xf32>, vector<1x838xf32> -> vector<1x838xf32>
    %136 = arith.addf %131, %135 : vector<1x838xf32>
    %c2_145 = arith.constant 2 : index
    %c0_146 = arith.constant 0 : index
    %c0_147 = arith.constant 0 : index
    %137 = vector.load %arg18[%c2_145, %c0_146, %c0_147] : memref<3x1x96xf32, #tpu.memory_space<vmem>>, vector<1x1x96xf32>
    %138 = vector.shape_cast %137 : vector<1x1x96xf32> to vector<1x96xf32>
    %c0_148 = arith.constant 0 : index
    %c2_149 = arith.constant 2 : index
    %139 = vector.load %arg25[%c0_148, %c2_149] : memref<96x840xf32, #tpu.memory_space<vmem>>, vector<96x838xf32>
    %cst_150 = arith.constant dense<0.000000e+00> : vector<1x838xf32>
    %140 = tpu.matmul %138, %139, %cst_150 {dimension_numbers = #tpu.dot_dimension_numbers<[1], [0], [0], [1], [0, 0, 1, 1], [], []>} : vector<1x96xf32>, vector<96x838xf32>, vector<1x838xf32> -> vector<1x838xf32>
    %141 = arith.addf %136, %140 : vector<1x838xf32>
    %c0_151 = arith.constant 0 : index
    %c0_152 = arith.constant 0 : index
    %142 = vector.load %arg20[%c0_151, %c0_152] : memref<838x784xf32, #tpu.memory_space<vmem>>, vector<838x784xf32>
    %cst_153 = arith.constant dense<0.000000e+00> : vector<1x784xf32>
    %143 = tpu.matmul %141, %142, %cst_153 {dimension_numbers = #tpu.dot_dimension_numbers<[1], [0], [0], [1], [0, 0, 1, 1], [], []>} : vector<1x838xf32>, vector<838x784xf32>, vector<1x784xf32> -> vector<1x784xf32>
    %c0_154 = arith.constant 0 : index
    %c0_155 = arith.constant 0 : index
    %144 = vector.load %arg19[%c0_154, %c0_155] : memref<1x1xf32, #tpu.memory_space<vmem>>, vector<1x1xf32>
    %145 = vector.broadcast %144 : vector<1x1xf32> to vector<1x784xf32>
    %146 = arith.addf %143, %145 : vector<1x784xf32>
    %147 = math.tanh %146 : vector<1x784xf32>
    %148 = vector.shape_cast %147 : vector<1x784xf32> to vector<1x1x784xf32>
    %c0_156 = arith.constant 0 : index
    %c0_157 = arith.constant 0 : index
    %c0_158 = arith.constant 0 : index
    %149 = vector.load %arg21[%c0_156, %c0_157, %c0_158] : memref<1x1x784xf32, #tpu.memory_space<vmem>>, vector<1x1x784xf32>
    tpu.vector_store %arg21[%c0_156, %c0_157, %c0_158], %148 {strides = array<i32>} : memref<1x1x784xf32, #tpu.memory_space<vmem>>, vector<1x1x784xf32>,
    return
  }
  func.func @transform_0(%arg0: i32) -> (i32, i32, i32) {
    %c0_i32 = arith.constant 0 : i32
    %c0_i32_0 = arith.constant 0 : i32
    %c0_i32_1 = arith.constant 0 : i32
    return %arg0, %c0_i32, %c0_i32_0 : i32, i32, i32
  }
  func.func @transform_1(%arg0: i32) -> (i32, i32) {
    %c0_i32 = arith.constant 0 : i32
    %c0_i32_0 = arith.constant 0 : i32
    %c0_i32_1 = arith.constant 0 : i32
    return %c0_i32, %c0_i32_0 : i32, i32
  }
  func.func @transform_2(%arg0: i32) -> (i32, i32) {
    %c0_i32 = arith.constant 0 : i32
    %c0_i32_0 = arith.constant 0 : i32
    %c0_i32_1 = arith.constant 0 : i32
    return %c0_i32, %c0_i32_0 : i32, i32
  }
  func.func @transform_3(%arg0: i32) -> (i32, i32) {
    %c0_i32 = arith.constant 0 : i32
    %c0_i32_0 = arith.constant 0 : i32
    %c0_i32_1 = arith.constant 0 : i32
    return %c0_i32, %c0_i32_0 : i32, i32
  }
  func.func @transform_4(%arg0: i32) -> (i32, i32) {
    %c0_i32 = arith.constant 0 : i32
    %c0_i32_0 = arith.constant 0 : i32
    %c0_i32_1 = arith.constant 0 : i32
    return %c0_i32, %c0_i32_0 : i32, i32
  }
  func.func @transform_5(%arg0: i32) -> (i32, i32, i32) {
    %c0_i32 = arith.constant 0 : i32
    %c0_i32_0 = arith.constant 0 : i32
    %c0_i32_1 = arith.constant 0 : i32
    %c0_i32_2 = arith.constant 0 : i32
    return %c0_i32, %c0_i32_0, %c0_i32_1 : i32, i32, i32
  }
  func.func @transform_6(%arg0: i32) -> (i32, i32) {
    %c0_i32 = arith.constant 0 : i32
    %c0_i32_0 = arith.constant 0 : i32
    %c0_i32_1 = arith.constant 0 : i32
    return %c0_i32, %c0_i32_0 : i32, i32
  }
  func.func @transform_7(%arg0: i32) -> (i32, i32) {
    %c0_i32 = arith.constant 0 : i32
    %c0_i32_0 = arith.constant 0 : i32
    %c0_i32_1 = arith.constant 0 : i32
    return %c0_i32, %c0_i32_0 : i32, i32
  }
  func.func @transform_8(%arg0: i32) -> (i32, i32, i32) {
    %c0_i32 = arith.constant 0 : i32
    %c0_i32_0 = arith.constant 0 : i32
    %c0_i32_1 = arith.constant 0 : i32
    %c0_i32_2 = arith.constant 0 : i32
    return %c0_i32, %c0_i32_0, %c0_i32_1 : i32, i32, i32
  }
  func.func @transform_9(%arg0: i32) -> (i32, i32) {
    %c0_i32 = arith.constant 0 : i32
    %c0_i32_0 = arith.constant 0 : i32
    %c0_i32_1 = arith.constant 0 : i32
    return %c0_i32, %c0_i32_0 : i32, i32
  }
  func.func @transform_10(%arg0: i32) -> (i32, i32) {
    %c0_i32 = arith.constant 0 : i32
    %c0_i32_0 = arith.constant 0 : i32
    %c0_i32_1 = arith.constant 0 : i32
    return %c0_i32, %c0_i32_0 : i32, i32
  }
  func.func @transform_11(%arg0: i32) -> (i32, i32, i32) {
    %c0_i32 = arith.constant 0 : i32
    %c0_i32_0 = arith.constant 0 : i32
    %c0_i32_1 = arith.constant 0 : i32
    %c0_i32_2 = arith.constant 0 : i32
    return %c0_i32, %c0_i32_0, %c0_i32_1 : i32, i32, i32
  }
  func.func @transform_12(%arg0: i32) -> (i32, i32) {
    %c0_i32 = arith.constant 0 : i32
    %c0_i32_0 = arith.constant 0 : i32
    %c0_i32_1 = arith.constant 0 : i32
    return %c0_i32, %c0_i32_0 : i32, i32
  }
  func.func @transform_13(%arg0: i32) -> (i32, i32) {
    %c0_i32 = arith.constant 0 : i32
    %c0_i32_0 = arith.constant 0 : i32
    %c0_i32_1 = arith.constant 0 : i32
    return %c0_i32, %c0_i32_0 : i32, i32
  }
  func.func @transform_14(%arg0: i32) -> (i32, i32, i32) {
    %c0_i32 = arith.constant 0 : i32
    %c0_i32_0 = arith.constant 0 : i32
    %c0_i32_1 = arith.constant 0 : i32
    %c0_i32_2 = arith.constant 0 : i32
    return %c0_i32, %c0_i32_0, %c0_i32_1 : i32, i32, i32
  }
  func.func @transform_15(%arg0: i32) -> (i32, i32) {
    %c0_i32 = arith.constant 0 : i32
    %c0_i32_0 = arith.constant 0 : i32
    %c0_i32_1 = arith.constant 0 : i32
    return %c0_i32, %c0_i32_0 : i32, i32
  }
  func.func @transform_16(%arg0: i32) -> (i32, i32) {
    %c0_i32 = arith.constant 0 : i32
    %c0_i32_0 = arith.constant 0 : i32
    %c0_i32_1 = arith.constant 0 : i32
    return %c0_i32, %c0_i32_0 : i32, i32
  }
  func.func @transform_17(%arg0: i32) -> (i32, i32, i32) {
    %c0_i32 = arith.constant 0 : i32
    %c0_i32_0 = arith.constant 0 : i32
    %c0_i32_1 = arith.constant 0 : i32
    %c0_i32_2 = arith.constant 0 : i32
    return %c0_i32, %c0_i32_0, %c0_i32_1 : i32, i32, i32
  }
  func.func @transform_18(%arg0: i32) -> (i32, i32) {
    %c0_i32 = arith.constant 0 : i32
    %c0_i32_0 = arith.constant 0 : i32
    %c0_i32_1 = arith.constant 0 : i32
    return %c0_i32, %c0_i32_0 : i32, i32
  }
  func.func @transform_19(%arg0: i32) -> (i32, i32) {
    %c0_i32 = arith.constant 0 : i32
    %c0_i32_0 = arith.constant 0 : i32
    %c0_i32_1 = arith.constant 0 : i32
    return %c0_i32, %c0_i32_0 : i32, i32
  }
  func.func @transform_20(%arg0: i32) -> (i32, i32, i32) {
    %c0_i32 = arith.constant 0 : i32
    %c0_i32_0 = arith.constant 0 : i32
    %c0_i32_1 = arith.constant 0 : i32
    return %arg0, %c0_i32, %c0_i32_0 : i32, i32, i32
  }
}

</mosaic_0001>

<bundles_post_ra>
// kernel: conv_decoder_forward.1
= control target key start
LH: loop header
LB: loop body
LE: loop exit
PB: predicated region body
PF: predicated region fallthrough
CT: control target
= control target key end

     0   :  { %s10449_s23 = smov 0   ;;  %s17729_s0 = inlined_call_operand.vmem [shape: f32[2,32,1], index: 0, kind: input, shape index: {}]   ;;  %s17730_s1 = inlined_call_operand.vmem [shape: f32[64,512], index: 1, kind: input, shape index: {}]   ;;  %s17731_s2 = inlined_call_operand.vmem [shape: f32[64,16], index: 2, kind: input, shape index: {}]   ;;  %s17732_s3 = inlined_call_operand.vmem [shape: f32[512,16], index: 3, kind: input, shape index: {}]   ;;  %s17733_s4 = inlined_call_operand.vmem [shape: f32[16,81], index: 4, kind: input, shape index: {}]   ;;  %s17734_s5 = inlined_call_operand.vmem [shape: f32[3,64,192], index: 5, kind: input, shape index: {}]   ;;  %s17735_s6 = inlined_call_operand.vmem [shape: f32[64,1], index: 6, kind: input, shape index: {}]   ;;  %s17736_s7 = inlined_call_operand.vmem [shape: f32[61,81], index: 7, kind: input, shape index: {}]   ;;  %s17737_s8 = inlined_call_operand.vmem [shape: f32[3,64,192], index: 8, kind: input, shape index: {}]   ;;  %s17738_s9 = inlined_call_operand.vmem [shape: f32[64,1], index: 9, kind: input, shape index: {}]   ;;  %s17739_s10 = inlined_call_operand.vmem [shape: f32[61,256], index: 10, kind: input, shape index: {}]   ;;  %s17740_s11 = inlined_call_operand.vmem [shape: f32[3,32,192], index: 11, kind: input, shape index: {}]   ;;  %s17741_s12 = inlined_call_operand.vmem [shape: f32[32,1], index: 12, kind: input, shape index: {}]   ;;  %s17742_s13 = inlined_call_operand.vmem [shape: f32[222,256], index: 13, kind: input, shape index: {}]   ;;  %s17743_s14 = inlined_call_operand.vmem [shape: f32[3,32,96], index: 14, kind: input, shape index: {}]   ;;  %s17744_s15 = inlined_call_operand.vmem [shape: f32[32,1], index: 15, kind: input, shape index: {}]   ;;  %s17745_s16 = inlined_call_operand.vmem [shape: f32[222,900], index: 16, kind: input, shape index: {}]   ;;  %s17746_s17 = inlined_call_operand.vmem [shape: f32[3,1,96], index: 17, kind: input, shape index: {}]   ;;  %s17747_s18 = inlined_call_operand.<no memory space> [shape: f32[1,1], index: 18, kind: input, shape index: {}]   ;;  %s17748_s19 = inlined_call_operand.vmem [shape: f32[838,784], index: 19, kind: input, shape index: {}]   ;;  %s17749_s20 = inlined_call_operand.vmem [shape: f32[2,1,784], index: 20, kind: output, shape index: {}]  }
   0x1   :  { %17831 = sst [smem:[#allocation56_spill]] %s17729_s0  ;;  %v25_v0 = vstv %s17747_s18 }
   0x2   :  { %17832 = sst [smem:[#allocation57_spill]] %s17730_s1  ;;  %26 = vst [vmem:[#allocation6] sm:$0x1] %v25_v0 }
   0x3   :  { %17833 = sst [smem:[#allocation58_spill]] %s17731_s2 }
   0x4   :  { %17834 = sst [smem:[#allocation59_spill]] %s17732_s3 }
   0x5   :  { %17835 = sst [smem:[#allocation60_spill]] %s17733_s4 }
   0x6 LB: > { %s9532_s24 = sadd.s32 4294967295, %s10327_s23   ;;  %p9536_p0 = scmp.ge.s32.totalorder %s10327_s23, 1  ;;  %s10327_s23 = sphi %s10449_s23, %s32_s23  }
   0x7   : > { %p564_p1 = scmp.lt.s32.totalorder %s10327_s23, 3 }
   0x9   : > { %p565_p2 = pnand %p9536_p0, %p564_p1 }
   0xb   : > { %568 = sbr.rel (%p565_p2) target bundleno = 4909 (0x132d), region = 100 }
  0x10   : > { %p621_p3 = scmp.lt.s32.totalorder %s9532_s24, 1  ;;  %v10329_v1 = vmov 0   ;;  %s17836_s3 = sld [smem:[#allocation56_spill]]  ;;  %vm1042_vm0 = vcmask 130048   ;;  %vm1172_vm1 = vcmask 515072   ;;  %vm1406_vm2 = vcmask 523264  }
  0x11   : > { %10244 = vset.pattern.permute.xlu1 %v10329_v1  ;;  %10243 = vset.pattern.permute.xlu0 %v10329_v1  ;;  %s17837_s4 = sld [smem:[#allocation57_spill]]  ;;  %s17758_s21 = smov 119   ;;  %vm1988_vm3 = vcmask 1044480   ;;  %vm1963_vm4 = vcmask 498688   ;;  %vm3038_vm5 = vcmask 785408   ;;  %vm3102_vm6 = vcmask 916480  }
  0x12   : > { %s17957_s24 = smov (!%p621_p3, %s9532_s24), 1  ;;  %s17838_s1 = sld [smem:[#allocation59_spill]]  ;;  %vm3424_vm7 = vcmask 1039360   ;;  %vm3804_vm8 = vcmask 1031168   ;;  %vm4095_vm9 = vcmask 1045504   ;;  %vm4082_vm10 = vcmask 769024  }
  0x13   : > { %s9783_s18 = sshll.u32 %s17957_s24, 5  ;;  %s17840_s27 = sld [smem:[#allocation58_spill]]  ;;  %vm5482_vm11 = vcmask 588800   ;;  %vm5738_vm12 = vcmask 556032   ;;  %vm5589_vm13 = vcmask 801792   ;;  %vm10339_vm14 = vmmov 0  }
  0x14   : > { %s17756_s22 = smov 110   ;;  %s17760_s0 = smov 126   ;;  %vm8254_vm15 = vcmask 572416  }
  0x15   : > { %s17842_s28 = smov 110   ;;  %s17844_s25 = smov 126  }
  0x16   : > { %s625_s26 = scalar_lea.vmem %s17836_s3, %s9783_s18  ;;  %s17839_s3 = sld [smem:[#allocation60_spill]] }
  0x17   : > { %v633_v2 = vld [vmem:[%s625_s26 + $0x18] sm:$0xff]  ;;  %v631_v3 = vld [vmem:[%s625_s26 + $0x8] sm:$0xff]  ;;  %v632_v4 = vld [vmem:[%s625_s26 + $0x10] sm:$0xff]  ;;  %s17754_s18 = smov 127   ;;  %s17766_s29 = smov 96  }
  0x18   : > { %715 = vperm.xlu0 %10243, %v633_v2   ;;  %705 = vperm.xlu1 %10244, %v631_v3   ;;  %v630_v5 = vld [vmem:[%s625_s26] sm:$0xff]  ;;  %v783_v6 = vld [vmem:[%s17837_s4 + $0x8] sm:$0xff]  ;;  %v785_v7 = vld [vmem:[%s17837_s4 + $0x18] sm:$0xff]  ;;  %s17841_s26 = smov 119  }
  0x19   : > { %886 = vmatprep.mubr.f32.mxu0 %v783_v6  ;;  %991 = vmatprep.mubr.f32.mxu1 %v785_v7  ;;  %v665_v8 = vld [vmem:[%s17838_s1 + $0xf8] sm:$0xff]  ;;  %v664_v18 = vld [vmem:[%s17838_s1 + $0xf0] sm:$0xff]  ;;  %v663_v23 = vld [vmem:[%s17838_s1 + $0xe8] sm:$0xff] }
  0x1a   : > { %v697_v9 = vld [vmem:[%s17838_s1 + $0x1f8] sm:$0xff]  ;;  %v696_v19 = vld [vmem:[%s17838_s1 + $0x1f0] sm:$0xff]  ;;  %v695_v24 = vld [vmem:[%s17838_s1 + $0x1e8] sm:$0xff] }
  0x1b   : > { %v649_v10 = vld [vmem:[%s17838_s1 + $0x78] sm:$0xff]  ;;  %v648_v20 = vld [vmem:[%s17838_s1 + $0x70] sm:$0xff]  ;;  %v647_v29 = vld [vmem:[%s17838_s1 + $0x68] sm:$0xff] }
  0x1c   : > { %710 = vperm.xlu0 %10243, %v632_v4   ;;  %700 = vperm.xlu1 %10244, %v630_v5   ;;  %v681_v11 = vld [vmem:[%s17838_s1 + $0x178] sm:$0xff]  ;;  %v680_v21 = vld [vmem:[%s17838_s1 + $0x170] sm:$0xff]  ;;  %v679_v30 = vld [vmem:[%s17838_s1 + $0x168] sm:$0xff] }
  0x1d   : > { %v662_v32 = vld [vmem:[%s17838_s1 + $0xe0] sm:$0xff]  ;;  %v661_v40 = vld [vmem:[%s17838_s1 + $0xd8] sm:$0xff]  ;;  %v660_v48 = vld [vmem:[%s17838_s1 + $0xd0] sm:$0xff] }
  0x1e   : > { %v694_v33 = vld [vmem:[%s17838_s1 + $0x1e0] sm:$0xff]  ;;  %v693_v41 = vld [vmem:[%s17838_s1 + $0x1d8] sm:$0xff]  ;;  %v692_v49 = vld [vmem:[%s17838_s1 + $0x1d0] sm:$0xff] }
  0x1f   : > { %v646_v36 = vld [vmem:[%s17838_s1 + $0x60] sm:$0xff]  ;;  %v645_v44 = vld [vmem:[%s17838_s1 + $0x58] sm:$0xff]  ;;  %v644_v52 = vld [vmem:[%s17838_s1 + $0x50] sm:$0xff] }
  0x20   : > { %v678_v37 = vld [vmem:[%s17838_s1 + $0x160] sm:$0xff]  ;;  %v677_v45 = vld [vmem:[%s17838_s1 + $0x158] sm:$0xff]  ;;  %v676_v53 = vld [vmem:[%s17838_s1 + $0x150] sm:$0xff] }
  0x21   : > { %v659_v56 = vld [vmem:[%s17838_s1 + $0xc8] sm:$0xff]  ;;  %v658_v0 = vld [vmem:[%s17838_s1 + $0xc0] sm:$0xff] }
  0x22   : > { %v691_v57 = vld [vmem:[%s17838_s1 + $0x1c8] sm:$0xff]  ;;  %v690_v1 = vld [vmem:[%s17838_s1 + $0x1c0] sm:$0xff] }
  0x23   : > { %v643_v60 = vld [vmem:[%s17838_s1 + $0x48] sm:$0xff]  ;;  %v642_v4 = vld [vmem:[%s17838_s1 + $0x40] sm:$0xff] }
  0x24   : > { %v675_v61 = vld [vmem:[%s17838_s1 + $0x148] sm:$0xff]  ;;  %v674_v5 = vld [vmem:[%s17838_s1 + $0x140] sm:$0xff] }
  0x93   : > { %v10481_v12 = vpop.permute.xlu0 %715  ;;  %v10483_v13 = vpop.permute.xlu1 %705 }
  0x94   : > { %v749_v14 = vmul.f32 %v10481_v12, %v665_v8  ;;  %v781_v15 = vmul.f32 %v10481_v12, %v697_v9  ;;  %v733_v16 = vmul.f32 %v10481_v12, %v649_v10  ;;  %v765_v17 = vmul.f32 %v10481_v12, %v681_v11  ;;  %v657_v8 = vld [vmem:[%s17838_s1 + $0xb8] sm:$0xff] }
  0x95   : > { %v747_v34 = vmul.f32 %v10483_v13, %v663_v23  ;;  %v779_v35 = vmul.f32 %v10483_v13, %v695_v24  ;;  %v731_v38 = vmul.f32 %v10483_v13, %v647_v29  ;;  %v763_v39 = vmul.f32 %v10483_v13, %v679_v30  ;;  %v689_v9 = vld [vmem:[%s17838_s1 + $0x1b8] sm:$0xff]  ;;  %v640_v23 = vld [vmem:[%s17838_s1 + $0x30] sm:$0xff] }
  0x96   : > { %9784 = vmatprep.subr.mxu0 %v749_v14  ;;  %9840 = vmatprep.subr.mxu1 %v781_v15  ;;  %v745_v50 = vmul.f32 %v10481_v12, %v661_v40  ;;  %v777_v51 = vmul.f32 %v10481_v12, %v693_v41  ;;  %v729_v54 = vmul.f32 %v10481_v12, %v645_v44  ;;  %v641_v14 = vld [vmem:[%s17838_s1 + $0x38] sm:$0xff]  ;;  %v672_v24 = vld [vmem:[%s17838_s1 + $0x130] sm:$0xff]  ;;  %v638_v40 = vld [vmem:[%s17838_s1 + $0x20] sm:$0xff] }
  0x97   : > { %9785 = vmatpush3.msra.mxu0 %v733_v16  ;;  %9841 = vmatpush3.msra.mxu1 %v765_v17  ;;  %v10501_v22 = vpop.permute.xlu0 %710  ;;  %v10519_v31 = vpop.permute.xlu1 %700  ;;  %v761_v55 = vmul.f32 %v10481_v12, %v677_v45  ;;  %v743_v2 = vmul.f32 %v10483_v13, %v659_v56  ;;  %v775_v3 = vmul.f32 %v10483_v13, %v691_v57  ;;  %v673_v15 = vld [vmem:[%s17838_s1 + $0x138] sm:$0xff]  ;;  %v670_v41 = vld [vmem:[%s17838_s1 + $0x120] sm:$0xff]  ;;  %v636_v56 = vld [vmem:[%s17838_s1 + $0x10] sm:$0xff] }
  0x98   : > { %v748_v25 = vmul.f32 %v10501_v22, %v664_v18  ;;  %v780_v26 = vmul.f32 %v10501_v22, %v696_v19  ;;  %v732_v27 = vmul.f32 %v10501_v22, %v648_v20  ;;  %v764_v28 = vmul.f32 %v10501_v22, %v680_v21  ;;  %v656_v18 = vld [vmem:[%s17838_s1 + $0xb0] sm:$0xff]  ;;  %v653_v44 = vld [vmem:[%s17838_s1 + $0x98] sm:$0xff] }
  0x99   : > { %v746_v42 = vmul.f32 %v10519_v31, %v662_v32  ;;  %v778_v43 = vmul.f32 %v10519_v31, %v694_v33  ;;  %v730_v46 = vmul.f32 %v10519_v31, %v646_v36  ;;  %v762_v47 = vmul.f32 %v10519_v31, %v678_v37  ;;  %v688_v19 = vld [vmem:[%s17838_s1 + $0x1b0] sm:$0xff]  ;;  %v639_v32 = vld [vmem:[%s17838_s1 + $0x28] sm:$0xff]  ;;  %v654_v36 = vld [vmem:[%s17838_s1 + $0xa0] sm:$0xff] }
  0x9a   : > { %9786 = vmatprep.subr.mxu0 %v748_v25  ;;  %9842 = vmatprep.subr.mxu1 %v780_v26  ;;  %v744_v58 = vmul.f32 %v10501_v22, %v660_v48  ;;  %v776_v59 = vmul.f32 %v10501_v22, %v692_v49  ;;  %v728_v62 = vmul.f32 %v10501_v22, %v644_v52  ;;  %v671_v33 = vld [vmem:[%s17838_s1 + $0x128] sm:$0xff]  ;;  %v686_v37 = vld [vmem:[%s17838_s1 + $0x1a0] sm:$0xff]  ;;  %v685_v45 = vld [vmem:[%s17838_s1 + $0x198] sm:$0xff] }
  0x9b   : > { %9787 = vmatpush3.msra.mxu0 %v732_v27  ;;  %9843 = vmatpush3.msra.mxu1 %v764_v28  ;;  %v760_v63 = vmul.f32 %v10501_v22, %v676_v53  ;;  %v727_v6 = vmul.f32 %v10483_v13, %v643_v60  ;;  %v759_v7 = vmul.f32 %v10483_v13, %v675_v61  ;;  %v655_v27 = vld [vmem:[%s17838_s1 + $0xa8] sm:$0xff]  ;;  %v637_v48 = vld [vmem:[%s17838_s1 + $0x18] sm:$0xff]  ;;  %v652_v52 = vld [vmem:[%s17838_s1 + $0x90] sm:$0xff] }
  0x9c   : > { %9788 = vmatprep.subr.mxu0 %v747_v34  ;;  %9844 = vmatprep.subr.mxu1 %v779_v35  ;;  %v742_v10 = vmul.f32 %v10519_v31, %v658_v0  ;;  %v774_v11 = vmul.f32 %v10519_v31, %v690_v1  ;;  %v726_v16 = vmul.f32 %v10519_v31, %v642_v4  ;;  %v687_v28 = vld [vmem:[%s17838_s1 + $0x1a8] sm:$0xff]  ;;  %v669_v49 = vld [vmem:[%s17838_s1 + $0x118] sm:$0xff]  ;;  %v684_v53 = vld [vmem:[%s17838_s1 + $0x190] sm:$0xff] }
  0x9d   : > { %9789 = vmatpush3.msra.mxu0 %v731_v38  ;;  %9845 = vmatpush3.msra.mxu1 %v763_v39  ;;  %v758_v17 = vmul.f32 %v10519_v31, %v674_v5  ;;  %v741_v20 = vmul.f32 %v10481_v12, %v657_v8  ;;  %v773_v21 = vmul.f32 %v10481_v12, %v689_v9  ;;  %v668_v57 = vld [vmem:[%s17838_s1 + $0x110] sm:$0xff]  ;;  %v651_v60 = vld [vmem:[%s17838_s1 + $0x88] sm:$0xff]  ;;  %v682_v4 = vld [vmem:[%s17838_s1 + $0x180] sm:$0xff] }
  0x9e   : > { %9790 = vmatprep.subr.mxu0 %v746_v42  ;;  %9846 = vmatprep.subr.mxu1 %v778_v43  ;;  %v725_v25 = vmul.f32 %v10481_v12, %v641_v14  ;;  %v757_v26 = vmul.f32 %v10481_v12, %v673_v15  ;;  %v740_v29 = vmul.f32 %v10501_v22, %v656_v18  ;;  %v683_v61 = vld [vmem:[%s17838_s1 + $0x188] sm:$0xff]  ;;  %v789_v18 = vld [vmem:[%s17837_s4 + $0x38] sm:$0xff] }
  0x9f   : > { %9791 = vmatpush3.msra.mxu0 %v730_v46  ;;  %9847 = vmatpush3.msra.mxu1 %v762_v47  ;;  %v772_v30 = vmul.f32 %v10501_v22, %v688_v19  ;;  %v724_v34 = vmul.f32 %v10501_v22, %v640_v23  ;;  %v756_v35 = vmul.f32 %v10501_v22, %v672_v24  ;;  %v635_v0 = vld [vmem:[%s17838_s1 + $0x8] sm:$0xff]  ;;  %v786_v19 = vld [vmem:[%s17837_s4 + $0x20] sm:$0xff]  ;;  %v793_v23 = vld [vmem:[%s17837_s4 + $0x58] sm:$0xff] }
  0xa0   : > { %9792 = vmatprep.subr.mxu0 %v745_v50  ;;  %9848 = vmatprep.subr.mxu1 %v777_v51  ;;  %v739_v38 = vmul.f32 %v10483_v13, %v655_v27  ;;  %v771_v39 = vmul.f32 %v10483_v13, %v687_v28  ;;  %v723_v42 = vmul.f32 %v10483_v13, %v639_v32  ;;  %v790_v24 = vld [vmem:[%s17837_s4 + $0x40] sm:$0xff]  ;;  %v797_v27 = vld [vmem:[%s17837_s4 + $0x78] sm:$0xff] }
  0xa1   : > { %9793 = vmatpush3.msra.mxu0 %v729_v54  ;;  %9849 = vmatpush3.msra.mxu1 %v761_v55  ;;  %v755_v43 = vmul.f32 %v10483_v13, %v671_v33  ;;  %v738_v46 = vmul.f32 %v10519_v31, %v654_v36  ;;  %v770_v47 = vmul.f32 %v10519_v31, %v686_v37  ;;  %v794_v28 = vld [vmem:[%s17837_s4 + $0x60] sm:$0xff]  ;;  %v801_v32 = vld [vmem:[%s17837_s4 + $0x98] sm:$0xff] }
  0xa2   : > { %9794 = vmatprep.subr.mxu0 %v744_v58  ;;  %9850 = vmatprep.subr.mxu1 %v776_v59  ;;  %v722_v50 = vmul.f32 %v10519_v31, %v638_v40  ;;  %v754_v51 = vmul.f32 %v10519_v31, %v670_v41  ;;  %v737_v54 = vmul.f32 %v10481_v12, %v653_v44  ;;  %v798_v33 = vld [vmem:[%s17837_s4 + $0x80] sm:$0xff]  ;;  %v805_v36 = vld [vmem:[%s17837_s4 + $0xb8] sm:$0xff] }
  0xa3   : > { %9795 = vmatpush3.msra.mxu0 %v728_v62  ;;  %9851 = vmatpush3.msra.mxu1 %v760_v63  ;;  %v769_v55 = vmul.f32 %v10481_v12, %v685_v45  ;;  %v721_v58 = vmul.f32 %v10481_v12, %v637_v48  ;;  %v753_v59 = vmul.f32 %v10481_v12, %v669_v49  ;;  %v667_v12 = vld [vmem:[%s17838_s1 + $0x108] sm:$0xff]  ;;  %v802_v37 = vld [vmem:[%s17837_s4 + $0xa0] sm:$0xff]  ;;  %v809_v40 = vld [vmem:[%s17837_s4 + $0xd8] sm:$0xff] }
  0xa4   : > { %9796 = vmatprep.subr.mxu0 %v743_v2  ;;  %9852 = vmatprep.subr.mxu1 %v775_v3  ;;  %v736_v62 = vmul.f32 %v10501_v22, %v652_v52  ;;  %v768_v63 = vmul.f32 %v10501_v22, %v684_v53  ;;  %v720_v1 = vmul.f32 %v10501_v22, %v636_v56  ;;  %v650_v3 = vld [vmem:[%s17838_s1 + $0x80] sm:$0xff]  ;;  %v813_v44 = vld [vmem:[%s17837_s4 + $0xf8] sm:$0xff] }
  0xa5   : > { %9797 = vmatpush3.msra.mxu0 %v727_v6  ;;  %9853 = vmatpush3.msra.mxu1 %v759_v7  ;;  %v752_v2 = vmul.f32 %v10501_v22, %v668_v57  ;;  %v735_v5 = vmul.f32 %v10483_v13, %v651_v60  ;;  %v767_v6 = vmul.f32 %v10483_v13, %v683_v61  ;;  %v634_v7 = vld [vmem:[%s17838_s1] sm:$0xff] }
  0xa6   : > { %9798 = vmatprep.subr.mxu0 %v742_v10  ;;  %9854 = vmatprep.subr.mxu1 %v774_v11  ;;  %v666_v22 = vld [vmem:[%s17838_s1 + $0x100] sm:$0xff]  ;;  %v719_v8 = vmul.f32 %v10483_v13, %v635_v0  ;;  %v751_v9 = vmul.f32 %v10483_v13, %v667_v12  ;;  %v734_v10 = vmul.f32 %v10519_v31, %v650_v3  ;;  %v784_v13 = vld [vmem:[%s17837_s4 + $0x10] sm:$0xff]  ;;  %s10337_s1 = smov 68  }
  0xa7   : > { %9799 = vmatpush3.msra.mxu0 %v726_v16  ;;  %9855 = vmatpush3.msra.mxu1 %v758_v17  ;;  %v766_v11 = vmul.f32 %v10519_v31, %v682_v4  ;;  %v718_v14 = vmul.f32 %v10519_v31, %v634_v7  ;;  %v750_v15 = vmul.f32 %v10519_v31, %v666_v22  ;;  %v782_v16 = vld [vmem:[%s17837_s4] sm:$0xff]  ;;  %v787_v17 = vld [vmem:[%s17837_s4 + $0x28] sm:$0xff]  ;;  %v816_v3 = vld [vmem:[%s17840_s27 + $0x10] sm:$0xff] }
  0xa8   : > { %9800 = vmatprep.subr.mxu0 %v741_v20  ;;  %9856 = vmatprep.subr.mxu1 %v773_v21  ;;  %v1041_v31 = vld [vmem:[%s17839_s3 + $0x8] sm:$0xff]  ;;  %v788_v20 = vld [vmem:[%s17837_s4 + $0x30] sm:$0xff]  ;;  %v806_v41 = vld [vmem:[%s17837_s4 + $0xc0] sm:$0xff] }
  0xa9   : > { %9801 = vmatpush3.msra.mxu0 %v725_v25  ;;  %9857 = vmatpush3.msra.mxu1 %v757_v26  ;;  %v791_v21 = vld [vmem:[%s17837_s4 + $0x48] sm:$0xff]  ;;  %v792_v25 = vld [vmem:[%s17837_s4 + $0x50] sm:$0xff]  ;;  %v810_v45 = vld [vmem:[%s17837_s4 + $0xe0] sm:$0xff] }
  0xaa   : > { %9802 = vmatprep.subr.mxu0 %v740_v29  ;;  %9858 = vmatprep.subr.mxu1 %v772_v30  ;;  %v795_v26 = vld [vmem:[%s17837_s4 + $0x68] sm:$0xff]  ;;  %v796_v29 = vld [vmem:[%s17837_s4 + $0x70] sm:$0xff] }
  0xab   : > { %9803 = vmatpush3.msra.mxu0 %v724_v34  ;;  %9859 = vmatpush3.msra.mxu1 %v756_v35  ;;  %v799_v30 = vld [vmem:[%s17837_s4 + $0x88] sm:$0xff]  ;;  %v800_v34 = vld [vmem:[%s17837_s4 + $0x90] sm:$0xff] }
  0xac   : > { %9804 = vmatprep.subr.mxu0 %v739_v38  ;;  %9860 = vmatprep.subr.mxu1 %v771_v39  ;;  %v803_v35 = vld [vmem:[%s17837_s4 + $0xa8] sm:$0xff]  ;;  %v804_v38 = vld [vmem:[%s17837_s4 + $0xb0] sm:$0xff] }
  0xad   : > { %9805 = vmatpush3.msra.mxu0 %v723_v42  ;;  %9861 = vmatpush3.msra.mxu1 %v755_v43  ;;  %v807_v39 = vld [vmem:[%s17837_s4 + $0xc8] sm:$0xff]  ;;  %v808_v42 = vld [vmem:[%s17837_s4 + $0xd0] sm:$0xff] }
  0xae   : > { %9806 = vmatprep.subr.mxu0 %v738_v46  ;;  %9862 = vmatprep.subr.mxu1 %v770_v47  ;;  %v811_v43 = vld [vmem:[%s17837_s4 + $0xe8] sm:$0xff]  ;;  %v812_v46 = vld [vmem:[%s17837_s4 + $0xf0] sm:$0xff]  ;;  %v1040_v47 = vld [vmem:[%s17839_s3] sm:$0xff]  ;;  %s10338_s3 = smov 98  }
  0xaf   : > { %9807 = vmatpush3.msra.mxu0 %v722_v50  ;;  %9863 = vmatpush3.msra.mxu1 %v754_v51  ;;  %v814_v50 = vld [vmem:[%s17840_s27] sm:$0xff] }
  0xb0   : > { %9808 = vmatprep.subr.mxu0 %v737_v54  ;;  %9864 = vmatprep.subr.mxu1 %v769_v55 }
  0xb1   : > { %9809 = vmatpush3.msra.mxu0 %v721_v58  ;;  %9865 = vmatpush3.msra.mxu1 %v753_v59  ;;  %v815_v58 = vld [vmem:[%s17840_s27 + $0x8] sm:$0xff] }
  0xb2   : > { %9810 = vmatprep.subr.mxu0 %v736_v62  ;;  %9866 = vmatprep.subr.mxu1 %v768_v63 }
  0xb3   : > { %9811 = vmatpush3.msra.mxu0 %v720_v1  ;;  %9867 = vmatpush3.msra.mxu1 %v752_v2 }
  0xb4   : > { %9812 = vmatprep.subr.mxu0 %v735_v5  ;;  %9868 = vmatprep.subr.mxu1 %v767_v6 }
  0xb5   : > { %9813 = vmatpush3.msra.mxu0 %v719_v8  ;;  %9869 = vmatpush3.msra.mxu1 %v751_v9 }
  0xb6   : > { %9814 = vmatprep.subr.mxu0 %v734_v10  ;;  %9870 = vmatprep.subr.mxu1 %v766_v11 }
  0xb7   : > { %9815 = vmatpush3.msra.mxu0 %v718_v14  ;;  %9871 = vmatpush3.msra.mxu1 %v750_v15  ;;  %v817_v14 = vld [vmem:[%s17840_s27 + $0x18] sm:$0xff] }
  0xb8   : > { %887 = vmatmul.mubr.f32.vlgmr.msra.gmra.mxu0 %v782_v16  ;;  %992 = vmatmul.mubr.f32.vlgmr.msra.gmra.mxu1 %v784_v13 }
  0xb9   : > { %891 = vmatprep.mubr.f32.mxu0 %v787_v17  ;;  %996 = vmatprep.mubr.f32.mxu1 %v789_v18 }
  0xba   : > { %10076 = vmatprep.subr.mxu0 %v1041_v31 }
  0xbb   : > { %10077 = vmatpush3.msra.mxu0 %v1041_v31 }
  0xbc   : > { %892 = vmatmul.mubr.f32.gmra.mxu0 %v786_v19  ;;  %997 = vmatmul.mubr.f32.gmra.mxu1 %v788_v20 }
  0xbd   : > { %896 = vmatprep.mubr.f32.mxu0 %v791_v21  ;;  %1001 = vmatprep.mubr.f32.mxu1 %v793_v23  ;;  %v818_v23 = vld [vmem:[%s17840_s27 + $0x20] sm:$0xff] }
  0xbe   : > { %10078 = vmatprep.subr.mxu0 %v1040_v47 }
  0xbf   : > { %10079 = vmatpush3.msra.mxu0 %v1040_v47 }
  0xc0   : > { %897 = vmatmul.mubr.f32.gmra.mxu0 %v790_v24  ;;  %1002 = vmatmul.mubr.f32.gmra.mxu1 %v792_v25 }
  0xc1   : > { %901 = vmatprep.mubr.f32.mxu0 %v795_v26  ;;  %1006 = vmatprep.mubr.f32.mxu1 %v797_v27 }
  0xc4   : > { %902 = vmatmul.mubr.f32.gmra.mxu0 %v794_v28  ;;  %1007 = vmatmul.mubr.f32.gmra.mxu1 %v796_v29 }
  0xc5   : > { %906 = vmatprep.mubr.f32.mxu0 %v799_v30  ;;  %1011 = vmatprep.mubr.f32.mxu1 %v801_v32 }
  0xc8   : > { %907 = vmatmul.mubr.f32.gmra.mxu0 %v798_v33  ;;  %1012 = vmatmul.mubr.f32.gmra.mxu1 %v800_v34  ;;  %v819_v34 = vld [vmem:[%s17840_s27 + $0x28] sm:$0xff] }
  0xc9   : > { %911 = vmatprep.mubr.f32.mxu0 %v803_v35  ;;  %1016 = vmatprep.mubr.f32.mxu1 %v805_v36 }
  0xcc   : > { %912 = vmatmul.mubr.f32.gmra.mxu0 %v802_v37  ;;  %1017 = vmatmul.mubr.f32.gmra.mxu1 %v804_v38 }
  0xcd   : > { %916 = vmatprep.mubr.f32.mxu0 %v807_v39  ;;  %1021 = vmatprep.mubr.f32.mxu1 %v809_v40 }
  0xd0   : > { %917 = vmatmul.mubr.f32.gmra.mxu0 %v806_v41  ;;  %1022 = vmatmul.mubr.f32.gmra.mxu1 %v808_v42 }
  0xd1   : > { %921 = vmatprep.mubr.f32.mxu0 %v811_v43  ;;  %1026 = vmatprep.mubr.f32.mxu1 %v813_v44  ;;  %v820_v44 = vld [vmem:[%s17840_s27 + $0x30] sm:$0xff] }
  0xd4   : > { %922 = vmatmul.mubr.f32.gmra.mxu0 %v810_v45  ;;  %1027 = vmatmul.mubr.f32.gmra.mxu1 %v812_v46 }
 0x178   : > { %v9816_v48 = vpop.f32.mrf.mxu0  ;;  %v9872_v49 = vpop.f32.mrf.mxu1 }
 0x17a   : > { %v9817_v51 = vpop.f32.mrf.mxu0  ;;  %v9873_v52 = vpop.f32.mrf.mxu1 }
 0x17b   : > { %v9818_v53 = vadd.f32 %v9817_v51, %v9816_v48  ;;  %v9874_v57 = vadd.f32 %v9873_v52, %v9872_v49 }
 0x17c   : > { %v9819_v54 = vpop.f32.mrf.mxu0  ;;  %v9875_v55 = vpop.f32.mrf.mxu1 }
 0x17d   : > { %v889_v56 = vadd.f32 %v9818_v53, %v814_v50 }
 0x17e   : > { %v9820_v59 = vpop.f32.mrf.mxu0  ;;  %v9876_v60 = vpop.f32.mrf.mxu1 }
 0x17f   : > { %v994_v61 = vadd.f32 %v9874_v57, %v889_v56  ;;  %v9821_v62 = vadd.f32 %v9820_v59, %v9819_v54  ;;  %v9877_v2 = vadd.f32 %v9876_v60, %v9875_v55  ;;  %v821_v54 = vld [vmem:[%s17840_s27 + $0x38] sm:$0xff] }
 0x180   : > { %v9822_v63 = vpop.f32.mrf.mxu0  ;;  %v9878_v0 = vpop.f32.mrf.mxu1 }
 0x181   : > { %v1032_v12 = vmax.f32 %v994_v61, 0.0  ;;  %v894_v1 = vadd.f32 %v9821_v62, %v815_v58 }
 0x182   : > { %v9823_v4 = vpop.f32.mrf.mxu0  ;;  %v9879_v5 = vpop.f32.mrf.mxu1 }
 0x183   : > { %v999_v6 = vadd.f32 %v9877_v2, %v894_v1  ;;  %v9824_v7 = vadd.f32 %v9823_v4, %v9822_v63  ;;  %10080 = vmatprep.mubr.msk.f32.mxu0 %vm1042_vm0, %v1032_v12  ;;  %v9880_v11 = vadd.f32 %v9879_v5, %v9878_v0  ;;  %v17768_v5 = vmov 0.0  }
 0x184   : > { %v9825_v22 = vpop.f32.mrf.mxu0  ;;  %v9881_v8 = vpop.f32.mrf.mxu1  ;;  %1560 = vmatprep.subr.mxu0 %v17768_v5  ;;  %1431 = vmatprep.subr.mxu1 %v17768_v5 }
 0x185   : > { %v1033_v9 = vmax.f32 %v999_v6, 0.0  ;;  %v899_v10 = vadd.f32 %v9824_v7, %v816_v3 }
 0x186   : > { %v9826_v15 = vpop.f32.mrf.mxu0  ;;  %v9882_v16 = vpop.f32.mrf.mxu1 }
 0x187   : > { %v1004_v13 = vadd.f32 %v9880_v11, %v899_v10  ;;  %v9827_v17 = vadd.f32 %v9826_v15, %v9825_v22  ;;  %10081 = vmatmul.mubr.msk.f32.vlgmr.msra.gmra.mxu0 %vm1042_vm0, %v1033_v9  ;;  %v9883_v21 = vadd.f32 %v9882_v16, %v9881_v8 }
 0x188   : > { %v9828_v18 = vpop.f32.mrf.mxu0  ;;  %v9884_v31 = vpop.f32.mrf.mxu1 }
 0x189   : > { %v1034_v19 = vmax.f32 %v1004_v13, 0.0  ;;  %v904_v20 = vadd.f32 %v9827_v17, %v817_v14 }
 0x18a   : > { %v9829_v24 = vpop.f32.mrf.mxu0  ;;  %v9885_v25 = vpop.f32.mrf.mxu1 }
 0x18b   : > { %v1009_v26 = vadd.f32 %v9883_v21, %v904_v20  ;;  %v9830_v27 = vadd.f32 %v9829_v24, %v9828_v18  ;;  %10083 = vmatprep.mubr.msk.f32.mxu0 %vm1042_vm0, %v1034_v19  ;;  %v9886_v33 = vadd.f32 %v9885_v25, %v9884_v31 }
 0x18c   : > { %v9831_v28 = vpop.f32.mrf.mxu0  ;;  %v9887_v29 = vpop.f32.mrf.mxu1 }
 0x18d   : > { %v1035_v30 = vmax.f32 %v1009_v26, 0.0  ;;  %v909_v32 = vadd.f32 %v9830_v27, %v818_v23 }
 0x18e   : > { %v9832_v35 = vpop.f32.mrf.mxu0  ;;  %v9888_v36 = vpop.f32.mrf.mxu1 }
 0x18f   : > { %v1014_v37 = vadd.f32 %v9886_v33, %v909_v32  ;;  %v9833_v38 = vadd.f32 %v9832_v35, %v9831_v28  ;;  %10084 = vmatmul.mubr.msk.f32.gmra.mxu0 %vm1042_vm0, %v1035_v30  ;;  %v9889_v43 = vadd.f32 %v9888_v36, %v9887_v29 }
 0x190   : > { %v9834_v39 = vpop.f32.mrf.mxu0  ;;  %v9890_v40 = vpop.f32.mrf.mxu1 }
 0x191   : > { %v1036_v41 = vmax.f32 %v1014_v37, 0.0  ;;  %v914_v42 = vadd.f32 %v9833_v38, %v819_v34 }
 0x192   : > { %v9835_v45 = vpop.f32.mrf.mxu0  ;;  %v9891_v46 = vpop.f32.mrf.mxu1 }
 0x193   : > { %v1019_v47 = vadd.f32 %v9889_v43, %v914_v42  ;;  %v9836_v48 = vadd.f32 %v9835_v45, %v9834_v39  ;;  %10086 = vmatprep.mubr.msk.f32.mxu0 %vm1042_vm0, %v1036_v41  ;;  %v9892_v53 = vadd.f32 %v9891_v46, %v9890_v40  ;;  %v9548_v43 = vld [vmem:[%s17734_s5 + $0x88] sm:$0xff] }
 0x194   : > { %v9837_v49 = vpop.f32.mrf.mxu0  ;;  %v9893_v50 = vpop.f32.mrf.mxu1  ;;  %9563 = vmatprep.mubr.msk.f32.mxu1 %vm1406_vm2, %v9548_v43 }
 0x195   : > { %v1037_v51 = vmax.f32 %v1019_v47, 0.0  ;;  %v919_v52 = vadd.f32 %v9836_v48, %v820_v44  ;;  %v1254_v44 = vld [vmem:[%s17734_s5 + $0x8] sm:$0xff] }
 0x196   : > { %v9838_v55 = vpop.f32.mrf.mxu0  ;;  %v9894_v56 = vpop.f32.mrf.mxu1 }
 0x197   : > { %v1024_v57 = vadd.f32 %v9892_v53, %v919_v52  ;;  %v9839_v58 = vadd.f32 %v9838_v55, %v9837_v49  ;;  %10087 = vmatmul.mubr.msk.f32.gmra.mxu0 %vm1042_vm0, %v1037_v51  ;;  %v9895_v61 = vadd.f32 %v9894_v56, %v9893_v50  ;;  %v1253_v50 = vld [vmem:[%s17734_s5] sm:$0xff]  ;;  %v1256_v52 = vld [vmem:[%s17734_s5 + $0x18] sm:$0xff]  ;;  %v1255_v53 = vld [vmem:[%s17734_s5 + $0x10] sm:$0xff] }
 0x198   : > { %v1257_v55 = vld [vmem:[%s17734_s5 + $0x20] sm:$0xff]  ;;  %v1260_v56 = vld [vmem:[%s17734_s5 + $0x38] sm:$0xff] }
 0x199   : > { %v1038_v59 = vmax.f32 %v1024_v57, 0.0  ;;  %v924_v60 = vadd.f32 %v9839_v58, %v821_v54  ;;  %v1258_v54 = vld [vmem:[%s17734_s5 + $0x28] sm:$0xff]  ;;  %v1259_v57 = vld [vmem:[%s17734_s5 + $0x30] sm:$0xff] }
 0x19a   : > { %v1262_v58 = vld [vmem:[%s17734_s5 + $0x48] sm:$0xff] }
 0x19b   : > { %v1029_v62 = vadd.f32 %v9895_v61, %v924_v60  ;;  %10089 = vmatprep.mubr.msk.f32.mxu0 %vm1042_vm0, %v1038_v59  ;;  %v1261_v59 = vld [vmem:[%s17734_s5 + $0x40] sm:$0xff]  ;;  %v1264_v60 = vld [vmem:[%s17734_s5 + $0x58] sm:$0xff]  ;;  %v1263_v61 = vld [vmem:[%s17734_s5 + $0x50] sm:$0xff] }
 0x19d   : > { %v1039_v63 = vmax.f32 %v1029_v62, 0.0  ;;  %v1266_v62 = vld [vmem:[%s17734_s5 + $0x68] sm:$0xff] }
 0x19f   : > { %10090 = vmatmul.mubr.msk.f32.gmra.mxu0 %vm1042_vm0, %v1039_v63  ;;  %v1265_v63 = vld [vmem:[%s17734_s5 + $0x60] sm:$0xff] }
 0x1a0   : > { %9571 = vmatprep.mubr.msk.f32.mxu0 %vm1406_vm2, %v1254_v44  ;;  %v9554_v44 = vld [vmem:[%s17734_s5 + $0xb8] sm:$0xff] }
 0x247   : > { %v10082_v0 = vpop.f32.mrf.mxu0 }
 0x248   : > { %1174 = vst.msk [vmem:[#allocation2 + $0x8] sm:$0xff] %vm1172_vm1, %v10082_v0 }
 0x249   : > { %v1133_v12 = vpop.f32.mrf.mxu0 }
 0x24a   : > { %1173 = vst.msk [vmem:[#allocation2] sm:$0xff] %vm1172_vm1, %v1133_v12 }
 0x24f   : > { %v10085_v1 = vpop.f32.mrf.mxu0  ;;  %v10987_v39 = vld [vmem:[#allocation2 + $0x8] sm:$0xff] }
 0x250   : > { %1176 = vst.msk [vmem:[#allocation2 + $0x18] sm:$0xff] %vm1172_vm1, %v10085_v1 }
 0x251   : > { %v1143_v2 = vpop.f32.mrf.mxu0  ;;  %v10993_v40 = vld [vmem:[#allocation2] sm:$0xff] }
 0x252   : > { %1175 = vst.msk [vmem:[#allocation2 + $0x10] sm:$0xff] %vm1172_vm1, %v1143_v2 }
 0x257   : > { %v10088_v3 = vpop.f32.mrf.mxu0  ;;  %v10975_v37 = vld [vmem:[#allocation2 + $0x18] sm:$0xff] }
 0x258   : > { %1178 = vst.msk [vmem:[#allocation2 + $0x28] sm:$0xff] %vm1172_vm1, %v10088_v3 }
 0x259   : > { %v1153_v4 = vpop.f32.mrf.mxu0  ;;  %v10981_v38 = vld [vmem:[#allocation2 + $0x10] sm:$0xff] }
 0x25a   : > { %1177 = vst.msk [vmem:[#allocation2 + $0x20] sm:$0xff] %vm1172_vm1, %v1153_v4 }
 0x25f   : > { %v10091_v6 = vpop.f32.mrf.mxu0  ;;  %v10961_v34 = vld [vmem:[#allocation2 + $0x28] sm:$0xff] }
 0x260   : > { %1180 = vst.msk [vmem:[#allocation2 + $0x38] sm:$0xff] %vm1172_vm1, %v10091_v6  ;;  %1203 = vrot.lane.b32.xlu0 %v10091_v6, %s17758_s21 }
 0x261   : > { %v1163_v7 = vpop.f32.mrf.mxu0  ;;  %v10968_v36 = vld [vmem:[#allocation2 + $0x20] sm:$0xff] }
 0x262   : > { %1179 = vst.msk [vmem:[#allocation2 + $0x30] sm:$0xff] %vm1172_vm1, %v1163_v7  ;;  %1201 = vrot.lane.b32.xlu1 %v1163_v7, %s17758_s21 }
 0x264   : > { %1199 = vrot.lane.b32.xlu0 %v10088_v3, %s17758_s21 }
 0x266   : > { %1197 = vrot.lane.b32.xlu1 %v1153_v4, %s17758_s21 }
 0x267   : > { %v10947_v29 = vld [vmem:[#allocation2 + $0x38] sm:$0xff] }
 0x268   : > { %1195 = vrot.lane.b32.xlu0 %v10085_v1, %s17758_s21 }
 0x269   : > { %v10954_v32 = vld [vmem:[#allocation2 + $0x30] sm:$0xff] }
 0x26a   : > { %1193 = vrot.lane.b32.xlu1 %v1143_v2, %s17758_s21 }
 0x26c   : > { %1191 = vrot.lane.b32.xlu0 %v10082_v0, %s17758_s21 }
 0x26e   : > { %1189 = vrot.lane.b32.xlu1 %v1133_v12, %s17758_s21  ;;  %s17843_s21 = smov 127  }
 0x270   : > { %1235 = vrot.lane.b32.xlu0 %v10091_v6, %s17756_s22  ;;  %v1895_v6 = vld [vmem:[%s17735_s6 + $0x20] sm:$0xff] }
 0x272   : > { %1233 = vrot.lane.b32.xlu1 %v1163_v7, %s17756_s22  ;;  %v1896_v7 = vld [vmem:[%s17735_s6 + $0x28] sm:$0xff] }
 0x274   : > { %1231 = vrot.lane.b32.xlu0 %v10088_v3, %s17756_s22  ;;  %v1893_v3 = vld [vmem:[%s17735_s6 + $0x10] sm:$0xff] }
 0x276   : > { %1229 = vrot.lane.b32.xlu1 %v1153_v4, %s17756_s22  ;;  %v1894_v4 = vld [vmem:[%s17735_s6 + $0x18] sm:$0xff] }
 0x278   : > { %1227 = vrot.lane.b32.xlu0 %v10085_v1, %s17756_s22  ;;  %v1891_v1 = vld [vmem:[%s17735_s6] sm:$0xff] }
 0x27a   : > { %1225 = vrot.lane.b32.xlu1 %v1143_v2, %s17756_s22  ;;  %v1892_v2 = vld [vmem:[%s17735_s6 + $0x8] sm:$0xff] }
 0x27c   : > { %1223 = vrot.lane.b32.xlu0 %v10082_v0, %s17756_s22  ;;  %v1268_v0 = vld [vmem:[%s17734_s5 + $0x78] sm:$0xff] }
 0x27e   : > { %1221 = vrot.lane.b32.xlu1 %v1133_v12, %s17756_s22  ;;  %v1267_v12 = vld [vmem:[%s17734_s5 + $0x70] sm:$0xff] }
 0x2d2   : > { %v1204_v22 = vpop.permute.xlu0 %1203 }
 0x2d3   : > { %1220 = vst.msk [vmem:[#allocation2 + $0x78] sm:$0xff] %vm1172_vm1, %v1204_v22  ;;  %v1897_v22 = vld [vmem:[%s17735_s6 + $0x30] sm:$0xff] }
 0x2d4   : > { %v1202_v8 = vpop.permute.xlu1 %1201 }
 0x2d5   : > { %1219 = vst.msk [vmem:[#allocation2 + $0x70] sm:$0xff] %vm1172_vm1, %v1202_v8  ;;  %v1898_v8 = vld [vmem:[%s17735_s6 + $0x38] sm:$0xff] }
 0x2d6   : > { %v1200_v9 = vpop.permute.xlu0 %1199 }
 0x2d7   : > { %1218 = vst.msk [vmem:[#allocation2 + $0x68] sm:$0xff] %vm1172_vm1, %v1200_v9 }
 0x2d8   : > { %v1198_v10 = vpop.permute.xlu1 %1197 }
 0x2d9   : > { %1217 = vst.msk [vmem:[#allocation2 + $0x60] sm:$0xff] %vm1172_vm1, %v1198_v10 }
 0x2da   : > { %v1196_v11 = vpop.permute.xlu0 %1195  ;;  %v10891_v14 = vld [vmem:[#allocation2 + $0x78] sm:$0xff] }
 0x2db   : > { %1216 = vst.msk [vmem:[#allocation2 + $0x58] sm:$0xff] %vm1172_vm1, %v1196_v11  ;;  %1364 = vrot.lane.b32.xlu0 %v10891_v14, %s17754_s18  ;;  %1561 = vmatpush1.msra.mxu0 %v10891_v14 }
 0x2dc   : > { %1562 = vmatprep.subr.mxu0 %v17768_v5  ;;  %v1194_v15 = vpop.permute.xlu1 %1193  ;;  %v10898_v16 = vld [vmem:[#allocation2 + $0x70] sm:$0xff] }
 0x2dd   : > { %1215 = vst.msk [vmem:[#allocation2 + $0x50] sm:$0xff] %vm1172_vm1, %v1194_v15  ;;  %1362 = vrot.lane.b32.xlu1 %v10898_v16, %s17754_s18  ;;  %1563 = vmatpush1.msra.mxu0 %v10898_v16 }
 0x2de   : > { %v1192_v13 = vpop.permute.xlu0 %1191  ;;  %1564 = vmatprep.subr.mxu0 %v17768_v5  ;;  %v10905_v17 = vld [vmem:[#allocation2 + $0x68] sm:$0xff] }
 0x2df   : > { %1214 = vst.msk [vmem:[#allocation2 + $0x48] sm:$0xff] %vm1172_vm1, %v1192_v13  ;;  %1360 = vrot.lane.b32.xlu0 %v10905_v17, %s17754_s18  ;;  %1565 = vmatpush1.msra.mxu0 %v10905_v17 }
 0x2e0   : > { %1566 = vmatprep.subr.mxu0 %v17768_v5  ;;  %v1190_v18 = vpop.permute.xlu1 %1189  ;;  %v10912_v31 = vld [vmem:[#allocation2 + $0x60] sm:$0xff] }
 0x2e1   : > { %1213 = vst.msk [vmem:[#allocation2 + $0x40] sm:$0xff] %vm1172_vm1, %v1190_v18  ;;  %1358 = vrot.lane.b32.xlu1 %v10912_v31, %s17754_s18  ;;  %1567 = vmatpush1.msra.mxu0 %v10912_v31 }
 0x2e2   : > { %v1236_v19 = vpop.permute.xlu0 %1235  ;;  %1568 = vmatprep.subr.mxu0 %v17768_v5  ;;  %v10919_v20 = vld [vmem:[#allocation2 + $0x58] sm:$0xff] }
 0x2e3   : > { %1252 = vst.msk [vmem:[#allocation2 + $0xb8] sm:$0xff] %vm1172_vm1, %v1236_v19  ;;  %1356 = vrot.lane.b32.xlu0 %v10919_v20, %s17754_s18  ;;  %1569 = vmatpush1.msra.mxu0 %v10919_v20 }
 0x2e4   : > { %1570 = vmatprep.subr.mxu0 %v17768_v5  ;;  %v1234_v21 = vpop.permute.xlu1 %1233  ;;  %v10926_v23 = vld [vmem:[#allocation2 + $0x50] sm:$0xff] }
 0x2e5   : > { %1251 = vst.msk [vmem:[#allocation2 + $0xb0] sm:$0xff] %vm1172_vm1, %v1234_v21  ;;  %1354 = vrot.lane.b32.xlu1 %v10926_v23, %s17754_s18  ;;  %1571 = vmatpush1.msra.mxu0 %v10926_v23 }
 0x2e6   : > { %v1232_v24 = vpop.permute.xlu0 %1231  ;;  %1572 = vmatprep.subr.mxu0 %v17768_v5  ;;  %v10933_v25 = vld [vmem:[#allocation2 + $0x48] sm:$0xff] }
 0x2e7   : > { %1250 = vst.msk [vmem:[#allocation2 + $0xa8] sm:$0xff] %vm1172_vm1, %v1232_v24  ;;  %1352 = vrot.lane.b32.xlu0 %v10933_v25, %s17754_s18  ;;  %1573 = vmatpush1.msra.mxu0 %v10933_v25 }
 0x2e8   : > { %1574 = vmatprep.subr.mxu0 %v17768_v5  ;;  %v1230_v26 = vpop.permute.xlu1 %1229  ;;  %v10940_v27 = vld [vmem:[#allocation2 + $0x40] sm:$0xff] }
 0x2e9   : > { %1249 = vst.msk [vmem:[#allocation2 + $0xa0] sm:$0xff] %vm1172_vm1, %v1230_v26  ;;  %1350 = vrot.lane.b32.xlu1 %v10940_v27, %s17754_s18  ;;  %1575 = vmatpush1.msra.mxu0 %v10940_v27 }
 0x2ea   : > { %v1228_v28 = vpop.permute.xlu0 %1227  ;;  %1576 = vmatprep.subr.mxu0 %v17768_v5  ;;  %v10999_v41 = vld [vmem:[#allocation2 + $0xb8] sm:$0xff] }
 0x2eb   : > { %1248 = vst.msk [vmem:[#allocation2 + $0x98] sm:$0xff] %vm1172_vm1, %v1228_v28  ;;  %1348 = vrot.lane.b32.xlu0 %v10947_v29, %s17754_s18  ;;  %1577 = vmatpush1.msra.mxu0 %v10947_v29 }
 0x2ec   : > { %1578 = vmatprep.subr.mxu0 %v17768_v5  ;;  %v1226_v30 = vpop.permute.xlu1 %1225  ;;  %v11005_v42 = vld [vmem:[#allocation2 + $0xb0] sm:$0xff] }
 0x2ed   : > { %1247 = vst.msk [vmem:[#allocation2 + $0x90] sm:$0xff] %vm1172_vm1, %v1226_v30  ;;  %1346 = vrot.lane.b32.xlu1 %v10954_v32, %s17754_s18  ;;  %1579 = vmatpush1.msra.mxu0 %v10954_v32 }
 0x2ee   : > { %v1224_v33 = vpop.permute.xlu0 %1223  ;;  %1580 = vmatprep.subr.mxu0 %v17768_v5  ;;  %v11017_v45 = vld [vmem:[#allocation2 + $0xa8] sm:$0xff] }
 0x2ef   : > { %1246 = vst.msk [vmem:[#allocation2 + $0x88] sm:$0xff] %vm1172_vm1, %v1224_v33  ;;  %1344 = vrot.lane.b32.xlu0 %v10961_v34, %s17754_s18  ;;  %1581 = vmatpush1.msra.mxu0 %v10961_v34 }
 0x2f0   : > { %v1222_v35 = vpop.permute.xlu1 %1221  ;;  %1582 = vmatprep.subr.mxu0 %v17768_v5  ;;  %v11024_v46 = vld [vmem:[#allocation2 + $0xa0] sm:$0xff] }
 0x2f1   : > { %1245 = vst.msk [vmem:[#allocation2 + $0x80] sm:$0xff] %vm1172_vm1, %v1222_v35  ;;  %1342 = vrot.lane.b32.xlu1 %v10968_v36, %s17754_s18  ;;  %1583 = vmatpush1.msra.mxu0 %v10968_v36 }
 0x2f2   : > { %1584 = vmatprep.subr.mxu0 %v17768_v5  ;;  %v11031_v47 = vld [vmem:[#allocation2 + $0x98] sm:$0xff] }
 0x2f3   : > { %1340 = vrot.lane.b32.xlu0 %v10975_v37, %s17754_s18  ;;  %1585 = vmatpush1.msra.mxu0 %v10975_v37 }
 0x2f4   : > { %1586 = vmatprep.subr.mxu0 %v17768_v5  ;;  %v1287_v48 = vld [vmem:[#allocation2 + $0x90] sm:$0xff] }
 0x2f5   : > { %1338 = vrot.lane.b32.xlu1 %v10981_v38, %s17754_s18  ;;  %1587 = vmatpush1.msra.mxu0 %v10981_v38 }
 0x2f6   : > { %1588 = vmatprep.subr.mxu0 %v17768_v5  ;;  %v1286_v49 = vld [vmem:[#allocation2 + $0x88] sm:$0xff] }
 0x2f7   : > { %1336 = vrot.lane.b32.xlu0 %v10987_v39, %s17754_s18  ;;  %1589 = vmatpush1.msra.mxu0 %v10987_v39 }
 0x2f8   : > { %1590 = vmatprep.subr.mxu0 %v17768_v5  ;;  %v1285_v51 = vld [vmem:[#allocation2 + $0x80] sm:$0xff] }
 0x2f9   : > { %1334 = vrot.lane.b32.xlu1 %v10993_v40, %s17754_s18  ;;  %1591 = vmatpush1.msra.mxu0 %v10993_v40 }
 0x2fa   : > { %1608 = vmatprep.subr.mxu0 %v17768_v5 }
 0x2fb   : > { %1380 = vrot.lane.b32.xlu0 %v10999_v41, %s17754_s18  ;;  %1609 = vmatpush2.msra.mxu0 %v10999_v41 }
 0x2fc   : > { %1610 = vmatprep.subr.mxu0 %v17768_v5 }
 0x2fd   : > { %1378 = vrot.lane.b32.xlu1 %v11005_v42, %s17754_s18  ;;  %1611 = vmatpush2.msra.mxu0 %v11005_v42 }
 0x2fe   : > { %1612 = vmatprep.subr.mxu0 %v17768_v5 }
 0x2ff   : > { %1376 = vrot.lane.b32.xlu0 %v11017_v45, %s17754_s18  ;;  %1613 = vmatpush2.msra.mxu0 %v11017_v45 }
 0x300   : > { %1614 = vmatprep.subr.mxu0 %v17768_v5 }
 0x301   : > { %1374 = vrot.lane.b32.xlu1 %v11024_v46, %s17754_s18  ;;  %1615 = vmatpush2.msra.mxu0 %v11024_v46 }
 0x302   : > { %1616 = vmatprep.subr.mxu0 %v17768_v5 }
 0x303   : > { %1372 = vrot.lane.b32.xlu0 %v11031_v47, %s17754_s18  ;;  %1617 = vmatpush2.msra.mxu0 %v11031_v47 }
 0x304   : > { %1618 = vmatprep.subr.mxu0 %v17768_v5 }
 0x305   : > { %1370 = vrot.lane.b32.xlu1 %v1287_v48, %s17754_s18  ;;  %1619 = vmatpush2.msra.mxu0 %v1287_v48 }
 0x306   : > { %1620 = vmatprep.subr.mxu0 %v17768_v5 }
 0x307   : > { %1368 = vrot.lane.b32.xlu0 %v1286_v49, %s17754_s18  ;;  %1621 = vmatpush2.msra.mxu0 %v1286_v49 }
 0x308   : > { %1622 = vmatprep.subr.mxu0 %v17768_v5 }
 0x309   : > { %1366 = vrot.lane.b32.xlu1 %v1285_v51, %s17754_s18  ;;  %1623 = vmatpush2.msra.mxu0 %v1285_v51 }
 0x30a   : > { %1625 = vmatmul.mubr.f32.vlgmr.msra.gmra.mxu0 %v1253_v50  ;;  %v9555_v50 = vld [vmem:[%s17734_s5 + $0xc0] sm:$0xff] }
 0x30b   : > { %1712 = vrot.lane.b32.xlu0 %v10891_v14, %s17760_s0  ;;  %9572 = vmatprep.mubr.msk.f32.mxu0 %vm1406_vm2, %v1256_v52  ;;  %v9558_v52 = vld [vmem:[%s17734_s5 + $0xd8] sm:$0xff] }
 0x30d   : > { %1710 = vrot.lane.b32.xlu1 %v10898_v16, %s17760_s0 }
 0x30e   : > { %1630 = vmatmul.mubr.f32.gmra.mxu0 %v1255_v53 }
 0x30f   : > { %1708 = vrot.lane.b32.xlu0 %v10905_v17, %s17760_s0  ;;  %9573 = vmatprep.mubr.msk.f32.mxu0 %vm1406_vm2, %v1258_v54  ;;  %v9557_v54 = vld [vmem:[%s17734_s5 + $0xd0] sm:$0xff] }
 0x311   : > { %1706 = vrot.lane.b32.xlu1 %v10912_v31, %s17760_s0 }
 0x312   : > { %1635 = vmatmul.mubr.f32.gmra.mxu0 %v1257_v55 }
 0x313   : > { %1704 = vrot.lane.b32.xlu0 %v10919_v20, %s17760_s0  ;;  %9574 = vmatprep.mubr.msk.f32.mxu0 %vm1406_vm2, %v1260_v56  ;;  %v9560_v56 = vld [vmem:[%s17734_s5 + $0xe8] sm:$0xff] }
 0x315   : > { %1702 = vrot.lane.b32.xlu1 %v10926_v23, %s17760_s0 }
 0x316   : > { %1640 = vmatmul.mubr.f32.gmra.mxu0 %v1259_v57 }
 0x317   : > { %1700 = vrot.lane.b32.xlu0 %v10933_v25, %s17760_s0  ;;  %9575 = vmatprep.mubr.msk.f32.mxu0 %vm1406_vm2, %v1262_v58  ;;  %v9559_v58 = vld [vmem:[%s17734_s5 + $0xe0] sm:$0xff] }
 0x319   : > { %1698 = vrot.lane.b32.xlu1 %v10940_v27, %s17760_s0 }
 0x31a   : > { %1645 = vmatmul.mubr.f32.gmra.mxu0 %v1261_v59 }
 0x31b   : > { %1696 = vrot.lane.b32.xlu0 %v10947_v29, %s17760_s0  ;;  %9576 = vmatprep.mubr.msk.f32.mxu0 %vm1406_vm2, %v1264_v60  ;;  %v9562_v60 = vld [vmem:[%s17734_s5 + $0xf8] sm:$0xff] }
 0x31d   : > { %1694 = vrot.lane.b32.xlu1 %v10954_v32, %s17760_s0 }
 0x31e   : > { %1650 = vmatmul.mubr.f32.gmra.mxu0 %v1263_v61 }
 0x31f   : > { %1692 = vrot.lane.b32.xlu0 %v10961_v34, %s17760_s0  ;;  %9577 = vmatprep.mubr.msk.f32.mxu0 %vm1406_vm2, %v1266_v62  ;;  %v9547_v34 = vld [vmem:[%s17734_s5 + $0x80] sm:$0xff]  ;;  %v9561_v62 = vld [vmem:[%s17734_s5 + $0xf0] sm:$0xff] }
 0x321   : > { %1690 = vrot.lane.b32.xlu1 %v10968_v36, %s17760_s0  ;;  %v9550_v36 = vld [vmem:[%s17734_s5 + $0x98] sm:$0xff] }
 0x322   : > { %1655 = vmatmul.mubr.f32.gmra.mxu0 %v1265_v63 }
 0x323   : > { %1688 = vrot.lane.b32.xlu0 %v10975_v37, %s17760_s0  ;;  %9578 = vmatprep.mubr.msk.f32.mxu0 %vm1406_vm2, %v1268_v0  ;;  %v9580_v0 = vld [vmem:[%s17734_s5 + $0x108] sm:$0xff] }
 0x325   : > { %1686 = vrot.lane.b32.xlu1 %v10981_v38, %s17760_s0  ;;  %v9549_v38 = vld [vmem:[%s17734_s5 + $0x90] sm:$0xff] }
 0x326   : > { %1660 = vmatmul.mubr.f32.gmra.mxu0 %v1267_v12 }
 0x327   : > { %1684 = vrot.lane.b32.xlu0 %v10987_v39, %s17760_s0 }
 0x329   : > { %1682 = vrot.lane.b32.xlu1 %v10993_v40, %s17760_s0  ;;  %v9552_v40 = vld [vmem:[%s17734_s5 + $0xa8] sm:$0xff] }
 0x32b   : > { %1728 = vrot.lane.b32.xlu0 %v10999_v41, %s17760_s0 }
 0x32d   : > { %1726 = vrot.lane.b32.xlu1 %v11005_v42, %s17760_s0  ;;  %v9551_v42 = vld [vmem:[%s17734_s5 + $0xa0] sm:$0xff] }
 0x32f   : > { %1724 = vrot.lane.b32.xlu0 %v11017_v45, %s17760_s0 }
 0x331   : > { %1722 = vrot.lane.b32.xlu1 %v11024_v46, %s17760_s0  ;;  %v9553_v46 = vld [vmem:[%s17734_s5 + $0xb0] sm:$0xff] }
 0x333   : > { %1720 = vrot.lane.b32.xlu0 %v11031_v47, %s17760_s0 }
 0x335   : > { %1718 = vrot.lane.b32.xlu1 %v1287_v48, %s17760_s0  ;;  %v9556_v48 = vld [vmem:[%s17734_s5 + $0xc8] sm:$0xff] }
 0x337   : > { %1716 = vrot.lane.b32.xlu0 %v1286_v49, %s17760_s0 }
 0x339   : > { %1714 = vrot.lane.b32.xlu1 %v1285_v51, %s17760_s0  ;;  %s17764_s0 = smov 112  }
 0x33b   : > { %1901 = vperm.xlu0 %10243, %v1891_v1  }
 0x33d   : > { %1906 = vperm.xlu1 %10244, %v1892_v2  }
 0x33f   : > { %1911 = vperm.xlu0 %10243, %v1893_v3  }
 0x341   : > { %1916 = vperm.xlu1 %10244, %v1894_v4  }
 0x343   : > { %1921 = vperm.xlu0 %10243, %v1895_v6  }
 0x345   : > { %1926 = vperm.xlu1 %10244, %v1896_v7  }
 0x347   : > { %1931 = vperm.xlu0 %10243, %v1897_v22  }
 0x349   : > { %1936 = vperm.xlu1 %10244, %v1898_v8  }
 0x34d   : > { %v1365_v9 = vpop.permute.xlu0 %1364 }
 0x34e   : > { %1432 = vmatpush1.msra.mxu1 %v1365_v9  ;;  %v9579_v9 = vld [vmem:[%s17734_s5 + $0x100] sm:$0xff] }
 0x34f   : > { %1433 = vmatprep.subr.mxu1 %v17768_v5  ;;  %v1363_v10 = vpop.permute.xlu1 %1362 }
 0x350   : > { %1434 = vmatpush1.msra.mxu1 %v1363_v10 }
 0x351   : > { %v1361_v11 = vpop.permute.xlu0 %1360  ;;  %1435 = vmatprep.subr.mxu1 %v17768_v5 }
 0x352   : > { %1436 = vmatpush1.msra.mxu1 %v1361_v11  ;;  %v9582_v11 = vld [vmem:[%s17734_s5 + $0x118] sm:$0xff] }
 0x353   : > { %1437 = vmatprep.subr.mxu1 %v17768_v5  ;;  %v1359_v14 = vpop.permute.xlu1 %1358 }
 0x354   : > { %1438 = vmatpush1.msra.mxu1 %v1359_v14  ;;  %v9581_v14 = vld [vmem:[%s17734_s5 + $0x110] sm:$0xff] }
 0x355   : > { %v1357_v15 = vpop.permute.xlu0 %1356  ;;  %1439 = vmatprep.subr.mxu1 %v17768_v5 }
 0x356   : > { %1440 = vmatpush1.msra.mxu1 %v1357_v15  ;;  %v9584_v15 = vld [vmem:[%s17734_s5 + $0x128] sm:$0xff] }
 0x357   : > { %1441 = vmatprep.subr.mxu1 %v17768_v5  ;;  %v1355_v16 = vpop.permute.xlu1 %1354 }
 0x358   : > { %1442 = vmatpush1.msra.mxu1 %v1355_v16  ;;  %v9583_v16 = vld [vmem:[%s17734_s5 + $0x120] sm:$0xff] }
 0x359   : > { %v1353_v13 = vpop.permute.xlu0 %1352  ;;  %1443 = vmatprep.subr.mxu1 %v17768_v5 }
 0x35a   : > { %1444 = vmatpush1.msra.mxu1 %v1353_v13  ;;  %v9586_v13 = vld [vmem:[%s17734_s5 + $0x138] sm:$0xff] }
 0x35b   : > { %1445 = vmatprep.subr.mxu1 %v17768_v5  ;;  %v1351_v17 = vpop.permute.xlu1 %1350 }
 0x35c   : > { %1446 = vmatpush1.msra.mxu1 %v1351_v17  ;;  %v9585_v17 = vld [vmem:[%s17734_s5 + $0x130] sm:$0xff] }
 0x35d   : > { %v1349_v18 = vpop.permute.xlu0 %1348  ;;  %1447 = vmatprep.subr.mxu1 %v17768_v5 }
 0x35e   : > { %1448 = vmatpush1.msra.mxu1 %v1349_v18  ;;  %v9588_v18 = vld [vmem:[%s17734_s5 + $0x148] sm:$0xff] }
 0x35f   : > { %1449 = vmatprep.subr.mxu1 %v17768_v5  ;;  %v1347_v31 = vpop.permute.xlu1 %1346 }
 0x360   : > { %1450 = vmatpush1.msra.mxu1 %v1347_v31  ;;  %v9587_v31 = vld [vmem:[%s17734_s5 + $0x140] sm:$0xff] }
 0x361   : > { %v1345_v19 = vpop.permute.xlu0 %1344  ;;  %1451 = vmatprep.subr.mxu1 %v17768_v5 }
 0x362   : > { %1452 = vmatpush1.msra.mxu1 %v1345_v19  ;;  %v9590_v19 = vld [vmem:[%s17734_s5 + $0x158] sm:$0xff] }
 0x363   : > { %1453 = vmatprep.subr.mxu1 %v17768_v5  ;;  %v1343_v20 = vpop.permute.xlu1 %1342 }
 0x364   : > { %1454 = vmatpush1.msra.mxu1 %v1343_v20  ;;  %v9589_v20 = vld [vmem:[%s17734_s5 + $0x150] sm:$0xff] }
 0x365   : > { %v1341_v21 = vpop.permute.xlu0 %1340  ;;  %1455 = vmatprep.subr.mxu1 %v17768_v5 }
 0x366   : > { %1456 = vmatpush1.msra.mxu1 %v1341_v21  ;;  %v9592_v21 = vld [vmem:[%s17734_s5 + $0x168] sm:$0xff] }
 0x367   : > { %1457 = vmatprep.subr.mxu1 %v17768_v5  ;;  %v1339_v23 = vpop.permute.xlu1 %1338 }
 0x368   : > { %1458 = vmatpush1.msra.mxu1 %v1339_v23  ;;  %v9591_v23 = vld [vmem:[%s17734_s5 + $0x160] sm:$0xff] }
 0x369   : > { %v1337_v24 = vpop.permute.xlu0 %1336  ;;  %1459 = vmatprep.subr.mxu1 %v17768_v5 }
 0x36a   : > { %1460 = vmatpush1.msra.mxu1 %v1337_v24  ;;  %v9594_v24 = vld [vmem:[%s17734_s5 + $0x178] sm:$0xff] }
 0x36b   : > { %1461 = vmatprep.subr.mxu1 %v17768_v5  ;;  %v1335_v25 = vpop.permute.xlu1 %1334 }
 0x36c   : > { %1462 = vmatpush1.msra.mxu1 %v1335_v25  ;;  %v9593_v25 = vld [vmem:[%s17734_s5 + $0x170] sm:$0xff] }
 0x36d   : > { %v1381_v26 = vpop.permute.xlu0 %1380  ;;  %1479 = vmatprep.subr.mxu1 %v17768_v5 }
 0x36e   : > { %1480 = vmatpush2.msra.mxu1 %v1381_v26 }
 0x36f   : > { %1481 = vmatprep.subr.mxu1 %v17768_v5  ;;  %v1379_v27 = vpop.permute.xlu1 %1378 }
 0x370   : > { %1482 = vmatpush2.msra.mxu1 %v1379_v27 }
 0x371   : > { %v1377_v28 = vpop.permute.xlu0 %1376  ;;  %1483 = vmatprep.subr.mxu1 %v17768_v5 }
 0x372   : > { %1484 = vmatpush2.msra.mxu1 %v1377_v28 }
 0x373   : > { %1485 = vmatprep.subr.mxu1 %v17768_v5  ;;  %v1375_v29 = vpop.permute.xlu1 %1374 }
 0x374   : > { %1486 = vmatpush2.msra.mxu1 %v1375_v29 }
 0x375   : > { %v1373_v30 = vpop.permute.xlu0 %1372  ;;  %1487 = vmatprep.subr.mxu1 %v17768_v5 }
 0x376   : > { %1488 = vmatpush2.msra.mxu1 %v1373_v30  ;;  %v1962_v30 = vld [vmem:[%s17736_s7 + $0x38] sm:$0x1f] }
 0x377   : > { %1489 = vmatprep.subr.mxu1 %v17768_v5  ;;  %v1371_v32 = vpop.permute.xlu1 %1370  ;;  %10092 = vmatprep.subr.msk.mxu0 %vm1988_vm3, %v1962_v30 }
 0x378   : > { %1490 = vmatpush2.msra.mxu1 %v1371_v32  ;;  %10093 = vmatpush3.msk.msra.mxu0 %vm1988_vm3, %v1962_v30 }
 0x379   : > { %v1369_v33 = vpop.permute.xlu0 %1368  ;;  %1491 = vmatprep.subr.mxu1 %v17768_v5 }
 0x37a   : > { %1492 = vmatpush2.msra.mxu1 %v1369_v33 }
 0x37b   : > { %1493 = vmatprep.subr.mxu1 %v17768_v5  ;;  %v1367_v35 = vpop.permute.xlu1 %1366 }
 0x37c   : > { %1494 = vmatpush2.msra.mxu1 %v1367_v35 }
 0x37d   : > { %v1713_v37 = vpop.permute.xlu0 %1712  ;;  %1496 = vmatmul.mubr.f32.vlgmr.msra.gmra.mxu1 %v9547_v34  ;;  %1778 = vmatprep.subr.mxu1 %v17768_v5  ;;  %v1961_v34 = vld [vmem:[%s17736_s7 + $0x30] sm:$0xff] }
 0x37e   : > { %1779 = vmatpush1.msra.mxu1 %v1713_v37  ;;  %9564 = vmatprep.mubr.msk.f32.mxu1 %vm1406_vm2, %v9550_v36  ;;  %v1960_v36 = vld [vmem:[%s17736_s7 + $0x28] sm:$0xff] }
 0x37f   : > { %1780 = vmatprep.subr.mxu1 %v17768_v5  ;;  %v1711_v39 = vpop.permute.xlu1 %1710  ;;  %10094 = vmatprep.subr.mxu0 %v1961_v34 }
 0x380   : > { %1781 = vmatpush1.msra.mxu1 %v1711_v39  ;;  %10095 = vmatpush3.msra.mxu0 %v1961_v34 }
 0x381   : > { %v1709_v41 = vpop.permute.xlu0 %1708  ;;  %1782 = vmatprep.subr.mxu1 %v17768_v5  ;;  %1501 = vmatmul.mubr.f32.gmra.mxu1 %v9549_v38 }
 0x382   : > { %1783 = vmatpush1.msra.mxu1 %v1709_v41  ;;  %9565 = vmatprep.mubr.msk.f32.mxu1 %vm1406_vm2, %v9552_v40 }
 0x383   : > { %1784 = vmatprep.subr.mxu1 %v17768_v5  ;;  %v1707_v43 = vpop.permute.xlu1 %1706  ;;  %10096 = vmatprep.subr.mxu0 %v1960_v36 }
 0x384   : > { %1785 = vmatpush1.msra.mxu1 %v1707_v43  ;;  %10097 = vmatpush3.msra.mxu0 %v1960_v36 }
 0x385   : > { %v1705_v45 = vpop.permute.xlu0 %1704  ;;  %1786 = vmatprep.subr.mxu1 %v17768_v5  ;;  %1506 = vmatmul.mubr.f32.gmra.mxu1 %v9551_v42 }
 0x386   : > { %1787 = vmatpush1.msra.mxu1 %v1705_v45  ;;  %9566 = vmatprep.mubr.msk.f32.mxu1 %vm1406_vm2, %v9554_v44 }
 0x387   : > { %1788 = vmatprep.subr.mxu1 %v17768_v5  ;;  %v1703_v47 = vpop.permute.xlu1 %1702 }
 0x388   : > { %1789 = vmatpush1.msra.mxu1 %v1703_v47  ;;  %v1958_v47 = vld [vmem:[%s17736_s7 + $0x18] sm:$0xff] }
 0x389   : > { %v1701_v49 = vpop.permute.xlu0 %1700  ;;  %1790 = vmatprep.subr.mxu1 %v17768_v5  ;;  %1511 = vmatmul.mubr.f32.gmra.mxu1 %v9553_v46  ;;  %v1959_v46 = vld [vmem:[%s17736_s7 + $0x20] sm:$0xff] }
 0x38a   : > { %1791 = vmatpush1.msra.mxu1 %v1701_v49  ;;  %9567 = vmatprep.mubr.msk.f32.mxu1 %vm1406_vm2, %v9556_v48  ;;  %v1957_v48 = vld [vmem:[%s17736_s7 + $0x10] sm:$0xff]  ;;  %v1956_v49 = vld [vmem:[%s17736_s7 + $0x8] sm:$0xff] }
 0x38b   : > { %1792 = vmatprep.subr.mxu1 %v17768_v5  ;;  %v1699_v51 = vpop.permute.xlu1 %1698  ;;  %10098 = vmatprep.subr.mxu0 %v1959_v46 }
 0x38c   : > { %1793 = vmatpush1.msra.mxu1 %v1699_v51  ;;  %10099 = vmatpush3.msra.mxu0 %v1959_v46 }
 0x38d   : > { %v1697_v53 = vpop.permute.xlu0 %1696  ;;  %1794 = vmatprep.subr.mxu1 %v17768_v5  ;;  %1516 = vmatmul.mubr.f32.gmra.mxu1 %v9555_v50  ;;  %v1955_v50 = vld [vmem:[%s17736_s7] sm:$0xff] }
 0x38e   : > { %1795 = vmatpush1.msra.mxu1 %v1697_v53  ;;  %9568 = vmatprep.mubr.msk.f32.mxu1 %vm1406_vm2, %v9558_v52 }
 0x38f   : > { %1796 = vmatprep.subr.mxu1 %v17768_v5  ;;  %v1695_v55 = vpop.permute.xlu1 %1694  ;;  %10100 = vmatprep.subr.mxu0 %v1958_v47 }
 0x390   : > { %1797 = vmatpush1.msra.mxu1 %v1695_v55  ;;  %10101 = vmatpush3.msra.mxu0 %v1958_v47 }
 0x391   : > { %v1693_v57 = vpop.permute.xlu0 %1692  ;;  %1798 = vmatprep.subr.mxu1 %v17768_v5  ;;  %1521 = vmatmul.mubr.f32.gmra.mxu1 %v9557_v54 }
 0x392   : > { %1799 = vmatpush1.msra.mxu1 %v1693_v57  ;;  %9569 = vmatprep.mubr.msk.f32.mxu1 %vm1406_vm2, %v9560_v56 }
 0x393   : > { %1800 = vmatprep.subr.mxu1 %v17768_v5  ;;  %v1691_v59 = vpop.permute.xlu1 %1690  ;;  %10102 = vmatprep.subr.mxu0 %v1957_v48 }
 0x394   : > { %1801 = vmatpush1.msra.mxu1 %v1691_v59  ;;  %10103 = vmatpush3.msra.mxu0 %v1957_v48 }
 0x395   : > { %v1689_v61 = vpop.permute.xlu0 %1688  ;;  %1802 = vmatprep.subr.mxu1 %v17768_v5  ;;  %1526 = vmatmul.mubr.f32.gmra.mxu1 %v9559_v58 }
 0x396   : > { %1803 = vmatpush1.msra.mxu1 %v1689_v61  ;;  %9570 = vmatprep.mubr.msk.f32.mxu1 %vm1406_vm2, %v9562_v60 }
 0x397   : > { %1804 = vmatprep.subr.mxu1 %v17768_v5  ;;  %v1687_v63 = vpop.permute.xlu1 %1686  ;;  %10104 = vmatprep.subr.mxu0 %v1956_v49 }
 0x398   : > { %1805 = vmatpush1.msra.mxu1 %v1687_v63  ;;  %10105 = vmatpush3.msra.mxu0 %v1956_v49 }
 0x399   : > { %v1685_v12 = vpop.permute.xlu0 %1684  ;;  %1806 = vmatprep.subr.mxu1 %v17768_v5  ;;  %1531 = vmatmul.mubr.f32.gmra.mxu1 %v9561_v62 }
 0x39a   : > { %1807 = vmatpush1.msra.mxu1 %v1685_v12  ;;  %9595 = vmatprep.mubr.msk.f32.mxu1 %vm1406_vm2, %v9580_v0 }
 0x39b   : > { %1808 = vmatprep.subr.mxu1 %v17768_v5  ;;  %v1683_v1 = vpop.permute.xlu1 %1682  ;;  %10106 = vmatprep.subr.mxu0 %v1955_v50 }
 0x39c   : > { %1809 = vmatpush1.msra.mxu1 %v1683_v1  ;;  %10107 = vmatpush3.msra.mxu0 %v1955_v50 }
 0x39d   : > { %v1729_v2 = vpop.permute.xlu0 %1728  ;;  %1826 = vmatprep.subr.mxu1 %v17768_v5  ;;  %2483 = vmatprep.subr.mxu0 %v17768_v5 }
 0x39e   : > { %1827 = vmatpush2.msra.mxu1 %v1729_v2 }
 0x39f   : > { %1828 = vmatprep.subr.mxu1 %v17768_v5  ;;  %v1727_v3 = vpop.permute.xlu1 %1726 }
 0x3a0   : > { %1829 = vmatpush2.msra.mxu1 %v1727_v3 }
 0x3a1   : > { %v1725_v4 = vpop.permute.xlu0 %1724  ;;  %1830 = vmatprep.subr.mxu1 %v17768_v5 }
 0x3a2   : > { %1831 = vmatpush2.msra.mxu1 %v1725_v4 }
 0x3a3   : > { %1832 = vmatprep.subr.mxu1 %v17768_v5  ;;  %v1723_v6 = vpop.permute.xlu1 %1722 }
 0x3a4   : > { %1833 = vmatpush2.msra.mxu1 %v1723_v6 }
 0x3a5   : > { %v1721_v7 = vpop.permute.xlu0 %1720  ;;  %1834 = vmatprep.subr.mxu1 %v17768_v5 }
 0x3a6   : > { %1835 = vmatpush2.msra.mxu1 %v1721_v7 }
 0x3a7   : > { %1836 = vmatprep.subr.mxu1 %v17768_v5  ;;  %v1719_v22 = vpop.permute.xlu1 %1718 }
 0x3a8   : > { %1837 = vmatpush2.msra.mxu1 %v1719_v22 }
 0x3a9   : > { %v1717_v8 = vpop.permute.xlu0 %1716  ;;  %1838 = vmatprep.subr.mxu1 %v17768_v5 }
 0x3aa   : > { %1839 = vmatpush2.msra.mxu1 %v1717_v8 }
 0x3ab   : > { %1840 = vmatprep.subr.mxu1 %v17768_v5  ;;  %v1715_v10 = vpop.permute.xlu1 %1714 }
 0x3ac   : > { %1841 = vmatpush2.msra.mxu1 %v1715_v10 }
 0x3ad   : > { %1843 = vmatmul.mubr.f32.vlgmr.msra.gmra.mxu1 %v9579_v9  ;;  %2354 = vmatprep.subr.mxu1 %v17768_v5 }
 0x3ae   : > { %9596 = vmatprep.mubr.msk.f32.mxu1 %vm1406_vm2, %v9582_v11 }
 0x3b1   : > { %1848 = vmatmul.mubr.f32.gmra.mxu1 %v9581_v14 }
 0x3b2   : > { %9597 = vmatprep.mubr.msk.f32.mxu1 %vm1406_vm2, %v9584_v15 }
 0x3b5   : > { %1853 = vmatmul.mubr.f32.gmra.mxu1 %v9583_v16 }
 0x3b6   : > { %9598 = vmatprep.mubr.msk.f32.mxu1 %vm1406_vm2, %v9586_v13  ;;  %v1902_v6 = vpop.permute.xlu0 %1901 }
 0x3b8   : > { %v1907_v14 = vpop.permute.xlu1 %1906 }
 0x3b9   : > { %1858 = vmatmul.mubr.f32.gmra.mxu1 %v9585_v17 }
 0x3ba   : > { %9599 = vmatprep.mubr.msk.f32.mxu1 %vm1406_vm2, %v9588_v18 }
 0x3bd   : > { %1863 = vmatmul.mubr.f32.gmra.mxu1 %v9587_v31 }
 0x3be   : > { %9600 = vmatprep.mubr.msk.f32.mxu1 %vm1406_vm2, %v9590_v19  ;;  %v1912_v19 = vpop.permute.xlu0 %1911 }
 0x3c1   : > { %1868 = vmatmul.mubr.f32.gmra.mxu1 %v9589_v20 }
 0x3c2   : > { %9601 = vmatprep.mubr.msk.f32.mxu1 %vm1406_vm2, %v9592_v21  ;;  %v1922_v36 = vpop.permute.xlu0 %1921 }
 0x3c5   : > { %1873 = vmatmul.mubr.f32.gmra.mxu1 %v9591_v23 }
 0x3c6   : > { %9602 = vmatprep.mubr.msk.f32.mxu1 %vm1406_vm2, %v9594_v24 }
 0x3c9   : > { %1878 = vmatmul.mubr.f32.gmra.mxu1 %v9593_v25 }
 0x3ca   : > { %v1626_v26 = vpop.f32.mrf.mxu0 }
 0x3cc   : > { %v1628_v27 = vpop.f32.mrf.mxu0 }
 0x3cd   : > { %v1917_v27 = vpop.permute.xlu1 %1916 }
 0x3ce   : > { %v1631_v28 = vpop.f32.mrf.mxu0 }
 0x3d0   : > { %v1633_v29 = vpop.f32.mrf.mxu0 }
 0x3d1   : > { %v1927_v46 = vpop.permute.xlu1 %1926 }
 0x3d2   : > { %v11322_v32 = vpop.f32.mrf.mxu0 }
 0x3d4   : > { %v1638_v33 = vpop.f32.mrf.mxu0 }
 0x3d6   : > { %v11329_v35 = vpop.f32.mrf.mxu0 }
 0x3d8   : > { %v1643_v37 = vpop.f32.mrf.mxu0 }
 0x3da   : > { %v11334_v38 = vpop.f32.mrf.mxu0 }
 0x3dc   : > { %v1648_v39 = vpop.f32.mrf.mxu0 }
 0x3de   : > { %v11336_v40 = vpop.f32.mrf.mxu0 }
 0x3e0   : > { %v1653_v41 = vpop.f32.mrf.mxu0 }
 0x3e2   : > { %v11338_v42 = vpop.f32.mrf.mxu0 }
 0x3e4   : > { %v1658_v43 = vpop.f32.mrf.mxu0 }
 0x3e6   : > { %v11340_v44 = vpop.f32.mrf.mxu0 }
 0x3e8   : > { %v1663_v45 = vpop.f32.mrf.mxu0 }
 0x43d   : > { %v1497_v51 = vpop.f32.mrf.mxu1 }
 0x43e   : > { %v1627_v2 = vadd.f32 %v1626_v26, %v1497_v51 }
 0x43f   : > { %v1499_v52 = vpop.f32.mrf.mxu1 }
 0x440   : > { %v1932_v52 = vpop.permute.xlu0 %1931 }
 0x441   : > { %v1502_v53 = vpop.f32.mrf.mxu1 }
 0x442   : > { %v1632_v22 = vadd.f32 %v1631_v28, %v1502_v53 }
 0x443   : > { %v1504_v54 = vpop.f32.mrf.mxu1 }
 0x445   : > { %v1507_v55 = vpop.f32.mrf.mxu1 }
 0x446   : > { %v1637_v16 = vadd.f32 %v11322_v32, %v1507_v55 }
 0x447   : > { %v1509_v56 = vpop.f32.mrf.mxu1 }
 0x449   : > { %v1512_v57 = vpop.f32.mrf.mxu1 }
 0x44a   : > { %v1642_v21 = vadd.f32 %v11329_v35, %v1512_v57 }
 0x44b   : > { %v1514_v58 = vpop.f32.mrf.mxu1 }
 0x44c   : > { %v1937_v58 = vpop.permute.xlu1 %1936 }
 0x44d   : > { %v1517_v59 = vpop.f32.mrf.mxu1 }
 0x44e   : > { %v1647_v29 = vadd.f32 %v11334_v38, %v1517_v59 }
 0x44f   : > { %v1519_v60 = vpop.f32.mrf.mxu1 }
 0x451   : > { %v1522_v61 = vpop.f32.mrf.mxu1 }
 0x452   : > { %v1652_v35 = vadd.f32 %v11336_v40, %v1522_v61 }
 0x453   : > { %v1524_v62 = vpop.f32.mrf.mxu1 }
 0x455   : > { %v1527_v63 = vpop.f32.mrf.mxu1 }
 0x456   : > { %v1657_v38 = vadd.f32 %v11338_v42, %v1527_v63 }
 0x457   : > { %v1529_v0 = vpop.f32.mrf.mxu1 }
 0x459   : > { %v1532_v12 = vpop.f32.mrf.mxu1 }
 0x45a   : > { %v1662_v40 = vadd.f32 %v11340_v44, %v1532_v12 }
 0x45b   : > { %v1534_v1 = vpop.f32.mrf.mxu1 }
 0x46d   : > { %v1844_v3 = vpop.f32.mrf.mxu1 }
 0x46e   : > { %v1883_v4 = vadd.f32 %v1844_v3, %v1627_v2 }
 0x46f   : > { %v1846_v7 = vpop.f32.mrf.mxu1 }
 0x470   : > { %v1939_v8 = vadd.f32 %v1902_v6, %v1883_v4 }
 0x471   : > { %v1849_v9 = vpop.f32.mrf.mxu1 }
 0x472   : > { %v1947_v10 = vmax.f32 %v1939_v8, 0.0  ;;  %v1884_v11 = vadd.f32 %v1849_v9, %v1632_v22 }
 0x473   : > { %v1851_v15 = vpop.f32.mrf.mxu1 }
 0x474   : > { %v1940_v13 = vadd.f32 %v1907_v14, %v1884_v11  ;;  %10108 = vmatprep.mubr.msk.f32.mxu0 %vm1963_vm4, %v1947_v10 }
 0x475   : > { %v1854_v17 = vpop.f32.mrf.mxu1 }
 0x476   : > { %v1948_v18 = vmax.f32 %v1940_v13, 0.0  ;;  %v1885_v31 = vadd.f32 %v1854_v17, %v1637_v16 }
 0x477   : > { %v1856_v20 = vpop.f32.mrf.mxu1 }
 0x478   : > { %v1941_v23 = vadd.f32 %v1912_v19, %v1885_v31  ;;  %10109 = vmatmul.mubr.msk.f32.vlgmr.msra.gmra.mxu0 %vm1963_vm4, %v1948_v18 }
 0x479   : > { %v1859_v24 = vpop.f32.mrf.mxu1 }
 0x47a   : > { %v1949_v25 = vmax.f32 %v1941_v23, 0.0  ;;  %v1886_v26 = vadd.f32 %v1859_v24, %v1642_v21 }
 0x47b   : > { %v1861_v28 = vpop.f32.mrf.mxu1 }
 0x47c   : > { %v1942_v30 = vadd.f32 %v1917_v27, %v1886_v26  ;;  %10111 = vmatprep.mubr.msk.f32.mxu0 %vm1963_vm4, %v1949_v25 }
 0x47d   : > { %v1864_v32 = vpop.f32.mrf.mxu1 }
 0x47e   : > { %v1950_v33 = vmax.f32 %v1942_v30, 0.0  ;;  %v1887_v34 = vadd.f32 %v1864_v32, %v1647_v29 }
 0x47f   : > { %v1866_v37 = vpop.f32.mrf.mxu1 }
 0x480   : > { %v1943_v39 = vadd.f32 %v1922_v36, %v1887_v34  ;;  %10112 = vmatmul.mubr.msk.f32.gmra.mxu0 %vm1963_vm4, %v1950_v33 }
 0x481   : > { %v1869_v41 = vpop.f32.mrf.mxu1 }
 0x482   : > { %v1951_v43 = vmax.f32 %v1943_v39, 0.0  ;;  %v1888_v45 = vadd.f32 %v1869_v41, %v1652_v35  ;;  %v9613_v41 = vld [vmem:[%s17737_s8 + $0x88] sm:$0xff] }
 0x483   : > { %v1871_v47 = vpop.f32.mrf.mxu1  ;;  %9628 = vmatprep.mubr.msk.f32.mxu1 %vm1406_vm2, %v9613_v41 }
 0x484   : > { %v1944_v48 = vadd.f32 %v1927_v46, %v1888_v45  ;;  %10114 = vmatprep.mubr.msk.f32.mxu0 %vm1963_vm4, %v1951_v43  ;;  %v2178_v43 = vld [vmem:[%s17737_s8 + $0x8] sm:$0xff] }
 0x485   : > { %v1874_v49 = vpop.f32.mrf.mxu1 }
 0x486   : > { %v1952_v50 = vmax.f32 %v1944_v48, 0.0  ;;  %v1889_v51 = vadd.f32 %v1874_v49, %v1657_v38  ;;  %v2177_v49 = vld [vmem:[%s17737_s8] sm:$0xff] }
 0x487   : > { %v1876_v53 = vpop.f32.mrf.mxu1 }
 0x488   : > { %v1945_v54 = vadd.f32 %v1932_v52, %v1889_v51  ;;  %10115 = vmatmul.mubr.msk.f32.gmra.mxu0 %vm1963_vm4, %v1952_v50  ;;  %v2180_v51 = vld [vmem:[%s17737_s8 + $0x18] sm:$0xff]  ;;  %v2179_v52 = vld [vmem:[%s17737_s8 + $0x10] sm:$0xff]  ;;  %v2182_v53 = vld [vmem:[%s17737_s8 + $0x28] sm:$0xff] }
 0x489   : > { %v1879_v55 = vpop.f32.mrf.mxu1 }
 0x48a   : > { %v1953_v56 = vmax.f32 %v1945_v54, 0.0  ;;  %v1890_v57 = vadd.f32 %v1879_v55, %v1662_v40  ;;  %v2181_v40 = vld [vmem:[%s17737_s8 + $0x20] sm:$0xff]  ;;  %v2184_v54 = vld [vmem:[%s17737_s8 + $0x38] sm:$0xff]  ;;  %v2183_v55 = vld [vmem:[%s17737_s8 + $0x30] sm:$0xff] }
 0x48b   : > { %v1881_v59 = vpop.f32.mrf.mxu1 }
 0x48c   : > { %v1946_v60 = vadd.f32 %v1937_v58, %v1890_v57  ;;  %10117 = vmatprep.mubr.msk.f32.mxu0 %vm1963_vm4, %v1953_v56  ;;  %v2186_v56 = vld [vmem:[%s17737_s8 + $0x48] sm:$0xff]  ;;  %v2185_v57 = vld [vmem:[%s17737_s8 + $0x40] sm:$0xff]  ;;  %v2188_v58 = vld [vmem:[%s17737_s8 + $0x58] sm:$0xff] }
 0x48d   : > { %v2187_v59 = vld [vmem:[%s17737_s8 + $0x50] sm:$0xff] }
 0x48e   : > { %v1954_v42 = vmax.f32 %v1946_v60, 0.0  ;;  %v2190_v60 = vld [vmem:[%s17737_s8 + $0x68] sm:$0xff] }
 0x490   : > { %10118 = vmatmul.mubr.msk.f32.gmra.mxu0 %vm1963_vm4, %v1954_v42  ;;  %v2189_v42 = vld [vmem:[%s17737_s8 + $0x60] sm:$0xff] }
 0x491   : > { %9636 = vmatprep.mubr.msk.f32.mxu0 %vm1406_vm2, %v2178_v43  ;;  %v9619_v43 = vld [vmem:[%s17737_s8 + $0xb8] sm:$0xff] }
 0x538   : > { %v10110_v61 = vpop.f32.mrf.mxu0 }
 0x539   : > { %2098 = vst.msk [vmem:[#allocation2 + $0x8] sm:$0xff] %vm1172_vm1, %v10110_v61 }
 0x53a   : > { %v2058_v62 = vpop.f32.mrf.mxu0 }
 0x53b   : > { %2097 = vst.msk [vmem:[#allocation2] sm:$0xff] %vm1172_vm1, %v2058_v62 }
 0x540   : > { %v10113_v44 = vpop.f32.mrf.mxu0  ;;  %v11496_v36 = vld [vmem:[#allocation2 + $0x8] sm:$0xff] }
 0x541   : > { %2100 = vst.msk [vmem:[#allocation2 + $0x18] sm:$0xff] %vm1172_vm1, %v10113_v44 }
 0x542   : > { %v2068_v63 = vpop.f32.mrf.mxu0  ;;  %v11502_v37 = vld [vmem:[#allocation2] sm:$0xff] }
 0x543   : > { %2099 = vst.msk [vmem:[#allocation2 + $0x10] sm:$0xff] %vm1172_vm1, %v2068_v63 }
 0x548   : > { %v10116_v0 = vpop.f32.mrf.mxu0  ;;  %v11484_v33 = vld [vmem:[#allocation2 + $0x18] sm:$0xff] }
 0x549   : > { %2102 = vst.msk [vmem:[#allocation2 + $0x28] sm:$0xff] %vm1172_vm1, %v10116_v0 }
 0x54a   : > { %v2078_v12 = vpop.f32.mrf.mxu0  ;;  %v11490_v34 = vld [vmem:[#allocation2 + $0x10] sm:$0xff] }
 0x54b   : > { %2101 = vst.msk [vmem:[#allocation2 + $0x20] sm:$0xff] %vm1172_vm1, %v2078_v12 }
 0x550   : > { %v10119_v1 = vpop.f32.mrf.mxu0  ;;  %v11470_v29 = vld [vmem:[#allocation2 + $0x28] sm:$0xff] }
 0x551   : > { %2104 = vst.msk [vmem:[#allocation2 + $0x38] sm:$0xff] %vm1172_vm1, %v10119_v1  ;;  %2127 = vrot.lane.b32.xlu0 %v10119_v1, %s17841_s26 }
 0x552   : > { %v2088_v2 = vpop.f32.mrf.mxu0  ;;  %v11477_v32 = vld [vmem:[#allocation2 + $0x20] sm:$0xff] }
 0x553   : > { %2103 = vst.msk [vmem:[#allocation2 + $0x30] sm:$0xff] %vm1172_vm1, %v2088_v2  ;;  %2125 = vrot.lane.b32.xlu1 %v2088_v2, %s17841_s26 }
 0x555   : > { %2123 = vrot.lane.b32.xlu0 %v10116_v0, %s17841_s26 }
 0x557   : > { %2121 = vrot.lane.b32.xlu1 %v2078_v12, %s17841_s26 }
 0x558   : > { %v11456_v25 = vld [vmem:[#allocation2 + $0x38] sm:$0xff] }
 0x559   : > { %2119 = vrot.lane.b32.xlu0 %v10113_v44, %s17841_s26 }
 0x55a   : > { %v11463_v27 = vld [vmem:[#allocation2 + $0x30] sm:$0xff] }
 0x55b   : > { %2117 = vrot.lane.b32.xlu1 %v2068_v63, %s17841_s26 }
 0x55d   : > { %2115 = vrot.lane.b32.xlu0 %v10110_v61, %s17841_s26 }
 0x55f   : > { %2113 = vrot.lane.b32.xlu1 %v2058_v62, %s17841_s26  ;;  %s17845_s26 = smov 96  }
 0x561   : > { %2159 = vrot.lane.b32.xlu0 %v10119_v1, %s17842_s28  ;;  %v2818_v1 = vld [vmem:[%s17738_s9 + $0x20] sm:$0xff] }
 0x563   : > { %2157 = vrot.lane.b32.xlu1 %v2088_v2, %s17842_s28  ;;  %v2819_v2 = vld [vmem:[%s17738_s9 + $0x28] sm:$0xff] }
 0x565   : > { %2155 = vrot.lane.b32.xlu0 %v10116_v0, %s17842_s28  ;;  %v2816_v0 = vld [vmem:[%s17738_s9 + $0x10] sm:$0xff] }
 0x567   : > { %2153 = vrot.lane.b32.xlu1 %v2078_v12, %s17842_s28  ;;  %v2817_v12 = vld [vmem:[%s17738_s9 + $0x18] sm:$0xff] }
 0x569   : > { %2151 = vrot.lane.b32.xlu0 %v10113_v44, %s17842_s28  ;;  %v2814_v44 = vld [vmem:[%s17738_s9] sm:$0xff] }
 0x56b   : > { %2149 = vrot.lane.b32.xlu1 %v2068_v63, %s17842_s28  ;;  %v2815_v63 = vld [vmem:[%s17738_s9 + $0x8] sm:$0xff] }
 0x56d   : > { %2147 = vrot.lane.b32.xlu0 %v10110_v61, %s17842_s28  ;;  %v2192_v61 = vld [vmem:[%s17737_s8 + $0x78] sm:$0xff] }
 0x56f   : > { %2145 = vrot.lane.b32.xlu1 %v2058_v62, %s17842_s28  ;;  %v2191_v62 = vld [vmem:[%s17737_s8 + $0x70] sm:$0xff]  ;;  %s17846_s28 = smov 112  }
 0x5c3   : > { %v2128_v3 = vpop.permute.xlu0 %2127 }
 0x5c4   : > { %2144 = vst.msk [vmem:[#allocation2 + $0x78] sm:$0xff] %vm1172_vm1, %v2128_v3  ;;  %v2820_v3 = vld [vmem:[%s17738_s9 + $0x30] sm:$0xff] }
 0x5c5   : > { %v2126_v4 = vpop.permute.xlu1 %2125 }
 0x5c6   : > { %2143 = vst.msk [vmem:[#allocation2 + $0x70] sm:$0xff] %vm1172_vm1, %v2126_v4  ;;  %v2821_v4 = vld [vmem:[%s17738_s9 + $0x38] sm:$0xff] }
 0x5c7   : > { %v2124_v6 = vpop.permute.xlu0 %2123 }
 0x5c8   : > { %2142 = vst.msk [vmem:[#allocation2 + $0x68] sm:$0xff] %vm1172_vm1, %v2124_v6 }
 0x5c9   : > { %v2122_v7 = vpop.permute.xlu1 %2121 }
 0x5ca   : > { %2141 = vst.msk [vmem:[#allocation2 + $0x60] sm:$0xff] %vm1172_vm1, %v2122_v7 }
 0x5cb   : > { %v2120_v22 = vpop.permute.xlu0 %2119  ;;  %v11400_v8 = vld [vmem:[#allocation2 + $0x78] sm:$0xff] }
 0x5cc   : > { %2140 = vst.msk [vmem:[#allocation2 + $0x58] sm:$0xff] %vm1172_vm1, %v2120_v22  ;;  %2288 = vrot.lane.b32.xlu0 %v11400_v8, %s17843_s21  ;;  %2484 = vmatpush1.msra.mxu0 %v11400_v8 }
 0x5cd   : > { %2485 = vmatprep.subr.mxu0 %v17768_v5  ;;  %v2118_v9 = vpop.permute.xlu1 %2117  ;;  %v11407_v10 = vld [vmem:[#allocation2 + $0x70] sm:$0xff] }
 0x5ce   : > { %2139 = vst.msk [vmem:[#allocation2 + $0x50] sm:$0xff] %vm1172_vm1, %v2118_v9  ;;  %2286 = vrot.lane.b32.xlu1 %v11407_v10, %s17843_s21  ;;  %2486 = vmatpush1.msra.mxu0 %v11407_v10 }
 0x5cf   : > { %v2116_v11 = vpop.permute.xlu0 %2115  ;;  %2487 = vmatprep.subr.mxu0 %v17768_v5  ;;  %v11414_v14 = vld [vmem:[#allocation2 + $0x68] sm:$0xff] }
 0x5d0   : > { %2138 = vst.msk [vmem:[#allocation2 + $0x48] sm:$0xff] %vm1172_vm1, %v2116_v11  ;;  %2284 = vrot.lane.b32.xlu0 %v11414_v14, %s17843_s21  ;;  %2488 = vmatpush1.msra.mxu0 %v11414_v14 }
 0x5d1   : > { %2489 = vmatprep.subr.mxu0 %v17768_v5  ;;  %v2114_v15 = vpop.permute.xlu1 %2113  ;;  %v11421_v16 = vld [vmem:[#allocation2 + $0x60] sm:$0xff] }
 0x5d2   : > { %2137 = vst.msk [vmem:[#allocation2 + $0x40] sm:$0xff] %vm1172_vm1, %v2114_v15  ;;  %2282 = vrot.lane.b32.xlu1 %v11421_v16, %s17843_s21  ;;  %2490 = vmatpush1.msra.mxu0 %v11421_v16 }
 0x5d3   : > { %v2160_v13 = vpop.permute.xlu0 %2159  ;;  %2491 = vmatprep.subr.mxu0 %v17768_v5  ;;  %v11428_v17 = vld [vmem:[#allocation2 + $0x58] sm:$0xff] }
 0x5d4   : > { %2176 = vst.msk [vmem:[#allocation2 + $0xb8] sm:$0xff] %vm1172_vm1, %v2160_v13  ;;  %2280 = vrot.lane.b32.xlu0 %v11428_v17, %s17843_s21  ;;  %2492 = vmatpush1.msra.mxu0 %v11428_v17 }
 0x5d5   : > { %2493 = vmatprep.subr.mxu0 %v17768_v5  ;;  %v2158_v18 = vpop.permute.xlu1 %2157  ;;  %v11435_v31 = vld [vmem:[#allocation2 + $0x50] sm:$0xff] }
 0x5d6   : > { %2175 = vst.msk [vmem:[#allocation2 + $0xb0] sm:$0xff] %vm1172_vm1, %v2158_v18  ;;  %2278 = vrot.lane.b32.xlu1 %v11435_v31, %s17843_s21  ;;  %2494 = vmatpush1.msra.mxu0 %v11435_v31 }
 0x5d7   : > { %v2156_v19 = vpop.permute.xlu0 %2155  ;;  %2495 = vmatprep.subr.mxu0 %v17768_v5  ;;  %v11442_v20 = vld [vmem:[#allocation2 + $0x48] sm:$0xff] }
 0x5d8   : > { %2174 = vst.msk [vmem:[#allocation2 + $0xa8] sm:$0xff] %vm1172_vm1, %v2156_v19  ;;  %2276 = vrot.lane.b32.xlu0 %v11442_v20, %s17843_s21  ;;  %2496 = vmatpush1.msra.mxu0 %v11442_v20 }
 0x5d9   : > { %2497 = vmatprep.subr.mxu0 %v17768_v5  ;;  %v2154_v21 = vpop.permute.xlu1 %2153  ;;  %v11449_v23 = vld [vmem:[#allocation2 + $0x40] sm:$0xff] }
 0x5da   : > { %2173 = vst.msk [vmem:[#allocation2 + $0xa0] sm:$0xff] %vm1172_vm1, %v2154_v21  ;;  %2274 = vrot.lane.b32.xlu1 %v11449_v23, %s17843_s21  ;;  %2498 = vmatpush1.msra.mxu0 %v11449_v23 }
 0x5db   : > { %v2152_v24 = vpop.permute.xlu0 %2151  ;;  %2499 = vmatprep.subr.mxu0 %v17768_v5  ;;  %v11508_v35 = vld [vmem:[#allocation2 + $0xb8] sm:$0xff] }
 0x5dc   : > { %2172 = vst.msk [vmem:[#allocation2 + $0x98] sm:$0xff] %vm1172_vm1, %v2152_v24  ;;  %2272 = vrot.lane.b32.xlu0 %v11456_v25, %s17843_s21  ;;  %2500 = vmatpush1.msra.mxu0 %v11456_v25 }
 0x5dd   : > { %2501 = vmatprep.subr.mxu0 %v17768_v5  ;;  %v2150_v26 = vpop.permute.xlu1 %2149  ;;  %v11514_v39 = vld [vmem:[#allocation2 + $0xb0] sm:$0xff] }
 0x5de   : > { %2171 = vst.msk [vmem:[#allocation2 + $0x90] sm:$0xff] %vm1172_vm1, %v2150_v26  ;;  %2270 = vrot.lane.b32.xlu1 %v11463_v27, %s17843_s21  ;;  %2502 = vmatpush1.msra.mxu0 %v11463_v27 }
 0x5df   : > { %v2148_v28 = vpop.permute.xlu0 %2147  ;;  %2503 = vmatprep.subr.mxu0 %v17768_v5  ;;  %v11526_v45 = vld [vmem:[#allocation2 + $0xa8] sm:$0xff] }
 0x5e0   : > { %2170 = vst.msk [vmem:[#allocation2 + $0x88] sm:$0xff] %vm1172_vm1, %v2148_v28  ;;  %2268 = vrot.lane.b32.xlu0 %v11470_v29, %s17843_s21  ;;  %2504 = vmatpush1.msra.mxu0 %v11470_v29 }
 0x5e1   : > { %v2146_v30 = vpop.permute.xlu1 %2145  ;;  %2505 = vmatprep.subr.mxu0 %v17768_v5  ;;  %v11533_v46 = vld [vmem:[#allocation2 + $0xa0] sm:$0xff] }
 0x5e2   : > { %2169 = vst.msk [vmem:[#allocation2 + $0x80] sm:$0xff] %vm1172_vm1, %v2146_v30  ;;  %2266 = vrot.lane.b32.xlu1 %v11477_v32, %s17843_s21  ;;  %2506 = vmatpush1.msra.mxu0 %v11477_v32 }
 0x5e3   : > { %2507 = vmatprep.subr.mxu0 %v17768_v5  ;;  %v11540_v47 = vld [vmem:[#allocation2 + $0x98] sm:$0xff] }
 0x5e4   : > { %2264 = vrot.lane.b32.xlu0 %v11484_v33, %s17843_s21  ;;  %2508 = vmatpush1.msra.mxu0 %v11484_v33 }
 0x5e5   : > { %2509 = vmatprep.subr.mxu0 %v17768_v5  ;;  %v2211_v38 = vld [vmem:[#allocation2 + $0x90] sm:$0xff] }
 0x5e6   : > { %2262 = vrot.lane.b32.xlu1 %v11490_v34, %s17843_s21  ;;  %2510 = vmatpush1.msra.mxu0 %v11490_v34 }
 0x5e7   : > { %2511 = vmatprep.subr.mxu0 %v17768_v5  ;;  %v2210_v48 = vld [vmem:[#allocation2 + $0x88] sm:$0xff] }
 0x5e8   : > { %2260 = vrot.lane.b32.xlu0 %v11496_v36, %s17843_s21  ;;  %2512 = vmatpush1.msra.mxu0 %v11496_v36 }
 0x5e9   : > { %2513 = vmatprep.subr.mxu0 %v17768_v5  ;;  %v2209_v50 = vld [vmem:[#allocation2 + $0x80] sm:$0xff] }
 0x5ea   : > { %2258 = vrot.lane.b32.xlu1 %v11502_v37, %s17843_s21  ;;  %2514 = vmatpush1.msra.mxu0 %v11502_v37 }
 0x5eb   : > { %2531 = vmatprep.subr.mxu0 %v17768_v5 }
 0x5ec   : > { %2304 = vrot.lane.b32.xlu0 %v11508_v35, %s17843_s21  ;;  %2532 = vmatpush2.msra.mxu0 %v11508_v35 }
 0x5ed   : > { %2533 = vmatprep.subr.mxu0 %v17768_v5 }
 0x5ee   : > { %2302 = vrot.lane.b32.xlu1 %v11514_v39, %s17843_s21  ;;  %2534 = vmatpush2.msra.mxu0 %v11514_v39 }
 0x5ef   : > { %2535 = vmatprep.subr.mxu0 %v17768_v5 }
 0x5f0   : > { %2300 = vrot.lane.b32.xlu0 %v11526_v45, %s17843_s21  ;;  %2536 = vmatpush2.msra.mxu0 %v11526_v45 }
 0x5f1   : > { %2537 = vmatprep.subr.mxu0 %v17768_v5 }
 0x5f2   : > { %2298 = vrot.lane.b32.xlu1 %v11533_v46, %s17843_s21  ;;  %2538 = vmatpush2.msra.mxu0 %v11533_v46 }
 0x5f3   : > { %2539 = vmatprep.subr.mxu0 %v17768_v5 }
 0x5f4   : > { %2296 = vrot.lane.b32.xlu0 %v11540_v47, %s17843_s21  ;;  %2540 = vmatpush2.msra.mxu0 %v11540_v47 }
 0x5f5   : > { %2541 = vmatprep.subr.mxu0 %v17768_v5 }
 0x5f6   : > { %2294 = vrot.lane.b32.xlu1 %v2211_v38, %s17843_s21  ;;  %2542 = vmatpush2.msra.mxu0 %v2211_v38 }
 0x5f7   : > { %2543 = vmatprep.subr.mxu0 %v17768_v5 }
 0x5f8   : > { %2292 = vrot.lane.b32.xlu0 %v2210_v48, %s17843_s21  ;;  %2544 = vmatpush2.msra.mxu0 %v2210_v48 }
 0x5f9   : > { %2545 = vmatprep.subr.mxu0 %v17768_v5 }
 0x5fa   : > { %2290 = vrot.lane.b32.xlu1 %v2209_v50, %s17843_s21  ;;  %2546 = vmatpush2.msra.mxu0 %v2209_v50 }
 0x5fb   : > { %2548 = vmatmul.mubr.f32.vlgmr.msra.gmra.mxu0 %v2177_v49  ;;  %v9620_v49 = vld [vmem:[%s17737_s8 + $0xc0] sm:$0xff] }
 0x5fc   : > { %2635 = vrot.lane.b32.xlu0 %v11400_v8, %s17844_s25  ;;  %9637 = vmatprep.mubr.msk.f32.mxu0 %vm1406_vm2, %v2180_v51  ;;  %v9623_v51 = vld [vmem:[%s17737_s8 + $0xd8] sm:$0xff] }
 0x5fe   : > { %2633 = vrot.lane.b32.xlu1 %v11407_v10, %s17844_s25 }
 0x5ff   : > { %2553 = vmatmul.mubr.f32.gmra.mxu0 %v2179_v52 }
 0x600   : > { %2631 = vrot.lane.b32.xlu0 %v11414_v14, %s17844_s25  ;;  %9638 = vmatprep.mubr.msk.f32.mxu0 %vm1406_vm2, %v2182_v53  ;;  %v9622_v53 = vld [vmem:[%s17737_s8 + $0xd0] sm:$0xff] }
 0x602   : > { %2629 = vrot.lane.b32.xlu1 %v11421_v16, %s17844_s25 }
 0x603   : > { %2558 = vmatmul.mubr.f32.gmra.mxu0 %v2181_v40 }
 0x604   : > { %2627 = vrot.lane.b32.xlu0 %v11428_v17, %s17844_s25  ;;  %9639 = vmatprep.mubr.msk.f32.mxu0 %vm1406_vm2, %v2184_v54  ;;  %v9625_v54 = vld [vmem:[%s17737_s8 + $0xe8] sm:$0xff] }
 0x606   : > { %2625 = vrot.lane.b32.xlu1 %v11435_v31, %s17844_s25 }
 0x607   : > { %2563 = vmatmul.mubr.f32.gmra.mxu0 %v2183_v55 }
 0x608   : > { %2623 = vrot.lane.b32.xlu0 %v11442_v20, %s17844_s25  ;;  %9640 = vmatprep.mubr.msk.f32.mxu0 %vm1406_vm2, %v2186_v56  ;;  %v9624_v56 = vld [vmem:[%s17737_s8 + $0xe0] sm:$0xff] }
 0x60a   : > { %2621 = vrot.lane.b32.xlu1 %v11449_v23, %s17844_s25 }
 0x60b   : > { %2568 = vmatmul.mubr.f32.gmra.mxu0 %v2185_v57 }
 0x60c   : > { %2619 = vrot.lane.b32.xlu0 %v11456_v25, %s17844_s25  ;;  %9641 = vmatprep.mubr.msk.f32.mxu0 %vm1406_vm2, %v2188_v58  ;;  %v9627_v58 = vld [vmem:[%s17737_s8 + $0xf8] sm:$0xff] }
 0x60e   : > { %2617 = vrot.lane.b32.xlu1 %v11463_v27, %s17844_s25 }
 0x60f   : > { %2573 = vmatmul.mubr.f32.gmra.mxu0 %v2187_v59 }
 0x610   : > { %2615 = vrot.lane.b32.xlu0 %v11470_v29, %s17844_s25  ;;  %9642 = vmatprep.mubr.msk.f32.mxu0 %vm1406_vm2, %v2190_v60  ;;  %v9612_v29 = vld [vmem:[%s17737_s8 + $0x80] sm:$0xff]  ;;  %v9626_v60 = vld [vmem:[%s17737_s8 + $0xf0] sm:$0xff] }
 0x612   : > { %2613 = vrot.lane.b32.xlu1 %v11477_v32, %s17844_s25  ;;  %v9615_v32 = vld [vmem:[%s17737_s8 + $0x98] sm:$0xff] }
 0x613   : > { %2578 = vmatmul.mubr.f32.gmra.mxu0 %v2189_v42 }
 0x614   : > { %2611 = vrot.lane.b32.xlu0 %v11484_v33, %s17844_s25  ;;  %9643 = vmatprep.mubr.msk.f32.mxu0 %vm1406_vm2, %v2192_v61  ;;  %v9645_v61 = vld [vmem:[%s17737_s8 + $0x108] sm:$0xff] }
 0x616   : > { %2609 = vrot.lane.b32.xlu1 %v11490_v34, %s17844_s25  ;;  %v9614_v34 = vld [vmem:[%s17737_s8 + $0x90] sm:$0xff] }
 0x617   : > { %2583 = vmatmul.mubr.f32.gmra.mxu0 %v2191_v62 }
 0x618   : > { %2607 = vrot.lane.b32.xlu0 %v11496_v36, %s17844_s25  ;;  %2988 = vmatprep.mubr.f32.mxu0 %v17768_v5 }
 0x61a   : > { %2605 = vrot.lane.b32.xlu1 %v11502_v37, %s17844_s25  ;;  %v9617_v37 = vld [vmem:[%s17737_s8 + $0xa8] sm:$0xff] }
 0x61c   : > { %2651 = vrot.lane.b32.xlu0 %v11508_v35, %s17844_s25 }
 0x61e   : > { %2649 = vrot.lane.b32.xlu1 %v11514_v39, %s17844_s25  ;;  %v9616_v39 = vld [vmem:[%s17737_s8 + $0xa0] sm:$0xff] }
 0x620   : > { %2647 = vrot.lane.b32.xlu0 %v11526_v45, %s17844_s25 }
 0x622   : > { %2645 = vrot.lane.b32.xlu1 %v11533_v46, %s17844_s25  ;;  %v9618_v46 = vld [vmem:[%s17737_s8 + $0xb0] sm:$0xff] }
 0x624   : > { %2643 = vrot.lane.b32.xlu0 %v11540_v47, %s17844_s25 }
 0x626   : > { %2641 = vrot.lane.b32.xlu1 %v2211_v38, %s17844_s25  ;;  %v9621_v38 = vld [vmem:[%s17737_s8 + $0xc8] sm:$0xff] }
 0x628   : > { %2639 = vrot.lane.b32.xlu0 %v2210_v48, %s17844_s25 }
 0x62a   : > { %2637 = vrot.lane.b32.xlu1 %v2209_v50, %s17844_s25 }
 0x62c   : > { %2824 = vperm.xlu0 %10243, %v2814_v44  }
 0x62e   : > { %2829 = vperm.xlu1 %10244, %v2815_v63  }
 0x630   : > { %2834 = vperm.xlu0 %10243, %v2816_v0  }
 0x632   : > { %2839 = vperm.xlu1 %10244, %v2817_v12  }
 0x634   : > { %2844 = vperm.xlu0 %10243, %v2818_v1  }
 0x636   : > { %2849 = vperm.xlu1 %10244, %v2819_v2  }
 0x638   : > { %2854 = vperm.xlu0 %10243, %v2820_v3  }
 0x63a   : > { %2859 = vperm.xlu1 %10244, %v2821_v4  }
 0x63e   : > { %v2289_v6 = vpop.permute.xlu0 %2288 }
 0x63f   : > { %2355 = vmatpush1.msra.mxu1 %v2289_v6  ;;  %v9644_v6 = vld [vmem:[%s17737_s8 + $0x100] sm:$0xff] }
 0x640   : > { %2356 = vmatprep.subr.mxu1 %v17768_v5  ;;  %v2287_v7 = vpop.permute.xlu1 %2286 }
 0x641   : > { %2357 = vmatpush1.msra.mxu1 %v2287_v7 }
 0x642   : > { %v2285_v22 = vpop.permute.xlu0 %2284  ;;  %2358 = vmatprep.subr.mxu1 %v17768_v5 }
 0x643   : > { %2359 = vmatpush1.msra.mxu1 %v2285_v22  ;;  %v9647_v22 = vld [vmem:[%s17737_s8 + $0x118] sm:$0xff] }
 0x644   : > { %2360 = vmatprep.subr.mxu1 %v17768_v5  ;;  %v2283_v8 = vpop.permute.xlu1 %2282 }
 0x645   : > { %2361 = vmatpush1.msra.mxu1 %v2283_v8  ;;  %v9646_v8 = vld [vmem:[%s17737_s8 + $0x110] sm:$0xff] }
 0x646   : > { %v2281_v9 = vpop.permute.xlu0 %2280  ;;  %2362 = vmatprep.subr.mxu1 %v17768_v5 }
 0x647   : > { %2363 = vmatpush1.msra.mxu1 %v2281_v9  ;;  %v9649_v9 = vld [vmem:[%s17737_s8 + $0x128] sm:$0xff] }
 0x648   : > { %2364 = vmatprep.subr.mxu1 %v17768_v5  ;;  %v2279_v10 = vpop.permute.xlu1 %2278 }
 0x649   : > { %2365 = vmatpush1.msra.mxu1 %v2279_v10  ;;  %v9648_v10 = vld [vmem:[%s17737_s8 + $0x120] sm:$0xff] }
 0x64a   : > { %v2277_v11 = vpop.permute.xlu0 %2276  ;;  %2366 = vmatprep.subr.mxu1 %v17768_v5 }
 0x64b   : > { %2367 = vmatpush1.msra.mxu1 %v2277_v11  ;;  %v9651_v11 = vld [vmem:[%s17737_s8 + $0x138] sm:$0xff] }
 0x64c   : > { %2368 = vmatprep.subr.mxu1 %v17768_v5  ;;  %v2275_v14 = vpop.permute.xlu1 %2274 }
 0x64d   : > { %2369 = vmatpush1.msra.mxu1 %v2275_v14  ;;  %v9650_v14 = vld [vmem:[%s17737_s8 + $0x130] sm:$0xff] }
 0x64e   : > { %v2273_v15 = vpop.permute.xlu0 %2272  ;;  %2370 = vmatprep.subr.mxu1 %v17768_v5 }
 0x64f   : > { %2371 = vmatpush1.msra.mxu1 %v2273_v15  ;;  %v9653_v15 = vld [vmem:[%s17737_s8 + $0x148] sm:$0xff] }
 0x650   : > { %2372 = vmatprep.subr.mxu1 %v17768_v5  ;;  %v2271_v16 = vpop.permute.xlu1 %2270 }
 0x651   : > { %2373 = vmatpush1.msra.mxu1 %v2271_v16  ;;  %v9652_v16 = vld [vmem:[%s17737_s8 + $0x140] sm:$0xff] }
 0x652   : > { %v2269_v13 = vpop.permute.xlu0 %2268  ;;  %2374 = vmatprep.subr.mxu1 %v17768_v5 }
 0x653   : > { %2375 = vmatpush1.msra.mxu1 %v2269_v13  ;;  %v9655_v13 = vld [vmem:[%s17737_s8 + $0x158] sm:$0xff] }
 0x654   : > { %2376 = vmatprep.subr.mxu1 %v17768_v5  ;;  %v2267_v17 = vpop.permute.xlu1 %2266 }
 0x655   : > { %2377 = vmatpush1.msra.mxu1 %v2267_v17  ;;  %v9654_v17 = vld [vmem:[%s17737_s8 + $0x150] sm:$0xff] }
 0x656   : > { %v2265_v18 = vpop.permute.xlu0 %2264  ;;  %2378 = vmatprep.subr.mxu1 %v17768_v5 }
 0x657   : > { %2379 = vmatpush1.msra.mxu1 %v2265_v18  ;;  %v9657_v18 = vld [vmem:[%s17737_s8 + $0x168] sm:$0xff] }
 0x658   : > { %2380 = vmatprep.subr.mxu1 %v17768_v5  ;;  %v2263_v31 = vpop.permute.xlu1 %2262 }
 0x659   : > { %2381 = vmatpush1.msra.mxu1 %v2263_v31  ;;  %v9656_v31 = vld [vmem:[%s17737_s8 + $0x160] sm:$0xff] }
 0x65a   : > { %v2261_v19 = vpop.permute.xlu0 %2260  ;;  %2382 = vmatprep.subr.mxu1 %v17768_v5 }
 0x65b   : > { %2383 = vmatpush1.msra.mxu1 %v2261_v19  ;;  %v9659_v19 = vld [vmem:[%s17737_s8 + $0x178] sm:$0xff] }
 0x65c   : > { %2384 = vmatprep.subr.mxu1 %v17768_v5  ;;  %v2259_v20 = vpop.permute.xlu1 %2258 }
 0x65d   : > { %2385 = vmatpush1.msra.mxu1 %v2259_v20  ;;  %v2893_v20 = vld [vmem:[%s17739_s10 + $0x78] sm:$0x1f] }
 0x65e   : > { %v2305_v21 = vpop.permute.xlu0 %2304  ;;  %2402 = vmatprep.subr.mxu1 %v17768_v5  ;;  %9668 = vmatprep.subr.msk.mxu0 %vm1988_vm3, %v2893_v20 }
 0x65f   : > { %2403 = vmatpush2.msra.mxu1 %v2305_v21  ;;  %v2892_v21 = vld [vmem:[%s17739_s10 + $0x70] sm:$0x1f] }
 0x660   : > { %2404 = vmatprep.subr.mxu1 %v17768_v5  ;;  %v2303_v23 = vpop.permute.xlu1 %2302  ;;  %9669 = vmatpush1.msk.msra.mxu0 %vm1988_vm3, %v2892_v21 }
 0x661   : > { %2405 = vmatpush2.msra.mxu1 %v2303_v23  ;;  %v9658_v23 = vld [vmem:[%s17737_s8 + $0x170] sm:$0xff] }
 0x662   : > { %v2301_v24 = vpop.permute.xlu0 %2300  ;;  %2406 = vmatprep.subr.mxu1 %v17768_v5 }
 0x663   : > { %2407 = vmatpush2.msra.mxu1 %v2301_v24  ;;  %v2891_v24 = vld [vmem:[%s17739_s10 + $0x68] sm:$0xff] }
 0x664   : > { %2408 = vmatprep.subr.mxu1 %v17768_v5  ;;  %v2299_v25 = vpop.permute.xlu1 %2298  ;;  %2942 = vmatprep.subr.mxu0 %v2891_v24 }
 0x665   : > { %2409 = vmatpush2.msra.mxu1 %v2299_v25  ;;  %v2890_v25 = vld [vmem:[%s17739_s10 + $0x60] sm:$0xff] }
 0x666   : > { %v2297_v26 = vpop.permute.xlu0 %2296  ;;  %2410 = vmatprep.subr.mxu1 %v17768_v5  ;;  %2943 = vmatpush1.msra.mxu0 %v2890_v25 }
 0x667   : > { %2411 = vmatpush2.msra.mxu1 %v2297_v26 }
 0x668   : > { %2412 = vmatprep.subr.mxu1 %v17768_v5  ;;  %v2295_v27 = vpop.permute.xlu1 %2294 }
 0x669   : > { %2413 = vmatpush2.msra.mxu1 %v2295_v27 }
 0x66a   : > { %v2293_v28 = vpop.permute.xlu0 %2292  ;;  %2414 = vmatprep.subr.mxu1 %v17768_v5 }
 0x66b   : > { %2415 = vmatpush2.msra.mxu1 %v2293_v28  ;;  %v2889_v28 = vld [vmem:[%s17739_s10 + $0x58] sm:$0xff] }
 0x66c   : > { %2416 = vmatprep.subr.mxu1 %v17768_v5  ;;  %v2291_v30 = vpop.permute.xlu1 %2290  ;;  %2944 = vmatprep.subr.mxu0 %v2889_v28 }
 0x66d   : > { %2417 = vmatpush2.msra.mxu1 %v2291_v30  ;;  %v2887_v30 = vld [vmem:[%s17739_s10 + $0x48] sm:$0xff] }
 0x66e   : > { %v2636_v33 = vpop.permute.xlu0 %2635  ;;  %2419 = vmatmul.mubr.f32.vlgmr.msra.gmra.mxu1 %v9612_v29  ;;  %2701 = vmatprep.subr.mxu1 %v17768_v5  ;;  %v2888_v29 = vld [vmem:[%s17739_s10 + $0x50] sm:$0xff] }
 0x66f   : > { %2702 = vmatpush1.msra.mxu1 %v2636_v33  ;;  %9629 = vmatprep.mubr.msk.f32.mxu1 %vm1406_vm2, %v9615_v32  ;;  %v2886_v32 = vld [vmem:[%s17739_s10 + $0x40] sm:$0xff] }
 0x670   : > { %2703 = vmatprep.subr.mxu1 %v17768_v5  ;;  %v2634_v36 = vpop.permute.xlu1 %2633  ;;  %2945 = vmatpush1.msra.mxu0 %v2888_v29 }
 0x671   : > { %2704 = vmatpush1.msra.mxu1 %v2634_v36  ;;  %2946 = vmatprep.subr.mxu0 %v2887_v30  ;;  %v2885_v36 = vld [vmem:[%s17739_s10 + $0x38] sm:$0xff] }
 0x672   : > { %v2632_v35 = vpop.permute.xlu0 %2631  ;;  %2705 = vmatprep.subr.mxu1 %v17768_v5  ;;  %2424 = vmatmul.mubr.f32.gmra.mxu1 %v9614_v34 }
 0x673   : > { %2706 = vmatpush1.msra.mxu1 %v2632_v35  ;;  %9630 = vmatprep.mubr.msk.f32.mxu1 %vm1406_vm2, %v9617_v37  ;;  %v2884_v37 = vld [vmem:[%s17739_s10 + $0x30] sm:$0xff] }
 0x674   : > { %2707 = vmatprep.subr.mxu1 %v17768_v5  ;;  %v2630_v41 = vpop.permute.xlu1 %2629  ;;  %2947 = vmatpush1.msra.mxu0 %v2886_v32 }
 0x675   : > { %2708 = vmatpush1.msra.mxu1 %v2630_v41  ;;  %2948 = vmatprep.subr.mxu0 %v2885_v36  ;;  %v2883_v41 = vld [vmem:[%s17739_s10 + $0x28] sm:$0xff] }
 0x676   : > { %v2628_v45 = vpop.permute.xlu0 %2627  ;;  %2709 = vmatprep.subr.mxu1 %v17768_v5  ;;  %2429 = vmatmul.mubr.f32.gmra.mxu1 %v9616_v39 }
 0x677   : > { %2710 = vmatpush1.msra.mxu1 %v2628_v45  ;;  %9631 = vmatprep.mubr.msk.f32.mxu1 %vm1406_vm2, %v9619_v43  ;;  %v2882_v43 = vld [vmem:[%s17739_s10 + $0x20] sm:$0xff] }
 0x678   : > { %2711 = vmatprep.subr.mxu1 %v17768_v5  ;;  %v2626_v47 = vpop.permute.xlu1 %2625  ;;  %2949 = vmatpush1.msra.mxu0 %v2884_v37 }
 0x679   : > { %2712 = vmatpush1.msra.mxu1 %v2626_v47  ;;  %2950 = vmatprep.subr.mxu0 %v2883_v41  ;;  %v2880_v47 = vld [vmem:[%s17739_s10 + $0x10] sm:$0xff] }
 0x67a   : > { %v2624_v48 = vpop.permute.xlu0 %2623  ;;  %2713 = vmatprep.subr.mxu1 %v17768_v5  ;;  %2434 = vmatmul.mubr.f32.gmra.mxu1 %v9618_v46  ;;  %v2881_v46 = vld [vmem:[%s17739_s10 + $0x18] sm:$0xff] }
 0x67b   : > { %2714 = vmatpush1.msra.mxu1 %v2624_v48  ;;  %9632 = vmatprep.mubr.msk.f32.mxu1 %vm1406_vm2, %v9621_v38 }
 0x67c   : > { %2715 = vmatprep.subr.mxu1 %v17768_v5  ;;  %v2622_v50 = vpop.permute.xlu1 %2621  ;;  %2951 = vmatpush1.msra.mxu0 %v2882_v43 }
 0x67d   : > { %2716 = vmatpush1.msra.mxu1 %v2622_v50  ;;  %2952 = vmatprep.subr.mxu0 %v2881_v46 }
 0x67e   : > { %v2620_v52 = vpop.permute.xlu0 %2619  ;;  %2717 = vmatprep.subr.mxu1 %v17768_v5  ;;  %2439 = vmatmul.mubr.f32.gmra.mxu1 %v9620_v49 }
 0x67f   : > { %2718 = vmatpush1.msra.mxu1 %v2620_v52  ;;  %9633 = vmatprep.mubr.msk.f32.mxu1 %vm1406_vm2, %v9623_v51 }
 0x680   : > { %2719 = vmatprep.subr.mxu1 %v17768_v5  ;;  %v2618_v40 = vpop.permute.xlu1 %2617  ;;  %2953 = vmatpush1.msra.mxu0 %v2880_v47 }
 0x681   : > { %2720 = vmatpush1.msra.mxu1 %v2618_v40 }
 0x682   : > { %v2616_v55 = vpop.permute.xlu0 %2615  ;;  %2721 = vmatprep.subr.mxu1 %v17768_v5  ;;  %2444 = vmatmul.mubr.f32.gmra.mxu1 %v9622_v53 }
 0x683   : > { %2722 = vmatpush1.msra.mxu1 %v2616_v55  ;;  %9634 = vmatprep.mubr.msk.f32.mxu1 %vm1406_vm2, %v9625_v54  ;;  %v2879_v55 = vld [vmem:[%s17739_s10 + $0x8] sm:$0xff] }
 0x684   : > { %2723 = vmatprep.subr.mxu1 %v17768_v5  ;;  %v2614_v57 = vpop.permute.xlu1 %2613  ;;  %2954 = vmatprep.subr.mxu0 %v2879_v55 }
 0x685   : > { %2724 = vmatpush1.msra.mxu1 %v2614_v57 }
 0x686   : > { %v2612_v59 = vpop.permute.xlu0 %2611  ;;  %2725 = vmatprep.subr.mxu1 %v17768_v5  ;;  %2449 = vmatmul.mubr.f32.gmra.mxu1 %v9624_v56  ;;  %v2878_v56 = vld [vmem:[%s17739_s10] sm:$0xff] }
 0x687   : > { %2726 = vmatpush1.msra.mxu1 %v2612_v59  ;;  %9635 = vmatprep.mubr.msk.f32.mxu1 %vm1406_vm2, %v9627_v58 }
 0x688   : > { %2727 = vmatprep.subr.mxu1 %v17768_v5  ;;  %v2610_v42 = vpop.permute.xlu1 %2609  ;;  %2955 = vmatpush1.msra.mxu0 %v2878_v56 }
 0x689   : > { %2728 = vmatpush1.msra.mxu1 %v2610_v42 }
 0x68a   : > { %v2608_v62 = vpop.permute.xlu0 %2607  ;;  %2729 = vmatprep.subr.mxu1 %v17768_v5  ;;  %2454 = vmatmul.mubr.f32.gmra.mxu1 %v9626_v60 }
 0x68b   : > { %2730 = vmatpush1.msra.mxu1 %v2608_v62  ;;  %9660 = vmatprep.mubr.msk.f32.mxu1 %vm1406_vm2, %v9645_v61 }
 0x68c   : > { %2731 = vmatprep.subr.mxu1 %v17768_v5  ;;  %v2606_v44 = vpop.permute.xlu1 %2605 }
 0x68d   : > { %2732 = vmatpush1.msra.mxu1 %v2606_v44 }
 0x68e   : > { %v2652_v63 = vpop.permute.xlu0 %2651  ;;  %2749 = vmatprep.subr.mxu1 %v17768_v5 }
 0x68f   : > { %2750 = vmatpush2.msra.mxu1 %v2652_v63 }
 0x690   : > { %2751 = vmatprep.subr.mxu1 %v17768_v5  ;;  %v2650_v0 = vpop.permute.xlu1 %2649 }
 0x691   : > { %2752 = vmatpush2.msra.mxu1 %v2650_v0 }
 0x692   : > { %v2648_v12 = vpop.permute.xlu0 %2647  ;;  %2753 = vmatprep.subr.mxu1 %v17768_v5 }
 0x693   : > { %2754 = vmatpush2.msra.mxu1 %v2648_v12 }
 0x694   : > { %2755 = vmatprep.subr.mxu1 %v17768_v5  ;;  %v2646_v1 = vpop.permute.xlu1 %2645 }
 0x695   : > { %2756 = vmatpush2.msra.mxu1 %v2646_v1 }
 0x696   : > { %v2644_v2 = vpop.permute.xlu0 %2643  ;;  %2757 = vmatprep.subr.mxu1 %v17768_v5 }
 0x697   : > { %2758 = vmatpush2.msra.mxu1 %v2644_v2 }
 0x698   : > { %2759 = vmatprep.subr.mxu1 %v17768_v5  ;;  %v2642_v3 = vpop.permute.xlu1 %2641 }
 0x699   : > { %2760 = vmatpush2.msra.mxu1 %v2642_v3 }
 0x69a   : > { %v2640_v4 = vpop.permute.xlu0 %2639  ;;  %2761 = vmatprep.subr.mxu1 %v17768_v5 }
 0x69b   : > { %2762 = vmatpush2.msra.mxu1 %v2640_v4 }
 0x69c   : > { %2763 = vmatprep.subr.mxu1 %v17768_v5  ;;  %v2638_v7 = vpop.permute.xlu1 %2637 }
 0x69d   : > { %2764 = vmatpush2.msra.mxu1 %v2638_v7 }
 0x69e   : > { %2766 = vmatmul.mubr.f32.vlgmr.msra.gmra.mxu1 %v9644_v6 }
 0x69f   : > { %9661 = vmatprep.mubr.msk.f32.mxu1 %vm1406_vm2, %v9647_v22 }
 0x6a2   : > { %2771 = vmatmul.mubr.f32.gmra.mxu1 %v9646_v8 }
 0x6a3   : > { %9662 = vmatprep.mubr.msk.f32.mxu1 %vm1406_vm2, %v9649_v9 }
 0x6a6   : > { %2776 = vmatmul.mubr.f32.gmra.mxu1 %v9648_v10 }
 0x6a7   : > { %9663 = vmatprep.mubr.msk.f32.mxu1 %vm1406_vm2, %v9651_v11  ;;  %v2825_v9 = vpop.permute.xlu0 %2824 }
 0x6aa   : > { %2781 = vmatmul.mubr.f32.gmra.mxu1 %v9650_v14 }
 0x6ab   : > { %9664 = vmatprep.mubr.msk.f32.mxu1 %vm1406_vm2, %v9653_v15  ;;  %v2835_v24 = vpop.permute.xlu0 %2834 }
 0x6ae   : > { %2786 = vmatmul.mubr.f32.gmra.mxu1 %v9652_v16 }
 0x6af   : > { %9665 = vmatprep.mubr.msk.f32.mxu1 %vm1406_vm2, %v9655_v13  ;;  %v2845_v41 = vpop.permute.xlu0 %2844 }
 0x6b2   : > { %2791 = vmatmul.mubr.f32.gmra.mxu1 %v9654_v17  ;;  %v2830_v17 = vpop.permute.xlu1 %2829 }
 0x6b3   : > { %9666 = vmatprep.mubr.msk.f32.mxu1 %vm1406_vm2, %v9657_v18 }
 0x6b6   : > { %2796 = vmatmul.mubr.f32.gmra.mxu1 %v9656_v31  ;;  %v2840_v32 = vpop.permute.xlu1 %2839 }
 0x6b7   : > { %9667 = vmatprep.mubr.msk.f32.mxu1 %vm1406_vm2, %v9659_v19 }
 0x6ba   : > { %2801 = vmatmul.mubr.f32.gmra.mxu1 %v9658_v23 }
 0x6bb   : > { %v2549_v26 = vpop.f32.mrf.mxu0 }
 0x6bd   : > { %v2551_v27 = vpop.f32.mrf.mxu0 }
 0x6bf   : > { %v2554_v33 = vpop.f32.mrf.mxu0 }
 0x6c1   : > { %v2556_v34 = vpop.f32.mrf.mxu0 }
 0x6c3   : > { %v2559_v35 = vpop.f32.mrf.mxu0 }
 0x6c5   : > { %v2561_v39 = vpop.f32.mrf.mxu0 }
 0x6c7   : > { %v2564_v45 = vpop.f32.mrf.mxu0 }
 0x6c9   : > { %v2566_v38 = vpop.f32.mrf.mxu0 }
 0x6cb   : > { %v2569_v48 = vpop.f32.mrf.mxu0 }
 0x6cd   : > { %v2571_v49 = vpop.f32.mrf.mxu0 }
 0x6ce   : > { %v2850_v49 = vpop.permute.xlu1 %2849 }
 0x6cf   : > { %v11872_v50 = vpop.f32.mrf.mxu0 }
 0x6d1   : > { %v2576_v51 = vpop.f32.mrf.mxu0 }
 0x6d3   : > { %v11874_v52 = vpop.f32.mrf.mxu0 }
 0x6d5   : > { %v2581_v53 = vpop.f32.mrf.mxu0 }
 0x6d7   : > { %v11876_v40 = vpop.f32.mrf.mxu0 }
 0x6d9   : > { %v2586_v54 = vpop.f32.mrf.mxu0 }
 0x72e   : > { %v2420_v57 = vpop.f32.mrf.mxu1 }
 0x72f   : > { %v2550_v7 = vadd.f32 %v2549_v26, %v2420_v57  ;;  %v2855_v57 = vpop.permute.xlu0 %2854 }
 0x730   : > { %v2422_v58 = vpop.f32.mrf.mxu1 }
 0x732   : > { %v2425_v59 = vpop.f32.mrf.mxu1 }
 0x733   : > { %v2555_v11 = vadd.f32 %v2554_v33, %v2425_v59 }
 0x734   : > { %v2427_v60 = vpop.f32.mrf.mxu1 }
 0x736   : > { %v2430_v42 = vpop.f32.mrf.mxu1 }
 0x737   : > { %v2560_v31 = vadd.f32 %v2559_v35, %v2430_v42 }
 0x738   : > { %v2432_v61 = vpop.f32.mrf.mxu1 }
 0x73a   : > { %v2435_v62 = vpop.f32.mrf.mxu1 }
 0x73b   : > { %v2565_v26 = vadd.f32 %v2564_v45, %v2435_v62  ;;  %v2860_v62 = vpop.permute.xlu1 %2859 }
 0x73c   : > { %v2437_v44 = vpop.f32.mrf.mxu1 }
 0x73e   : > { %v2440_v63 = vpop.f32.mrf.mxu1 }
 0x73f   : > { %v2570_v34 = vadd.f32 %v2569_v48, %v2440_v63 }
 0x740   : > { %v2442_v0 = vpop.f32.mrf.mxu1 }
 0x742   : > { %v2445_v12 = vpop.f32.mrf.mxu1 }
 0x743   : > { %v2575_v45 = vadd.f32 %v11872_v50, %v2445_v12 }
 0x744   : > { %v2447_v1 = vpop.f32.mrf.mxu1 }
 0x746   : > { %v2450_v2 = vpop.f32.mrf.mxu1 }
 0x747   : > { %v2580_v53 = vadd.f32 %v11874_v52, %v2450_v2 }
 0x748   : > { %v2452_v3 = vpop.f32.mrf.mxu1 }
 0x74a   : > { %v2455_v4 = vpop.f32.mrf.mxu1 }
 0x74b   : > { %v2585_v59 = vadd.f32 %v11876_v40, %v2455_v4 }
 0x74c   : > { %v2457_v6 = vpop.f32.mrf.mxu1 }
 0x75e   : > { %v2767_v22 = vpop.f32.mrf.mxu1 }
 0x75f   : > { %v2806_v8 = vadd.f32 %v2767_v22, %v2550_v7 }
 0x760   : > { %v2769_v10 = vpop.f32.mrf.mxu1 }
 0x761   : > { %v2862_v14 = vadd.f32 %v2825_v9, %v2806_v8 }
 0x762   : > { %v2772_v15 = vpop.f32.mrf.mxu1 }
 0x763   : > { %v2870_v16 = vmax.f32 %v2862_v14, 0.0  ;;  %v2807_v13 = vadd.f32 %v2772_v15, %v2555_v11 }
 0x764   : > { %v2774_v18 = vpop.f32.mrf.mxu1 }
 0x765   : > { %v2863_v19 = vadd.f32 %v2830_v17, %v2807_v13  ;;  %9670 = vmatmul.mubr.msk.f32.vlgmr.msra.gmra.mxu0 %vm1963_vm4, %v2870_v16 }
 0x766   : > { %v2777_v20 = vpop.f32.mrf.mxu1  ;;  %2994 = vmatprep.mubr.f32.mxu0 %v17768_v5 }
 0x767   : > { %v2871_v21 = vmax.f32 %v2863_v19, 0.0  ;;  %v2808_v23 = vadd.f32 %v2777_v20, %v2560_v31 }
 0x768   : > { %v2779_v25 = vpop.f32.mrf.mxu1 }
 0x769   : > { %v2864_v27 = vadd.f32 %v2835_v24, %v2808_v23  ;;  %9671 = vmatmul.mubr.msk.f32.gmra.mxu0 %vm1963_vm4, %v2871_v21 }
 0x76a   : > { %v2782_v28 = vpop.f32.mrf.mxu1  ;;  %3000 = vmatprep.mubr.f32.mxu0 %v17768_v5 }
 0x76b   : > { %v2872_v29 = vmax.f32 %v2864_v27, 0.0  ;;  %v2809_v30 = vadd.f32 %v2782_v28, %v2565_v26 }
 0x76c   : > { %v2784_v33 = vpop.f32.mrf.mxu1 }
 0x76d   : > { %v2865_v36 = vadd.f32 %v2840_v32, %v2809_v30  ;;  %9672 = vmatmul.mubr.msk.f32.gmra.mxu0 %vm1963_vm4, %v2872_v29 }
 0x76e   : > { %v2787_v37 = vpop.f32.mrf.mxu1  ;;  %3006 = vmatprep.mubr.f32.mxu0 %v17768_v5 }
 0x76f   : > { %v2873_v35 = vmax.f32 %v2865_v36, 0.0  ;;  %v2810_v39 = vadd.f32 %v2787_v37, %v2570_v34 }
 0x770   : > { %v2789_v43 = vpop.f32.mrf.mxu1 }
 0x771   : > { %v2866_v46 = vadd.f32 %v2845_v41, %v2810_v39  ;;  %9673 = vmatmul.mubr.msk.f32.gmra.mxu0 %vm1963_vm4, %v2873_v35 }
 0x772   : > { %v2792_v47 = vpop.f32.mrf.mxu1  ;;  %3012 = vmatprep.mubr.f32.mxu0 %v17768_v5 }
 0x773   : > { %v2874_v38 = vmax.f32 %v2866_v46, 0.0  ;;  %v2811_v48 = vadd.f32 %v2792_v47, %v2575_v45 }
 0x774   : > { %v2794_v51 = vpop.f32.mrf.mxu1 }
 0x775   : > { %v2867_v54 = vadd.f32 %v2850_v49, %v2811_v48  ;;  %9674 = vmatmul.mubr.msk.f32.gmra.mxu0 %vm1963_vm4, %v2874_v38 }
 0x776   : > { %v2797_v55 = vpop.f32.mrf.mxu1  ;;  %3018 = vmatprep.mubr.f32.mxu0 %v17768_v5 }
 0x777   : > { %v2875_v56 = vmax.f32 %v2867_v54, 0.0  ;;  %v2812_v50 = vadd.f32 %v2797_v55, %v2580_v53 }
 0x778   : > { %v2799_v58 = vpop.f32.mrf.mxu1 }
 0x779   : > { %v2868_v60 = vadd.f32 %v2855_v57, %v2812_v50  ;;  %9675 = vmatmul.mubr.msk.f32.gmra.mxu0 %vm1963_vm4, %v2875_v56 }
 0x77a   : > { %v2802_v42 = vpop.f32.mrf.mxu1  ;;  %3024 = vmatprep.mubr.f32.mxu0 %v17768_v5 }
 0x77b   : > { %v2876_v61 = vmax.f32 %v2868_v60, 0.0  ;;  %v2813_v52 = vadd.f32 %v2802_v42, %v2585_v59 }
 0x77c   : > { %v2804_v44 = vpop.f32.mrf.mxu1 }
 0x77d   : > { %v2869_v63 = vadd.f32 %v2860_v62, %v2813_v52  ;;  %9676 = vmatmul.mubr.msk.f32.gmra.mxu0 %vm1963_vm4, %v2876_v61 }
 0x77e   : > { %3030 = vmatprep.mubr.f32.mxu0 %v17768_v5 }
 0x77f   : > { %v2877_v0 = vmax.f32 %v2869_v63, 0.0 }
 0x781   : > { %9677 = vmatmul.mubr.msk.f32.gmra.mxu0 %vm1963_vm4, %v2877_v0 }
 0x825   : > { %v11902_v12 = vpop.f32.mrf.mxu0 }
 0x826   : > { %3070 = vrot.lane.b32.xlu0 %v11902_v12, %s17764_s0 }
 0x827   : > { %v2992_v40 = vpop.f32.mrf.mxu0 }
 0x828   : > { %3039 = vst.msk [vmem:[#allocation3 + $0x8] sm:$0xff] %vm3038_vm5, %v2992_v40  ;;  %3072 = vrot.lane.b32.xlu1 %v2992_v40, %s17764_s0 }
 0x829   : > { %v11908_v1 = vpop.f32.mrf.mxu0 }
 0x82a   : > { %3143 = vrot.lane.b32.xlu0 %v11902_v12, %s17766_s29 }
 0x82b   : > { %v2998_v2 = vpop.f32.mrf.mxu0 }
 0x82c   : > { %3041 = vst.msk [vmem:[#allocation3 + $0x18] sm:$0xff] %vm3038_vm5, %v2998_v2  ;;  %3145 = vrot.lane.b32.xlu1 %v2992_v40, %s17766_s29 }
 0x82d   : > { %v11914_v3 = vpop.f32.mrf.mxu0 }
 0x82e   : > { %3074 = vrot.lane.b32.xlu0 %v11908_v1, %s17764_s0 }
 0x82f   : > { %v3004_v4 = vpop.f32.mrf.mxu0  ;;  %v11942_v15 = vld [vmem:[#allocation3 + $0x8] sm:$0xff] }
 0x830   : > { %3043 = vst.msk [vmem:[#allocation3 + $0x28] sm:$0xff] %vm3038_vm5, %v3004_v4  ;;  %3076 = vrot.lane.b32.xlu1 %v2998_v2, %s17764_s0 }
 0x831   : > { %v11920_v6 = vpop.f32.mrf.mxu0 }
 0x832   : > { %3147 = vrot.lane.b32.xlu0 %v11908_v1, %s17766_s29 }
 0x833   : > { %v3010_v7 = vpop.f32.mrf.mxu0  ;;  %v11958_v17 = vld [vmem:[#allocation3 + $0x18] sm:$0xff] }
 0x834   : > { %3045 = vst.msk [vmem:[#allocation3 + $0x38] sm:$0xff] %vm3038_vm5, %v3010_v7  ;;  %3149 = vrot.lane.b32.xlu1 %v2998_v2, %s17766_s29 }
 0x835   : > { %v11926_v22 = vpop.f32.mrf.mxu0 }
 0x836   : > { %3078 = vrot.lane.b32.xlu0 %v11914_v3, %s17764_s0 }
 0x837   : > { %v3016_v8 = vpop.f32.mrf.mxu0  ;;  %v11970_v18 = vld [vmem:[#allocation3 + $0x28] sm:$0xff] }
 0x838   : > { %3047 = vst.msk [vmem:[#allocation3 + $0x48] sm:$0xff] %vm3038_vm5, %v3016_v8  ;;  %3080 = vrot.lane.b32.xlu1 %v3004_v4, %s17764_s0 }
 0x839   : > { %v11932_v9 = vpop.f32.mrf.mxu0 }
 0x83a   : > { %3151 = vrot.lane.b32.xlu0 %v11914_v3, %s17766_s29 }
 0x83b   : > { %v3022_v10 = vpop.f32.mrf.mxu0  ;;  %v11982_v31 = vld [vmem:[#allocation3 + $0x38] sm:$0xff] }
 0x83c   : > { %3049 = vst.msk [vmem:[#allocation3 + $0x58] sm:$0xff] %vm3038_vm5, %v3022_v10  ;;  %3153 = vrot.lane.b32.xlu1 %v3004_v4, %s17766_s29 }
 0x83d   : > { %v11938_v11 = vpop.f32.mrf.mxu0 }
 0x83e   : > { %3328 = vrot.lane.b32.xlu0 %v11902_v12, %s17843_s21 }
 0x83f   : > { %v3028_v14 = vpop.f32.mrf.mxu0  ;;  %v11994_v19 = vld [vmem:[#allocation3 + $0x48] sm:$0xff] }
 0x840   : > { %3051 = vst.msk [vmem:[#allocation3 + $0x68] sm:$0xff] %vm3038_vm5, %v3028_v14  ;;  %3330 = vrot.lane.b32.xlu1 %v11942_v15, %s17843_s21 }
 0x841   : > { %v11947_v16 = vpop.f32.mrf.mxu0 }
 0x842   : > { %3082 = vrot.lane.b32.xlu0 %v11920_v6, %s17764_s0 }
 0x843   : > { %v3034_v13 = vpop.f32.mrf.mxu0  ;;  %v12006_v20 = vld [vmem:[#allocation3 + $0x58] sm:$0xff] }
 0x844   : > { %3053 = vst.msk [vmem:[#allocation3 + $0x78] sm:$0xff] %vm3038_vm5, %v3034_v13  ;;  %3084 = vrot.lane.b32.xlu1 %v3010_v7, %s17764_s0 }
 0x846   : > { %3155 = vrot.lane.b32.xlu0 %v11920_v6, %s17766_s29 }
 0x847   : > { %v12012_v21 = vld [vmem:[#allocation3 + $0x68] sm:$0xff] }
 0x848   : > { %3157 = vrot.lane.b32.xlu1 %v3010_v7, %s17766_s29 }
 0x84a   : > { %3332 = vrot.lane.b32.xlu0 %v11908_v1, %s17843_s21 }
 0x84b   : > { %v12018_v23 = vld [vmem:[#allocation3 + $0x78] sm:$0xff] }
 0x84c   : > { %3334 = vrot.lane.b32.xlu1 %v11958_v17, %s17843_s21 }
 0x84e   : > { %3086 = vrot.lane.b32.xlu0 %v11926_v22, %s17764_s0 }
 0x850   : > { %3088 = vrot.lane.b32.xlu1 %v3016_v8, %s17764_s0 }
 0x852   : > { %3159 = vrot.lane.b32.xlu0 %v11926_v22, %s17766_s29 }
 0x854   : > { %3161 = vrot.lane.b32.xlu1 %v3016_v8, %s17766_s29 }
 0x856   : > { %3336 = vrot.lane.b32.xlu0 %v11914_v3, %s17843_s21 }
 0x858   : > { %3338 = vrot.lane.b32.xlu1 %v11970_v18, %s17843_s21 }
 0x85a   : > { %3090 = vrot.lane.b32.xlu0 %v11932_v9, %s17764_s0 }
 0x85c   : > { %3092 = vrot.lane.b32.xlu1 %v3022_v10, %s17764_s0 }
 0x85e   : > { %3163 = vrot.lane.b32.xlu0 %v11932_v9, %s17766_s29 }
 0x860   : > { %3165 = vrot.lane.b32.xlu1 %v3022_v10, %s17766_s29 }
 0x862   : > { %3340 = vrot.lane.b32.xlu0 %v11920_v6, %s17843_s21 }
 0x864   : > { %3342 = vrot.lane.b32.xlu1 %v11982_v31, %s17843_s21 }
 0x866   : > { %3094 = vrot.lane.b32.xlu0 %v11938_v11, %s17764_s0 }
 0x868   : > { %3096 = vrot.lane.b32.xlu1 %v3028_v14, %s17764_s0 }
 0x86a   : > { %3167 = vrot.lane.b32.xlu0 %v11938_v11, %s17766_s29 }
 0x86c   : > { %3169 = vrot.lane.b32.xlu1 %v3028_v14, %s17766_s29 }
 0x86e   : > { %3344 = vrot.lane.b32.xlu0 %v11926_v22, %s17843_s21 }
 0x870   : > { %3346 = vrot.lane.b32.xlu1 %v11994_v19, %s17843_s21 }
 0x872   : > { %3098 = vrot.lane.b32.xlu0 %v11947_v16, %s17764_s0 }
 0x874   : > { %3100 = vrot.lane.b32.xlu1 %v3034_v13, %s17764_s0 }
 0x876   : > { %3171 = vrot.lane.b32.xlu0 %v11947_v16, %s17766_s29 }
 0x878   : > { %3173 = vrot.lane.b32.xlu1 %v3034_v13, %s17766_s29 }
 0x87a   : > { %3348 = vrot.lane.b32.xlu0 %v11932_v9, %s17843_s21 }
 0x87c   : > { %3350 = vrot.lane.b32.xlu1 %v12006_v20, %s17843_s21 }
 0x87e   : > { %3352 = vrot.lane.b32.xlu0 %v11938_v11, %s17843_s21 }
 0x880   : > { %3354 = vrot.lane.b32.xlu1 %v12012_v21, %s17843_s21 }
 0x882   : > { %3356 = vrot.lane.b32.xlu0 %v11947_v16, %s17843_s21 }
 0x884   : > { %3358 = vrot.lane.b32.xlu1 %v12018_v23, %s17843_s21 }
 0x898   : > { %v3071_v24 = vpop.permute.xlu0 %3070 }
 0x89a   : > { %v3073_v25 = vpop.permute.xlu1 %3072 }
 0x89b   : > { %v12023_v26 = vsel %vm3102_vm6, %v3071_v24, %v3073_v25  ;;  %3128 = vst.msk [vmem:[#allocation3 + $0x88] sm:$0xff] %vm3038_vm5, %v3073_v25 }
 0x89c   : > { %v3144_v27 = vpop.permute.xlu0 %3143  ;;  %3360 = vrot.lane.b32.xlu0 %v12023_v26, %s17843_s21 }
 0x89e   : > { %v3146_v28 = vpop.permute.xlu1 %3145 }
 0x89f   : > { %v12029_v29 = vsel %vm3038_vm5, %v3144_v27, %v3146_v28  ;;  %3200 = vst.msk [vmem:[#allocation3 + $0x108] sm:$0xff] %vm3038_vm5, %v3146_v28 }
 0x8a0   : > { %v3075_v30 = vpop.permute.xlu0 %3074  ;;  %3392 = vrot.lane.b32.xlu0 %v12029_v29, %s17843_s21 }
 0x8a2   : > { %v3077_v32 = vpop.permute.xlu1 %3076  ;;  %v12034_v33 = vld [vmem:[#allocation3 + $0x88] sm:$0xff] }
 0x8a3   : > { %v12037_v34 = vsel %vm3102_vm6, %v3075_v30, %v3077_v32  ;;  %3130 = vst.msk [vmem:[#allocation3 + $0x98] sm:$0xff] %vm3038_vm5, %v3077_v32  ;;  %3362 = vrot.lane.b32.xlu1 %v12034_v33, %s17843_s21 }
 0x8a4   : > { %v3148_v36 = vpop.permute.xlu0 %3147  ;;  %3364 = vrot.lane.b32.xlu0 %v12037_v34, %s17843_s21 }
 0x8a6   : > { %v3150_v37 = vpop.permute.xlu1 %3149  ;;  %v12044_v35 = vld [vmem:[#allocation3 + $0x108] sm:$0xff] }
 0x8a7   : > { %v12047_v39 = vsel %vm3038_vm5, %v3148_v36, %v3150_v37  ;;  %3202 = vst.msk [vmem:[#allocation3 + $0x118] sm:$0xff] %vm3038_vm5, %v3150_v37  ;;  %3394 = vrot.lane.b32.xlu1 %v12044_v35, %s17843_s21 }
 0x8a8   : > { %v3079_v41 = vpop.permute.xlu0 %3078  ;;  %3396 = vrot.lane.b32.xlu0 %v12047_v39, %s17843_s21 }
 0x8aa   : > { %v3081_v43 = vpop.permute.xlu1 %3080  ;;  %v12054_v45 = vld [vmem:[#allocation3 + $0x98] sm:$0xff] }
 0x8ab   : > { %v12057_v46 = vsel %vm3102_vm6, %v3079_v41, %v3081_v43  ;;  %3132 = vst.msk [vmem:[#allocation3 + $0xa8] sm:$0xff] %vm3038_vm5, %v3081_v43  ;;  %3366 = vrot.lane.b32.xlu1 %v12054_v45, %s17843_s21 }
 0x8ac   : > { %v3152_v47 = vpop.permute.xlu0 %3151  ;;  %3368 = vrot.lane.b32.xlu0 %v12057_v46, %s17843_s21 }
 0x8ae   : > { %v3154_v38 = vpop.permute.xlu1 %3153  ;;  %v12064_v48 = vld [vmem:[#allocation3 + $0x118] sm:$0xff] }
 0x8af   : > { %v12067_v49 = vsel %vm3038_vm5, %v3152_v47, %v3154_v38  ;;  %3204 = vst.msk [vmem:[#allocation3 + $0x128] sm:$0xff] %vm3038_vm5, %v3154_v38  ;;  %3398 = vrot.lane.b32.xlu1 %v12064_v48, %s17843_s21 }
 0x8b0   : > { %v12072_v51 = vpop.permute.xlu0 %3328  ;;  %3400 = vrot.lane.b32.xlu0 %v12067_v49, %s17843_s21 }
 0x8b2   : > { %v12076_v53 = vpop.permute.xlu1 %3330  ;;  %v12078_v54 = vld [vmem:[#allocation3 + $0xa8] sm:$0xff] }
 0x8b3   : > { %3370 = vrot.lane.b32.xlu1 %v12078_v54, %s17843_s21 }
 0x8b4   : > { %v3083_v55 = vpop.permute.xlu0 %3082 }
 0x8b6   : > { %v3085_v56 = vpop.permute.xlu1 %3084  ;;  %v12082_v50 = vld [vmem:[#allocation3 + $0x128] sm:$0xff] }
 0x8b7   : > { %v12085_v57 = vsel %vm3102_vm6, %v3083_v55, %v3085_v56  ;;  %3134 = vst.msk [vmem:[#allocation3 + $0xb8] sm:$0xff] %vm3038_vm5, %v3085_v56  ;;  %3402 = vrot.lane.b32.xlu1 %v12082_v50, %s17843_s21 }
 0x8b8   : > { %v3156_v58 = vpop.permute.xlu0 %3155  ;;  %3372 = vrot.lane.b32.xlu0 %v12085_v57, %s17843_s21 }
 0x8ba   : > { %v3158_v59 = vpop.permute.xlu1 %3157 }
 0x8bb   : > { %v12093_v60 = vsel %vm3038_vm5, %v3156_v58, %v3158_v59  ;;  %3206 = vst.msk [vmem:[#allocation3 + $0x138] sm:$0xff] %vm3038_vm5, %v3158_v59 }
 0x8bc   : > { %v12096_v42 = vpop.permute.xlu0 %3332  ;;  %3404 = vrot.lane.b32.xlu0 %v12093_v60, %s17843_s21 }
 0x8be   : > { %v12100_v61 = vpop.permute.xlu1 %3334  ;;  %v12102_v52 = vld [vmem:[#allocation3 + $0xb8] sm:$0xff] }
 0x8bf   : > { %3374 = vrot.lane.b32.xlu1 %v12102_v52, %s17843_s21 }
 0x8c0   : > { %v3087_v62 = vpop.permute.xlu0 %3086 }
 0x8c2   : > { %v3089_v44 = vpop.permute.xlu1 %3088  ;;  %v12106_v63 = vld [vmem:[#allocation3 + $0x138] sm:$0xff] }
 0x8c3   : > { %v12109_v0 = vsel %vm3102_vm6, %v3087_v62, %v3089_v44  ;;  %3136 = vst.msk [vmem:[#allocation3 + $0xc8] sm:$0xff] %vm3038_vm5, %v3089_v44  ;;  %3406 = vrot.lane.b32.xlu1 %v12106_v63, %s17843_s21 }
 0x8c4   : > { %v3160_v40 = vpop.permute.xlu0 %3159  ;;  %3376 = vrot.lane.b32.xlu0 %v12109_v0, %s17843_s21 }
 0x8c6   : > { %v3162_v2 = vpop.permute.xlu1 %3161 }
 0x8c7   : > { %v12117_v4 = vsel %vm3038_vm5, %v3160_v40, %v3162_v2  ;;  %3208 = vst.msk [vmem:[#allocation3 + $0x148] sm:$0xff] %vm3038_vm5, %v3162_v2 }
 0x8c8   : > { %v12120_v7 = vpop.permute.xlu0 %3336  ;;  %3408 = vrot.lane.b32.xlu0 %v12117_v4, %s17843_s21 }
 0x8ca   : > { %v12124_v8 = vpop.permute.xlu1 %3338  ;;  %v12126_v10 = vld [vmem:[#allocation3 + $0xc8] sm:$0xff] }
 0x8cb   : > { %3378 = vrot.lane.b32.xlu1 %v12126_v10, %s17843_s21 }
 0x8cc   : > { %v3091_v14 = vpop.permute.xlu0 %3090 }
 0x8ce   : > { %v3093_v13 = vpop.permute.xlu1 %3092  ;;  %v12130_v24 = vld [vmem:[#allocation3 + $0x148] sm:$0xff] }
 0x8cf   : > { %v3108_v25 = vsel %vm3102_vm6, %v3091_v14, %v3093_v13  ;;  %3138 = vst.msk [vmem:[#allocation3 + $0xd8] sm:$0xff] %vm3038_vm5, %v3093_v13  ;;  %3410 = vrot.lane.b32.xlu1 %v12130_v24, %s17843_s21 }
 0x8d0   : > { %v3164_v27 = vpop.permute.xlu0 %3163  ;;  %3380 = vrot.lane.b32.xlu0 %v3108_v25, %s17843_s21 }
 0x8d2   : > { %v3166_v28 = vpop.permute.xlu1 %3165 }
 0x8d3   : > { %v12138_v30 = vsel %vm3038_vm5, %v3164_v27, %v3166_v28  ;;  %3210 = vst.msk [vmem:[#allocation3 + $0x158] sm:$0xff] %vm3038_vm5, %v3166_v28 }
 0x8d4   : > { %v12141_v32 = vpop.permute.xlu0 %3340  ;;  %3412 = vrot.lane.b32.xlu0 %v12138_v30, %s17843_s21 }
 0x8d6   : > { %v12145_v36 = vpop.permute.xlu1 %3342  ;;  %v3250_v37 = vld [vmem:[#allocation3 + $0xd8] sm:$0xff] }
 0x8d7   : > { %3382 = vrot.lane.b32.xlu1 %v3250_v37, %s17843_s21 }
 0x8d8   : > { %v3095_v41 = vpop.permute.xlu0 %3094 }
 0x8da   : > { %v3097_v43 = vpop.permute.xlu1 %3096  ;;  %v12148_v47 = vld [vmem:[#allocation3 + $0x158] sm:$0xff] }
 0x8db   : > { %v3109_v38 = vsel %vm3102_vm6, %v3095_v41, %v3097_v43  ;;  %3140 = vst.msk [vmem:[#allocation3 + $0xe8] sm:$0xff] %vm3038_vm5, %v3097_v43  ;;  %3414 = vrot.lane.b32.xlu1 %v12148_v47, %s17843_s21 }
 0x8dc   : > { %v3168_v55 = vpop.permute.xlu0 %3167  ;;  %3384 = vrot.lane.b32.xlu0 %v3109_v38, %s17843_s21 }
 0x8de   : > { %v3170_v56 = vpop.permute.xlu1 %3169 }
 0x8df   : > { %v12156_v58 = vsel %vm3038_vm5, %v3168_v55, %v3170_v56  ;;  %3212 = vst.msk [vmem:[#allocation3 + $0x168] sm:$0xff] %vm3038_vm5, %v3170_v56 }
 0x8e0   : > { %v12159_v59 = vpop.permute.xlu0 %3344  ;;  %3416 = vrot.lane.b32.xlu0 %v12156_v58, %s17843_s21 }
 0x8e2   : > { %v12163_v62 = vpop.permute.xlu1 %3346  ;;  %v3252_v44 = vld [vmem:[#allocation3 + $0xe8] sm:$0xff] }
 0x8e3   : > { %3386 = vrot.lane.b32.xlu1 %v3252_v44, %s17843_s21 }
 0x8e4   : > { %v3099_v40 = vpop.permute.xlu0 %3098  ;;  %3764 = vrot.lane.b32.xlu0 %v3109_v38, %s17844_s25 }
 0x8e6   : > { %v3101_v2 = vpop.permute.xlu1 %3100  ;;  %v12167_v14 = vld [vmem:[#allocation3 + $0x168] sm:$0xff] }
 0x8e7   : > { %v12170_v13 = vsel %vm3102_vm6, %v3099_v40, %v3101_v2  ;;  %3142 = vst.msk [vmem:[#allocation3 + $0xf8] sm:$0xff] %vm3038_vm5, %v3101_v2  ;;  %3418 = vrot.lane.b32.xlu1 %v12167_v14, %s17843_s21 }
 0x8e8   : > { %3388 = vrot.lane.b32.xlu0 %v12170_v13, %s17843_s21  ;;  %v3172_v27 = vpop.permute.xlu0 %3171 }
 0x8ea   : > { %v3174_v28 = vpop.permute.xlu1 %3173 }
 0x8eb   : > { %v12178_v41 = vsel %vm3038_vm5, %v3172_v27, %v3174_v28  ;;  %3214 = vst.msk [vmem:[#allocation3 + $0x178] sm:$0xff] %vm3038_vm5, %v3174_v28  ;;  %3766 = vrot.lane.b32.xlu1 %v3252_v44, %s17844_s25 }
 0x8ec   : > { %3760 = vrot.lane.b32.xlu0 %v3108_v25, %s17844_s25 }
 0x8ee   : > { %v3254_v43 = vld [vmem:[#allocation3 + $0xf8] sm:$0xff] }
 0x8ef   : > { %3610 = vmatprep.subr.mxu1 %v3254_v43  ;;  %3390 = vrot.lane.b32.xlu1 %v3254_v43, %s17843_s21 }
 0x8f0   : > { %3611 = vmatpush1.msra.mxu1 %v12170_v13  ;;  %3756 = vrot.lane.b32.xlu0 %v12109_v0, %s17844_s25 }
 0x8f1   : > { %3612 = vmatprep.subr.mxu1 %v3252_v44 }
 0x8f2   : > { %3613 = vmatpush1.msra.mxu1 %v3109_v38  ;;  %v12187_v55 = vld [vmem:[#allocation3 + $0x178] sm:$0xff] }
 0x8f3   : > { %3614 = vmatprep.subr.mxu1 %v3250_v37  ;;  %3422 = vrot.lane.b32.xlu1 %v12187_v55, %s17843_s21  ;;  %v3222_v38 = vld [vmem:[%s17740_s11 + $0x38] sm:$0xff] }
 0x8f4   : > { %3615 = vmatpush1.msra.mxu1 %v3108_v25  ;;  %3752 = vrot.lane.b32.xlu0 %v12085_v57, %s17844_s25  ;;  %v3220_v25 = vld [vmem:[%s17740_s11 + $0x28] sm:$0xff] }
 0x8f5   : > { %3616 = vmatprep.subr.mxu1 %v12126_v10 }
 0x8f6   : > { %3617 = vmatpush1.msra.mxu1 %v12109_v0  ;;  %v12208_v0 = vpop.permute.xlu0 %3348 }
 0x8f7   : > { %3618 = vmatprep.subr.mxu1 %v12102_v52  ;;  %3770 = vrot.lane.b32.xlu1 %v3254_v43, %s17844_s25 }
 0x8f8   : > { %3619 = vmatpush1.msra.mxu1 %v12085_v57  ;;  %3748 = vrot.lane.b32.xlu0 %v12057_v46, %s17844_s25 }
 0x8f9   : > { %3620 = vmatprep.subr.mxu1 %v12078_v54 }
 0x8fa   : > { %3621 = vmatpush1.msra.mxu1 %v12057_v46  ;;  %v12227_v46 = vpop.permute.xlu1 %3350 }
 0x8fb   : > { %3622 = vmatprep.subr.mxu1 %v12054_v45  ;;  %3762 = vrot.lane.b32.xlu1 %v3250_v37, %s17844_s25 }
 0x8fc   : > { %3623 = vmatpush1.msra.mxu1 %v12037_v34  ;;  %3744 = vrot.lane.b32.xlu0 %v12037_v34, %s17844_s25  ;;  %v12222_v34 = vpop.permute.xlu0 %3352 }
 0x8fd   : > { %3624 = vmatprep.subr.mxu1 %v12034_v33 }
 0x8fe   : > { %3625 = vmatpush1.msra.mxu1 %v12023_v26 }
 0x8ff   : > { %3758 = vrot.lane.b32.xlu1 %v12126_v10, %s17844_s25  ;;  %3626 = vmatprep.subr.mxu1 %v12018_v23 }
 0x900   : > { %3627 = vmatpush1.msra.mxu1 %v11947_v16  ;;  %3740 = vrot.lane.b32.xlu0 %v12023_v26, %s17844_s25  ;;  %v12238_v26 = vpop.permute.xlu0 %3356 }
 0x901   : > { %3628 = vmatprep.subr.mxu1 %v12012_v21 }
 0x902   : > { %3629 = vmatpush1.msra.mxu1 %v11938_v11 }
 0x903   : > { %3754 = vrot.lane.b32.xlu1 %v12102_v52, %s17844_s25  ;;  %3630 = vmatprep.subr.mxu1 %v12006_v20 }
 0x904   : > { %3631 = vmatpush1.msra.mxu1 %v11932_v9  ;;  %3736 = vrot.lane.b32.xlu0 %v11947_v16, %s17844_s25  ;;  %v12241_v16 = vpop.permute.xlu1 %3354 }
 0x905   : > { %3632 = vmatprep.subr.mxu1 %v11994_v19 }
 0x906   : > { %3633 = vmatpush1.msra.mxu1 %v11926_v22 }
 0x907   : > { %3750 = vrot.lane.b32.xlu1 %v12078_v54, %s17844_s25  ;;  %3634 = vmatprep.subr.mxu1 %v11982_v31 }
 0x908   : > { %3635 = vmatpush1.msra.mxu1 %v11920_v6  ;;  %3420 = vrot.lane.b32.xlu0 %v12178_v41, %s17843_s21 }
 0x909   : > { %3636 = vmatprep.subr.mxu1 %v11970_v18 }
 0x90a   : > { %3637 = vmatpush1.msra.mxu1 %v11914_v3 }
 0x90b   : > { %3746 = vrot.lane.b32.xlu1 %v12054_v45, %s17844_s25  ;;  %3638 = vmatprep.subr.mxu1 %v11958_v17  ;;  %v12259_v45 = vpop.permute.xlu1 %3358 }
 0x90c   : > { %3639 = vmatpush1.msra.mxu1 %v11908_v1  ;;  %3732 = vrot.lane.b32.xlu0 %v11938_v11, %s17844_s25  ;;  %v9679_v11 = vld [vmem:[%s17740_s11 + $0x48] sm:$0xff] }
 0x90d   : > { %3640 = vmatprep.subr.mxu1 %v11942_v15  ;;  %9686 = vmatprep.mubr.msk.f32.mxu0 %vm1406_vm2, %v9679_v11 }
 0x90e   : > { %3641 = vmatpush1.msra.mxu1 %v11902_v12  ;;  %v12251_v54 = vpop.permute.xlu0 %3360 }
 0x90f   : > { %3742 = vrot.lane.b32.xlu1 %v12034_v33, %s17844_s25  ;;  %3658 = vmatprep.subr.mxu1 %v12187_v55  ;;  %v3216_v33 = vld [vmem:[%s17740_s11 + $0x8] sm:$0xff] }
 0x910   : > { %3659 = vmatpush2.msra.mxu1 %v12178_v41  ;;  %3728 = vrot.lane.b32.xlu0 %v11932_v9, %s17844_s25 }
 0x911   : > { %3660 = vmatprep.subr.mxu1 %v12167_v14  ;;  %9690 = vmatprep.mubr.msk.f32.mxu1 %vm1406_vm2, %v3216_v33 }
 0x912   : > { %3661 = vmatpush2.msra.mxu1 %v12156_v58  ;;  %v12274_v9 = vpop.permute.xlu0 %3392 }
 0x913   : > { %3738 = vrot.lane.b32.xlu1 %v12018_v23, %s17844_s25  ;;  %3662 = vmatprep.subr.mxu1 %v12148_v47 }
 0x914   : > { %3663 = vmatpush2.msra.mxu1 %v12138_v30  ;;  %3724 = vrot.lane.b32.xlu0 %v11926_v22, %s17844_s25 }
 0x915   : > { %v12278_v57 = vpop.permute.xlu1 %3362  ;;  %3664 = vmatprep.subr.mxu1 %v12130_v24 }
 0x916   : > { %3665 = vmatpush2.msra.mxu1 %v12117_v4  ;;  %v12291_v22 = vpop.permute.xlu0 %3364 }
 0x917   : > { %3734 = vrot.lane.b32.xlu1 %v12012_v21, %s17844_s25  ;;  %3666 = vmatprep.subr.mxu1 %v12106_v63  ;;  %v3215_v21 = vld [vmem:[%s17740_s11] sm:$0xff] }
 0x918   : > { %3667 = vmatpush2.msra.mxu1 %v12093_v60  ;;  %3768 = vrot.lane.b32.xlu0 %v12170_v13, %s17844_s25 }
 0x919   : > { %3668 = vmatprep.subr.mxu1 %v12082_v50  ;;  %v12293_v23 = vpop.permute.xlu1 %3394 }
 0x91a   : > { %3669 = vmatpush2.msra.mxu1 %v12067_v49 }
 0x91b   : > { %3730 = vrot.lane.b32.xlu1 %v12006_v20, %s17844_s25  ;;  %3670 = vmatprep.subr.mxu1 %v12064_v48  ;;  %v12308_v20 = vpop.permute.xlu0 %3396 }
 0x91c   : > { %3671 = vmatpush2.msra.mxu1 %v12047_v39  ;;  %3720 = vrot.lane.b32.xlu0 %v11920_v6, %s17844_s25 }
 0x91d   : > { %3672 = vmatprep.subr.mxu1 %v12044_v35  ;;  %v12312_v52 = vpop.permute.xlu1 %3366 }
 0x91e   : > { %3673 = vmatpush2.msra.mxu1 %v12029_v29 }
 0x91f   : > { %3726 = vrot.lane.b32.xlu1 %v11994_v19, %s17844_s25  ;;  %3675 = vmatmul.mubr.f32.vlgmr.msra.gmra.mxu1 %v3215_v21  ;;  %v12318_v6 = vpop.permute.xlu0 %3368  ;;  %v3217_v19 = vld [vmem:[%s17740_s11 + $0x10] sm:$0xff] }
 0x920   : > { %3716 = vrot.lane.b32.xlu0 %v11914_v3, %s17844_s25 }
 0x921   : > { %v12320_v10 = vpop.permute.xlu1 %3398 }
 0x923   : > { %3722 = vrot.lane.b32.xlu1 %v11982_v31, %s17844_s25  ;;  %v12328_v3 = vpop.permute.xlu0 %3400 }
 0x924   : > { %3712 = vrot.lane.b32.xlu0 %v11908_v1, %s17844_s25 }
 0x925   : > { %v12332_v31 = vpop.permute.xlu1 %3370 }
 0x927   : > { %3718 = vrot.lane.b32.xlu1 %v11970_v18, %s17844_s25 }
 0x928   : > { %3708 = vrot.lane.b32.xlu0 %v11902_v12, %s17844_s25 }
 0x929   : > { %v12340_v18 = vpop.permute.xlu1 %3402 }
 0x92a   : > { %v12336_v1 = vpop.permute.xlu0 %3372 }
 0x92b   : > { %3714 = vrot.lane.b32.xlu1 %v11958_v17, %s17844_s25  ;;  %v3218_v17 = vld [vmem:[%s17740_s11 + $0x18] sm:$0xff] }
 0x92c   : > { %3796 = vrot.lane.b32.xlu0 %v12156_v58, %s17844_s25  ;;  %9691 = vmatprep.mubr.msk.f32.mxu1 %vm1406_vm2, %v3218_v17 }
 0x92d   : > { %3681 = vmatmul.mubr.f32.gmra.mxu1 %v3217_v19 }
 0x92e   : > { %v12346_v12 = vpop.permute.xlu0 %3404  ;;  %9692 = vmatprep.mubr.msk.f32.mxu1 %vm1406_vm2, %v3220_v25 }
 0x92f   : > { %3710 = vrot.lane.b32.xlu1 %v11942_v15, %s17844_s25 }
 0x930   : > { %3792 = vrot.lane.b32.xlu0 %v12138_v30, %s17844_s25  ;;  %v3219_v30 = vld [vmem:[%s17740_s11 + $0x20] sm:$0xff] }
 0x931   : > { %v12351_v15 = vpop.permute.xlu1 %3374  ;;  %3687 = vmatmul.mubr.f32.gmra.mxu1 %v3219_v30 }
 0x932   : > { %9693 = vmatprep.mubr.msk.f32.mxu1 %vm1406_vm2, %v3222_v38  ;;  %v3436_v38 = vsel %vm3424_vm7, %v12336_v1, %v12351_v15 }
 0x933   : > { %3802 = vrot.lane.b32.xlu1 %v12187_v55, %s17844_s25 }
 0x934   : > { %3788 = vrot.lane.b32.xlu0 %v12117_v4, %s17844_s25 }
 0x935   : > { %v12372_v37 = vpop.permute.xlu1 %3406 }
 0x936   : > { %v3377_v4 = vpop.permute.xlu0 %3376 }
 0x937   : > { %3798 = vrot.lane.b32.xlu1 %v12167_v14, %s17844_s25 }
 0x938   : > { %3800 = vrot.lane.b32.xlu0 %v12178_v41, %s17844_s25 }
 0x93a   : > { %v12383_v56 = vpop.permute.xlu0 %3408 }
 0x93b   : > { %3794 = vrot.lane.b32.xlu1 %v12148_v47, %s17844_s25  ;;  %v3221_v47 = vld [vmem:[%s17740_s11 + $0x30] sm:$0xff] }
 0x93c   : > { %3784 = vrot.lane.b32.xlu0 %v12093_v60, %s17844_s25  ;;  %3693 = vmatmul.mubr.f32.gmra.mxu1 %v3221_v47 }
 0x93d   : > { %v3379_v60 = vpop.permute.xlu1 %3378 }
 0x93e   : > { %v3437_v25 = vsel %vm3424_vm7, %v3377_v4, %v3379_v60 }
 0x93f   : > { %3790 = vrot.lane.b32.xlu1 %v12130_v24, %s17844_s25 }
 0x940   : > { %3780 = vrot.lane.b32.xlu0 %v12067_v49, %s17844_s25  ;;  %v3986_v49 = vld [vmem:[%s17741_s12] sm:$0xff] }
 0x941   : > { %v12391_v24 = vpop.permute.xlu1 %3410 }
 0x942   : > { %v3381_v58 = vpop.permute.xlu0 %3380 }
 0x943   : > { %3786 = vrot.lane.b32.xlu1 %v12106_v63, %s17844_s25 }
 0x944   : > { %3776 = vrot.lane.b32.xlu0 %v12047_v39, %s17844_s25  ;;  %v3988_v39 = vld [vmem:[%s17741_s12 + $0x10] sm:$0xff] }
 0x946   : > { %v12400_v44 = vpop.permute.xlu0 %3412 }
 0x947   : > { %3782 = vrot.lane.b32.xlu1 %v12082_v50, %s17844_s25 }
 0x948   : > { %3772 = vrot.lane.b32.xlu0 %v12029_v29, %s17844_s25  ;;  %v3987_v29 = vld [vmem:[%s17741_s12 + $0x8] sm:$0xff] }
 0x949   : > { %v3383_v40 = vpop.permute.xlu1 %3382 }
 0x94a   : > { %v3438_v17 = vsel %vm3424_vm7, %v3381_v58, %v3383_v40  ;;  %v3435_v58 = vsel %vm3424_vm7, %v12318_v6, %v12332_v31 }
 0x94b   : > { %3778 = vrot.lane.b32.xlu1 %v12064_v48, %s17844_s25  ;;  %v3989_v48 = vld [vmem:[%s17741_s12 + $0x18] sm:$0xff] }
 0x94c   : > { %3992 = vperm.xlu0 %10243, %v3986_v49  }
 0x94d   : > { %v12412_v50 = vpop.permute.xlu1 %3414 }
 0x94e   : > { %v3385_v63 = vpop.permute.xlu0 %3384 }
 0x94f   : > { %3774 = vrot.lane.b32.xlu1 %v12044_v35, %s17844_s25 }
 0x950   : > { %4002 = vperm.xlu0 %10243, %v3988_v39  }
 0x952   : > { %v12414_v2 = vpop.permute.xlu0 %3416 }
 0x953   : > { %3997 = vperm.xlu1 %10244, %v3987_v29   ;;  %v3443_v29 = vsel %vm3424_vm7, %v12328_v3, %v12340_v18  ;;  %v3441_v3 = vsel %vm3424_vm7, %v12274_v9, %v12293_v23  ;;  %v9680_v9 = vld [vmem:[%s17740_s11 + $0x50] sm:$0xff] }
 0x955   : > { %v3387_v14 = vpop.permute.xlu1 %3386 }
 0x956   : > { %v12419_v13 = vpop.permute.xlu0 %3764  ;;  %v3439_v33 = vsel %vm3424_vm7, %v3385_v63, %v3387_v14  ;;  %v3444_v63 = vsel %vm3424_vm7, %v12346_v12, %v12372_v37 }
 0x957   : > { %4007 = vperm.xlu1 %10244, %v3989_v48  }
 0x959   : > { %v12421_v27 = vpop.permute.xlu1 %3418 }
 0x95a   : > { %v3389_v35 = vpop.permute.xlu0 %3388 }
 0x95d   : > { %v12423_v28 = vpop.permute.xlu1 %3766 }
 0x95e   : > { %v12425_v41 = vpop.permute.xlu0 %3760 }
 0x961   : > { %v3391_v43 = vpop.permute.xlu1 %3390 }
 0x962   : > { %v3440_v55 = vsel %vm3424_vm7, %v3389_v35, %v3391_v43  ;;  %3509 = vmatprep.subr.mxu0 %v3391_v43  ;;  %v12428_v11 = vpop.permute.xlu0 %3756 }
 0x963   : > { %3510 = vmatpush1.msra.mxu0 %v3440_v55 }
 0x964   : > { %3511 = vmatprep.subr.mxu0 %v3387_v14 }
 0x965   : > { %v3423_v21 = vpop.permute.xlu1 %3422  ;;  %3512 = vmatpush1.msra.mxu0 %v3439_v33 }
 0x966   : > { %3513 = vmatprep.subr.mxu0 %v3383_v40  ;;  %v12432_v19 = vpop.permute.xlu0 %3752  ;;  %v3445_v40 = vsel %vm3424_vm7, %v12383_v56, %v12391_v24 }
 0x967   : > { %3514 = vmatpush1.msra.mxu0 %v3438_v17 }
 0x968   : > { %3515 = vmatprep.subr.mxu0 %v3379_v60  ;;  %v3434_v60 = vsel %vm3424_vm7, %v12291_v22, %v12312_v52  ;;  %v3432_v22 = vsel %vm3424_vm7, %v12238_v26, %v12259_v45  ;;  %v3429_v26 = vsel %vm3424_vm7, %v12159_v59, %v12163_v62  ;;  %v3426_v59 = vsel %vm3424_vm7, %v12096_v42, %v12100_v61 }
 0x969   : > { %v12435_v30 = vpop.permute.xlu1 %3770  ;;  %3516 = vmatpush1.msra.mxu0 %v3437_v25  ;;  %v3447_v42 = vsel %vm3424_vm7, %v12414_v2, %v12421_v27  ;;  %v9683_v2 = vld [vmem:[%s17740_s11 + $0x68] sm:$0xff] }
 0x96a   : > { %3517 = vmatprep.subr.mxu0 %v12351_v15  ;;  %v12441_v47 = vpop.permute.xlu0 %3748  ;;  %v3433_v15 = vsel %vm3424_vm7, %v12251_v54, %v12278_v57  ;;  %v3431_v54 = vsel %vm3424_vm7, %v12222_v34, %v12241_v16  ;;  %v3428_v34 = vsel %vm3424_vm7, %v12141_v32, %v12145_v36  ;;  %v3425_v32 = vsel %vm3424_vm7, %v12072_v51, %v12076_v53 }
 0x96b   : > { %3518 = vmatpush1.msra.mxu0 %v3436_v38  ;;  %v3446_v51 = vsel %vm3424_vm7, %v12400_v44, %v12412_v50 }
 0x96c   : > { %3519 = vmatprep.subr.mxu0 %v12332_v31 }
 0x96d   : > { %v12447_v4 = vpop.permute.xlu1 %3762  ;;  %3520 = vmatpush1.msra.mxu0 %v3435_v58 }
 0x96e   : > { %3521 = vmatprep.subr.mxu0 %v12312_v52  ;;  %v12453_v1 = vpop.permute.xlu0 %3744  ;;  %v3818_v14 = vsel %vm3804_vm8, %v12425_v41, %v12447_v4 }
 0x96f   : > { %3522 = vmatpush1.msra.mxu0 %v3434_v60 }
 0x970   : > { %3523 = vmatprep.subr.mxu0 %v12278_v57  ;;  %v3430_v57 = vsel %vm3424_vm7, %v12208_v0, %v12227_v46  ;;  %v3427_v0 = vsel %vm3424_vm7, %v12120_v7, %v12124_v8 }
 0x971   : > { %v12459_v6 = vpop.permute.xlu1 %3758  ;;  %3524 = vmatpush1.msra.mxu0 %v3433_v15 }
 0x972   : > { %3525 = vmatprep.subr.mxu0 %v12259_v45  ;;  %v12465_v31 = vpop.permute.xlu0 %3740  ;;  %v3817_v35 = vsel %vm3804_vm8, %v12428_v11, %v12459_v6  ;;  %v9684_v11 = vld [vmem:[%s17740_s11 + $0x70] sm:$0xff] }
 0x973   : > { %3526 = vmatpush1.msra.mxu0 %v3432_v22 }
 0x974   : > { %3527 = vmatprep.subr.mxu0 %v12241_v16 }
 0x975   : > { %v12471_v52 = vpop.permute.xlu1 %3754  ;;  %3528 = vmatpush1.msra.mxu0 %v3431_v54 }
 0x976   : > { %3529 = vmatprep.subr.mxu0 %v12227_v46  ;;  %v12477_v49 = vpop.permute.xlu0 %3736  ;;  %v3816_v43 = vsel %vm3804_vm8, %v12432_v19, %v12471_v52 }
 0x977   : > { %3530 = vmatpush1.msra.mxu0 %v3430_v57 }
 0x978   : > { %3531 = vmatprep.subr.mxu0 %v12163_v62 }
 0x979   : > { %v12483_v45 = vpop.permute.xlu1 %3750  ;;  %3532 = vmatpush1.msra.mxu0 %v3429_v26 }
 0x97a   : > { %3533 = vmatprep.subr.mxu0 %v12145_v36  ;;  %v3421_v16 = vpop.permute.xlu0 %3420  ;;  %v3815_v33 = vsel %vm3804_vm8, %v12441_v47, %v12483_v45 }
 0x97b   : > { %3534 = vmatpush1.msra.mxu0 %v3428_v34  ;;  %v3448_v7 = vsel %vm3424_vm7, %v3421_v16, %v3423_v21 }
 0x97c   : > { %3535 = vmatprep.subr.mxu0 %v12124_v8 }
 0x97d   : > { %v12493_v46 = vpop.permute.xlu1 %3746  ;;  %3536 = vmatpush1.msra.mxu0 %v3427_v0 }
 0x97e   : > { %3537 = vmatprep.subr.mxu0 %v12100_v61  ;;  %v12499_v62 = vpop.permute.xlu0 %3732  ;;  %v3814_v19 = vsel %vm3804_vm8, %v12453_v1, %v12493_v46 }
 0x97f   : > { %3538 = vmatpush1.msra.mxu0 %v3426_v59 }
 0x980   : > { %3539 = vmatprep.subr.mxu0 %v12076_v53 }
 0x981   : > { %v12505_v36 = vpop.permute.xlu1 %3742  ;;  %3540 = vmatpush1.msra.mxu0 %v3425_v32 }
 0x982   : > { %3557 = vmatprep.subr.mxu0 %v3423_v21  ;;  %v12508_v8 = vpop.permute.xlu0 %3728  ;;  %v9695_v21 = vld [vmem:[%s17740_s11 + $0x88] sm:$0xff] }
 0x983   : > { %3558 = vmatpush2.msra.mxu0 %v3448_v7 }
 0x984   : > { %3559 = vmatprep.subr.mxu0 %v12421_v27 }
 0x985   : > { %v12514_v61 = vpop.permute.xlu1 %3738  ;;  %3560 = vmatpush2.msra.mxu0 %v3447_v42 }
 0x986   : > { %3561 = vmatprep.subr.mxu0 %v12412_v50  ;;  %v12520_v53 = vpop.permute.xlu0 %3724  ;;  %v3812_v47 = vsel %vm3804_vm8, %v12477_v49, %v12514_v61 }
 0x987   : > { %3562 = vmatpush2.msra.mxu0 %v3446_v51 }
 0x988   : > { %3563 = vmatprep.subr.mxu0 %v12391_v24  ;;  %v3442_v24 = vsel %vm3424_vm7, %v12308_v20, %v12320_v10 }
 0x989   : > { %v12526_v39 = vpop.permute.xlu1 %3734  ;;  %3564 = vmatpush2.msra.mxu0 %v3445_v40 }
 0x98a   : > { %3565 = vmatprep.subr.mxu0 %v12372_v37  ;;  %v3769_v44 = vpop.permute.xlu0 %3768  ;;  %v9678_v37 = vld [vmem:[%s17740_s11 + $0x40] sm:$0xff] }
 0x98b   : > { %3566 = vmatpush2.msra.mxu0 %v3444_v63 }
 0x98c   : > { %3567 = vmatprep.subr.mxu0 %v12340_v18  ;;  %v9681_v18 = vld [vmem:[%s17740_s11 + $0x58] sm:$0xff] }
 0x98d   : > { %v12536_v56 = vpop.permute.xlu1 %3730  ;;  %3568 = vmatpush2.msra.mxu0 %v3443_v29  ;;  %v9696_v29 = vld [vmem:[%s17740_s11 + $0x90] sm:$0xff] }
 0x98e   : > { %3569 = vmatprep.subr.mxu0 %v12320_v10  ;;  %v12542_v12 = vpop.permute.xlu0 %3720  ;;  %v3820_v10 = vsel %vm3804_vm8, %v3769_v44, %v12435_v30  ;;  %v3810_v1 = vsel %vm3804_vm8, %v12508_v8, %v12536_v56  ;;  %v9697_v44 = vld [vmem:[%s17740_s11 + $0x98] sm:$0xff] }
 0x98f   : > { %3570 = vmatpush2.msra.mxu0 %v3442_v24  ;;  %v9698_v24 = vld [vmem:[%s17740_s11 + $0xa0] sm:$0xff] }
 0x990   : > { %3571 = vmatprep.subr.mxu0 %v12293_v23  ;;  %v3819_v23 = vsel %vm3804_vm8, %v12419_v13, %v12423_v28  ;;  %v9682_v13 = vld [vmem:[%s17740_s11 + $0x60] sm:$0xff] }
 0x991   : > { %v3727_v20 = vpop.permute.xlu1 %3726  ;;  %3572 = vmatpush2.msra.mxu0 %v3441_v3  ;;  %v4057_v3 = vld [vmem:[%s17742_s13 + $0xf8] sm:$0xff] }
 0x992   : > { %3889 = vmatprep.subr.mxu0 %v12435_v30  ;;  %3574 = vmatmul.mubr.f32.vlgmr.msra.gmra.mxu0 %v9678_v37  ;;  %v12557_v50 = vpop.permute.xlu0 %3716  ;;  %v3813_v30 = vsel %vm3804_vm8, %v12465_v31, %v12505_v36  ;;  %v9700_v37 = vld [vmem:[%s17740_s11 + $0xb0] sm:$0xff] }
 0x993   : > { %3890 = vmatpush1.msra.mxu0 %v3820_v10  ;;  %9687 = vmatprep.mubr.msk.f32.mxu0 %vm1406_vm2, %v9681_v18  ;;  %v4056_v18 = vld [vmem:[%s17742_s13 + $0xf0] sm:$0xff]  ;;  %v4054_v10 = vld [vmem:[%s17742_s13 + $0xe0] sm:$0xff] }
 0x994   : > { %3891 = vmatprep.subr.mxu0 %v12423_v28  ;;  %v9685_v28 = vld [vmem:[%s17740_s11 + $0x78] sm:$0xff]  ;;  %4102 = vmatprep.subr.mxu1 %v4057_v3 }
 0x995   : > { %v3723_v48 = vpop.permute.xlu1 %3722  ;;  %3892 = vmatpush1.msra.mxu0 %v3819_v23  ;;  %4103 = vmatpush1.msra.mxu1 %v4056_v18  ;;  %v4051_v23 = vld [vmem:[%s17742_s13 + $0xc8] sm:$0xff] }
 0x996   : > { %3893 = vmatprep.subr.mxu0 %v12447_v4  ;;  %v3713_v27 = vpop.permute.xlu0 %3712  ;;  %3580 = vmatmul.mubr.f32.gmra.mxu0 %v9680_v9  ;;  %v3811_v4 = vsel %vm3804_vm8, %v12499_v62, %v12526_v39  ;;  %v3808_v31 = vsel %vm3804_vm8, %v12542_v12, %v3723_v48  ;;  %v9701_v12 = vld [vmem:[%s17740_s11 + $0xb8] sm:$0xff]  ;;  %v4052_v9 = vld [vmem:[%s17742_s13 + $0xd0] sm:$0xff] }
 0x997   : > { %3894 = vmatpush1.msra.mxu0 %v3818_v14  ;;  %9688 = vmatprep.mubr.msk.f32.mxu0 %vm1406_vm2, %v9683_v2  ;;  %v4050_v2 = vld [vmem:[%s17742_s13 + $0xc0] sm:$0xff]  ;;  %v4048_v14 = vld [vmem:[%s17742_s13 + $0xb0] sm:$0xff] }
 0x998   : > { %3895 = vmatprep.subr.mxu0 %v12459_v6  ;;  %v3809_v6 = vsel %vm3804_vm8, %v12520_v53, %v3727_v20 }
 0x999   : > { %v3719_v41 = vpop.permute.xlu1 %3718  ;;  %3896 = vmatpush1.msra.mxu0 %v3817_v35  ;;  %v4045_v35 = vld [vmem:[%s17742_s13 + $0x98] sm:$0xff] }
 0x99a   : > { %3897 = vmatprep.subr.mxu0 %v12471_v52  ;;  %v3709_v55 = vpop.permute.xlu0 %3708  ;;  %3586 = vmatmul.mubr.f32.gmra.mxu0 %v9682_v13  ;;  %v3807_v52 = vsel %vm3804_vm8, %v12557_v50, %v3719_v41  ;;  %v4053_v50 = vld [vmem:[%s17742_s13 + $0xd8] sm:$0xff]  ;;  %v4046_v13 = vld [vmem:[%s17742_s13 + $0xa0] sm:$0xff] }
 0x99b   : > { %3898 = vmatpush1.msra.mxu0 %v3816_v43  ;;  %9689 = vmatprep.mubr.msk.f32.mxu0 %vm1406_vm2, %v9685_v28  ;;  %v4044_v28 = vld [vmem:[%s17742_s13 + $0x90] sm:$0xff]  ;;  %v4042_v43 = vld [vmem:[%s17742_s13 + $0x80] sm:$0xff] }
 0x99c   : > { %3899 = vmatprep.subr.mxu0 %v12483_v45 }
 0x99d   : > { %v3715_v17 = vpop.permute.xlu1 %3714  ;;  %3900 = vmatpush1.msra.mxu0 %v3815_v33  ;;  %v4039_v33 = vld [vmem:[%s17742_s13 + $0x68] sm:$0xff] }
 0x99e   : > { %3901 = vmatprep.subr.mxu0 %v12493_v46  ;;  %v3797_v25 = vpop.permute.xlu0 %3796  ;;  %3592 = vmatmul.mubr.f32.gmra.mxu0 %v9684_v11  ;;  %v3806_v49 = vsel %vm3804_vm8, %v3713_v27, %v3715_v17  ;;  %v4047_v27 = vld [vmem:[%s17742_s13 + $0xa8] sm:$0xff]  ;;  %v4040_v11 = vld [vmem:[%s17742_s13 + $0x70] sm:$0xff] }
 0x99f   : > { %3902 = vmatpush1.msra.mxu0 %v3814_v19  ;;  %9702 = vmatprep.mubr.msk.f32.mxu0 %vm1406_vm2, %v9695_v21  ;;  %v4038_v21 = vld [vmem:[%s17742_s13 + $0x60] sm:$0xff]  ;;  %v4036_v19 = vld [vmem:[%s17742_s13 + $0x50] sm:$0xff] }
 0x9a0   : > { %3903 = vmatprep.subr.mxu0 %v12505_v36 }
 0x9a1   : > { %v3711_v38 = vpop.permute.xlu1 %3710  ;;  %3904 = vmatpush1.msra.mxu0 %v3813_v30  ;;  %v4034_v30 = vld [vmem:[%s17742_s13 + $0x40] sm:$0xff] }
 0x9a2   : > { %3905 = vmatprep.subr.mxu0 %v12514_v61  ;;  %v3793_v58 = vpop.permute.xlu0 %3792  ;;  %v3805_v45 = vsel %vm3804_vm8, %v3709_v55, %v3711_v38  ;;  %v4041_v55 = vld [vmem:[%s17742_s13 + $0x78] sm:$0xff] }
 0x9a3   : > { %3906 = vmatpush1.msra.mxu0 %v3812_v47  ;;  %v4032_v47 = vld [vmem:[%s17742_s13 + $0x30] sm:$0xff] }
 0x9a4   : > { %3907 = vmatprep.subr.mxu0 %v12526_v39  ;;  %v9694_v39 = vld [vmem:[%s17740_s11 + $0x80] sm:$0xff] }
 0x9a5   : > { %v3803_v60 = vpop.permute.xlu1 %3802  ;;  %3908 = vmatpush1.msra.mxu0 %v3811_v4  ;;  %v4030_v4 = vld [vmem:[%s17742_s13 + $0x20] sm:$0xff] }
 0x9a6   : > { %3909 = vmatprep.subr.mxu0 %v12536_v56  ;;  %v3789_v15 = vpop.permute.xlu0 %3788  ;;  %v9699_v56 = vld [vmem:[%s17740_s11 + $0xa8] sm:$0xff] }
 0x9a7   : > { %3910 = vmatpush1.msra.mxu0 %v3810_v1  ;;  %v4028_v1 = vld [vmem:[%s17742_s13 + $0x10] sm:$0xff] }
 0x9a8   : > { %3911 = vmatprep.subr.mxu0 %v3727_v20  ;;  %v4055_v20 = vld [vmem:[%s17742_s13 + $0xe8] sm:$0xff] }
 0x9a9   : > { %v3799_v22 = vpop.permute.xlu1 %3798  ;;  %3912 = vmatpush1.msra.mxu0 %v3809_v6  ;;  %4104 = vmatprep.subr.mxu1 %v4055_v20  ;;  %v4026_v6 = vld [vmem:[%s17742_s13] sm:$0xff] }
 0x9aa   : > { %3913 = vmatprep.subr.mxu0 %v3723_v48  ;;  %v3801_v54 = vpop.permute.xlu0 %3800  ;;  %v3827_v0 = vsel %vm3804_vm8, %v3797_v25, %v3799_v22  ;;  %4105 = vmatpush1.msra.mxu1 %v4054_v10  ;;  %v4049_v48 = vld [vmem:[%s17742_s13 + $0xb8] sm:$0xff]  ;;  %v4035_v25 = vld [vmem:[%s17742_s13 + $0x48] sm:$0xff] }
 0x9ab   : > { %3914 = vmatpush1.msra.mxu0 %v3808_v31  ;;  %v3828_v16 = vsel %vm3804_vm8, %v3801_v54, %v3803_v60  ;;  %4106 = vmatprep.subr.mxu1 %v4053_v50  ;;  %v4080_v31 = vld [vmem:[%s17742_s13 + $0x1b0] sm:$0x3f]  ;;  %v4079_v54 = vld [vmem:[%s17742_s13 + $0x1a8] sm:$0xff] }
 0x9ac   : > { %3915 = vmatprep.subr.mxu0 %v3719_v41  ;;  %4107 = vmatpush1.msra.mxu1 %v4052_v9  ;;  %v4043_v41 = vld [vmem:[%s17742_s13 + $0x88] sm:$0xff] }
 0x9ad   : > { %v3795_v57 = vpop.permute.xlu1 %3794  ;;  %3916 = vmatpush1.msra.mxu0 %v3807_v52  ;;  %4108 = vmatprep.subr.mxu1 %v4051_v23  ;;  %v4078_v52 = vld [vmem:[%s17742_s13 + $0x1a0] sm:$0xff] }
 0x9ae   : > { %3917 = vmatprep.subr.mxu0 %v3715_v17  ;;  %v3785_v26 = vpop.permute.xlu0 %3784  ;;  %v3826_v62 = vsel %vm3804_vm8, %v3793_v58, %v3795_v57  ;;  %4109 = vmatpush1.msra.mxu1 %v4050_v2  ;;  %v4037_v17 = vld [vmem:[%s17742_s13 + $0x58] sm:$0xff]  ;;  %v4031_v58 = vld [vmem:[%s17742_s13 + $0x28] sm:$0xff] }
 0x9af   : > { %3918 = vmatpush1.msra.mxu0 %v3806_v49  ;;  %4110 = vmatprep.subr.mxu1 %v4049_v48  ;;  %v4076_v49 = vld [vmem:[%s17742_s13 + $0x190] sm:$0xff] }
 0x9b0   : > { %3919 = vmatprep.subr.mxu0 %v3711_v38  ;;  %4111 = vmatpush1.msra.mxu1 %v4048_v14  ;;  %v4033_v38 = vld [vmem:[%s17742_s13 + $0x38] sm:$0xff] }
 0x9b1   : > { %v3791_v34 = vpop.permute.xlu1 %3790  ;;  %3920 = vmatpush1.msra.mxu0 %v3805_v45  ;;  %4112 = vmatprep.subr.mxu1 %v4047_v27  ;;  %v4074_v45 = vld [vmem:[%s17742_s13 + $0x180] sm:$0xff] }
 0x9b2   : > { %3937 = vmatprep.subr.mxu0 %v3803_v60  ;;  %v3781_v59 = vpop.permute.xlu0 %3780  ;;  %v3825_v32 = vsel %vm3804_vm8, %v3789_v15, %v3791_v34  ;;  %4113 = vmatpush1.msra.mxu1 %v4046_v13  ;;  %v4029_v60 = vld [vmem:[%s17742_s13 + $0x18] sm:$0xff]  ;;  %v4027_v15 = vld [vmem:[%s17742_s13 + $0x8] sm:$0xff] }
 0x9b3   : > { %3938 = vmatpush2.msra.mxu0 %v3828_v16  ;;  %4114 = vmatprep.subr.mxu1 %v4045_v35  ;;  %v4072_v16 = vld [vmem:[%s17742_s13 + $0x170] sm:$0xff] }
 0x9b4   : > { %3939 = vmatprep.subr.mxu0 %v3799_v22  ;;  %4115 = vmatpush1.msra.mxu1 %v4044_v28  ;;  %v4081_v22 = vld [vmem:[%s17742_s13 + $0x1b8] sm:$0x3f] }
 0x9b5   : > { %v3787_v46 = vpop.permute.xlu1 %3786  ;;  %3940 = vmatpush2.msra.mxu0 %v3827_v0  ;;  %4116 = vmatprep.subr.mxu1 %v4043_v41  ;;  %v4071_v0 = vld [vmem:[%s17742_s13 + $0x168] sm:$0xff] }
 0x9b6   : > { %3941 = vmatprep.subr.mxu0 %v3795_v57  ;;  %v3824_v7 = vsel %vm3804_vm8, %v3785_v26, %v3787_v46  ;;  %v3777_v8 = vpop.permute.xlu0 %3776  ;;  %4117 = vmatpush1.msra.mxu1 %v4042_v43  ;;  %v4077_v57 = vld [vmem:[%s17742_s13 + $0x198] sm:$0xff]  ;;  %v4075_v26 = vld [vmem:[%s17742_s13 + $0x188] sm:$0xff] }
 0x9b7   : > { %3942 = vmatpush2.msra.mxu0 %v3826_v62  ;;  %4118 = vmatprep.subr.mxu1 %v4041_v55  ;;  %v4068_v62 = vld [vmem:[%s17742_s13 + $0x150] sm:$0xff] }
 0x9b8   : > { %3943 = vmatprep.subr.mxu0 %v3791_v34  ;;  %4119 = vmatpush1.msra.mxu1 %v4040_v11  ;;  %v4073_v34 = vld [vmem:[%s17742_s13 + $0x178] sm:$0xff] }
 0x9b9   : > { %v3783_v36 = vpop.permute.xlu1 %3782  ;;  %3944 = vmatpush2.msra.mxu0 %v3825_v32  ;;  %4120 = vmatprep.subr.mxu1 %v4039_v33  ;;  %v4067_v32 = vld [vmem:[%s17742_s13 + $0x148] sm:$0xff] }
 0x9ba   : > { %3945 = vmatprep.subr.mxu0 %v3787_v46  ;;  %v3823_v42 = vsel %vm3804_vm8, %v3781_v59, %v3783_v36  ;;  %v3773_v40 = vpop.permute.xlu0 %3772  ;;  %4121 = vmatpush1.msra.mxu1 %v4038_v21  ;;  %v4070_v46 = vld [vmem:[%s17742_s13 + $0x160] sm:$0xff]  ;;  %v4069_v59 = vld [vmem:[%s17742_s13 + $0x158] sm:$0xff] }
 0x9bb   : > { %3946 = vmatpush2.msra.mxu0 %v3824_v7  ;;  %4122 = vmatprep.subr.mxu1 %v4037_v17  ;;  %v4065_v7 = vld [vmem:[%s17742_s13 + $0x138] sm:$0xff] }
 0x9bc   : > { %3947 = vmatprep.subr.mxu0 %v3783_v36  ;;  %4123 = vmatpush1.msra.mxu1 %v4036_v19  ;;  %v4066_v36 = vld [vmem:[%s17742_s13 + $0x140] sm:$0xff] }
 0x9bd   : > { %v3779_v61 = vpop.permute.xlu1 %3778  ;;  %3948 = vmatpush2.msra.mxu0 %v3823_v42  ;;  %4124 = vmatprep.subr.mxu1 %v4035_v25  ;;  %v4063_v42 = vld [vmem:[%s17742_s13 + $0x128] sm:$0xff] }
 0x9be   : > { %v3822_v51 = vsel %vm3804_vm8, %v3777_v8, %v3779_v61  ;;  %3949 = vmatprep.subr.mxu0 %v3779_v61  ;;  %4125 = vmatpush1.msra.mxu1 %v4034_v30  ;;  %v4064_v8 = vld [vmem:[%s17742_s13 + $0x130] sm:$0xff]  ;;  %v4062_v61 = vld [vmem:[%s17742_s13 + $0x120] sm:$0xff] }
 0x9bf   : > { %3950 = vmatpush2.msra.mxu0 %v3822_v51  ;;  %4126 = vmatprep.subr.mxu1 %v4033_v38  ;;  %v4061_v51 = vld [vmem:[%s17742_s13 + $0x118] sm:$0xff] }
 0x9c0   : > { %4127 = vmatpush1.msra.mxu1 %v4032_v47 }
 0x9c1   : > { %v3775_v53 = vpop.permute.xlu1 %3774  ;;  %4128 = vmatprep.subr.mxu1 %v4031_v58 }
 0x9c2   : > { %v3821_v63 = vsel %vm3804_vm8, %v3773_v40, %v3775_v53  ;;  %3951 = vmatprep.subr.mxu0 %v3775_v53  ;;  %4129 = vmatpush1.msra.mxu1 %v4030_v4  ;;  %v4060_v53 = vld [vmem:[%s17742_s13 + $0x110] sm:$0xff]  ;;  %v4059_v40 = vld [vmem:[%s17742_s13 + $0x108] sm:$0xff] }
 0x9c3   : > { %3952 = vmatpush2.msra.mxu0 %v3821_v63  ;;  %4130 = vmatprep.subr.mxu1 %v4029_v60 }
 0x9c4   : > { %3954 = vmatmul.mubr.f32.vlgmr.msra.gmra.mxu0 %v9694_v39  ;;  %4131 = vmatpush1.msra.mxu1 %v4028_v1  ;;  %v4058_v39 = vld [vmem:[%s17742_s13 + $0x100] sm:$0xff] }
 0x9c5   : > { %9703 = vmatprep.mubr.msk.f32.mxu0 %vm1406_vm2, %v9697_v44  ;;  %4132 = vmatprep.subr.mxu1 %v4027_v15 }
 0x9c6   : > { %4133 = vmatpush1.msra.mxu1 %v4026_v6 }
 0x9c7   : > { %9706 = vmatprep.subr.msk.mxu1 %vm4095_vm9, %v4081_v22  ;;  %v3993_v35 = vpop.permute.xlu0 %3992 }
 0x9c8   : > { %3960 = vmatmul.mubr.f32.gmra.mxu0 %v9696_v29  ;;  %9707 = vmatpush2.msk.msra.mxu1 %vm4095_vm9, %v4080_v31 }
 0x9c9   : > { %9704 = vmatprep.mubr.msk.f32.mxu0 %vm1406_vm2, %v9699_v56  ;;  %4144 = vmatprep.subr.mxu1 %v4079_v54 }
 0x9ca   : > { %4145 = vmatpush2.msra.mxu1 %v4078_v52 }
 0x9cb   : > { %4146 = vmatprep.subr.mxu1 %v4077_v57  ;;  %v4003_v54 = vpop.permute.xlu0 %4002 }
 0x9cc   : > { %3966 = vmatmul.mubr.f32.gmra.mxu0 %v9698_v24  ;;  %4147 = vmatpush2.msra.mxu1 %v4076_v49 }
 0x9cd   : > { %9705 = vmatprep.mubr.msk.f32.mxu0 %vm1406_vm2, %v9701_v12  ;;  %4148 = vmatprep.subr.mxu1 %v4075_v26 }
 0x9ce   : > { %4149 = vmatpush2.msra.mxu1 %v4074_v45  ;;  %v3998_v25 = vpop.permute.xlu1 %3997 }
 0x9cf   : > { %4150 = vmatprep.subr.mxu1 %v4073_v34 }
 0x9d0   : > { %3972 = vmatmul.mubr.f32.gmra.mxu0 %v9700_v37  ;;  %4151 = vmatpush2.msra.mxu1 %v4072_v16 }
 0x9d1   : > { %4496 = vmatprep.mubr.f32.mxu0 %v17768_v5  ;;  %4152 = vmatprep.subr.mxu1 %v4071_v0 }
 0x9d2   : > { %4153 = vmatpush2.msra.mxu1 %v4070_v46 }
 0x9d3   : > { %4154 = vmatprep.subr.mxu1 %v4069_v59 }
 0x9d4   : > { %4155 = vmatpush2.msra.mxu1 %v4068_v62  ;;  %v4008_v62 = vpop.permute.xlu1 %4007 }
 0x9d5   : > { %4156 = vmatprep.subr.mxu1 %v4067_v32 }
 0x9d6   : > { %4157 = vmatpush2.msra.mxu1 %v4066_v36 }
 0x9d7   : > { %4158 = vmatprep.subr.mxu1 %v4065_v7 }
 0x9d8   : > { %4159 = vmatpush2.msra.mxu1 %v4064_v8 }
 0x9d9   : > { %4160 = vmatprep.subr.mxu1 %v4063_v42 }
 0x9da   : > { %4161 = vmatpush2.msra.mxu1 %v4062_v61 }
 0x9db   : > { %4162 = vmatprep.subr.mxu1 %v4061_v51 }
 0x9dc   : > { %4163 = vmatpush2.msra.mxu1 %v4060_v53 }
 0x9dd   : > { %4164 = vmatprep.subr.mxu1 %v4059_v40 }
 0x9de   : > { %4165 = vmatpush2.msra.mxu1 %v4058_v39 }
 0x9df   : > { %v3676_v24 = vpop.f32.mrf.mxu1 }
 0x9e1   : > { %v3678_v37 = vpop.f32.mrf.mxu1 }
 0x9ed   : > { %v3682_v3 = vpop.f32.mrf.mxu1 }
 0x9ef   : > { %v3684_v20 = vpop.f32.mrf.mxu1 }
 0x9f1   : > { %v3688_v50 = vpop.f32.mrf.mxu1 }
 0x9f3   : > { %v3690_v27 = vpop.f32.mrf.mxu1 }
 0x9fc   : > { %v3694_v17 = vpop.f32.mrf.mxu1 }
 0x9fe   : > { %v3696_v22 = vpop.f32.mrf.mxu1 }
 0xa52   : > { %v3575_v63 = vpop.f32.mrf.mxu0 }
 0xa53   : > { %v3677_v23 = vadd.f32 %v3676_v24, %v3575_v63 }
 0xa54   : > { %v3577_v44 = vpop.f32.mrf.mxu0 }
 0xa55   : > { %v3679_v48 = vadd.f32 %v3678_v37, %v3577_v44 }
 0xa56   : > { %v3581_v29 = vpop.f32.mrf.mxu0 }
 0xa57   : > { %v3683_v28 = vadd.f32 %v3682_v3, %v3581_v29 }
 0xa58   : > { %v3583_v56 = vpop.f32.mrf.mxu0 }
 0xa59   : > { %v3685_v11 = vadd.f32 %v3684_v20, %v3583_v56 }
 0xa5a   : > { %v3587_v12 = vpop.f32.mrf.mxu0 }
 0xa5b   : > { %v3689_v30 = vadd.f32 %v3688_v50, %v3587_v12 }
 0xa5c   : > { %v3589_v18 = vpop.f32.mrf.mxu0 }
 0xa5d   : > { %v3691_v1 = vadd.f32 %v3690_v27, %v3589_v18 }
 0xa5e   : > { %v3593_v10 = vpop.f32.mrf.mxu0 }
 0xa5f   : > { %v3695_v52 = vadd.f32 %v3694_v17, %v3593_v10 }
 0xa60   : > { %v3595_v9 = vpop.f32.mrf.mxu0 }
 0xa61   : > { %v3697_v16 = vadd.f32 %v3696_v22, %v3595_v9 }
 0xa84   : > { %v3955_v2 = vpop.f32.mrf.mxu0 }
 0xa85   : > { %v3978_v14 = vadd.f32 %v3955_v2, %v3677_v23 }
 0xa86   : > { %v3957_v13 = vpop.f32.mrf.mxu0 }
 0xa87   : > { %v3979_v41 = vadd.f32 %v3957_v13, %v3679_v48  ;;  %v4010_v43 = vadd.f32 %v3993_v35, %v3978_v14 }
 0xa88   : > { %v3961_v55 = vpop.f32.mrf.mxu0 }
 0xa89   : > { %v4011_v33 = vadd.f32 %v3993_v35, %v3979_v41  ;;  %v3980_v21 = vadd.f32 %v3961_v55, %v3683_v28  ;;  %v4018_v58 = vmax.f32 %v4010_v43, 0.0 }
 0xa8a   : > { %v3963_v19 = vpop.f32.mrf.mxu0 }
 0xa8b   : > { %v4019_v38 = vmax.f32 %v4011_v33, 0.0  ;;  %v3981_v47 = vadd.f32 %v3963_v19, %v3685_v11  ;;  %v4012_v4 = vadd.f32 %v3998_v25, %v3980_v21 }
 0xa8c   : > { %v3967_v60 = vpop.f32.mrf.mxu0 }
 0xa8d   : > { %v4013_v15 = vadd.f32 %v3998_v25, %v3981_v47  ;;  %v3982_v6 = vadd.f32 %v3967_v60, %v3689_v30  ;;  %9708 = vmatprep.mubr.msk.f32.mxu1 %vm4082_vm10, %v4019_v38  ;;  %v4020_v26 = vmax.f32 %v4012_v4, 0.0 }
 0xa8e   : > { %v3969_v31 = vpop.f32.mrf.mxu0  ;;  %4167 = vmatmul.mubr.f32.vlgmr.msra.gmra.mxu1 %v4018_v58 }
 0xa8f   : > { %v4021_v57 = vmax.f32 %v4013_v15, 0.0  ;;  %v3983_v49 = vadd.f32 %v3969_v31, %v3691_v1  ;;  %v4014_v45 = vadd.f32 %v4003_v54, %v3982_v6 }
 0xa90   : > { %v3973_v34 = vpop.f32.mrf.mxu0 }
 0xa91   : > { %v4015_v0 = vadd.f32 %v4003_v54, %v3983_v49  ;;  %v3984_v46 = vadd.f32 %v3973_v34, %v3695_v52  ;;  %9709 = vmatprep.mubr.msk.f32.mxu1 %vm4082_vm10, %v4021_v57  ;;  %v4022_v7 = vmax.f32 %v4014_v45, 0.0  ;;  %v4279_v54 = vld [vmem:[%s17743_s14] sm:$0xff]  ;;  %v4280_v52 = vld [vmem:[%s17743_s14 + $0x8] sm:$0xff]  ;;  %v4281_v57 = vld [vmem:[%s17743_s14 + $0x10] sm:$0xff] }
 0xa92   : > { %v3975_v59 = vpop.f32.mrf.mxu0  ;;  %4173 = vmatmul.mubr.f32.gmra.mxu1 %v4020_v26  ;;  %v4282_v49 = vld [vmem:[%s17743_s14 + $0x18] sm:$0xff]  ;;  %v4820_v26 = vld [vmem:[%s17744_s15] sm:$0xff]  ;;  %v4822_v45 = vld [vmem:[%s17744_s15 + $0x10] sm:$0xff] }
 0xa93   : > { %v4023_v32 = vmax.f32 %v4015_v0, 0.0  ;;  %v3985_v36 = vadd.f32 %v3975_v59, %v3697_v16  ;;  %v4016_v8 = vadd.f32 %v4008_v62, %v3984_v46  ;;  %v4821_v34 = vld [vmem:[%s17744_s15 + $0x8] sm:$0xff]  ;;  %v4980_v0 = vld [vmem:[%s17745_s16 + $0x3c0] sm:$0xff]  ;;  %v4823_v59 = vld [vmem:[%s17744_s15 + $0x18] sm:$0xff] }
 0xa94   : > { %v4981_v16 = vld [vmem:[%s17745_s16 + $0x3c8] sm:$0xff] }
 0xa95   : > { %v4017_v42 = vadd.f32 %v4008_v62, %v3985_v36  ;;  %9710 = vmatprep.mubr.msk.f32.mxu1 %vm4082_vm10, %v4023_v32  ;;  %v4024_v51 = vmax.f32 %v4016_v8, 0.0  ;;  %v4973_v46 = vld [vmem:[%s17745_s16 + $0x388] sm:$0xff]  ;;  %v4972_v62 = vld [vmem:[%s17745_s16 + $0x380] sm:$0xff] }
 0xa96   : > { %4179 = vmatmul.mubr.f32.gmra.mxu1 %v4022_v7  ;;  %v4965_v32 = vld [vmem:[%s17745_s16 + $0x348] sm:$0xff]  ;;  %v4964_v36 = vld [vmem:[%s17745_s16 + $0x340] sm:$0xff] }
 0xa97   : > { %v4025_v61 = vmax.f32 %v4017_v42, 0.0  ;;  %v4957_v7 = vld [vmem:[%s17745_s16 + $0x308] sm:$0xff]  ;;  %v4956_v8 = vld [vmem:[%s17745_s16 + $0x300] sm:$0xff] }
 0xa99   : > { %9711 = vmatprep.mubr.msk.f32.mxu1 %vm4082_vm10, %v4025_v61  ;;  %v4949_v61 = vld [vmem:[%s17745_s16 + $0x2c8] sm:$0xff] }
 0xa9a   : > { %4185 = vmatmul.mubr.f32.gmra.mxu1 %v4024_v51  ;;  %v4948_v51 = vld [vmem:[%s17745_s16 + $0x2c0] sm:$0xff] }
 0xa9b   : > { %4597 = vmatprep.mubr.f32.mxu1 %v17768_v5 }
 0xb4e   : > { %v12837_v53 = vpop.f32.mrf.mxu1 }
 0xb4f   : > { %4243 = vrot.lane.b32.xlu0 %v12837_v53, %s17845_s26 }
 0xb50   : > { %v4170_v40 = vpop.f32.mrf.mxu1 }
 0xb51   : > { %4192 = vst.msk [vmem:[#allocation4 + $0x8] sm:$0xff] %vm3038_vm5, %v4170_v40  ;;  %4245 = vrot.lane.b32.xlu1 %v4170_v40, %s17845_s26 }
 0xb52   : > { %v12843_v39 = vpop.f32.mrf.mxu1 }
 0xb53   : > { %4247 = vrot.lane.b32.xlu0 %v12843_v39, %s17845_s26 }
 0xb54   : > { %v4176_v63 = vpop.f32.mrf.mxu1 }
 0xb55   : > { %4194 = vst.msk [vmem:[#allocation4 + $0x18] sm:$0xff] %vm3038_vm5, %v4176_v63  ;;  %4249 = vrot.lane.b32.xlu1 %v4176_v63, %s17845_s26 }
 0xb56   : > { %v12849_v44 = vpop.f32.mrf.mxu1 }
 0xb57   : > { %4251 = vrot.lane.b32.xlu0 %v12849_v44, %s17845_s26 }
 0xb58   : > { %v4182_v29 = vpop.f32.mrf.mxu1  ;;  %v12875_v12 = vld [vmem:[#allocation4 + $0x8] sm:$0xff] }
 0xb59   : > { %4196 = vst.msk [vmem:[#allocation4 + $0x28] sm:$0xff] %vm3038_vm5, %v4182_v29  ;;  %4253 = vrot.lane.b32.xlu1 %v4182_v29, %s17845_s26 }
 0xb5a   : > { %v12855_v56 = vpop.f32.mrf.mxu1 }
 0xb5b   : > { %4255 = vrot.lane.b32.xlu0 %v12855_v56, %s17845_s26 }
 0xb5c   : > { %v4188_v24 = vpop.f32.mrf.mxu1  ;;  %v12881_v37 = vld [vmem:[#allocation4 + $0x18] sm:$0xff] }
 0xb5d   : > { %4198 = vst.msk [vmem:[#allocation4 + $0x38] sm:$0xff] %vm3038_vm5, %v4188_v24  ;;  %4257 = vrot.lane.b32.xlu1 %v4188_v24, %s17845_s26 }
 0xb5f   : > { %4215 = vrot.lane.b32.xlu0 %v12849_v44, %s17846_s28 }
 0xb60   : > { %v12887_v3 = vld [vmem:[#allocation4 + $0x28] sm:$0xff] }
 0xb61   : > { %4217 = vrot.lane.b32.xlu1 %v4182_v29, %s17846_s28  ;;  %v4925_v29 = vld [vmem:[%s17745_s16 + $0x208] sm:$0xff] }
 0xb63   : > { %4219 = vrot.lane.b32.xlu0 %v12855_v56, %s17846_s28 }
 0xb64   : > { %v12893_v18 = vld [vmem:[#allocation4 + $0x38] sm:$0xff] }
 0xb65   : > { %4221 = vrot.lane.b32.xlu1 %v4188_v24, %s17846_s28  ;;  %v4924_v24 = vld [vmem:[%s17745_s16 + $0x200] sm:$0xff] }
 0xb67   : > { %4211 = vrot.lane.b32.xlu0 %v12843_v39, %s17846_s28 }
 0xb69   : > { %4213 = vrot.lane.b32.xlu1 %v4176_v63, %s17846_s28  ;;  %v4932_v63 = vld [vmem:[%s17745_s16 + $0x240] sm:$0xff] }
 0xb6b   : > { %4207 = vrot.lane.b32.xlu0 %v12837_v53, %s17846_s28 }
 0xb6d   : > { %4209 = vrot.lane.b32.xlu1 %v4170_v40, %s17846_s28  ;;  %v4940_v40 = vld [vmem:[%s17745_s16 + $0x280] sm:$0xff] }
 0xb6f   : > { %4340 = vrot.lane.b32.xlu0 %v12843_v39, %s17843_s21 }
 0xb71   : > { %4338 = vrot.lane.b32.xlu1 %v12875_v12, %s17843_s21 }
 0xb73   : > { %4336 = vrot.lane.b32.xlu0 %v12837_v53, %s17843_s21 }
 0xb75   : > { %4342 = vrot.lane.b32.xlu1 %v12881_v37, %s17843_s21 }
 0xb77   : > { %4344 = vrot.lane.b32.xlu0 %v12849_v44, %s17843_s21 }
 0xb79   : > { %4346 = vrot.lane.b32.xlu1 %v12887_v3, %s17843_s21 }
 0xb7b   : > { %4348 = vrot.lane.b32.xlu0 %v12855_v56, %s17843_s21 }
 0xb7d   : > { %4350 = vrot.lane.b32.xlu1 %v12893_v18, %s17843_s21 }
 0xbc1   : > { %v4244_v20 = vpop.permute.xlu0 %4243 }
 0xbc3   : > { %v4246_v10 = vpop.permute.xlu1 %4245 }
 0xbc4   : > { %v12898_v50 = vsel %vm3038_vm5, %v4244_v20, %v4246_v10  ;;  %4272 = vst.msk [vmem:[#allocation4 + $0x88] sm:$0xff] %vm3038_vm5, %v4246_v10  ;;  %v4901_v10 = vld [vmem:[%s17745_s16 + $0x148] sm:$0xff] }
 0xbc5   : > { %v4248_v9 = vpop.permute.xlu0 %4247  ;;  %4368 = vrot.lane.b32.xlu0 %v12898_v50, %s17843_s21 }
 0xbc7   : > { %v4250_v23 = vpop.permute.xlu1 %4249 }
 0xbc8   : > { %v12904_v2 = vsel %vm3038_vm5, %v4248_v9, %v4250_v23  ;;  %4274 = vst.msk [vmem:[#allocation4 + $0x98] sm:$0xff] %vm3038_vm5, %v4250_v23  ;;  %v4900_v9 = vld [vmem:[%s17745_s16 + $0x140] sm:$0xff] }
 0xbc9   : > { %v4252_v48 = vpop.permute.xlu0 %4251 }
 0xbcb   : > { %v4254_v14 = vpop.permute.xlu1 %4253  ;;  %v12907_v27 = vld [vmem:[#allocation4 + $0x88] sm:$0xff] }
 0xbcc   : > { %v4261_v13 = vsel %vm3038_vm5, %v4252_v48, %v4254_v14  ;;  %4276 = vst.msk [vmem:[#allocation4 + $0xa8] sm:$0xff] %vm3038_vm5, %v4254_v14  ;;  %4370 = vrot.lane.b32.xlu1 %v12907_v27, %s17843_s21 }
 0xbcd   : > { %v4256_v35 = vpop.permute.xlu0 %4255 }
 0xbcf   : > { %v4258_v28 = vpop.permute.xlu1 %4257  ;;  %v4302_v47 = vld [vmem:[#allocation4 + $0x98] sm:$0xff] }
 0xbd0   : > { %v12914_v41 = vsel %vm3038_vm5, %v4256_v35, %v4258_v28  ;;  %4278 = vst.msk [vmem:[#allocation4 + $0xb8] sm:$0xff] %vm3038_vm5, %v4258_v28 }
 0xbd1   : > { %v4216_v43 = vpop.permute.xlu0 %4215 }
 0xbd3   : > { %v4218_v55 = vpop.permute.xlu1 %4217  ;;  %v4304_v30 = vld [vmem:[#allocation4 + $0xa8] sm:$0xff] }
 0xbd4   : > { %v12918_v11 = vsel %vm3102_vm6, %v4216_v43, %v4218_v55  ;;  %4240 = vst.msk [vmem:[#allocation4 + $0x68] sm:$0xff] %vm3038_vm5, %v4218_v55 }
 0xbd5   : > { %v4220_v33 = vpop.permute.xlu0 %4219 }
 0xbd7   : > { %v4222_v21 = vpop.permute.xlu1 %4221  ;;  %v4306_v17 = vld [vmem:[#allocation4 + $0xb8] sm:$0xff] }
 0xbd8   : > { %v12922_v19 = vsel %vm3102_vm6, %v4220_v33, %v4222_v21  ;;  %4242 = vst.msk [vmem:[#allocation4 + $0x78] sm:$0xff] %vm3038_vm5, %v4222_v21  ;;  %4541 = vmatprep.subr.mxu1 %v4306_v17 }
 0xbd9   : > { %v4212_v25 = vpop.permute.xlu0 %4211  ;;  %4542 = vmatpush1.msra.mxu1 %v12914_v41 }
 0xbda   : > { %4543 = vmatprep.subr.mxu1 %v4304_v30 }
 0xbdb   : > { %4544 = vmatpush1.msra.mxu1 %v4261_v13  ;;  %v4214_v38 = vpop.permute.xlu1 %4213  ;;  %v4296_v6 = vld [vmem:[#allocation4 + $0x68] sm:$0xff] }
 0xbdc   : > { %v4224_v58 = vsel %vm3102_vm6, %v4212_v25, %v4214_v38  ;;  %4238 = vst.msk [vmem:[#allocation4 + $0x58] sm:$0xff] %vm3038_vm5, %v4214_v38  ;;  %4545 = vmatprep.subr.mxu1 %v4302_v47 }
 0xbdd   : > { %4546 = vmatpush1.msra.mxu1 %v12904_v2  ;;  %v4208_v4 = vpop.permute.xlu0 %4207 }
 0xbde   : > { %4547 = vmatprep.subr.mxu1 %v12907_v27 }
 0xbdf   : > { %4548 = vmatpush1.msra.mxu1 %v12898_v50  ;;  %v4210_v60 = vpop.permute.xlu1 %4209  ;;  %v4298_v1 = vld [vmem:[#allocation4 + $0x78] sm:$0xff] }
 0xbe0   : > { %v4223_v15 = vsel %vm3102_vm6, %v4208_v4, %v4210_v60  ;;  %4236 = vst.msk [vmem:[#allocation4 + $0x48] sm:$0xff] %vm3038_vm5, %v4210_v60  ;;  %4549 = vmatprep.subr.mxu1 %v4298_v1 }
 0xbe1   : > { %4550 = vmatpush1.msra.mxu1 %v12922_v19  ;;  %4352 = vrot.lane.b32.xlu0 %v4223_v15, %s17843_s21  ;;  %v13054_v42 = vpop.permute.xlu0 %4340 }
 0xbe2   : > { %4551 = vmatprep.subr.mxu1 %v4296_v6 }
 0xbe3   : > { %4552 = vmatpush1.msra.mxu1 %v12918_v11  ;;  %v4294_v22 = vld [vmem:[#allocation4 + $0x58] sm:$0xff] }
 0xbe4   : > { %4553 = vmatprep.subr.mxu1 %v4294_v22 }
 0xbe5   : > { %4554 = vmatpush1.msra.mxu1 %v4224_v58  ;;  %4372 = vrot.lane.b32.xlu0 %v12904_v2, %s17843_s21 }
 0xbe7   : > { %v4292_v31 = vld [vmem:[#allocation4 + $0x48] sm:$0xff] }
 0xbe8   : > { %4555 = vmatprep.subr.mxu1 %v4292_v31  ;;  %4354 = vrot.lane.b32.xlu1 %v4292_v31, %s17843_s21 }
 0xbe9   : > { %4556 = vmatpush1.msra.mxu1 %v4223_v15  ;;  %4356 = vrot.lane.b32.xlu0 %v4224_v58, %s17843_s21 }
 0xbea   : > { %4557 = vmatprep.subr.mxu1 %v12893_v18 }
 0xbeb   : > { %4558 = vmatpush1.msra.mxu1 %v12855_v56 }
 0xbec   : > { %4374 = vrot.lane.b32.xlu1 %v4302_v47, %s17843_s21  ;;  %4559 = vmatprep.subr.mxu1 %v12887_v3 }
 0xbed   : > { %4560 = vmatpush1.msra.mxu1 %v12849_v44  ;;  %4376 = vrot.lane.b32.xlu0 %v4261_v13, %s17843_s21 }
 0xbee   : > { %4561 = vmatprep.subr.mxu1 %v12881_v37 }
 0xbef   : > { %4562 = vmatpush1.msra.mxu1 %v12843_v39 }
 0xbf0   : > { %4358 = vrot.lane.b32.xlu1 %v4294_v22, %s17843_s21  ;;  %4563 = vmatprep.subr.mxu1 %v12875_v12 }
 0xbf1   : > { %4564 = vmatpush1.msra.mxu1 %v12837_v53  ;;  %4360 = vrot.lane.b32.xlu0 %v12918_v11, %s17843_s21 }
 0xbf2   : > { %9720 = vmatmul.mubr.msk.f32.vlgmr.msra.gmra.mxu1 %vm3038_vm5, %v4279_v54  ;;  %5120 = vmatprep.subr.mxu1 %v4981_v16 }
 0xbf3   : > { %4603 = vmatprep.mubr.f32.mxu1 %v17768_v5  ;;  %5121 = vmatpush1.msra.mxu1 %v4980_v0 }
 0xbf4   : > { %4378 = vrot.lane.b32.xlu1 %v4304_v30, %s17843_s21  ;;  %5122 = vmatprep.subr.mxu1 %v4973_v46 }
 0xbf5   : > { %4667 = vrot.lane.b32.xlu0 %v4261_v13, %s17844_s25  ;;  %5123 = vmatpush1.msra.mxu1 %v4972_v62 }
 0xbf6   : > { %9721 = vmatmul.mubr.msk.f32.gmra.mxu1 %vm3038_vm5, %v4280_v52  ;;  %5124 = vmatprep.subr.mxu1 %v4965_v32 }
 0xbf7   : > { %4609 = vmatprep.mubr.f32.mxu1 %v17768_v5  ;;  %5125 = vmatpush1.msra.mxu1 %v4964_v36 }
 0xbf8   : > { %4362 = vrot.lane.b32.xlu1 %v4296_v6, %s17843_s21  ;;  %5126 = vmatprep.subr.mxu1 %v4957_v7  ;;  %v9712_v7 = vld [vmem:[%s17743_s14 + $0x20] sm:$0xff] }
 0xbf9   : > { %4380 = vrot.lane.b32.xlu0 %v12914_v41, %s17843_s21  ;;  %5127 = vmatpush1.msra.mxu1 %v4956_v8 }
 0xbfa   : > { %9722 = vmatmul.mubr.msk.f32.gmra.mxu1 %vm3038_vm5, %v4281_v57  ;;  %5128 = vmatprep.subr.mxu1 %v4949_v61 }
 0xbfb   : > { %4615 = vmatprep.mubr.f32.mxu1 %v17768_v5  ;;  %5129 = vmatpush1.msra.mxu1 %v4948_v51 }
 0xbfc   : > { %4669 = vrot.lane.b32.xlu1 %v4304_v30, %s17844_s25 }
 0xbfd   : > { %4663 = vrot.lane.b32.xlu0 %v12904_v2, %s17844_s25 }
 0xbfe   : > { %9723 = vmatmul.mubr.msk.f32.gmra.mxu1 %vm3038_vm5, %v4282_v49 }
 0xc00   : > { %4382 = vrot.lane.b32.xlu1 %v4306_v17, %s17843_s21 }
 0xc01   : > { %4364 = vrot.lane.b32.xlu0 %v12922_v19, %s17843_s21 }
 0xc04   : > { %4366 = vrot.lane.b32.xlu1 %v4298_v1, %s17843_s21 }
 0xc05   : > { %4659 = vrot.lane.b32.xlu0 %v12898_v50, %s17844_s25 }
 0xc08   : > { %4673 = vrot.lane.b32.xlu1 %v4306_v17, %s17844_s25 }
 0xc09   : > { %4651 = vrot.lane.b32.xlu0 %v12918_v11, %s17844_s25 }
 0xc0c   : > { %4665 = vrot.lane.b32.xlu1 %v4302_v47, %s17844_s25 }
 0xc0d   : > { %4647 = vrot.lane.b32.xlu0 %v4224_v58, %s17844_s25 }
 0xc10   : > { %4661 = vrot.lane.b32.xlu1 %v12907_v27, %s17844_s25 }
 0xc11   : > { %4671 = vrot.lane.b32.xlu0 %v12914_v41, %s17844_s25 }
 0xc14   : > { %4657 = vrot.lane.b32.xlu1 %v4298_v1, %s17844_s25 }
 0xc15   : > { %4643 = vrot.lane.b32.xlu0 %v4223_v15, %s17844_s25 }
 0xc18   : > { %4653 = vrot.lane.b32.xlu1 %v4296_v6, %s17844_s25 }
 0xc19   : > { %4655 = vrot.lane.b32.xlu0 %v12922_v19, %s17844_s25 }
 0xc1c   : > { %4649 = vrot.lane.b32.xlu1 %v4294_v22, %s17844_s25 }
 0xc1d   : > { %4639 = vrot.lane.b32.xlu0 %v12855_v56, %s17844_s25  ;;  %v13079_v56 = vpop.permute.xlu1 %4338 }
 0xc20   : > { %4645 = vrot.lane.b32.xlu1 %v4292_v31, %s17844_s25 }
 0xc21   : > { %4635 = vrot.lane.b32.xlu0 %v12849_v44, %s17844_s25  ;;  %v13074_v44 = vpop.permute.xlu0 %4336  ;;  %v13101_v50 = vpop.permute.xlu1 %4342 }
 0xc22   : > { %v4385_v32 = vsel %vm3424_vm7, %v13054_v42, %v13101_v50  ;;  %v4384_v8 = vsel %vm3424_vm7, %v13074_v44, %v13079_v56 }
 0xc24   : > { %4641 = vrot.lane.b32.xlu1 %v12893_v18, %s17844_s25  ;;  %v4908_v18 = vld [vmem:[%s17745_s16 + $0x180] sm:$0xff] }
 0xc25   : > { %4631 = vrot.lane.b32.xlu0 %v12843_v39, %s17844_s25  ;;  %v4933_v39 = vld [vmem:[%s17745_s16 + $0x248] sm:$0xff]  ;;  %v13096_v20 = vpop.permute.xlu0 %4344  ;;  %v4347_v2 = vpop.permute.xlu1 %4346 }
 0xc28   : > { %4637 = vrot.lane.b32.xlu1 %v12887_v3, %s17844_s25  ;;  %v4909_v3 = vld [vmem:[%s17745_s16 + $0x188] sm:$0xff] }
 0xc29   : > { %4627 = vrot.lane.b32.xlu0 %v12837_v53, %s17844_s25  ;;  %v4941_v53 = vld [vmem:[%s17745_s16 + $0x288] sm:$0xff]  ;;  %v4349_v23 = vpop.permute.xlu0 %4348  ;;  %v4351_v14 = vpop.permute.xlu1 %4350 }
 0xc2a   : > { %5130 = vmatprep.subr.mxu1 %v4941_v53  ;;  %v4387_v0 = vsel %vm3424_vm7, %v4349_v23, %v4351_v14  ;;  %v9713_v53 = vld [vmem:[%s17743_s14 + $0x28] sm:$0xff] }
 0xc2b   : > { %5131 = vmatpush1.msra.mxu1 %v4940_v40 }
 0xc2c   : > { %4633 = vrot.lane.b32.xlu1 %v12881_v37, %s17844_s25  ;;  %5132 = vmatprep.subr.mxu1 %v4933_v39  ;;  %v4916_v37 = vld [vmem:[%s17745_s16 + $0x1c0] sm:$0xff] }
 0xc2d   : > { %4826 = vperm.xlu0 %10243, %v4820_v26   ;;  %5133 = vmatpush1.msra.mxu1 %v4932_v63 }
 0xc2e   : > { %5134 = vmatprep.subr.mxu1 %v4925_v29  ;;  %v9714_v29 = vld [vmem:[%s17743_s14 + $0x30] sm:$0xff] }
 0xc2f   : > { %5135 = vmatpush1.msra.mxu1 %v4924_v24 }
 0xc30   : > { %4629 = vrot.lane.b32.xlu1 %v12875_v12, %s17844_s25  ;;  %v4917_v12 = vld [vmem:[%s17745_s16 + $0x1c8] sm:$0xff] }
 0xc31   : > { %4836 = vperm.xlu0 %10243, %v4822_v45   ;;  %5136 = vmatprep.subr.mxu1 %v4917_v12 }
 0xc32   : > { %5137 = vmatpush1.msra.mxu1 %v4916_v37  ;;  %v9715_v37 = vld [vmem:[%s17743_s14 + $0x38] sm:$0xff] }
 0xc33   : > { %5138 = vmatprep.subr.mxu1 %v4909_v3 }
 0xc34   : > { %4831 = vperm.xlu1 %10244, %v4821_v34   ;;  %5139 = vmatpush1.msra.mxu1 %v4908_v18 }
 0xc35   : > { %5140 = vmatprep.subr.mxu1 %v4901_v10 }
 0xc36   : > { %5141 = vmatpush1.msra.mxu1 %v4900_v9 }
 0xc37   : > { %v4369_v48 = vpop.permute.xlu0 %4368 }
 0xc38   : > { %4841 = vperm.xlu1 %10244, %v4823_v59   ;;  %v4386_v59 = vsel %vm3424_vm7, %v13096_v20, %v4347_v2 }
 0xc3e   : > { %v4371_v13 = vpop.permute.xlu1 %4370 }
 0xc3f   : > { %v4392_v22 = vsel %vm3424_vm7, %v4369_v48, %v4371_v13 }
 0xc53   : > { %v4353_v27 = vpop.permute.xlu0 %4352 }
 0xc57   : > { %v4373_v35 = vpop.permute.xlu0 %4372 }
 0xc5a   : > { %v4355_v28 = vpop.permute.xlu1 %4354 }
 0xc5b   : > { %v4357_v41 = vpop.permute.xlu0 %4356  ;;  %v4388_v34 = vsel %vm3424_vm7, %v4353_v27, %v4355_v28 }
 0xc5e   : > { %v4375_v43 = vpop.permute.xlu1 %4374 }
 0xc5f   : > { %v4377_v55 = vpop.permute.xlu0 %4376  ;;  %v4393_v15 = vsel %vm3424_vm7, %v4373_v35, %v4375_v43 }
 0xc62   : > { %v4359_v11 = vpop.permute.xlu1 %4358 }
 0xc63   : > { %v4361_v33 = vpop.permute.xlu0 %4360  ;;  %v4389_v26 = vsel %vm3424_vm7, %v4357_v41, %v4359_v11  ;;  %v4983_v41 = vld [vmem:[%s17745_s16 + $0x3d8] sm:$0xff] }
 0xc66   : > { %v4379_v21 = vpop.permute.xlu1 %4378 }
 0xc67   : > { %v13106_v17 = vpop.permute.xlu0 %4667  ;;  %v4394_v60 = vsel %vm3424_vm7, %v4377_v55, %v4379_v21  ;;  %v4982_v55 = vld [vmem:[%s17745_s16 + $0x3d0] sm:$0xff] }
 0xc6a   : > { %v4363_v19 = vpop.permute.xlu1 %4362 }
 0xc6b   : > { %v4381_v25 = vpop.permute.xlu0 %4380  ;;  %v4390_v57 = vsel %vm3424_vm7, %v4361_v33, %v4363_v19  ;;  %v4974_v33 = vld [vmem:[%s17745_s16 + $0x390] sm:$0xff] }
 0xc6e   : > { %v4670_v30 = vpop.permute.xlu1 %4669 }
 0xc6f   : > { %v13108_v38 = vpop.permute.xlu0 %4663  ;;  %v4685_v40 = vsel %vm3804_vm8, %v13106_v17, %v4670_v30  ;;  %v4967_v17 = vld [vmem:[%s17745_s16 + $0x358] sm:$0xff] }
 0xc72   : > { %v4383_v47 = vpop.permute.xlu1 %4382 }
 0xc73   : > { %v4395_v58 = vsel %vm3424_vm7, %v4381_v25, %v4383_v47  ;;  %4440 = vmatprep.subr.mxu0 %v4383_v47  ;;  %v4365_v4 = vpop.permute.xlu0 %4364  ;;  %v4959_v25 = vld [vmem:[%s17745_s16 + $0x318] sm:$0xff] }
 0xc74   : > { %4441 = vmatpush1.msra.mxu0 %v4395_v58  ;;  %v4951_v47 = vld [vmem:[%s17745_s16 + $0x2d8] sm:$0xff]  ;;  %v4950_v58 = vld [vmem:[%s17745_s16 + $0x2d0] sm:$0xff] }
 0xc75   : > { %4442 = vmatprep.subr.mxu0 %v4379_v21  ;;  %v9725_v21 = vld [vmem:[%s17743_s14 + $0x48] sm:$0xff] }
 0xc76   : > { %v4367_v1 = vpop.permute.xlu1 %4366  ;;  %4443 = vmatpush1.msra.mxu0 %v4394_v60  ;;  %v4942_v60 = vld [vmem:[%s17745_s16 + $0x290] sm:$0xff] }
 0xc77   : > { %4444 = vmatprep.subr.mxu0 %v4375_v43  ;;  %v4660_v6 = vpop.permute.xlu0 %4659  ;;  %v4391_v54 = vsel %vm3424_vm7, %v4365_v4, %v4367_v1  ;;  %v4943_v4 = vld [vmem:[%s17745_s16 + $0x298] sm:$0xff] }
 0xc78   : > { %4445 = vmatpush1.msra.mxu0 %v4393_v15  ;;  %v4935_v15 = vld [vmem:[%s17745_s16 + $0x258] sm:$0xff] }
 0xc79   : > { %4446 = vmatprep.subr.mxu0 %v4371_v13 }
 0xc7a   : > { %v4674_v31 = vpop.permute.xlu1 %4673  ;;  %4447 = vmatpush1.msra.mxu0 %v4392_v22  ;;  %v4927_v22 = vld [vmem:[%s17745_s16 + $0x218] sm:$0xff] }
 0xc7b   : > { %4448 = vmatprep.subr.mxu0 %v4367_v1  ;;  %v4652_v52 = vpop.permute.xlu0 %4651  ;;  %v9727_v1 = vld [vmem:[%s17743_s14 + $0x58] sm:$0xff] }
 0xc7c   : > { %4449 = vmatpush1.msra.mxu0 %v4391_v54  ;;  %v4919_v54 = vld [vmem:[%s17745_s16 + $0x1d8] sm:$0xff] }
 0xc7d   : > { %4450 = vmatprep.subr.mxu0 %v4363_v19  ;;  %v4966_v19 = vld [vmem:[%s17745_s16 + $0x350] sm:$0xff] }
 0xc7e   : > { %v4666_v49 = vpop.permute.xlu1 %4665  ;;  %4451 = vmatpush1.msra.mxu0 %v4390_v57  ;;  %v4911_v57 = vld [vmem:[%s17745_s16 + $0x198] sm:$0xff] }
 0xc7f   : > { %4452 = vmatprep.subr.mxu0 %v4359_v11  ;;  %v4648_v45 = vpop.permute.xlu0 %4647  ;;  %v4684_v63 = vsel %vm3804_vm8, %v13108_v38, %v4666_v49  ;;  %v4975_v11 = vld [vmem:[%s17745_s16 + $0x398] sm:$0xff]  ;;  %v9726_v38 = vld [vmem:[%s17743_s14 + $0x50] sm:$0xff] }
 0xc80   : > { %4453 = vmatpush1.msra.mxu0 %v4389_v26  ;;  %v4903_v26 = vld [vmem:[%s17745_s16 + $0x158] sm:$0xff] }
 0xc81   : > { %4454 = vmatprep.subr.mxu0 %v4355_v28  ;;  %v9724_v28 = vld [vmem:[%s17743_s14 + $0x40] sm:$0xff] }
 0xc82   : > { %v4662_v16 = vpop.permute.xlu1 %4661  ;;  %4455 = vmatpush1.msra.mxu0 %v4388_v34  ;;  %v4893_v34 = vld [vmem:[%s17745_s16 + $0x108] sm:$0xff] }
 0xc83   : > { %4456 = vmatprep.subr.mxu0 %v4351_v14  ;;  %v4672_v46 = vpop.permute.xlu0 %4671  ;;  %5142 = vmatprep.subr.mxu1 %v4893_v34  ;;  %v4998_v34 = vld [vmem:[%s17745_s16 + $0x450] sm:$0xff] }
 0xc84   : > { %4457 = vmatpush1.msra.mxu0 %v4387_v0  ;;  %v4686_v51 = vsel %vm3804_vm8, %v4672_v46, %v4674_v31  ;;  %v4892_v0 = vld [vmem:[%s17745_s16 + $0x100] sm:$0xff]  ;;  %v4894_v46 = vld [vmem:[%s17745_s16 + $0x110] sm:$0xff] }
 0xc85   : > { %4458 = vmatprep.subr.mxu0 %v4347_v2  ;;  %5143 = vmatpush1.msra.mxu1 %v4892_v0  ;;  %v4991_v0 = vld [vmem:[%s17745_s16 + $0x418] sm:$0xff] }
 0xc86   : > { %v4658_v62 = vpop.permute.xlu1 %4657  ;;  %4459 = vmatpush1.msra.mxu0 %v4386_v59  ;;  %v4885_v59 = vld [vmem:[%s17745_s16 + $0xc8] sm:$0xff] }
 0xc87   : > { %4460 = vmatprep.subr.mxu0 %v13101_v50  ;;  %v4644_v36 = vpop.permute.xlu0 %4643  ;;  %5144 = vmatprep.subr.mxu1 %v4885_v59  ;;  %v4990_v59 = vld [vmem:[%s17745_s16 + $0x410] sm:$0xff] }
 0xc88   : > { %4461 = vmatpush1.msra.mxu0 %v4385_v32  ;;  %v4884_v32 = vld [vmem:[%s17745_s16 + $0xc0] sm:$0xff] }
 0xc89   : > { %4462 = vmatprep.subr.mxu0 %v13079_v56  ;;  %v4683_v56 = vsel %vm3804_vm8, %v4660_v6, %v4662_v16  ;;  %v4934_v6 = vld [vmem:[%s17745_s16 + $0x250] sm:$0xff]  ;;  %5145 = vmatpush1.msra.mxu1 %v4884_v32  ;;  %v4987_v32 = vld [vmem:[%s17745_s16 + $0x3f8] sm:$0xff] }
 0xc8a   : > { %v4654_v61 = vpop.permute.xlu1 %4653  ;;  %4463 = vmatpush1.msra.mxu0 %v4384_v8  ;;  %v4879_v8 = vld [vmem:[%s17745_s16 + $0x98] sm:$0xff] }
 0xc8b   : > { %4731 = vmatprep.subr.mxu0 %v4674_v31  ;;  %9716 = vmatmul.mubr.msk.f32.vlgmr.msra.gmra.mxu0 %vm3038_vm5, %v9712_v7  ;;  %v4656_v42 = vpop.permute.xlu0 %4655  ;;  %v4681_v3 = vsel %vm3804_vm8, %v4652_v52, %v4654_v61  ;;  %v4926_v31 = vld [vmem:[%s17745_s16 + $0x210] sm:$0xff]  ;;  %v4877_v7 = vld [vmem:[%s17745_s16 + $0x88] sm:$0xff] }
 0xc8c   : > { %4732 = vmatpush1.msra.mxu0 %v4686_v51  ;;  %4502 = vmatprep.mubr.f32.mxu0 %v17768_v5  ;;  %v4682_v12 = vsel %vm3804_vm8, %v4656_v42, %v4658_v62  ;;  %v4918_v52 = vld [vmem:[%s17745_s16 + $0x1d0] sm:$0xff]  ;;  %v4869_v42 = vld [vmem:[%s17745_s16 + $0x48] sm:$0xff] }
 0xc8d   : > { %4733 = vmatprep.subr.mxu0 %v4670_v30  ;;  %v4958_v30 = vld [vmem:[%s17745_s16 + $0x310] sm:$0xff]  ;;  %5146 = vmatprep.subr.mxu1 %v4877_v7 }
 0xc8e   : > { %v4650_v39 = vpop.permute.xlu1 %4649  ;;  %4734 = vmatpush1.msra.mxu0 %v4685_v40  ;;  %v4878_v51 = vld [vmem:[%s17745_s16 + $0x90] sm:$0xff]  ;;  %v4868_v40 = vld [vmem:[%s17745_s16 + $0x40] sm:$0xff] }
 0xc8f   : > { %4735 = vmatprep.subr.mxu0 %v4666_v49  ;;  %9717 = vmatmul.mubr.msk.f32.gmra.mxu0 %vm3038_vm5, %v9713_v53  ;;  %v4640_v44 = vpop.permute.xlu0 %4639  ;;  %v4680_v10 = vsel %vm3804_vm8, %v4648_v45, %v4650_v39  ;;  %v4910_v49 = vld [vmem:[%s17745_s16 + $0x190] sm:$0xff]  ;;  %v4871_v53 = vld [vmem:[%s17745_s16 + $0x58] sm:$0xff] }
 0xc90   : > { %4736 = vmatpush1.msra.mxu0 %v4684_v63  ;;  %4508 = vmatprep.mubr.f32.mxu0 %v17768_v5  ;;  %v4902_v45 = vld [vmem:[%s17745_s16 + $0x150] sm:$0xff]  ;;  %v4861_v63 = vld [vmem:[%s17745_s16 + $0x8] sm:$0xff] }
 0xc91   : > { %4737 = vmatprep.subr.mxu0 %v4662_v16  ;;  %v4895_v16 = vld [vmem:[%s17745_s16 + $0x118] sm:$0xff] }
 0xc92   : > { %v4646_v24 = vpop.permute.xlu1 %4645  ;;  %4738 = vmatpush1.msra.mxu0 %v4683_v56  ;;  %v4862_v56 = vld [vmem:[%s17745_s16 + $0x10] sm:$0xff] }
 0xc93   : > { %4739 = vmatprep.subr.mxu0 %v4658_v62  ;;  %9718 = vmatmul.mubr.msk.f32.gmra.mxu0 %vm3038_vm5, %v9714_v29  ;;  %v4636_v20 = vpop.permute.xlu0 %4635  ;;  %v4679_v50 = vsel %vm3804_vm8, %v4644_v36, %v4646_v24  ;;  %v4887_v62 = vld [vmem:[%s17745_s16 + $0xd8] sm:$0xff]  ;;  %v4886_v36 = vld [vmem:[%s17745_s16 + $0xd0] sm:$0xff]  ;;  %v4860_v29 = vld [vmem:[%s17745_s16] sm:$0xff] }
 0xc94   : > { %4740 = vmatpush1.msra.mxu0 %v4682_v12  ;;  %4514 = vmatprep.mubr.f32.mxu0 %v17768_v5  ;;  %v5079_v12 = vld [vmem:[%s17745_s16 + $0x6d8] sm:$0x3f] }
 0xc95   : > { %4741 = vmatprep.subr.mxu0 %v4654_v61  ;;  %v4876_v61 = vld [vmem:[%s17745_s16 + $0x80] sm:$0xff] }
 0xc96   : > { %v4642_v18 = vpop.permute.xlu1 %4641  ;;  %4742 = vmatpush1.msra.mxu0 %v4681_v3  ;;  %5147 = vmatpush1.msra.mxu1 %v4876_v61  ;;  %v5078_v3 = vld [vmem:[%s17745_s16 + $0x6d0] sm:$0x3f] }
 0xc97   : > { %4743 = vmatprep.subr.mxu0 %v4650_v39  ;;  %9719 = vmatmul.mubr.msk.f32.gmra.mxu0 %vm3038_vm5, %v9715_v37  ;;  %v4678_v23 = vsel %vm3804_vm8, %v4640_v44, %v4642_v18  ;;  %v4632_v2 = vpop.permute.xlu0 %4631  ;;  %v4870_v39 = vld [vmem:[%s17745_s16 + $0x50] sm:$0xff]  ;;  %v4863_v44 = vld [vmem:[%s17745_s16 + $0x18] sm:$0xff]  ;;  %v5076_v37 = vld [vmem:[%s17745_s16 + $0x6c0] sm:$0x3f] }
 0xc98   : > { %4744 = vmatpush1.msra.mxu0 %v4680_v10  ;;  %4787 = vmatprep.mubr.f32.mxu0 %v17768_v5  ;;  %v5068_v10 = vld [vmem:[%s17745_s16 + $0x680] sm:$0xff] }
 0xc99   : > { %4745 = vmatprep.subr.mxu0 %v4646_v24  ;;  %5148 = vmatprep.subr.mxu1 %v4869_v42  ;;  %v5077_v24 = vld [vmem:[%s17745_s16 + $0x6c8] sm:$0x3f] }
 0xc9a   : > { %v4638_v9 = vpop.permute.xlu1 %4637  ;;  %4746 = vmatpush1.msra.mxu0 %v4679_v50  ;;  %5149 = vmatpush1.msra.mxu1 %v4868_v40  ;;  %v5070_v50 = vld [vmem:[%s17745_s16 + $0x690] sm:$0xff] }
 0xc9b   : > { %4747 = vmatprep.subr.mxu0 %v4642_v18  ;;  %v4677_v48 = vsel %vm3804_vm8, %v4636_v20, %v4638_v9  ;;  %v4628_v35 = vpop.permute.xlu0 %4627  ;;  %5150 = vmatprep.subr.mxu1 %v4861_v63  ;;  %v5069_v18 = vld [vmem:[%s17745_s16 + $0x688] sm:$0xff]  ;;  %v5071_v20 = vld [vmem:[%s17745_s16 + $0x698] sm:$0xff] }
 0xc9c   : > { %4748 = vmatpush1.msra.mxu0 %v4678_v23  ;;  %5151 = vmatpush1.msra.mxu1 %v4860_v29  ;;  %v5063_v23 = vld [vmem:[%s17745_s16 + $0x658] sm:$0xff] }
 0xc9d   : > { %4749 = vmatprep.subr.mxu0 %v4638_v9  ;;  %9732 = vmatprep.subr.msk.mxu1 %vm4095_vm9, %v5077_v24  ;;  %v5061_v9 = vld [vmem:[%s17745_s16 + $0x648] sm:$0xff] }
 0xc9e   : > { %v4634_v14 = vpop.permute.xlu1 %4633  ;;  %4750 = vmatpush1.msra.mxu0 %v4677_v48  ;;  %9733 = vmatpush2.msk.msra.mxu1 %vm4095_vm9, %v5076_v37  ;;  %v5062_v48 = vld [vmem:[%s17745_s16 + $0x650] sm:$0xff] }
 0xc9f   : > { %v4676_v27 = vsel %vm3804_vm8, %v4632_v2, %v4634_v14  ;;  %4751 = vmatprep.subr.mxu0 %v4634_v14  ;;  %5162 = vmatprep.subr.mxu1 %v5069_v18  ;;  %v5060_v2 = vld [vmem:[%s17745_s16 + $0x640] sm:$0xff]  ;;  %v5053_v14 = vld [vmem:[%s17745_s16 + $0x608] sm:$0xff] }
 0xca0   : > { %4752 = vmatpush1.msra.mxu0 %v4676_v27  ;;  %5163 = vmatpush2.msra.mxu1 %v5068_v10  ;;  %v5055_v27 = vld [vmem:[%s17745_s16 + $0x618] sm:$0xff] }
 0xca1   : > { %5164 = vmatprep.subr.mxu1 %v5061_v9 }
 0xca2   : > { %v4630_v13 = vpop.permute.xlu1 %4629  ;;  %5165 = vmatpush2.msra.mxu1 %v5060_v2 }
 0xca3   : > { %v4675_v43 = vsel %vm3804_vm8, %v4628_v35, %v4630_v13  ;;  %4753 = vmatprep.subr.mxu0 %v4630_v13  ;;  %v5052_v13 = vld [vmem:[%s17745_s16 + $0x600] sm:$0xff]  ;;  %v5054_v35 = vld [vmem:[%s17745_s16 + $0x610] sm:$0xff]  ;;  %5166 = vmatprep.subr.mxu1 %v5053_v14 }
 0xca4   : > { %4754 = vmatpush1.msra.mxu0 %v4675_v43  ;;  %v5044_v43 = vld [vmem:[%s17745_s16 + $0x5c0] sm:$0xff]  ;;  %5167 = vmatpush2.msra.mxu1 %v5052_v13 }
 0xca5   : > { %9728 = vmatmul.mubr.msk.f32.vlgmr.msra.gmra.mxu0 %vm3038_vm5, %v9724_v28  ;;  %5209 = vmatprep.subr.mxu0 %v4983_v41  ;;  %v5045_v28 = vld [vmem:[%s17745_s16 + $0x5c8] sm:$0xff]  ;;  %v5047_v41 = vld [vmem:[%s17745_s16 + $0x5d8] sm:$0xff] }
 0xca6   : > { %4793 = vmatprep.mubr.f32.mxu0 %v17768_v5  ;;  %5210 = vmatpush1.msra.mxu0 %v4982_v55  ;;  %v5046_v55 = vld [vmem:[%s17745_s16 + $0x5d0] sm:$0xff] }
 0xca7   : > { %5211 = vmatprep.subr.mxu0 %v4975_v11  ;;  %v5037_v11 = vld [vmem:[%s17745_s16 + $0x588] sm:$0xff]  ;;  %5168 = vmatprep.subr.mxu1 %v5045_v28 }
 0xca8   : > { %5212 = vmatpush1.msra.mxu0 %v4974_v33  ;;  %v5039_v33 = vld [vmem:[%s17745_s16 + $0x598] sm:$0xff]  ;;  %5169 = vmatpush2.msra.mxu1 %v5044_v43  ;;  %v4827_v10 = vpop.permute.xlu0 %4826 }
 0xca9   : > { %9729 = vmatmul.mubr.msk.f32.gmra.mxu0 %vm3038_vm5, %v9725_v21  ;;  %5213 = vmatprep.subr.mxu0 %v4967_v17  ;;  %v5036_v21 = vld [vmem:[%s17745_s16 + $0x580] sm:$0xff]  ;;  %v5038_v17 = vld [vmem:[%s17745_s16 + $0x590] sm:$0xff] }
 0xcaa   : > { %4799 = vmatprep.mubr.f32.mxu0 %v17768_v5  ;;  %5214 = vmatpush1.msra.mxu0 %v4966_v19  ;;  %v5029_v19 = vld [vmem:[%s17745_s16 + $0x548] sm:$0xff] }
 0xcab   : > { %5215 = vmatprep.subr.mxu0 %v4959_v25  ;;  %v5031_v25 = vld [vmem:[%s17745_s16 + $0x558] sm:$0xff]  ;;  %5170 = vmatprep.subr.mxu1 %v5037_v11 }
 0xcac   : > { %5216 = vmatpush1.msra.mxu0 %v4958_v30  ;;  %v5028_v30 = vld [vmem:[%s17745_s16 + $0x540] sm:$0xff]  ;;  %5171 = vmatpush2.msra.mxu1 %v5036_v21  ;;  %v4986_v21 = vld [vmem:[%s17745_s16 + $0x3f0] sm:$0xff] }
 0xcad   : > { %9730 = vmatmul.mubr.msk.f32.gmra.mxu0 %vm3038_vm5, %v9726_v38  ;;  %5217 = vmatprep.subr.mxu0 %v4951_v47  ;;  %v5030_v38 = vld [vmem:[%s17745_s16 + $0x550] sm:$0xff]  ;;  %v5021_v47 = vld [vmem:[%s17745_s16 + $0x508] sm:$0xff] }
 0xcae   : > { %4805 = vmatprep.mubr.f32.mxu0 %v17768_v5  ;;  %5218 = vmatpush1.msra.mxu0 %v4950_v58  ;;  %v5023_v58 = vld [vmem:[%s17745_s16 + $0x518] sm:$0xff] }
 0xcaf   : > { %5219 = vmatprep.subr.mxu0 %v4943_v4  ;;  %5172 = vmatprep.subr.mxu1 %v5029_v19  ;;  %v5020_v4 = vld [vmem:[%s17745_s16 + $0x500] sm:$0xff]  ;;  %v4832_v43 = vpop.permute.xlu1 %4831 }
 0xcb0   : > { %5220 = vmatpush1.msra.mxu0 %v4942_v60  ;;  %5173 = vmatpush2.msra.mxu1 %v5028_v30  ;;  %v5022_v60 = vld [vmem:[%s17745_s16 + $0x510] sm:$0xff]  ;;  %v4979_v30 = vld [vmem:[%s17745_s16 + $0x3b8] sm:$0xff] }
 0xcb1   : > { %9731 = vmatmul.mubr.msk.f32.gmra.mxu0 %vm3038_vm5, %v9727_v1  ;;  %5221 = vmatprep.subr.mxu0 %v4935_v15  ;;  %v5013_v1 = vld [vmem:[%s17745_s16 + $0x4c8] sm:$0xff]  ;;  %v5015_v15 = vld [vmem:[%s17745_s16 + $0x4d8] sm:$0xff] }
 0xcb2   : > { %5222 = vmatpush1.msra.mxu0 %v4934_v6  ;;  %5174 = vmatprep.subr.mxu1 %v5021_v47  ;;  %v5012_v6 = vld [vmem:[%s17745_s16 + $0x4c0] sm:$0xff] }
 0xcb3   : > { %5223 = vmatprep.subr.mxu0 %v4927_v22  ;;  %5175 = vmatpush2.msra.mxu1 %v5020_v4  ;;  %v5014_v22 = vld [vmem:[%s17745_s16 + $0x4d0] sm:$0xff] }
 0xcb4   : > { %5224 = vmatpush1.msra.mxu0 %v4926_v31  ;;  %5176 = vmatprep.subr.mxu1 %v5013_v1  ;;  %v5005_v31 = vld [vmem:[%s17745_s16 + $0x488] sm:$0xff]  ;;  %v4978_v1 = vld [vmem:[%s17745_s16 + $0x3b0] sm:$0xff] }
 0xcb5   : > { %5225 = vmatprep.subr.mxu0 %v4919_v54  ;;  %5177 = vmatpush2.msra.mxu1 %v5012_v6  ;;  %v5007_v54 = vld [vmem:[%s17745_s16 + $0x498] sm:$0xff] }
 0xcb6   : > { %5226 = vmatpush1.msra.mxu0 %v4918_v52  ;;  %5178 = vmatprep.subr.mxu1 %v5005_v31  ;;  %v5004_v52 = vld [vmem:[%s17745_s16 + $0x480] sm:$0xff] }
 0xcb7   : > { %5227 = vmatprep.subr.mxu0 %v4911_v57  ;;  %v5006_v57 = vld [vmem:[%s17745_s16 + $0x490] sm:$0xff]  ;;  %5179 = vmatpush2.msra.mxu1 %v5004_v52  ;;  %v4969_v52 = vld [vmem:[%s17745_s16 + $0x368] sm:$0xff] }
 0xcb8   : > { %5228 = vmatpush1.msra.mxu0 %v4910_v49  ;;  %v4997_v49 = vld [vmem:[%s17745_s16 + $0x448] sm:$0xff] }
 0xcb9   : > { %5229 = vmatprep.subr.mxu0 %v4903_v26  ;;  %v4999_v26 = vld [vmem:[%s17745_s16 + $0x458] sm:$0xff]  ;;  %5180 = vmatprep.subr.mxu1 %v4997_v49 }
 0xcba   : > { %5230 = vmatpush1.msra.mxu0 %v4902_v45  ;;  %v4996_v45 = vld [vmem:[%s17745_s16 + $0x440] sm:$0xff] }
 0xcbb   : > { %5231 = vmatprep.subr.mxu0 %v4895_v16  ;;  %v4989_v16 = vld [vmem:[%s17745_s16 + $0x408] sm:$0xff]  ;;  %5181 = vmatpush2.msra.mxu1 %v4996_v45 }
 0xcbc   : > { %5232 = vmatpush1.msra.mxu0 %v4894_v46  ;;  %5182 = vmatprep.subr.mxu1 %v4989_v16  ;;  %v4988_v46 = vld [vmem:[%s17745_s16 + $0x400] sm:$0xff] }
 0xcbd   : > { %5233 = vmatprep.subr.mxu0 %v4887_v62  ;;  %v4985_v62 = vld [vmem:[%s17745_s16 + $0x3e8] sm:$0xff]  ;;  %5183 = vmatpush2.msra.mxu1 %v4988_v46  ;;  %v4968_v16 = vld [vmem:[%s17745_s16 + $0x360] sm:$0xff] }
 0xcbe   : > { %5234 = vmatpush1.msra.mxu0 %v4886_v36  ;;  %5298 = vmatprep.subr.mxu1 %v4985_v62  ;;  %v4963_v62 = vld [vmem:[%s17745_s16 + $0x338] sm:$0xff] }
 0xcbf   : > { %5235 = vmatprep.subr.mxu0 %v4879_v8 }
 0xcc0   : > { %5236 = vmatpush1.msra.mxu0 %v4878_v51  ;;  %v4599_v51 = vpop.f32.mrf.mxu1 }
 0xcc1   : > { %5237 = vmatprep.subr.mxu0 %v4871_v53 }
 0xcc2   : > { %5238 = vmatpush1.msra.mxu0 %v4870_v39  ;;  %v4601_v53 = vpop.f32.mrf.mxu1 }
 0xcc3   : > { %5239 = vmatprep.subr.mxu0 %v4863_v44 }
 0xcc4   : > { %5240 = vmatpush1.msra.mxu0 %v4862_v56  ;;  %v4605_v40 = vpop.f32.mrf.mxu1 }
 0xcc5   : > { %9738 = vmatprep.subr.msk.mxu0 %vm4095_vm9, %v5079_v12 }
 0xcc6   : > { %9739 = vmatpush2.msk.msra.mxu0 %vm4095_vm9, %v5078_v3  ;;  %v4607_v63 = vpop.f32.mrf.mxu1 }
 0xcc7   : > { %5251 = vmatprep.subr.mxu0 %v5071_v20 }
 0xcc8   : > { %5252 = vmatpush2.msra.mxu0 %v5070_v50  ;;  %v4611_v29 = vpop.f32.mrf.mxu1 }
 0xcc9   : > { %5253 = vmatprep.subr.mxu0 %v5063_v23 }
 0xcca   : > { %5254 = vmatpush2.msra.mxu0 %v5062_v48  ;;  %v4613_v18 = vpop.f32.mrf.mxu1 }
 0xccb   : > { %5255 = vmatprep.subr.mxu0 %v5055_v27 }
 0xccc   : > { %5256 = vmatpush2.msra.mxu0 %v5054_v35  ;;  %v4617_v27 = vpop.f32.mrf.mxu1 }
 0xccd   : > { %5257 = vmatprep.subr.mxu0 %v5047_v41 }
 0xcce   : > { %5258 = vmatpush2.msra.mxu0 %v5046_v55  ;;  %v4619_v47 = vpop.f32.mrf.mxu1 }
 0xccf   : > { %5259 = vmatprep.subr.mxu0 %v5039_v33  ;;  %v4984_v33 = vld [vmem:[%s17745_s16 + $0x3e0] sm:$0xff] }
 0xcd0   : > { %5260 = vmatpush2.msra.mxu0 %v5038_v17 }
 0xcd1   : > { %5261 = vmatprep.subr.mxu0 %v5031_v25  ;;  %v4977_v25 = vld [vmem:[%s17745_s16 + $0x3a8] sm:$0xff] }
 0xcd2   : > { %5262 = vmatpush2.msra.mxu0 %v5030_v38 }
 0xcd3   : > { %5263 = vmatprep.subr.mxu0 %v5023_v58 }
 0xcd4   : > { %5264 = vmatpush2.msra.mxu0 %v5022_v60  ;;  %v4976_v60 = vld [vmem:[%s17745_s16 + $0x3a0] sm:$0xff] }
 0xcd5   : > { %5265 = vmatprep.subr.mxu0 %v5015_v15 }
 0xcd6   : > { %5266 = vmatpush2.msra.mxu0 %v5014_v22  ;;  %v4837_v22 = vpop.permute.xlu0 %4836 }
 0xcd7   : > { %5267 = vmatprep.subr.mxu0 %v5007_v54 }
 0xcd8   : > { %5268 = vmatpush2.msra.mxu0 %v5006_v57  ;;  %v4971_v57 = vld [vmem:[%s17745_s16 + $0x378] sm:$0xff] }
 0xcd9   : > { %5269 = vmatprep.subr.mxu0 %v4999_v26 }
 0xcda   : > { %5270 = vmatpush2.msra.mxu0 %v4998_v34 }
 0xcdb   : > { %5271 = vmatprep.subr.mxu0 %v4991_v0  ;;  %v4970_v0 = vld [vmem:[%s17745_s16 + $0x370] sm:$0xff] }
 0xcdc   : > { %5272 = vmatpush2.msra.mxu0 %v4990_v59  ;;  %v4961_v59 = vld [vmem:[%s17745_s16 + $0x328] sm:$0xff] }
 0xcdd   : > { %5387 = vmatprep.subr.mxu0 %v4987_v32 }
 0xd4b   : > { %v4498_v36 = vpop.f32.mrf.mxu0 }
 0xd4c   : > { %v4600_v24 = vadd.f32 %v4599_v51, %v4498_v36  ;;  %v4842_v51 = vpop.permute.xlu1 %4841 }
 0xd4d   : > { %v4500_v7 = vpop.f32.mrf.mxu0 }
 0xd4e   : > { %v4602_v37 = vadd.f32 %v4601_v53, %v4500_v7 }
 0xd4f   : > { %v4504_v8 = vpop.f32.mrf.mxu0 }
 0xd50   : > { %v4606_v9 = vadd.f32 %v4605_v40, %v4504_v8  ;;  %v4960_v8 = vld [vmem:[%s17745_s16 + $0x320] sm:$0xff]  ;;  %v4953_v40 = vld [vmem:[%s17745_s16 + $0x2e8] sm:$0xff] }
 0xd51   : > { %v4506_v61 = vpop.f32.mrf.mxu0 }
 0xd52   : > { %v4608_v48 = vadd.f32 %v4607_v63, %v4506_v61  ;;  %v4962_v61 = vld [vmem:[%s17745_s16 + $0x330] sm:$0xff] }
 0xd53   : > { %v4510_v42 = vpop.f32.mrf.mxu0 }
 0xd54   : > { %v4612_v38 = vadd.f32 %v4611_v29, %v4510_v42  ;;  %v4954_v29 = vld [vmem:[%s17745_s16 + $0x2f0] sm:$0xff] }
 0xd55   : > { %v4512_v39 = vpop.f32.mrf.mxu0 }
 0xd56   : > { %v4614_v17 = vadd.f32 %v4613_v18, %v4512_v39  ;;  %v4955_v39 = vld [vmem:[%s17745_s16 + $0x2f8] sm:$0xff]  ;;  %v4946_v18 = vld [vmem:[%s17745_s16 + $0x2b0] sm:$0xff] }
 0xd57   : > { %v13462_v44 = vpop.f32.mrf.mxu0 }
 0xd58   : > { %v4618_v32 = vadd.f32 %v4617_v27, %v13462_v44  ;;  %v4952_v44 = vld [vmem:[%s17745_s16 + $0x2e0] sm:$0xff]  ;;  %v4930_v27 = vld [vmem:[%s17745_s16 + $0x230] sm:$0xff] }
 0xd59   : > { %v4518_v56 = vpop.f32.mrf.mxu0 }
 0xd5a   : > { %v4620_v49 = vadd.f32 %v4619_v47, %v4518_v56  ;;  %v4945_v56 = vld [vmem:[%s17745_s16 + $0x2a8] sm:$0xff]  ;;  %v4899_v47 = vld [vmem:[%s17745_s16 + $0x138] sm:$0xff] }
 0xd65   : > { %v4789_v12 = vpop.f32.mrf.mxu0 }
 0xd66   : > { %v4812_v3 = vadd.f32 %v4789_v12, %v4600_v24  ;;  %v4947_v24 = vld [vmem:[%s17745_s16 + $0x2b8] sm:$0xff] }
 0xd67   : > { %v4791_v20 = vpop.f32.mrf.mxu0 }
 0xd68   : > { %v4813_v50 = vadd.f32 %v4791_v20, %v4602_v37  ;;  %v4844_v23 = vadd.f32 %v4827_v10, %v4812_v3  ;;  %v4944_v3 = vld [vmem:[%s17745_s16 + $0x2a0] sm:$0xff]  ;;  %v4937_v20 = vld [vmem:[%s17745_s16 + $0x268] sm:$0xff] }
 0xd69   : > { %v4795_v2 = vpop.f32.mrf.mxu0 }
 0xd6a   : > { %v4845_v14 = vadd.f32 %v4827_v10, %v4813_v50  ;;  %v4814_v13 = vadd.f32 %v4795_v2, %v4606_v9  ;;  %v13466_v55 = vmax.f32 %v4844_v23, 0.0  ;;  %v4939_v10 = vld [vmem:[%s17745_s16 + $0x278] sm:$0xff]  ;;  %v4936_v9 = vld [vmem:[%s17745_s16 + $0x260] sm:$0xff]  ;;  %v4938_v23 = vld [vmem:[%s17745_s16 + $0x270] sm:$0xff] }
 0xd6b   : > { %v4797_v35 = vpop.f32.mrf.mxu0  ;;  %v4929_v2 = vld [vmem:[%s17745_s16 + $0x228] sm:$0xff] }
 0xd6c   : > { %v13464_v28 = vmax.f32 %v4845_v14, 0.0  ;;  %v4815_v41 = vadd.f32 %v4797_v35, %v4608_v48  ;;  %v4846_v58 = vadd.f32 %v4832_v43, %v4814_v13  ;;  %v4931_v48 = vld [vmem:[%s17745_s16 + $0x238] sm:$0xff]  ;;  %v4928_v14 = vld [vmem:[%s17745_s16 + $0x220] sm:$0xff]  ;;  %v4921_v13 = vld [vmem:[%s17745_s16 + $0x1e8] sm:$0xff] }
 0xd6d   : > { %v4801_v11 = vpop.f32.mrf.mxu0  ;;  %v4923_v35 = vld [vmem:[%s17745_s16 + $0x1f8] sm:$0xff] }
 0xd6e   : > { %v4847_v19 = vadd.f32 %v4832_v43, %v4815_v41  ;;  %9734 = vmatprep.mubr.msk.f32.mxu1 %vm4082_vm10, %v13464_v28  ;;  %9740 = vmatprep.mubr.msk.f32.mxu0 %vm4082_vm10, %v13464_v28  ;;  %v4816_v31 = vadd.f32 %v4801_v11, %v4612_v38  ;;  %v13500_v45 = vmax.f32 %v4846_v58, 0.0  ;;  %v4920_v41 = vld [vmem:[%s17745_s16 + $0x1e0] sm:$0xff]  ;;  %v4922_v43 = vld [vmem:[%s17745_s16 + $0x1f0] sm:$0xff]  ;;  %v4913_v11 = vld [vmem:[%s17745_s16 + $0x1a8] sm:$0xff] }
 0xd6f   : > { %v4803_v4 = vpop.f32.mrf.mxu0  ;;  %5185 = vmatmul.mubr.f32.vlgmr.msra.gmra.mxu1 %v13466_v55  ;;  %5274 = vmatmul.mubr.f32.vlgmr.msra.gmra.mxu0 %v13466_v55  ;;  %v4897_v38 = vld [vmem:[%s17745_s16 + $0x128] sm:$0xff]  ;;  %v4896_v58 = vld [vmem:[%s17745_s16 + $0x120] sm:$0xff] }
 0xd70   : > { %v13492_v15 = vmax.f32 %v4847_v19, 0.0  ;;  %v4817_v6 = vadd.f32 %v4803_v4, %v4614_v17  ;;  %5299 = vmatpush1.msra.mxu1 %v4984_v33  ;;  %5388 = vmatpush1.msra.mxu0 %v4986_v21  ;;  %v4848_v36 = vadd.f32 %v4837_v22, %v4816_v31  ;;  %v4915_v33 = vld [vmem:[%s17745_s16 + $0x1b8] sm:$0xff]  ;;  %v4914_v21 = vld [vmem:[%s17745_s16 + $0x1b0] sm:$0xff]  ;;  %v4905_v17 = vld [vmem:[%s17745_s16 + $0x168] sm:$0xff] }
 0xd71   : > { %5300 = vmatprep.subr.mxu1 %v4977_v25  ;;  %5389 = vmatprep.subr.mxu0 %v4979_v30  ;;  %v4807_v54 = vpop.f32.mrf.mxu0  ;;  %v4907_v19 = vld [vmem:[%s17745_s16 + $0x178] sm:$0xff]  ;;  %v4904_v25 = vld [vmem:[%s17745_s16 + $0x160] sm:$0xff]  ;;  %v4906_v30 = vld [vmem:[%s17745_s16 + $0x170] sm:$0xff] }
 0xd72   : > { %v4849_v26 = vadd.f32 %v4837_v22, %v4817_v6  ;;  %5301 = vmatpush1.msra.mxu1 %v4976_v60  ;;  %5390 = vmatpush1.msra.mxu0 %v4978_v1  ;;  %v4818_v42 = vadd.f32 %v4807_v54, %v4618_v32  ;;  %v13535_v63 = vmax.f32 %v4848_v36, 0.0  ;;  %v4898_v4 = vld [vmem:[%s17745_s16 + $0x130] sm:$0xff]  ;;  %v4889_v60 = vld [vmem:[%s17745_s16 + $0xe8] sm:$0xff]  ;;  %v4891_v1 = vld [vmem:[%s17745_s16 + $0xf8] sm:$0xff] }
 0xd73   : > { %9735 = vmatprep.mubr.msk.f32.mxu1 %vm4082_vm10, %v13492_v15  ;;  %9741 = vmatprep.mubr.msk.f32.mxu0 %vm4082_vm10, %v13492_v15  ;;  %v4809_v34 = vpop.f32.mrf.mxu0  ;;  %v4888_v6 = vld [vmem:[%s17745_s16 + $0xe0] sm:$0xff]  ;;  %v4890_v22 = vld [vmem:[%s17745_s16 + $0xf0] sm:$0xff]  ;;  %v4881_v31 = vld [vmem:[%s17745_s16 + $0xa8] sm:$0xff] }
 0xd74   : > { %5302 = vmatprep.subr.mxu1 %v4969_v52  ;;  %5391 = vmatprep.subr.mxu0 %v4971_v57  ;;  %v4819_v46 = vadd.f32 %v4809_v34, %v4620_v49  ;;  %v13519_v7 = vmax.f32 %v4849_v26, 0.0  ;;  %v4850_v12 = vadd.f32 %v4842_v51, %v4818_v42  ;;  %v4883_v54 = vld [vmem:[%s17745_s16 + $0xb8] sm:$0xff]  ;;  %v4880_v52 = vld [vmem:[%s17745_s16 + $0xa0] sm:$0xff]  ;;  %v4882_v57 = vld [vmem:[%s17745_s16 + $0xb0] sm:$0xff] }
 0xd75   : > { %5191 = vmatmul.mubr.f32.gmra.mxu1 %v13500_v45  ;;  %5280 = vmatmul.mubr.f32.gmra.mxu0 %v13500_v45  ;;  %v4873_v49 = vld [vmem:[%s17745_s16 + $0x68] sm:$0xff]  ;;  %v4875_v26 = vld [vmem:[%s17745_s16 + $0x78] sm:$0xff]  ;;  %v4872_v34 = vld [vmem:[%s17745_s16 + $0x60] sm:$0xff] }
 0xd76   : > { %5303 = vmatpush1.msra.mxu1 %v4968_v16  ;;  %5392 = vmatpush1.msra.mxu0 %v4970_v0  ;;  %v4851_v53 = vadd.f32 %v4842_v51, %v4819_v46  ;;  %v13569_v50 = vmax.f32 %v4850_v12, 0.0  ;;  %v4874_v16 = vld [vmem:[%s17745_s16 + $0x70] sm:$0xff]  ;;  %v4865_v0 = vld [vmem:[%s17745_s16 + $0x28] sm:$0xff]  ;;  %v4867_v46 = vld [vmem:[%s17745_s16 + $0x38] sm:$0xff] }
 0xd77   : > { %5304 = vmatprep.subr.mxu1 %v4961_v59  ;;  %5393 = vmatprep.subr.mxu0 %v4963_v62  ;;  %v4864_v59 = vld [vmem:[%s17745_s16 + $0x20] sm:$0xff]  ;;  %v4866_v62 = vld [vmem:[%s17745_s16 + $0x30] sm:$0xff]  ;;  %v5081_v32 = vld [vmem:[%s17745_s16 + $0x6e8] sm:$0x3f] }
 0xd78   : > { %5305 = vmatpush1.msra.mxu1 %v4960_v8  ;;  %5394 = vmatpush1.msra.mxu0 %v4962_v61  ;;  %v13553_v37 = vmax.f32 %v4851_v53, 0.0  ;;  %v5083_v36 = vld [vmem:[%s17745_s16 + $0x6f8] sm:$0x3f]  ;;  %v5080_v8 = vld [vmem:[%s17745_s16 + $0x6e0] sm:$0x3f]  ;;  %v5073_v51 = vld [vmem:[%s17745_s16 + $0x6a8] sm:$0xff] }
 0xd79   : > { %9736 = vmatprep.mubr.msk.f32.mxu1 %vm4082_vm10, %v13519_v7  ;;  %9742 = vmatprep.mubr.msk.f32.mxu0 %vm4082_vm10, %v13519_v7  ;;  %v5082_v61 = vld [vmem:[%s17745_s16 + $0x6f0] sm:$0x3f]  ;;  %v5075_v42 = vld [vmem:[%s17745_s16 + $0x6b8] sm:$0xff]  ;;  %v5072_v53 = vld [vmem:[%s17745_s16 + $0x6a0] sm:$0xff] }
 0xd7a   : > { %5306 = vmatprep.subr.mxu1 %v4953_v40  ;;  %5395 = vmatprep.subr.mxu0 %v4955_v39  ;;  %v5074_v40 = vld [vmem:[%s17745_s16 + $0x6b0] sm:$0xff]  ;;  %v5065_v39 = vld [vmem:[%s17745_s16 + $0x668] sm:$0xff]  ;;  %v5059_v12 = vld [vmem:[%s17745_s16 + $0x638] sm:$0xff] }
 0xd7b   : > { %5197 = vmatmul.mubr.f32.gmra.mxu1 %v13535_v63  ;;  %5286 = vmatmul.mubr.f32.gmra.mxu0 %v13535_v63 }
 0xd7c   : > { %5307 = vmatpush1.msra.mxu1 %v4952_v44  ;;  %5396 = vmatpush1.msra.mxu0 %v4954_v29  ;;  %v5067_v44 = vld [vmem:[%s17745_s16 + $0x678] sm:$0xff]  ;;  %v5064_v29 = vld [vmem:[%s17745_s16 + $0x660] sm:$0xff] }
 0xd7d   : > { %5308 = vmatprep.subr.mxu1 %v4945_v56  ;;  %5397 = vmatprep.subr.mxu0 %v4947_v24  ;;  %v5066_v56 = vld [vmem:[%s17745_s16 + $0x670] sm:$0xff]  ;;  %v5057_v24 = vld [vmem:[%s17745_s16 + $0x628] sm:$0xff] }
 0xd7e   : > { %5309 = vmatpush1.msra.mxu1 %v4944_v3  ;;  %5398 = vmatpush1.msra.mxu0 %v4946_v18  ;;  %v5056_v3 = vld [vmem:[%s17745_s16 + $0x620] sm:$0xff]  ;;  %v5058_v18 = vld [vmem:[%s17745_s16 + $0x630] sm:$0xff] }
 0xd7f   : > { %9737 = vmatprep.mubr.msk.f32.mxu1 %vm4082_vm10, %v13553_v37  ;;  %9743 = vmatprep.mubr.msk.f32.mxu0 %vm4082_vm10, %v13553_v37 }
 0xd80   : > { %5310 = vmatprep.subr.mxu1 %v4937_v20  ;;  %5399 = vmatprep.subr.mxu0 %v4939_v10  ;;  %v5049_v20 = vld [vmem:[%s17745_s16 + $0x5e8] sm:$0xff]  ;;  %v5051_v10 = vld [vmem:[%s17745_s16 + $0x5f8] sm:$0xff] }
 0xd81   : > { %5203 = vmatmul.mubr.f32.gmra.mxu1 %v13569_v50  ;;  %5292 = vmatmul.mubr.f32.gmra.mxu0 %v13569_v50 }
 0xd82   : > { %5311 = vmatpush1.msra.mxu1 %v4936_v9  ;;  %5400 = vmatpush1.msra.mxu0 %v4938_v23  ;;  %v5048_v9 = vld [vmem:[%s17745_s16 + $0x5e0] sm:$0xff]  ;;  %v5050_v23 = vld [vmem:[%s17745_s16 + $0x5f0] sm:$0xff] }
 0xd83   : > { %5312 = vmatprep.subr.mxu1 %v4929_v2  ;;  %9746 = vmatprep.mubr.msk.f32.mxu1 %vm4082_vm10, %v13464_v28  ;;  %v5041_v2 = vld [vmem:[%s17745_s16 + $0x5a8] sm:$0xff] }
 0xd84   : > { %5401 = vmatprep.subr.mxu0 %v4931_v48  ;;  %9752 = vmatprep.mubr.msk.f32.mxu0 %vm4082_vm10, %v13464_v28  ;;  %v4912_v28 = vld [vmem:[%s17745_s16 + $0x1a0] sm:$0xff]  ;;  %v5043_v48 = vld [vmem:[%s17745_s16 + $0x5b8] sm:$0xff] }
 0xd85   : > { %5313 = vmatpush1.msra.mxu1 %v4928_v14  ;;  %5402 = vmatpush1.msra.mxu0 %v4930_v27  ;;  %v5040_v14 = vld [vmem:[%s17745_s16 + $0x5a0] sm:$0xff]  ;;  %v5042_v27 = vld [vmem:[%s17745_s16 + $0x5b0] sm:$0xff] }
 0xd86   : > { %5314 = vmatprep.subr.mxu1 %v4921_v13  ;;  %5403 = vmatprep.subr.mxu0 %v4923_v35  ;;  %v5033_v13 = vld [vmem:[%s17745_s16 + $0x568] sm:$0xff]  ;;  %v5035_v35 = vld [vmem:[%s17745_s16 + $0x578] sm:$0xff] }
 0xd87   : > { %5315 = vmatpush1.msra.mxu1 %v4920_v41  ;;  %5404 = vmatpush1.msra.mxu0 %v4922_v43  ;;  %v5032_v41 = vld [vmem:[%s17745_s16 + $0x560] sm:$0xff]  ;;  %v5034_v43 = vld [vmem:[%s17745_s16 + $0x570] sm:$0xff] }
 0xd88   : > { %5316 = vmatprep.subr.mxu1 %v4913_v11  ;;  %5405 = vmatprep.subr.mxu0 %v4915_v33  ;;  %v5025_v11 = vld [vmem:[%s17745_s16 + $0x528] sm:$0xff]  ;;  %v5027_v33 = vld [vmem:[%s17745_s16 + $0x538] sm:$0xff] }
 0xd89   : > { %5317 = vmatpush1.msra.mxu1 %v4912_v28  ;;  %5406 = vmatpush1.msra.mxu0 %v4914_v21  ;;  %v5024_v28 = vld [vmem:[%s17745_s16 + $0x520] sm:$0xff]  ;;  %v5026_v21 = vld [vmem:[%s17745_s16 + $0x530] sm:$0xff] }
 0xd8a   : > { %5318 = vmatprep.subr.mxu1 %v4905_v17  ;;  %5407 = vmatprep.subr.mxu0 %v4907_v19  ;;  %v5017_v17 = vld [vmem:[%s17745_s16 + $0x4e8] sm:$0xff]  ;;  %v5019_v19 = vld [vmem:[%s17745_s16 + $0x4f8] sm:$0xff] }
 0xd8b   : > { %5319 = vmatpush1.msra.mxu1 %v4904_v25  ;;  %5408 = vmatpush1.msra.mxu0 %v4906_v30  ;;  %v5016_v25 = vld [vmem:[%s17745_s16 + $0x4e0] sm:$0xff]  ;;  %v5018_v30 = vld [vmem:[%s17745_s16 + $0x4f0] sm:$0xff] }
 0xd8c   : > { %5320 = vmatprep.subr.mxu1 %v4897_v38  ;;  %5409 = vmatprep.subr.mxu0 %v4899_v47  ;;  %v5009_v38 = vld [vmem:[%s17745_s16 + $0x4a8] sm:$0xff]  ;;  %v5011_v47 = vld [vmem:[%s17745_s16 + $0x4b8] sm:$0xff] }
 0xd8d   : > { %5321 = vmatpush1.msra.mxu1 %v4896_v58  ;;  %5410 = vmatpush1.msra.mxu0 %v4898_v4  ;;  %v5008_v58 = vld [vmem:[%s17745_s16 + $0x4a0] sm:$0xff]  ;;  %v5010_v4 = vld [vmem:[%s17745_s16 + $0x4b0] sm:$0xff] }
 0xd8e   : > { %5322 = vmatprep.subr.mxu1 %v4889_v60  ;;  %5411 = vmatprep.subr.mxu0 %v4891_v1  ;;  %v5001_v60 = vld [vmem:[%s17745_s16 + $0x468] sm:$0xff]  ;;  %v5003_v1 = vld [vmem:[%s17745_s16 + $0x478] sm:$0xff] }
 0xd8f   : > { %5323 = vmatpush1.msra.mxu1 %v4888_v6  ;;  %5412 = vmatpush1.msra.mxu0 %v4890_v22  ;;  %v5000_v6 = vld [vmem:[%s17745_s16 + $0x460] sm:$0xff]  ;;  %v5002_v22 = vld [vmem:[%s17745_s16 + $0x470] sm:$0xff] }
 0xd90   : > { %5324 = vmatprep.subr.mxu1 %v4881_v31  ;;  %5413 = vmatprep.subr.mxu0 %v4883_v54  ;;  %v4993_v31 = vld [vmem:[%s17745_s16 + $0x428] sm:$0xff]  ;;  %v4995_v54 = vld [vmem:[%s17745_s16 + $0x438] sm:$0xff] }
 0xd91   : > { %5325 = vmatpush1.msra.mxu1 %v4880_v52  ;;  %5414 = vmatpush1.msra.mxu0 %v4882_v57  ;;  %v4992_v52 = vld [vmem:[%s17745_s16 + $0x420] sm:$0xff]  ;;  %v4994_v57 = vld [vmem:[%s17745_s16 + $0x430] sm:$0xff] }
 0xd92   : > { %5326 = vmatprep.subr.mxu1 %v4873_v49  ;;  %5415 = vmatprep.subr.mxu0 %v4875_v26 }
 0xd93   : > { %5327 = vmatpush1.msra.mxu1 %v4872_v34  ;;  %5416 = vmatpush1.msra.mxu0 %v4874_v16 }
 0xd94   : > { %5328 = vmatprep.subr.mxu1 %v4865_v0  ;;  %5417 = vmatprep.subr.mxu0 %v4867_v46 }
 0xd95   : > { %5329 = vmatpush1.msra.mxu1 %v4864_v59  ;;  %5418 = vmatpush1.msra.mxu0 %v4866_v62 }
 0xd96   : > { %9744 = vmatprep.subr.msk.mxu1 %vm4095_vm9, %v5081_v32  ;;  %9750 = vmatprep.subr.msk.mxu0 %vm4095_vm9, %v5083_v36 }
 0xd97   : > { %9745 = vmatpush2.msk.msra.mxu1 %vm4095_vm9, %v5080_v8  ;;  %9751 = vmatpush2.msk.msra.mxu0 %vm4095_vm9, %v5082_v61 }
 0xd98   : > { %5340 = vmatprep.subr.mxu1 %v5073_v51  ;;  %5429 = vmatprep.subr.mxu0 %v5075_v42 }
 0xd99   : > { %5341 = vmatpush2.msra.mxu1 %v5072_v53  ;;  %5430 = vmatpush2.msra.mxu0 %v5074_v40 }
 0xd9a   : > { %5342 = vmatprep.subr.mxu1 %v5065_v39  ;;  %5431 = vmatprep.subr.mxu0 %v5067_v44 }
 0xd9b   : > { %5343 = vmatpush2.msra.mxu1 %v5064_v29  ;;  %5432 = vmatpush2.msra.mxu0 %v5066_v56 }
 0xd9c   : > { %5344 = vmatprep.subr.mxu1 %v5057_v24  ;;  %5433 = vmatprep.subr.mxu0 %v5059_v12 }
 0xd9d   : > { %5345 = vmatpush2.msra.mxu1 %v5056_v3  ;;  %5434 = vmatpush2.msra.mxu0 %v5058_v18 }
 0xd9e   : > { %5346 = vmatprep.subr.mxu1 %v5049_v20  ;;  %5435 = vmatprep.subr.mxu0 %v5051_v10 }
 0xd9f   : > { %5347 = vmatpush2.msra.mxu1 %v5048_v9  ;;  %5436 = vmatpush2.msra.mxu0 %v5050_v23 }
 0xda0   : > { %5348 = vmatprep.subr.mxu1 %v5041_v2  ;;  %5437 = vmatprep.subr.mxu0 %v5043_v48 }
 0xda1   : > { %5349 = vmatpush2.msra.mxu1 %v5040_v14  ;;  %5438 = vmatpush2.msra.mxu0 %v5042_v27 }
 0xda2   : > { %5350 = vmatprep.subr.mxu1 %v5033_v13  ;;  %5439 = vmatprep.subr.mxu0 %v5035_v35 }
 0xda3   : > { %5351 = vmatpush2.msra.mxu1 %v5032_v41  ;;  %5440 = vmatpush2.msra.mxu0 %v5034_v43 }
 0xda4   : > { %5352 = vmatprep.subr.mxu1 %v5025_v11  ;;  %5441 = vmatprep.subr.mxu0 %v5027_v33 }
 0xda5   : > { %5353 = vmatpush2.msra.mxu1 %v5024_v28  ;;  %5442 = vmatpush2.msra.mxu0 %v5026_v21 }
 0xda6   : > { %5354 = vmatprep.subr.mxu1 %v5017_v17  ;;  %5443 = vmatprep.subr.mxu0 %v5019_v19 }
 0xda7   : > { %5355 = vmatpush2.msra.mxu1 %v5016_v25  ;;  %5444 = vmatpush2.msra.mxu0 %v5018_v30 }
 0xda8   : > { %5356 = vmatprep.subr.mxu1 %v5009_v38  ;;  %5445 = vmatprep.subr.mxu0 %v5011_v47 }
 0xda9   : > { %5357 = vmatpush2.msra.mxu1 %v5008_v58  ;;  %5446 = vmatpush2.msra.mxu0 %v5010_v4 }
 0xdaa   : > { %5358 = vmatprep.subr.mxu1 %v5001_v60  ;;  %5447 = vmatprep.subr.mxu0 %v5003_v1 }
 0xdab   : > { %5359 = vmatpush2.msra.mxu1 %v5000_v6  ;;  %5448 = vmatpush2.msra.mxu0 %v5002_v22 }
 0xdac   : > { %5360 = vmatprep.subr.mxu1 %v4993_v31  ;;  %5449 = vmatprep.subr.mxu0 %v4995_v54 }
 0xdad   : > { %5361 = vmatpush2.msra.mxu1 %v4992_v52  ;;  %5450 = vmatpush2.msra.mxu0 %v4994_v57 }
 0xdae   : > { %5363 = vmatmul.mubr.f32.vlgmr.msra.gmra.mxu1 %v13466_v55  ;;  %5452 = vmatmul.mubr.f32.vlgmr.msra.gmra.mxu0 %v13466_v55 }
 0xdaf   : > { %9747 = vmatprep.mubr.msk.f32.mxu1 %vm4082_vm10, %v13492_v15  ;;  %9753 = vmatprep.mubr.msk.f32.mxu0 %vm4082_vm10, %v13492_v15 }
 0xdb2   : > { %5369 = vmatmul.mubr.f32.gmra.mxu1 %v13500_v45  ;;  %5458 = vmatmul.mubr.f32.gmra.mxu0 %v13500_v45 }
 0xdb3   : > { %9748 = vmatprep.mubr.msk.f32.mxu1 %vm4082_vm10, %v13519_v7  ;;  %9754 = vmatprep.mubr.msk.f32.mxu0 %vm4082_vm10, %v13519_v7 }
 0xdb6   : > { %5375 = vmatmul.mubr.f32.gmra.mxu1 %v13535_v63  ;;  %5464 = vmatmul.mubr.f32.gmra.mxu0 %v13535_v63 }
 0xdb7   : > { %9749 = vmatprep.mubr.msk.f32.mxu1 %vm4082_vm10, %v13553_v37  ;;  %9755 = vmatprep.mubr.msk.f32.mxu0 %vm4082_vm10, %v13553_v37 }
 0xdba   : > { %5381 = vmatmul.mubr.f32.gmra.mxu1 %v13569_v50  ;;  %5470 = vmatmul.mubr.f32.gmra.mxu0 %v13569_v50 }
 0xdbb   : > { %6385 = vmatprep.mubr.f32.mxu1 %v17768_v5  ;;  %6456 = vmatprep.mubr.f32.mxu0 %v17768_v5 }
 0xe2f   : > { %v5186_v55 = vpop.f32.mrf.mxu1  ;;  %v5275_v15 = vpop.f32.mrf.mxu0 }
 0xe30   : > { %5476 = vst [vmem:[#allocation5] sm:$0xff] %v5186_v55  ;;  %5478 = vst [vmem:[#allocation5 + $0x10] sm:$0xff] %v5275_v15  ;;  %5678 = vrot.lane.b32.xlu1 %v5275_v15, %s10337_s1 }
 0xe31   : > { %v13866_v45 = vpop.f32.mrf.mxu1  ;;  %v5277_v7 = vpop.f32.mrf.mxu0 }
 0xe32   : > { %5477 = vst [vmem:[#allocation5 + $0x8] sm:$0xff] %v13866_v45  ;;  %5479 = vst [vmem:[#allocation5 + $0x18] sm:$0xff] %v5277_v7  ;;  %5676 = vrot.lane.b32.xlu0 %v13866_v45, %s10337_s1 }
 0xe34   : > { %5674 = vrot.lane.b32.xlu1 %v5186_v55, %s10337_s1 }
 0xe35   : > { %v13872_v63 = vpop.f32.mrf.mxu1  ;;  %v13874_v37 = vpop.f32.mrf.mxu0 }
 0xe36   : > { %5484 = vst [vmem:[#allocation5 + $0x38] sm:$0xff] %v13872_v63  ;;  %5486 = vst [vmem:[#allocation5 + $0x48] sm:$0xff] %v13874_v37  ;;  %5680 = vrot.lane.b32.xlu0 %v5277_v7, %s10337_s1 }
 0xe37   : > { %v13879_v50 = vpop.f32.mrf.mxu1  ;;  %v13881_v49 = vpop.f32.mrf.mxu0 }
 0xe38   : > { %5485 = vst [vmem:[#allocation5 + $0x40] sm:$0xff] %v13879_v50  ;;  %5487 = vst [vmem:[#allocation5 + $0x50] sm:$0xff] %v13881_v49  ;;  %5537 = vrot.lane.b32.xlu1 %v5275_v15, %s10338_s3 }
 0xe3a   : > { %5535 = vrot.lane.b32.xlu0 %v13866_v45, %s10338_s3 }
 0xe3b   : > { %v13888_v26 = vpop.f32.mrf.mxu1  ;;  %v13890_v34 = vpop.f32.mrf.mxu0 }
 0xe3c   : > { %5491 = vst [vmem:[#allocation5 + $0x70] sm:$0xff] %v13888_v26  ;;  %5493 = vst [vmem:[#allocation5 + $0x80] sm:$0xff] %v13890_v34  ;;  %5533 = vrot.lane.b32.xlu1 %v5186_v55, %s10338_s3 }
 0xe3d   : > { %v13895_v16 = vpop.f32.mrf.mxu1  ;;  %v13897_v0 = vpop.f32.mrf.mxu0 }
 0xe3e   : > { %5492 = vst [vmem:[#allocation5 + $0x78] sm:$0xff] %v13895_v16  ;;  %5494 = vst [vmem:[#allocation5 + $0x88] sm:$0xff] %v13897_v0  ;;  %5539 = vrot.lane.b32.xlu0 %v5277_v7, %s10338_s3 }
 0xe40   : > { %5694 = vrot.lane.b32.xlu1 %v13874_v37, %s10337_s1 }
 0xe41   : > { %v13904_v46 = vpop.f32.mrf.mxu1  ;;  %v13906_v59 = vpop.f32.mrf.mxu0 }
 0xe42   : > { %5498 = vst [vmem:[#allocation5 + $0xa8] sm:$0xff] %v13904_v46  ;;  %5500 = vst [vmem:[#allocation5 + $0xb8] sm:$0xff] %v13906_v59  ;;  %5692 = vrot.lane.b32.xlu0 %v13879_v50, %s10337_s1 }
 0xe43   : > { %v13912_v62 = vpop.f32.mrf.mxu1  ;;  %v13914_v32 = vpop.f32.mrf.mxu0 }
 0xe44   : > { %5499 = vst [vmem:[#allocation5 + $0xb0] sm:$0xff] %v13912_v62  ;;  %5501 = vst [vmem:[#allocation5 + $0xc0] sm:$0xff] %v13914_v32  ;;  %5690 = vrot.lane.b32.xlu1 %v13872_v63, %s10337_s1 }
 0xe46   : > { %5696 = vrot.lane.b32.xlu0 %v13881_v49, %s10337_s1 }
 0xe48   : > { %5551 = vrot.lane.b32.xlu1 %v13874_v37, %s10338_s3 }
 0xe4a   : > { %5549 = vrot.lane.b32.xlu0 %v13879_v50, %s10338_s3 }
 0xe4c   : > { %5547 = vrot.lane.b32.xlu1 %v13872_v63, %s10338_s3 }
 0xe4e   : > { %5553 = vrot.lane.b32.xlu0 %v13881_v49, %s10338_s3 }
 0xe50   : > { %5710 = vrot.lane.b32.xlu1 %v13890_v34, %s10337_s1 }
 0xe52   : > { %5998 = vrot.lane.b32.xlu0 %v5275_v15, %s17843_s21 }
 0xe54   : > { %5706 = vrot.lane.b32.xlu1 %v13888_v26, %s10337_s1 }
 0xe56   : > { %5708 = vrot.lane.b32.xlu0 %v13895_v16, %s10337_s1 }
 0xe58   : > { %5565 = vrot.lane.b32.xlu1 %v13890_v34, %s10338_s3 }
 0xe5a   : > { %5712 = vrot.lane.b32.xlu0 %v13897_v0, %s10337_s1 }
 0xe5c   : > { %5561 = vrot.lane.b32.xlu1 %v13888_v26, %s10338_s3 }
 0xe5e   : > { %5563 = vrot.lane.b32.xlu0 %v13895_v16, %s10338_s3 }
 0xe60   : > { %5994 = vrot.lane.b32.xlu1 %v5186_v55, %s17843_s21 }
 0xe62   : > { %5567 = vrot.lane.b32.xlu0 %v13897_v0, %s10338_s3 }
 0xe64   : > { %5996 = vrot.lane.b32.xlu1 %v13866_v45, %s17843_s21 }
 0xe66   : > { %6000 = vrot.lane.b32.xlu0 %v5277_v7, %s17843_s21 }
 0xe68   : > { %5726 = vrot.lane.b32.xlu1 %v13906_v59, %s10337_s1 }
 0xe6a   : > { %6008 = vrot.lane.b32.xlu0 %v13872_v63, %s17843_s21 }
 0xe6c   : > { %5722 = vrot.lane.b32.xlu1 %v13904_v46, %s10337_s1 }
 0xe6e   : > { %v5453_v36 = vpop.f32.mrf.mxu0  ;;  %v13957_v8 = vpop.f32.mrf.mxu1  ;;  %5724 = vrot.lane.b32.xlu0 %v13912_v62, %s10337_s1 }
 0xe6f   : > { %5483 = vst.msk [vmem:[#allocation5 + $0x30] sm:$0xff] %vm5482_vm11, %v5453_v36  ;;  %5480 = vst [vmem:[#allocation5 + $0x20] sm:$0xff] %v13957_v8 }
 0xe70   : > { %v5455_v61 = vpop.f32.mrf.mxu0  ;;  %v13963_v51 = vpop.f32.mrf.mxu1  ;;  %5579 = vrot.lane.b32.xlu1 %v13906_v59, %s10338_s3 }
 0xe71   : > { %5481 = vst [vmem:[#allocation5 + $0x28] sm:$0xff] %v13963_v51 }
 0xe72   : > { %v13968_v42 = vpop.f32.mrf.mxu0  ;;  %v13970_v53 = vpop.f32.mrf.mxu1  ;;  %5728 = vrot.lane.b32.xlu0 %v13914_v32, %s10337_s1 }
 0xe73   : > { %17847 = vst [vmem:[#allocation7_spill] sm:$0xff] %v13970_v53  ;;  %5490 = vst.msk [vmem:[#allocation5 + $0x68] sm:$0xff] %vm5482_vm11, %v13968_v42 }
 0xe74   : > { %5488 = vst [vmem:[#allocation5 + $0x58] sm:$0xff] %v13970_v53  ;;  %v5461_v40 = vpop.f32.mrf.mxu0  ;;  %v13977_v39 = vpop.f32.mrf.mxu1  ;;  %5575 = vrot.lane.b32.xlu1 %v13904_v46, %s10338_s3 }
 0xe75   : > { %5489 = vst [vmem:[#allocation5 + $0x60] sm:$0xff] %v13977_v39 }
 0xe76   : > { %v13982_v44 = vpop.f32.mrf.mxu0  ;;  %v13984_v29 = vpop.f32.mrf.mxu1  ;;  %5577 = vrot.lane.b32.xlu0 %v13912_v62, %s10338_s3  ;;  %v5830_v11 = vld [vmem:[#allocation5 + $0x30] sm:$0xff] }
 0xe77   : > { %17848 = vst [vmem:[#allocation8_spill] sm:$0xff] %v13984_v29  ;;  %5497 = vst.msk [vmem:[#allocation5 + $0xa0] sm:$0xff] %vm5482_vm11, %v13982_v44 }
 0xe78   : > { %5495 = vst [vmem:[#allocation5 + $0x90] sm:$0xff] %v13984_v29  ;;  %v13991_v56 = vpop.f32.mrf.mxu0  ;;  %v13993_v24 = vpop.f32.mrf.mxu1  ;;  %6012 = vrot.lane.b32.xlu1 %v13874_v37, %s17843_s21 }
 0xe79   : > { %5496 = vst [vmem:[#allocation5 + $0x98] sm:$0xff] %v13993_v24 }
 0xe7a   : > { %v13998_v12 = vpop.f32.mrf.mxu0  ;;  %v14000_v3 = vpop.f32.mrf.mxu1  ;;  %5581 = vrot.lane.b32.xlu0 %v13914_v32, %s10338_s3  ;;  %v5837_v22 = vld [vmem:[#allocation5 + $0x68] sm:$0xff] }
 0xe7b   : > { %17849 = vst [vmem:[#allocation9_spill] sm:$0xff] %v14000_v3  ;;  %5504 = vst.msk [vmem:[#allocation5 + $0xd8] sm:$0xff] %vm5482_vm11, %v13998_v12 }
 0xe7c   : > { %5502 = vst [vmem:[#allocation5 + $0xc8] sm:$0xff] %v14000_v3  ;;  %v14007_v18 = vpop.f32.mrf.mxu1  ;;  %6022 = vrot.lane.b32.xlu1 %v13888_v26, %s17843_s21  ;;  %v5473_v15 = vpop.f32.mrf.mxu0 }
 0xe7d   : > { %5503 = vst [vmem:[#allocation5 + $0xd0] sm:$0xff] %v14007_v18 }
 0xe7e   : > { %6010 = vrot.lane.b32.xlu0 %v13879_v50, %s17843_s21 }
 0xe80   : > { %6024 = vrot.lane.b32.xlu1 %v13895_v16, %s17843_s21 }
 0xe82   : > { %6014 = vrot.lane.b32.xlu0 %v13881_v49, %s17843_s21 }
 0xe84   : > { %6040 = vrot.lane.b32.xlu1 %v13906_v59, %s17843_s21 }
 0xe86   : > { %6026 = vrot.lane.b32.xlu0 %v13890_v34, %s17843_s21 }
 0xe88   : > { %5541 = vrot.lane.b32.xlu1 %v13957_v8, %s10338_s3 }
 0xe8a   : > { %6028 = vrot.lane.b32.xlu0 %v13897_v0, %s17843_s21 }
 0xe8c   : > { %5545 = vrot.lane.b32.xlu1 %v5453_v36, %s10338_s3 }
 0xe8e   : > { %6036 = vrot.lane.b32.xlu0 %v13904_v46, %s17843_s21 }
 0xe90   : > { %5684 = vrot.lane.b32.xlu1 %v13963_v51, %s10337_s1 }
 0xe92   : > { %6038 = vrot.lane.b32.xlu0 %v13912_v62, %s17843_s21 }
 0xe94   : > { %5688 = vrot.lane.b32.xlu1 %v5455_v61, %s10337_s1 }
 0xe96   : > { %6042 = vrot.lane.b32.xlu0 %v13914_v32, %s17843_s21 }
 0xe98   : > { %5700 = vrot.lane.b32.xlu1 %v13977_v39, %s10337_s1 }
 0xe9a   : > { %5682 = vrot.lane.b32.xlu0 %v13957_v8, %s10337_s1 }
 0xe9c   : > { %5704 = vrot.lane.b32.xlu1 %v5461_v40, %s10337_s1 }
 0xe9e   : > { %5686 = vrot.lane.b32.xlu0 %v5453_v36, %s10337_s1 }
 0xea0   : > { %5557 = vrot.lane.b32.xlu1 %v13977_v39, %s10338_s3 }
 0xea2   : > { %v5679_v20 = vpop.permute.xlu1 %5678  ;;  %5543 = vrot.lane.b32.xlu0 %v13963_v51, %s10338_s3 }
 0xea4   : > { %v5677_v10 = vpop.permute.xlu0 %5676  ;;  %5569 = vrot.lane.b32.xlu1 %v13984_v29, %s10338_s3 }
 0xea5   : > { %v14049_v9 = vsel %vm5738_vm12, %v5677_v10, %v5679_v20 }
 0xea6   : > { %5796 = vst [vmem:[#allocation5 + $0x1c8] sm:$0xff] %v14049_v9  ;;  %v5675_v23 = vpop.permute.xlu1 %5674  ;;  %5698 = vrot.lane.b32.xlu0 %v13970_v53, %s10337_s1 }
 0xea7   : > { %v14055_v2 = vsel %vm5738_vm12, %v5675_v23, %v5677_v10 }
 0xea8   : > { %5795 = vst [vmem:[#allocation5 + $0x1c0] sm:$0xff] %v14055_v2  ;;  %v14058_v48 = vpop.permute.xlu0 %5680  ;;  %5573 = vrot.lane.b32.xlu1 %v13982_v44, %s10338_s3 }
 0xea9   : > { %v14064_v14 = vsel %vm5738_vm12, %v5679_v20, %v14058_v48 }
 0xeaa   : > { %5797 = vst [vmem:[#allocation5 + $0x1d0] sm:$0xff] %v14064_v14  ;;  %v5538_v27 = vpop.permute.xlu1 %5537  ;;  %5702 = vrot.lane.b32.xlu0 %v13968_v42, %s10337_s1 }
 0xeac   : > { %v5536_v13 = vpop.permute.xlu0 %5535  ;;  %6002 = vrot.lane.b32.xlu1 %v13957_v8, %s17843_s21 }
 0xead   : > { %v14072_v35 = vsel %vm5589_vm13, %v5536_v13, %v5538_v27 }
 0xeae   : > { %5643 = vst [vmem:[#allocation5 + $0xe8] sm:$0xff] %v14072_v35  ;;  %v5534_v41 = vpop.permute.xlu1 %5533  ;;  %5555 = vrot.lane.b32.xlu0 %v13970_v53, %s10338_s3 }
 0xeaf   : > { %v14078_v43 = vsel %vm5589_vm13, %v5534_v41, %v5536_v13  ;;  %v14199_v13 = vld [vmem:[#allocation5 + $0xd8] sm:$0xff] }
 0xeb0   : > { %5642 = vst [vmem:[#allocation5 + $0xe0] sm:$0xff] %v14078_v43  ;;  %v14081_v33 = vpop.permute.xlu0 %5539  ;;  %6006 = vrot.lane.b32.xlu1 %v5830_v11, %s17843_s21  ;;  %17853 = vst [vmem:[#allocation13_spill] sm:$0xff] %v14199_v13 }
 0xeb1   : > { %v14086_v28 = vsel %vm5589_vm13, %v5538_v27, %v14081_v33 }
 0xeb2   : > { %5644 = vst [vmem:[#allocation5 + $0xf0] sm:$0xff] %v14086_v28  ;;  %v5695_v21 = vpop.permute.xlu1 %5694  ;;  %5559 = vrot.lane.b32.xlu0 %v13968_v42, %s10338_s3 }
 0xeb4   : > { %v5693_v17 = vpop.permute.xlu0 %5692  ;;  %5716 = vrot.lane.b32.xlu1 %v13993_v24, %s10337_s1 }
 0xeb5   : > { %v14094_v19 = vsel %vm5738_vm12, %v5693_v17, %v5695_v21 }
 0xeb6   : > { %5803 = vst [vmem:[#allocation5 + $0x200] sm:$0xff] %v14094_v19  ;;  %v5691_v25 = vpop.permute.xlu1 %5690  ;;  %5714 = vrot.lane.b32.xlu0 %v13984_v29, %s10337_s1 }
 0xeb7   : > { %v14100_v30 = vsel %vm5738_vm12, %v5691_v25, %v5693_v17 }
 0xeb8   : > { %5802 = vst [vmem:[#allocation5 + $0x1f8] sm:$0xff] %v14100_v30  ;;  %v14103_v38 = vpop.permute.xlu0 %5696  ;;  %5720 = vrot.lane.b32.xlu1 %v13991_v56, %s10337_s1  ;;  %v14178_v56 = vld [vmem:[#allocation5 + $0xa0] sm:$0xff] }
 0xeb9   : > { %v14109_v47 = vsel %vm5738_vm12, %v5695_v21, %v14103_v38  ;;  %17851 = vst [vmem:[#allocation11_spill] sm:$0xff] %v14178_v56 }
 0xeba   : > { %5804 = vst [vmem:[#allocation5 + $0x208] sm:$0xff] %v14109_v47  ;;  %v5552_v58 = vpop.permute.xlu1 %5551  ;;  %5718 = vrot.lane.b32.xlu0 %v13982_v44, %s10337_s1 }
 0xebc   : > { %v5550_v4 = vpop.permute.xlu0 %5549  ;;  %6016 = vrot.lane.b32.xlu1 %v13970_v53, %s17843_s21 }
 0xebd   : > { %v14117_v60 = vsel %vm5589_vm13, %v5550_v4, %v5552_v58 }
 0xebe   : > { %5650 = vst [vmem:[#allocation5 + $0x120] sm:$0xff] %v14117_v60  ;;  %v5548_v1 = vpop.permute.xlu1 %5547  ;;  %5571 = vrot.lane.b32.xlu0 %v13993_v24, %s10338_s3 }
 0xebf   : > { %v14123_v6 = vsel %vm5589_vm13, %v5548_v1, %v5550_v4 }
 0xec0   : > { %5649 = vst [vmem:[#allocation5 + $0x118] sm:$0xff] %v14123_v6  ;;  %v14126_v31 = vpop.permute.xlu0 %5553  ;;  %6020 = vrot.lane.b32.xlu1 %v5837_v22, %s17843_s21 }
 0xec1   : > { %v14131_v54 = vsel %vm5589_vm13, %v5552_v58, %v14126_v31 }
 0xec2   : > { %5651 = vst [vmem:[#allocation5 + $0x128] sm:$0xff] %v14131_v54  ;;  %v5711_v52 = vpop.permute.xlu1 %5710  ;;  %6004 = vrot.lane.b32.xlu0 %v13963_v51, %s17843_s21 }
 0xec4   : > { %v14136_v57 = vpop.permute.xlu0 %5998  ;;  %5732 = vrot.lane.b32.xlu1 %v14007_v18, %s10337_s1 }
 0xec6   : > { %v5707_v55 = vpop.permute.xlu1 %5706  ;;  %5730 = vrot.lane.b32.xlu0 %v14000_v3, %s10337_s1 }
 0xec8   : > { %v5709_v7 = vpop.permute.xlu0 %5708  ;;  %5736 = vrot.lane.b32.xlu1 %v5473_v15, %s10337_s1 }
 0xec9   : > { %v14144_v49 = vsel %vm5738_vm12, %v5707_v55, %v5709_v7  ;;  %v14147_v0 = vsel %vm5738_vm12, %v5709_v7, %v5711_v52 }
 0xeca   : > { %5809 = vst [vmem:[#allocation5 + $0x230] sm:$0xff] %v14144_v49  ;;  %5810 = vst [vmem:[#allocation5 + $0x238] sm:$0xff] %v14147_v0  ;;  %v5566_v32 = vpop.permute.xlu1 %5565  ;;  %5734 = vrot.lane.b32.xlu0 %v13998_v12, %s10337_s1 }
 0xecc   : > { %v14153_v36 = vpop.permute.xlu0 %5712  ;;  %5585 = vrot.lane.b32.xlu1 %v14007_v18, %s10338_s3 }
 0xecd   : > { %v14159_v8 = vsel %vm5738_vm12, %v5711_v52, %v14153_v36 }
 0xece   : > { %5811 = vst [vmem:[#allocation5 + $0x240] sm:$0xff] %v14159_v8  ;;  %v5562_v61 = vpop.permute.xlu1 %5561  ;;  %5583 = vrot.lane.b32.xlu0 %v14000_v3, %s10338_s3 }
 0xed0   : > { %v5564_v51 = vpop.permute.xlu0 %5563  ;;  %6030 = vrot.lane.b32.xlu1 %v13984_v29, %s17843_s21 }
 0xed1   : > { %v14167_v42 = vsel %vm5589_vm13, %v5562_v61, %v5564_v51  ;;  %v14170_v40 = vsel %vm5589_vm13, %v5564_v51, %v5566_v32 }
 0xed2   : > { %5656 = vst [vmem:[#allocation5 + $0x150] sm:$0xff] %v14167_v42  ;;  %5657 = vst [vmem:[#allocation5 + $0x158] sm:$0xff] %v14170_v40  ;;  %v14174_v44 = vpop.permute.xlu1 %5994  ;;  %5587 = vrot.lane.b32.xlu0 %v13998_v12, %s10338_s3 }
 0xed3   : > { %17850 = vst [vmem:[#allocation10_spill] sm:$0xff] %v14174_v44 }
 0xed4   : > { %v14180_v20 = vpop.permute.xlu0 %5567  ;;  %6034 = vrot.lane.b32.xlu1 %v14178_v56, %s17843_s21 }
 0xed5   : > { %v14186_v10 = vsel %vm5589_vm13, %v5566_v32, %v14180_v20 }
 0xed6   : > { %5658 = vst [vmem:[#allocation5 + $0x160] sm:$0xff] %v14186_v10  ;;  %v14189_v23 = vpop.permute.xlu1 %5996  ;;  %6018 = vrot.lane.b32.xlu0 %v13977_v39, %s17843_s21 }
 0xed8   : > { %v14193_v27 = vpop.permute.xlu0 %6000  ;;  %6044 = vrot.lane.b32.xlu1 %v14000_v3, %s17843_s21 }
 0xed9   : > { %17852 = vst [vmem:[#allocation12_spill] sm:$0xff] %v14193_v27 }
 0xeda   : > { %v5727_v12 = vpop.permute.xlu1 %5726  ;;  %6032 = vrot.lane.b32.xlu0 %v13993_v24, %s17843_s21 }
 0xedc   : > { %v14201_v41 = vpop.permute.xlu0 %6008  ;;  %6048 = vrot.lane.b32.xlu1 %v14199_v13, %s17843_s21 }
 0xede   : > { %v5723_v11 = vpop.permute.xlu1 %5722  ;;  %6046 = vrot.lane.b32.xlu0 %v14007_v18, %s17843_s21 }
 0xee0   : > { %v5725_v39 = vpop.permute.xlu0 %5724  ;;  %6108 = vrot.lane.b32.xlu1 %v14049_v9, %s17843_s21 }
 0xee1   : > { %v14210_v21 = vsel %vm5738_vm12, %v5723_v11, %v5725_v39  ;;  %v14213_v24 = vsel %vm5738_vm12, %v5725_v39, %v5727_v12 }
 0xee2   : > { %17854 = vst [vmem:[#allocation14_spill] sm:$0xff] %v14210_v21  ;;  %17855 = vst [vmem:[#allocation15_spill] sm:$0xff] %v14213_v24  ;;  %v5580_v17 = vpop.permute.xlu1 %5579  ;;  %6110 = vrot.lane.b32.xlu0 %v14064_v14, %s17843_s21 }
 0xee4   : > { %v14217_v25 = vpop.permute.xlu0 %5728  ;;  %6106 = vrot.lane.b32.xlu1 %v14055_v2, %s17843_s21 }
 0xee5   : > { %v14223_v18 = vsel %vm5738_vm12, %v5727_v12, %v14217_v25 }
 0xee6   : > { %5818 = vst [vmem:[#allocation5 + $0x278] sm:$0xff] %v14223_v18  ;;  %v5576_v58 = vpop.permute.xlu1 %5575  ;;  %6054 = vrot.lane.b32.xlu0 %v14086_v28, %s17843_s21 }
 0xee8   : > { %v5578_v4 = vpop.permute.xlu0 %5577  ;;  %6052 = vrot.lane.b32.xlu1 %v14072_v35, %s17843_s21 }
 0xee9   : > { %v14231_v1 = vsel %vm5589_vm13, %v5576_v58, %v5578_v4  ;;  %v14234_v22 = vsel %vm5589_vm13, %v5578_v4, %v5580_v17 }
 0xeea   : > { %5663 = vst [vmem:[#allocation5 + $0x188] sm:$0xff] %v14231_v1  ;;  %5664 = vst [vmem:[#allocation5 + $0x190] sm:$0xff] %v14234_v22  ;;  %v14238_v52 = vpop.permute.xlu1 %6012  ;;  %6122 = vrot.lane.b32.xlu0 %v14094_v19, %s17843_s21 }
 0xeec   : > { %v14242_v55 = vpop.permute.xlu0 %5581  ;;  %6050 = vrot.lane.b32.xlu1 %v14078_v43, %s17843_s21 }
 0xeed   : > { %v14248_v15 = vsel %vm5589_vm13, %v5580_v17, %v14242_v55 }
 0xeee   : > { %5665 = vst [vmem:[#allocation5 + $0x198] sm:$0xff] %v14248_v15  ;;  %v14251_v7 = vpop.permute.xlu1 %6022  ;;  %6120 = vrot.lane.b32.xlu0 %v14100_v30, %s17843_s21 }
 0xef0   : > { %v14255_v32 = vpop.permute.xlu0 %6010  ;;  %6124 = vrot.lane.b32.xlu1 %v14109_v47, %s17843_s21 }
 0xef2   : > { %v14259_v61 = vpop.permute.xlu1 %6024  ;;  %6066 = vrot.lane.b32.xlu0 %v14117_v60, %s17843_s21 }
 0xef4   : > { %v14263_v51 = vpop.permute.xlu0 %6014  ;;  %6068 = vrot.lane.b32.xlu1 %v14131_v54, %s17843_s21 }
 0xef5   : > { %17856 = vst [vmem:[#allocation16_spill] sm:$0xff] %v14263_v51 }
 0xef6   : > { %v14267_v12 = vpop.permute.xlu1 %6040  ;;  %6064 = vrot.lane.b32.xlu0 %v14123_v6, %s17843_s21 }
 0xef8   : > { %v14271_v11 = vpop.permute.xlu0 %6026  ;;  %6136 = vrot.lane.b32.xlu1 %v14147_v0, %s17843_s21 }
 0xefa   : > { %v5542_v39 = vpop.permute.xlu1 %5541  ;;  %7020 = vrot.lane.b32.xlu0 %v14094_v19, %s17844_s25 }
 0xefb   : > { %v14279_v17 = vsel %vm5589_vm13, %v14081_v33, %v5542_v39 }
 0xefc   : > { %17857 = vst [vmem:[#allocation17_spill] sm:$0xff] %v14279_v17  ;;  %5645 = vst [vmem:[#allocation5 + $0xf8] sm:$0xff] %v14279_v17  ;;  %v14282_v58 = vpop.permute.xlu0 %6028  ;;  %6134 = vrot.lane.b32.xlu1 %v14144_v49, %s17843_s21 }
 0xefd   : > { %17858 = vst [vmem:[#allocation18_spill] sm:$0xff] %v14282_v58 }
 0xefe   : > { %v5546_v4 = vpop.permute.xlu1 %5545  ;;  %6138 = vrot.lane.b32.xlu0 %v14159_v8, %s17843_s21 }
 0xeff   : > { %5648 = vst.msk [vmem:[#allocation5 + $0x110] sm:$0xff] %vm5482_vm11, %v5546_v4 }
 0xf00   : > { %v14289_v5 = vpop.permute.xlu0 %6036  ;;  %6080 = vrot.lane.b32.xlu1 %v14170_v40, %s17843_s21 }
 0xf02   : > { %v5685_v33 = vpop.permute.xlu1 %5684  ;;  %6082 = vrot.lane.b32.xlu0 %v14186_v10, %s17843_s21 }
 0xf04   : > { %v14295_v19 = vpop.permute.xlu0 %6038  ;;  %6078 = vrot.lane.b32.xlu1 %v14167_v42, %s17843_s21 }
 0xf06   : > { %v5689_v27 = vpop.permute.xlu1 %5688  ;;  %7036 = vrot.lane.b32.xlu0 %v14159_v8, %s17844_s25 }
 0xf08   : > { %v14301_v56 = vpop.permute.xlu0 %6042  ;;  %7034 = vrot.lane.b32.xlu1 %v14147_v0, %s17844_s25 }
 0xf09   : > { %17859 = vst [vmem:[#allocation19_spill] sm:$0xff] %v14301_v56 }
 0xf0a   : > { %v5701_v51 = vpop.permute.xlu1 %5700  ;;  %6150 = vrot.lane.b32.xlu0 %v14213_v24, %s17843_s21 }
 0xf0c   : > { %v5683_v58 = vpop.permute.xlu0 %5682  ;;  %7032 = vrot.lane.b32.xlu1 %v14144_v49, %s17844_s25 }
 0xf0d   : > { %v14311_v13 = vsel %vm5738_vm12, %v14058_v48, %v5683_v58  ;;  %v14314_v53 = vsel %vm5738_vm12, %v5683_v58, %v5685_v33 }
 0xf0e   : > { %5798 = vst [vmem:[#allocation5 + $0x1d8] sm:$0xff] %v14311_v13  ;;  %5799 = vst [vmem:[#allocation5 + $0x1e0] sm:$0xff] %v14314_v53  ;;  %v5705_v0 = vpop.permute.xlu1 %5704  ;;  %6148 = vrot.lane.b32.xlu0 %v14210_v21, %s17843_s21 }
 0xf10   : > { %v5687_v8 = vpop.permute.xlu0 %5686  ;;  %6152 = vrot.lane.b32.xlu1 %v14223_v18, %s17843_s21 }
 0xf11   : > { %v14323_v49 = vsel %vm5738_vm12, %v5685_v33, %v5687_v8  ;;  %v5745_v48 = vsel %vm5738_vm12, %v5687_v8, %v5689_v27 }
 0xf12   : > { %17860 = vst [vmem:[#allocation20_spill] sm:$0xff] %v14323_v49  ;;  %5800 = vst [vmem:[#allocation5 + $0x1e8] sm:$0xff] %v14323_v49  ;;  %v5558_v58 = vpop.permute.xlu1 %5557  ;;  %6094 = vrot.lane.b32.xlu0 %v14234_v22, %s17843_s21 }
 0xf13   : > { %5801 = vst.msk [vmem:[#allocation5 + $0x1f0] sm:$0xff] %vm5482_vm11, %v5745_v48 }
 0xf14   : > { %v5544_v56 = vpop.permute.xlu0 %5543  ;;  %6096 = vrot.lane.b32.xlu1 %v14248_v15, %s17843_s21 }
 0xf15   : > { %v14333_v29 = vsel %vm5589_vm13, %v5542_v39, %v5544_v56  ;;  %v14336_v33 = vsel %vm5589_vm13, %v5544_v56, %v5546_v4 }
 0xf16   : > { %17861 = vst [vmem:[#allocation21_spill] sm:$0xff] %v14333_v29  ;;  %17862 = vst [vmem:[#allocation22_spill] sm:$0xff] %v14336_v33  ;;  %v5570_v27 = vpop.permute.xlu1 %5569  ;;  %6092 = vrot.lane.b32.xlu0 %v14231_v1, %s17843_s21 }
 0xf17   : > { %5646 = vst [vmem:[#allocation5 + $0x100] sm:$0xff] %v14333_v29  ;;  %5647 = vst [vmem:[#allocation5 + $0x108] sm:$0xff] %v14336_v33  ;;  %v14344_v8 = vsel %vm5589_vm13, %v14180_v20, %v5570_v27  ;;  %v14359_v20 = vld [vmem:[#allocation5 + $0x110] sm:$0xff] }
 0xf18   : > { %5659 = vst [vmem:[#allocation5 + $0x168] sm:$0xff] %v14344_v8  ;;  %v5699_v48 = vpop.permute.xlu0 %5698  ;;  %7050 = vrot.lane.b32.xlu1 %v14223_v18, %s17844_s25  ;;  %17863 = vst [vmem:[#allocation23_spill] sm:$0xff] %v14359_v20 }
 0xf19   : > { %v14351_v56 = vsel %vm5738_vm12, %v14103_v38, %v5699_v48  ;;  %v14354_v39 = vsel %vm5738_vm12, %v5699_v48, %v5701_v51 }
 0xf1a   : > { %v5574_v4 = vpop.permute.xlu1 %5573  ;;  %7048 = vrot.lane.b32.xlu0 %v14213_v24, %s17844_s25 }
 0xf1b   : > { %5662 = vst.msk [vmem:[#allocation5 + $0x180] sm:$0xff] %vm5482_vm11, %v5574_v4 }
 0xf1c   : > { %v5703_v3 = vpop.permute.xlu0 %5702  ;;  %6062 = vrot.lane.b32.xlu1 %v14359_v20, %s17843_s21 }
 0xf1d   : > { %v14364_v18 = vsel %vm5738_vm12, %v5701_v51, %v5703_v3  ;;  %v5752_v38 = vsel %vm5738_vm12, %v5703_v3, %v5705_v0  ;;  %v14386_v0 = vld [vmem:[#allocation5 + $0x1f0] sm:$0xff] }
 0xf1e   : > { %17864 = vst [vmem:[#allocation24_spill] sm:$0xff] %v14364_v18  ;;  %5808 = vst.msk [vmem:[#allocation5 + $0x228] sm:$0xff] %vm5482_vm11, %v5752_v38  ;;  %v14368_v48 = vpop.permute.xlu1 %6002  ;;  %7046 = vrot.lane.b32.xlu0 %v14210_v21, %s17844_s25 }
 0xf1f   : > { %17865 = vst [vmem:[#allocation25_spill] sm:$0xff] %v14368_v48  ;;  %17867 = vst [vmem:[#allocation27_spill] sm:$0xff] %v14386_v0 }
 0xf20   : > { %v5556_v24 = vpop.permute.xlu0 %5555  ;;  %6114 = vrot.lane.b32.xlu1 %v14314_v53, %s17843_s21 }
 0xf21   : > { %v14376_v44 = vsel %vm5589_vm13, %v14126_v31, %v5556_v24  ;;  %v14379_v51 = vsel %vm5589_vm13, %v5556_v24, %v5558_v58 }
 0xf22   : > { %5653 = vst [vmem:[#allocation5 + $0x138] sm:$0xff] %v14379_v51  ;;  %v14382_v3 = vpop.permute.xlu1 %6006  ;;  %6112 = vrot.lane.b32.xlu0 %v14311_v13, %s17843_s21 }
 0xf23   : > { %17866 = vst [vmem:[#allocation26_spill] sm:$0xff] %v14382_v3 }
 0xf24   : > { %v5560_v38 = vpop.permute.xlu0 %5559  ;;  %6118 = vrot.lane.b32.xlu1 %v14386_v0, %s17843_s21 }
 0xf25   : > { %v14391_v21 = vsel %vm5589_vm13, %v5558_v58, %v5560_v38  ;;  %5655 = vst.msk [vmem:[#allocation5 + $0x148] sm:$0xff] %vm5482_vm11, %v5560_v38 }
 0xf26   : > { %17868 = vst [vmem:[#allocation28_spill] sm:$0xff] %v14391_v21  ;;  %v5717_v31 = vpop.permute.xlu1 %5716  ;;  %6056 = vrot.lane.b32.xlu0 %v14279_v17, %s17843_s21 }
 0xf28   : > { %v5715_v24 = vpop.permute.xlu0 %5714  ;;  %6058 = vrot.lane.b32.xlu1 %v14333_v29, %s17843_s21 }
 0xf29   : > { %v14400_v3 = vsel %vm5738_vm12, %v14153_v36, %v5715_v24  ;;  %v14403_v48 = vsel %vm5738_vm12, %v5715_v24, %v5717_v31 }
 0xf2a   : > { %v5721_v20 = vpop.permute.xlu1 %5720  ;;  %6116 = vrot.lane.b32.xlu0 %v14323_v49, %s17843_s21 }
 0xf2c   : > { %v5719_v58 = vpop.permute.xlu0 %5718  ;;  %v14407_v38 = vld [vmem:[#allocation5 + $0x148] sm:$0xff] }
 0xf2d   : > { %17869 = vst [vmem:[#allocation29_spill] sm:$0xff] %v14407_v38  ;;  %v14410_v0 = vsel %vm5738_vm12, %v5717_v31, %v5719_v58  ;;  %v5759_v17 = vsel %vm5738_vm12, %v5719_v58, %v5721_v20  ;;  %6076 = vrot.lane.b32.xlu1 %v14407_v38, %s17843_s21  ;;  %v14434_v31 = vld [vmem:[#allocation5 + $0x228] sm:$0xff] }
 0xf2e   : > { %17870 = vst [vmem:[#allocation30_spill] sm:$0xff] %v14410_v0  ;;  %5815 = vst.msk [vmem:[#allocation5 + $0x260] sm:$0xff] %vm5482_vm11, %v5759_v17  ;;  %v14416_v36 = vpop.permute.xlu1 %6016  ;;  %6060 = vrot.lane.b32.xlu0 %v14336_v33, %s17843_s21 }
 0xf2f   : > { %17871 = vst [vmem:[#allocation31_spill] sm:$0xff] %v14416_v36  ;;  %17875 = vst [vmem:[#allocation35_spill] sm:$0xff] %v14434_v31 }
 0xf30   : > { %v5572_v24 = vpop.permute.xlu0 %5571 }
 0xf31   : > { %v14421_v49 = vsel %vm5589_vm13, %v5570_v27, %v5572_v24  ;;  %v14424_v29 = vsel %vm5589_vm13, %v5572_v24, %v5574_v4  ;;  %6128 = vrot.lane.b32.xlu1 %v14354_v39, %s17843_s21 }
 0xf32   : > { %17872 = vst [vmem:[#allocation32_spill] sm:$0xff] %v14424_v29  ;;  %v14428_v20 = vpop.permute.xlu1 %6020  ;;  %6126 = vrot.lane.b32.xlu0 %v14351_v56, %s17843_s21 }
 0xf33   : > { %17873 = vst [vmem:[#allocation33_spill] sm:$0xff] %v14428_v20  ;;  %v14451_v20 = vld [vmem:[#allocation5 + $0x180] sm:$0xff] }
 0xf34   : > { %v14432_v17 = vpop.permute.xlu0 %6004  ;;  %17876 = vst [vmem:[#allocation36_spill] sm:$0xff] %v14451_v20 }
 0xf35   : > { %17874 = vst [vmem:[#allocation34_spill] sm:$0xff] %v14432_v17  ;;  %6132 = vrot.lane.b32.xlu1 %v14434_v31, %s17843_s21 }
 0xf36   : > { %v5733_v27 = vpop.permute.xlu1 %5732  ;;  %6070 = vrot.lane.b32.xlu0 %v14376_v44, %s17843_s21 }
 0xf38   : > { %v5731_v4 = vpop.permute.xlu0 %5730 }
 0xf39   : > { %v14442_v58 = vsel %vm5738_vm12, %v14217_v25, %v5731_v4  ;;  %v14445_v24 = vsel %vm5738_vm12, %v5731_v4, %v5733_v27  ;;  %6072 = vrot.lane.b32.xlu1 %v14379_v51, %s17843_s21 }
 0xf3a   : > { %v5737_v33 = vpop.permute.xlu1 %5736  ;;  %6130 = vrot.lane.b32.xlu0 %v14364_v18, %s17843_s21 }
 0xf3c   : > { %v5735_v17 = vpop.permute.xlu0 %5734 }
 0xf3d   : > { %v14454_v36 = vsel %vm5738_vm12, %v5733_v27, %v5735_v17  ;;  %v5766_v38 = vsel %vm5738_vm12, %v5735_v17, %v5737_v33  ;;  %6090 = vrot.lane.b32.xlu1 %v14451_v20, %s17843_s21  ;;  %v14475_v17 = vld [vmem:[#allocation5 + $0x260] sm:$0xff] }
 0xf3e   : > { %17877 = vst [vmem:[#allocation37_spill] sm:$0xff] %v14454_v36  ;;  %5822 = vst.msk [vmem:[#allocation5 + $0x298] sm:$0xff] %vm5482_vm11, %v5766_v38  ;;  %v5586_v25 = vpop.permute.xlu1 %5585  ;;  %6074 = vrot.lane.b32.xlu0 %v14391_v21, %s17843_s21 }
 0xf3f   : > { %17879 = vst [vmem:[#allocation39_spill] sm:$0xff] %v14475_v17 }
 0xf40   : > { %v5584_v4 = vpop.permute.xlu0 %5583 }
 0xf41   : > { %v14464_v18 = vsel %vm5589_vm13, %v14242_v55, %v5584_v4  ;;  %v14467_v31 = vsel %vm5589_vm13, %v5584_v4, %v5586_v25  ;;  %6142 = vrot.lane.b32.xlu1 %v14403_v48, %s17843_s21 }
 0xf42   : > { %v14471_v33 = vpop.permute.xlu1 %6030  ;;  %6140 = vrot.lane.b32.xlu0 %v14400_v3, %s17843_s21 }
 0xf43   : > { %17878 = vst [vmem:[#allocation38_spill] sm:$0xff] %v14471_v33 }
 0xf44   : > { %v5588_v38 = vpop.permute.xlu0 %5587 }
 0xf45   : > { %v14478_v27 = vsel %vm5589_vm13, %v5586_v25, %v5588_v38  ;;  %5669 = vst.msk [vmem:[#allocation5 + $0x1b8] sm:$0xff] %vm5482_vm11, %v5588_v38  ;;  %6146 = vrot.lane.b32.xlu1 %v14475_v17, %s17843_s21 }
 0xf46   : > { %17880 = vst [vmem:[#allocation40_spill] sm:$0xff] %v14478_v27  ;;  %v14483_v55 = vpop.permute.xlu1 %6034  ;;  %6084 = vrot.lane.b32.xlu0 %v14344_v8, %s17843_s21 }
 0xf47   : > { %17881 = vst [vmem:[#allocation41_spill] sm:$0xff] %v14483_v55 }
 0xf48   : > { %v14487_v4 = vpop.permute.xlu0 %6018 }
 0xf49   : > { %17882 = vst [vmem:[#allocation42_spill] sm:$0xff] %v14487_v4  ;;  %6086 = vrot.lane.b32.xlu1 %v14421_v49, %s17843_s21 }
 0xf4a   : > { %v14491_v21 = vpop.permute.xlu1 %6044  ;;  %6144 = vrot.lane.b32.xlu0 %v14410_v0, %s17843_s21  ;;  %v14515_v0 = vld [vmem:[#allocation5 + $0x298] sm:$0xff] }
 0xf4b   : > { %17883 = vst [vmem:[#allocation43_spill] sm:$0xff] %v14491_v21  ;;  %17888 = vst [vmem:[#allocation48_spill] sm:$0xff] %v14515_v0 }
 0xf4c   : > { %v14495_v25 = vpop.permute.xlu0 %6032  ;;  %v14497_v38 = vld [vmem:[#allocation5 + $0x1b8] sm:$0xff] }
 0xf4d   : > { %17884 = vst [vmem:[#allocation44_spill] sm:$0xff] %v14495_v25  ;;  %17885 = vst [vmem:[#allocation45_spill] sm:$0xff] %v14497_v38  ;;  %6104 = vrot.lane.b32.xlu1 %v14497_v38, %s17843_s21 }
 0xf4e   : > { %v14501_v55 = vpop.permute.xlu1 %6048  ;;  %6088 = vrot.lane.b32.xlu0 %v14424_v29, %s17843_s21 }
 0xf4f   : > { %17886 = vst [vmem:[#allocation46_spill] sm:$0xff] %v14501_v55 }
 0xf50   : > { %v14505_v4 = vpop.permute.xlu0 %6046 }
 0xf51   : > { %17887 = vst [vmem:[#allocation47_spill] sm:$0xff] %v14505_v4  ;;  %6156 = vrot.lane.b32.xlu1 %v14445_v24, %s17843_s21 }
 0xf52   : > { %v14509_v33 = vpop.permute.xlu1 %6108  ;;  %6154 = vrot.lane.b32.xlu0 %v14442_v58, %s17843_s21 }
 0xf54   : > { %v14513_v25 = vpop.permute.xlu0 %6110 }
 0xf55   : > { %6160 = vrot.lane.b32.xlu1 %v14515_v0, %s17843_s21 }
 0xf56   : > { %v14519_v55 = vpop.permute.xlu1 %6106  ;;  %6098 = vrot.lane.b32.xlu0 %v14464_v18, %s17843_s21 }
 0xf58   : > { %v14523_v29 = vpop.permute.xlu0 %6054 }
 0xf59   : > { %7022 = vrot.lane.b32.xlu1 %v14109_v47, %s17844_s25 }
 0xf5a   : > { %v14527_v4 = vpop.permute.xlu1 %6052  ;;  %6158 = vrot.lane.b32.xlu0 %v14454_v36, %s17843_s21 }
 0xf5c   : > { %v6123_v21 = vpop.permute.xlu0 %6122 }
 0xf5d   : > { %6100 = vrot.lane.b32.xlu1 %v14467_v31, %s17843_s21 }
 0xf5e   : > { %v14533_v0 = vpop.permute.xlu1 %6050  ;;  %7018 = vrot.lane.b32.xlu0 %v14100_v30, %s17844_s25 }
 0xf60   : > { %v6121_v20 = vpop.permute.xlu0 %6120 }
 0xf61   : > { %7006 = vrot.lane.b32.xlu1 %v14049_v9, %s17844_s25 }
 0xf62   : > { %v14539_v38 = vpop.permute.xlu1 %6124  ;;  %6102 = vrot.lane.b32.xlu0 %v14478_v27, %s17843_s21  ;;  %s10222_s21 = smul.u32 7, %s17957_s24 }
 0xf64   : > { %v14543_v47 = vpop.permute.xlu0 %6066  ;;  %s629_s29 = scalar_lea.vmem %s17749_s20, %s10222_s21 }
 0xf65   : > { %7004 = vrot.lane.b32.xlu1 %v14055_v2, %s17844_s25 }
 0xf66   : > { %v14547_v36 = vpop.permute.xlu1 %6068  ;;  %7008 = vrot.lane.b32.xlu0 %v14064_v14, %s17844_s25 }
 0xf68   : > { %v14551_v30 = vpop.permute.xlu0 %6064 }
 0xf69   : > { %6994 = vrot.lane.b32.xlu1 %v14248_v15, %s17844_s25 }
 0xf6a   : > { %v6137_v9 = vpop.permute.xlu1 %6136  ;;  %6992 = vrot.lane.b32.xlu0 %v14234_v22, %s17844_s25 }
 0xf6c   : > { %v14557_v27 = vpop.permute.xlu0 %7020 }
 0xf6d   : > { %17889 = vst [vmem:[#allocation49_spill] sm:$0xff] %v14557_v27  ;;  %6978 = vrot.lane.b32.xlu1 %v14170_v40, %s17844_s25 }
 0xf6e   : > { %v6135_v2 = vpop.permute.xlu1 %6134  ;;  %6990 = vrot.lane.b32.xlu0 %v14231_v1, %s17844_s25 }
 0xf70   : > { %v14563_v17 = vpop.permute.xlu0 %6138 }
 0xf71   : > { %6976 = vrot.lane.b32.xlu1 %v14167_v42, %s17844_s25 }
 0xf72   : > { %v6081_v14 = vpop.permute.xlu1 %6080  ;;  %6980 = vrot.lane.b32.xlu0 %v14186_v10, %s17844_s25 }
 0xf74   : > { %v14569_v15 = vpop.permute.xlu0 %6082 }
 0xf75   : > { %6966 = vrot.lane.b32.xlu1 %v14131_v54, %s17844_s25 }
 0xf76   : > { %v6079_v22 = vpop.permute.xlu1 %6078  ;;  %6964 = vrot.lane.b32.xlu0 %v14117_v60, %s17844_s25 }
 0xf78   : > { %v14575_v40 = vpop.permute.xlu0 %7036 }
 0xf79   : > { %17890 = vst [vmem:[#allocation50_spill] sm:$0xff] %v14575_v40  ;;  %6950 = vrot.lane.b32.xlu1 %v14072_v35, %s17844_s25  ;;  %v14791_v40 = vld [vmem:[#allocation5 + $0x18] sm:$0xff] }
 0xf7a   : > { %v14579_v1 = vpop.permute.xlu1 %7034  ;;  %6962 = vrot.lane.b32.xlu0 %v14123_v6, %s17844_s25 }
 0xf7b   : > { %17891 = vst [vmem:[#allocation51_spill] sm:$0xff] %v14579_v1 }
 0xf7c   : > { %v6151_v42 = vpop.permute.xlu0 %6150 }
 0xf7d   : > { %6948 = vrot.lane.b32.xlu1 %v14078_v43, %s17844_s25 }
 0xf7e   : > { %v14585_v10 = vpop.permute.xlu1 %7032  ;;  %6952 = vrot.lane.b32.xlu0 %v14086_v28, %s17844_s25  ;;  %v6223_v28 = vsel %vm3424_vm7, %v6137_v9, %v14563_v17 }
 0xf7f   : > { %17892 = vst [vmem:[#allocation52_spill] sm:$0xff] %v14585_v10  ;;  %v14786_v10 = vld [vmem:[#allocation5 + $0x20] sm:$0xff] }
 0xf80   : > { %v6149_v60 = vpop.permute.xlu0 %6148 }
 0xf81   : > { %6938 = vrot.lane.b32.xlu1 %v13906_v59, %s17844_s25  ;;  %v6228_v6 = vsel %vm3424_vm7, %v6149_v60, %v6151_v42  ;;  %v6222_v59 = vsel %vm3424_vm7, %v6135_v2, %v6137_v9  ;;  %v6211_v9 = vsel %vm3424_vm7, %v14509_v33, %v14513_v25  ;;  %v6193_v60 = vsel %vm3424_vm7, %v14543_v47, %v14547_v36 }
 0xf82   : > { %v14591_v54 = vpop.permute.xlu1 %6152  ;;  %6936 = vrot.lane.b32.xlu0 %v13912_v62, %s17844_s25  ;;  %v6217_v62 = vsel %vm3424_vm7, %v6123_v21, %v14539_v38 }
 0xf83   : > { %v6229_v35 = vsel %vm3424_vm7, %v6151_v42, %v14591_v54  ;;  %v6216_v42 = vsel %vm3424_vm7, %v6121_v20, %v6123_v21 }
 0xf84   : > { %6329 = vmatprep.subr.mxu1 %v6229_v35  ;;  %v6095_v43 = vpop.permute.xlu0 %6094 }
 0xf85   : > { %6922 = vrot.lane.b32.xlu1 %v13895_v16, %s17844_s25  ;;  %6330 = vmatpush1.msra.mxu1 %v6228_v6  ;;  %v14664_v6 = vld [vmem:[#allocation5] sm:$0xff] }
 0xf86   : > { %v14603_v27 = vpop.permute.xlu1 %6096  ;;  %6934 = vrot.lane.b32.xlu0 %v13904_v46, %s17844_s25  ;;  %6331 = vmatprep.subr.mxu1 %v6223_v28  ;;  %v6210_v46 = vsel %vm3424_vm7, %v14519_v55, %v14509_v33  ;;  %v6199_v33 = vsel %vm3424_vm7, %v6081_v14, %v14569_v15  ;;  %v6198_v55 = vsel %vm3424_vm7, %v6079_v22, %v6081_v14 }
 0xf87   : > { %6332 = vmatpush1.msra.mxu1 %v6222_v59  ;;  %v6205_v21 = vsel %vm3424_vm7, %v6095_v43, %v14603_v27  ;;  %v6186_v14 = vsel %vm3424_vm7, %v14533_v0, %v14527_v4  ;;  %v6168_v28 = vsel %vm3424_vm7, %v14201_v41, %v14255_v32  ;;  %v17896_v41 = vld [vmem:[#allocation10_spill] sm:$0xff] }
 0xf88   : > { %6333 = vmatprep.subr.mxu1 %v6217_v62  ;;  %v6093_v16 = vpop.permute.xlu0 %6092  ;;  %17903 = vst [vmem:[#allocation10_spill] sm:$0xff] %v14786_v10 }
 0xf89   : > { %6920 = vrot.lane.b32.xlu1 %v13888_v26, %s17844_s25  ;;  %6334 = vmatpush1.msra.mxu1 %v6216_v42  ;;  %v6204_v26 = vsel %vm3424_vm7, %v6093_v16, %v6095_v43  ;;  %v17897_v42 = vmov 0.0  }
 0xf8a   : > { %v14618_v2 = vpop.permute.xlu1 %7050  ;;  %6924 = vrot.lane.b32.xlu0 %v13890_v34, %s17844_s25  ;;  %6335 = vmatprep.subr.mxu1 %v6211_v9 }
 0xf8b   : > { %17893 = vst [vmem:[#allocation53_spill] sm:$0xff] %v14618_v2  ;;  %6336 = vmatpush1.msra.mxu1 %v6210_v46  ;;  %v17904_v2 = vld [vmem:[#allocation39_spill] sm:$0xff] }
 0xf8c   : > { %6337 = vmatprep.subr.mxu1 %v6205_v21  ;;  %v14625_v20 = vpop.permute.xlu0 %7048 }
 0xf8d   : > { %17894 = vst [vmem:[#allocation54_spill] sm:$0xff] %v14625_v20  ;;  %6910 = vrot.lane.b32.xlu1 %v13874_v37, %s17844_s25  ;;  %6338 = vmatpush1.msra.mxu1 %v6204_v26  ;;  %v6192_v37 = vsel %vm3424_vm7, %v14551_v30, %v14543_v47  ;;  %v6180_v30 = vsel %vm3424_vm7, %v14289_v5, %v14295_v19 }
 0xf8e   : > { %v14632_v34 = vpop.permute.xlu1 %6062  ;;  %6908 = vrot.lane.b32.xlu0 %v13879_v50, %s17844_s25  ;;  %6339 = vmatprep.subr.mxu1 %v6199_v33  ;;  %v6187_v50 = vsel %vm3424_vm7, %v14527_v4, %v14523_v29  ;;  %v14673_v4 = vld [vmem:[#allocation5 + $0x10] sm:$0xff]  ;;  %v6174_v5 = vsel %vm3424_vm7, %v14251_v7, %v14259_v61  ;;  %v6163_v7 = vsel %vm3424_vm7, %v14189_v23, %v14136_v57 }
 0xf8f   : > { %6340 = vmatpush1.msra.mxu1 %v6198_v55  ;;  %v17898_v55 = vld [vmem:[#allocation21_spill] sm:$0xff] }
 0xf90   : > { %6341 = vmatprep.subr.mxu1 %v6193_v60  ;;  %v14642_v35 = vpop.permute.xlu0 %7046 }
 0xf91   : > { %17895 = vst [vmem:[#allocation55_spill] sm:$0xff] %v14642_v35  ;;  %6894 = vrot.lane.b32.xlu1 %v13866_v45, %s17844_s25  ;;  %6342 = vmatpush1.msra.mxu1 %v6192_v37  ;;  %v6181_v45 = vsel %vm3424_vm7, %v14295_v19, %v14267_v12  ;;  %v6169_v19 = vsel %vm3424_vm7, %v14255_v32, %v14238_v52  ;;  %v17899_v37 = vld [vmem:[#allocation9_spill] sm:$0xff] }
 0xf92   : > { %v14652_v22 = vpop.permute.xlu1 %6114  ;;  %6906 = vrot.lane.b32.xlu0 %v13872_v63, %s17844_s25  ;;  %6343 = vmatprep.subr.mxu1 %v6187_v50  ;;  %v6175_v63 = vsel %vm3424_vm7, %v14259_v61, %v14271_v11  ;;  %v14696_v61 = vld [vmem:[%s17746_s17 + $0x1] sm:$0x1]  ;;  %v6162_v32 = vsel %vm3424_vm7, %v17896_v41, %v14189_v23 }
 0xf93   : > { %6344 = vmatpush1.msra.mxu1 %v6186_v14  ;;  %v17900_v14 = vld [vmem:[#allocation17_spill] sm:$0xff] }
 0xf94   : > { %6345 = vmatprep.subr.mxu1 %v6181_v45  ;;  %v14659_v47 = vpop.permute.xlu0 %6112 }
 0xf95   : > { %6892 = vrot.lane.b32.xlu1 %v14664_v6, %s17844_s25  ;;  %6346 = vmatpush1.msra.mxu1 %v6180_v30  ;;  %v17901_v30 = vld [vmem:[#allocation8_spill] sm:$0xff] }
 0xf96   : > { %v14671_v0 = vpop.permute.xlu1 %6118  ;;  %6896 = vrot.lane.b32.xlu0 %v14673_v4, %s17844_s25  ;;  %6347 = vmatprep.subr.mxu1 %v6175_v63  ;;  %v14762_v63 = vld [vmem:[#allocation5 + $0xc0] sm:$0xff] }
 0xf97   : > { %6348 = vmatpush1.msra.mxu1 %v6174_v5 }
 0xf98   : > { %6349 = vmatprep.subr.mxu1 %v6169_v19  ;;  %v14683_v43 = vpop.permute.xlu0 %6056 }
 0xf99   : > { %7040 = vrot.lane.b32.xlu1 %v14403_v48, %s17844_s25  ;;  %6350 = vmatpush1.msra.mxu1 %v6168_v28  ;;  %v14770_v28 = vld [vmem:[#allocation5 + $0x88] sm:$0xff] }
 0xf9a   : > { %v14698_v59 = vpop.permute.xlu1 %6058  ;;  %7052 = vrot.lane.b32.xlu0 %v14442_v58, %s17844_s25  ;;  %6351 = vmatprep.subr.mxu1 %v6163_v7 }
 0xf9b   : > { %6352 = vmatpush1.msra.mxu1 %v6162_v32  ;;  %v17902_v32 = vld [vmem:[#allocation7_spill] sm:$0xff] }
 0xf9c   : > { %v14705_v62 = vpop.permute.xlu0 %6116  ;;  %9757 = vmatmul.mubr.msk.f32.vlgmr.msra.gmra.mxu1 %vm3038_vm5, %v14696_v61 }
 0xf9d   : > { %7026 = vrot.lane.b32.xlu1 %v14354_v39, %s17844_s25  ;;  %6527 = vmatprep.mubr.f32.mxu1 %v17897_v42 }
 0xf9e   : > { %7038 = vrot.lane.b32.xlu0 %v14400_v3, %s17844_s25 }
 0xf9f   : > { %v14714_v16 = vpop.permute.xlu1 %6076 }
 0xfa0   : > { %v14716_v9 = vpop.permute.xlu0 %6060 }
 0xfa1   : > { %7012 = vrot.lane.b32.xlu1 %v14314_v53, %s17844_s25 }
 0xfa2   : > { %7024 = vrot.lane.b32.xlu0 %v14351_v56, %s17844_s25 }
 0xfa3   : > { %v14722_v23 = vpop.permute.xlu1 %6128 }
 0xfa4   : > { %v6127_v46 = vpop.permute.xlu0 %6126 }
 0xfa5   : > { %6984 = vrot.lane.b32.xlu1 %v14421_v49, %s17844_s25 }
 0xfa6   : > { %7010 = vrot.lane.b32.xlu0 %v14311_v13, %s17844_s25 }
 0xfa7   : > { %v14728_v21 = vpop.permute.xlu1 %6132 }
 0xfa8   : > { %v14730_v26 = vpop.permute.xlu0 %6070 }
 0xfa9   : > { %6970 = vrot.lane.b32.xlu1 %v14379_v51, %s17844_s25 }
 0xfaa   : > { %6996 = vrot.lane.b32.xlu0 %v14464_v18, %s17844_s25 }
 0xfab   : > { %v14736_v53 = vpop.permute.xlu1 %6072 }
 0xfac   : > { %v14738_v33 = vpop.permute.xlu0 %6130 }
 0xfad   : > { %6956 = vrot.lane.b32.xlu1 %v17898_v55, %s17844_s25  ;;  %v14780_v55 = vld [vmem:[#allocation5 + $0x50] sm:$0xff] }
 0xfae   : > { %6982 = vrot.lane.b32.xlu0 %v14344_v8, %s17844_s25 }
 0xfaf   : > { %v14744_v13 = vpop.permute.xlu1 %6090 }
 0xfb0   : > { %v14746_v60 = vpop.permute.xlu0 %6074 }
 0xfb1   : > { %6942 = vrot.lane.b32.xlu1 %v17899_v37, %s17844_s25 }
 0xfb2   : > { %6968 = vrot.lane.b32.xlu0 %v14376_v44, %s17844_s25 }
 0xfb3   : > { %v6143_v51 = vpop.permute.xlu1 %6142 }
 0xfb4   : > { %v6141_v50 = vpop.permute.xlu0 %6140 }
 0xfb5   : > { %7054 = vrot.lane.b32.xlu1 %v14445_v24, %s17844_s25  ;;  %v6225_v35 = vsel %vm3424_vm7, %v6141_v50, %v6143_v51 }
 0xfb6   : > { %6954 = vrot.lane.b32.xlu0 %v17900_v14, %s17844_s25 }
 0xfb7   : > { %v14756_v45 = vpop.permute.xlu1 %6146 }
 0xfb8   : > { %v14758_v8 = vpop.permute.xlu0 %6084 }
 0xfb9   : > { %6928 = vrot.lane.b32.xlu1 %v17901_v30, %s17844_s25 }
 0xfba   : > { %6940 = vrot.lane.b32.xlu0 %v14762_v63, %s17844_s25 }
 0xfbb   : > { %v14766_v5 = vpop.permute.xlu1 %6086 }
 0xfbc   : > { %v6145_v19 = vpop.permute.xlu0 %6144 }
 0xfbd   : > { %6998 = vrot.lane.b32.xlu1 %v14467_v31, %s17844_s25 }
 0xfbe   : > { %6926 = vrot.lane.b32.xlu0 %v14770_v28, %s17844_s25 }
 0xfbf   : > { %v14774_v7 = vpop.permute.xlu1 %6104 }
 0xfc0   : > { %v14776_v41 = vpop.permute.xlu0 %6088 }
 0xfc1   : > { %6914 = vrot.lane.b32.xlu1 %v17902_v32, %s17844_s25 }
 0xfc2   : > { %6912 = vrot.lane.b32.xlu0 %v14780_v55, %s17844_s25 }
 0xfc3   : > { %v6157_v37 = vpop.permute.xlu1 %6156 }
 0xfc4   : > { %v6155_v14 = vpop.permute.xlu0 %6154 }
 0xfc5   : > { %v6230_v30 = vsel %vm3424_vm7, %v14591_v54, %v6155_v14  ;;  %6900 = vrot.lane.b32.xlu1 %v14786_v10, %s17844_s25  ;;  %v6231_v1 = vsel %vm3424_vm7, %v6155_v14, %v6157_v37  ;;  %v6224_v54 = vsel %vm3424_vm7, %v14563_v17, %v6141_v50  ;;  %v6219_v14 = vsel %vm3424_vm7, %v6127_v46, %v14722_v23  ;;  %v17905_v10 = vld [vmem:[#allocation35_spill] sm:$0xff] }
 0xfc6   : > { %6898 = vrot.lane.b32.xlu0 %v14791_v40, %s17844_s25  ;;  %6400 = vmatprep.subr.mxu0 %v6231_v1  ;;  %v6218_v1 = vsel %vm3424_vm7, %v14539_v38, %v6127_v46  ;;  %v6213_v17 = vsel %vm3424_vm7, %v14659_v47, %v14652_v22  ;;  %v6212_v50 = vsel %vm3424_vm7, %v14513_v25, %v14659_v47  ;;  %v17907_v46 = vld [vmem:[#allocation45_spill] sm:$0xff] }
 0xfc7   : > { %v14795_v32 = vpop.permute.xlu1 %6160  ;;  %6401 = vmatpush1.msra.mxu0 %v6230_v30 }
 0xfc8   : > { %6402 = vmatprep.subr.mxu0 %v6225_v35  ;;  %v6099_v20 = vpop.permute.xlu0 %6098 }
 0xfc9   : > { %7044 = vrot.lane.b32.xlu1 %v17904_v2, %s17844_s25  ;;  %6403 = vmatpush1.msra.mxu0 %v6224_v54 }
 0xfca   : > { %7030 = vrot.lane.b32.xlu0 %v17905_v10, %s17844_s25  ;;  %6404 = vmatprep.subr.mxu0 %v6219_v14  ;;  %v17906_v14 = vld [vmem:[#allocation27_spill] sm:$0xff] }
 0xfcb   : > { %v14808_v30 = vpop.permute.xlu1 %7022  ;;  %6405 = vmatpush1.msra.mxu0 %v6218_v1 }
 0xfcc   : > { %6406 = vmatprep.subr.mxu0 %v6213_v17  ;;  %v6159_v35 = vpop.permute.xlu0 %6158  ;;  %v6227_v17 = vsel %vm3424_vm7, %v6145_v19, %v14756_v45 }
 0xfcd   : > { %v6232_v54 = vsel %vm3424_vm7, %v6157_v37, %v6159_v35  ;;  %7016 = vrot.lane.b32.xlu1 %v17906_v14, %s17844_s25  ;;  %6407 = vmatpush1.msra.mxu0 %v6212_v50  ;;  %v6233_v38 = vsel %vm3424_vm7, %v6159_v35, %v14795_v32  ;;  %v6226_v37 = vsel %vm3424_vm7, %v6143_v51, %v6145_v19  ;;  %v17908_v50 = vld [vmem:[#allocation36_spill] sm:$0xff] }
 0xfce   : > { %7002 = vrot.lane.b32.xlu0 %v17907_v46, %s17844_s25  ;;  %6471 = vmatprep.subr.mxu1 %v6233_v38  ;;  %v6206_v35 = vsel %vm3424_vm7, %v14603_v27, %v6099_v20  ;;  %v6221_v14 = vsel %vm3424_vm7, %v14738_v33, %v14728_v21  ;;  %v6220_v38 = vsel %vm3424_vm7, %v14722_v23, %v14738_v33 }
 0xfcf   : > { %v6101_v1 = vpop.permute.xlu1 %6100  ;;  %6472 = vmatpush1.msra.mxu1 %v6232_v54  ;;  %v17909_v54 = vld [vmem:[#allocation48_spill] sm:$0xff]  ;;  %v6201_v19 = vsel %vm3424_vm7, %v14758_v8, %v14766_v5  ;;  %v6200_v27 = vsel %vm3424_vm7, %v14569_v15, %v14758_v8  ;;  %v6195_v23 = vsel %vm3424_vm7, %v14730_v26, %v14736_v53  ;;  %v17910_v15 = vld [vmem:[#allocation23_spill] sm:$0xff]  ;;  %v6214_v8 = vsel %vm3424_vm7, %v14652_v22, %v14705_v62 }
 0xfd0   : > { %6473 = vmatprep.subr.mxu1 %v6227_v17  ;;  %v14825_v25 = vpop.permute.xlu0 %7018  ;;  %v6207_v47 = vsel %vm3424_vm7, %v6099_v20, %v6101_v1  ;;  %v6215_v20 = vsel %vm3424_vm7, %v14705_v62, %v14671_v0  ;;  %v6188_v22 = vsel %vm3424_vm7, %v14523_v29, %v14683_v43  ;;  %v17915_v29 = vld [vmem:[#allocation13_spill] sm:$0xff] }
 0xfd1   : > { %6988 = vrot.lane.b32.xlu1 %v17908_v50, %s17844_s25  ;;  %6408 = vmatprep.subr.mxu0 %v6207_v47  ;;  %v6194_v50 = vsel %vm3424_vm7, %v14547_v36, %v14730_v26  ;;  %v6203_v36 = vsel %vm3424_vm7, %v14776_v41, %v14744_v13  ;;  %v17913_v26 = vld [vmem:[#allocation43_spill] sm:$0xff] }
 0xfd2   : > { %6474 = vmatpush1.msra.mxu1 %v6226_v37  ;;  %7058 = vrot.lane.b32.xlu0 %v17909_v54, %s17844_s25  ;;  %v17911_v37 = vld [vmem:[#allocation29_spill] sm:$0xff] }
 0xfd3   : > { %6409 = vmatpush1.msra.mxu0 %v6206_v35  ;;  %6475 = vmatprep.subr.mxu1 %v6221_v14  ;;  %v7007_v51 = vpop.permute.xlu1 %7006  ;;  %v6189_v14 = vsel %vm3424_vm7, %v14683_v43, %v14698_v59 }
 0xfd4   : > { %6410 = vmatprep.subr.mxu0 %v6201_v19  ;;  %6476 = vmatpush1.msra.mxu1 %v6220_v38  ;;  %v6103_v17 = vpop.permute.xlu0 %6102  ;;  %v17914_v19 = vld [vmem:[#allocation19_spill] sm:$0xff] }
 0xfd5   : > { %6411 = vmatpush1.msra.mxu0 %v6200_v27  ;;  %6477 = vmatprep.subr.mxu1 %v6215_v20  ;;  %v6209_v33 = vsel %vm3424_vm7, %v6103_v17, %v14774_v7  ;;  %v6208_v47 = vsel %vm3424_vm7, %v6101_v1, %v6103_v17  ;;  %v6183_v27 = vsel %vm3424_vm7, %v17914_v19, %v17913_v26 }
 0xfd6   : > { %6960 = vrot.lane.b32.xlu1 %v17910_v15, %s17844_s25  ;;  %6412 = vmatprep.subr.mxu0 %v6195_v23  ;;  %v6202_v20 = vsel %vm3424_vm7, %v14766_v5, %v14776_v41  ;;  %v6182_v17 = vsel %vm3424_vm7, %v14267_v12, %v17914_v19  ;;  %v6197_v23 = vsel %vm3424_vm7, %v14746_v60, %v14714_v16  ;;  %v17918_v41 = vld [vmem:[#allocation38_spill] sm:$0xff] }
 0xfd7   : > { %6478 = vmatpush1.msra.mxu1 %v6214_v8  ;;  %6974 = vrot.lane.b32.xlu0 %v17911_v37, %s17844_s25  ;;  %v7005_v35 = vpop.permute.xlu1 %7004  ;;  %v6196_v5 = vsel %vm3424_vm7, %v14736_v53, %v14746_v60  ;;  %v6191_v53 = vsel %vm3424_vm7, %v14716_v9, %v14632_v34  ;;  %v17920_v60 = vld [vmem:[#allocation31_spill] sm:$0xff]  ;;  %v17921_v37 = vld [vmem:[#allocation16_spill] sm:$0xff] }
 0xfd8   : > { %6413 = vmatpush1.msra.mxu0 %v6194_v50  ;;  %6479 = vmatprep.subr.mxu1 %v6209_v33  ;;  %v14867_v1 = vsel %vm3804_vm8, %v7005_v35, %v7007_v51  ;;  %v14872_v38 = vpop.permute.xlu0 %7008  ;;  %v6171_v50 = vsel %vm3424_vm7, %v17921_v37, %v17920_v60  ;;  %v6170_v19 = vsel %vm3424_vm7, %v14238_v52, %v17921_v37 }
 0xfd9   : > { %17912 = vst [vmem:[#allocation21_spill] sm:$0xff] %v14872_v38  ;;  %6414 = vmatprep.subr.mxu0 %v6189_v14  ;;  %6480 = vmatpush1.msra.mxu1 %v6208_v47  ;;  %v14882_v62 = vsel %vm3804_vm8, %v7007_v51, %v14872_v38  ;;  %v17917_v51 = vld [vmem:[#allocation30_spill] sm:$0xff]  ;;  %v17922_v14 = vld [vmem:[#allocation11_spill] sm:$0xff]  ;;  %v10289_v38 = vld [vmem:[#allocation5 + $0x70] sm:$0xff] }
 0xfda   : > { %6415 = vmatpush1.msra.mxu0 %v6188_v22  ;;  %6481 = vmatprep.subr.mxu1 %v6203_v36  ;;  %v17919_v47 = vld [vmem:[#allocation18_spill] sm:$0xff]  ;;  %v6190_v22 = vsel %vm3424_vm7, %v14698_v59, %v14716_v9  ;;  %v17923_v36 = vld [vmem:[#allocation24_spill] sm:$0xff] }
 0xfdb   : > { %6946 = vrot.lane.b32.xlu1 %v17915_v29, %s17844_s25  ;;  %6416 = vmatprep.subr.mxu0 %v6183_v27  ;;  %v14892_v43 = vpop.permute.xlu1 %6994  ;;  %v6177_v15 = vsel %vm3424_vm7, %v17919_v47, %v17918_v41  ;;  %v6176_v12 = vsel %vm3424_vm7, %v14271_v11, %v17919_v47  ;;  %v17924_v27 = vld [vmem:[#allocation46_spill] sm:$0xff]  ;;  %v17927_v59 = vld [vmem:[#allocation12_spill] sm:$0xff]  ;;  %v17928_v47 = vld [vmem:[#allocation41_spill] sm:$0xff] }
 0xfdc   : > { %17916 = vst [vmem:[#allocation9_spill] sm:$0xff] %v14892_v43  ;;  %6482 = vmatpush1.msra.mxu1 %v6202_v20  ;;  %7042 = vrot.lane.b32.xlu0 %v17917_v51, %s17844_s25  ;;  %v6993_v33 = vpop.permute.xlu0 %6992  ;;  %v17925_v20 = vld [vmem:[#allocation47_spill] sm:$0xff]  ;;  %v6164_v52 = vsel %vm3424_vm7, %v14136_v57, %v17927_v59 }
 0xfdd   : > { %6417 = vmatpush1.msra.mxu0 %v6182_v17  ;;  %6483 = vmatprep.subr.mxu1 %v6197_v23  ;;  %v14910_v8 = vsel %vm3804_vm8, %v6993_v33, %v14892_v43  ;;  %v6185_v29 = vsel %vm3424_vm7, %v17925_v20, %v17924_v27  ;;  %v17926_v23 = vld [vmem:[#allocation25_spill] sm:$0xff] }
 0xfde   : > { %6418 = vmatprep.subr.mxu0 %v6177_v15  ;;  %6484 = vmatpush1.msra.mxu1 %v6196_v5  ;;  %v6165_v9 = vsel %vm3424_vm7, %v17927_v59, %v17926_v23  ;;  %v6184_v5 = vsel %vm3424_vm7, %v17913_v26, %v17925_v20  ;;  %v17929_v15 = vld [vmem:[#allocation44_spill] sm:$0xff]  ;;  %v10288_v43 = vld [vmem:[#allocation5 + $0x78] sm:$0xff] }
 0xfdf   : > { %6419 = vmatpush1.msra.mxu0 %v6176_v12  ;;  %6485 = vmatprep.subr.mxu1 %v6191_v53  ;;  %v6979_v35 = vpop.permute.xlu1 %6978  ;;  %v6178_v53 = vsel %vm3424_vm7, %v17918_v41, %v17929_v15  ;;  %v17932_v41 = vld [vmem:[#allocation33_spill] sm:$0xff] }
 0xfe0   : > { %6932 = vrot.lane.b32.xlu1 %v17922_v14, %s17844_s25  ;;  %6420 = vmatprep.subr.mxu0 %v6171_v50  ;;  %v6991_v11 = vpop.permute.xlu0 %6990  ;;  %v14957_v50 = vld [vmem:[#allocation5 + $0x68] sm:$0xff]  ;;  %v17931_v14 = vld [vmem:[#allocation37_spill] sm:$0xff] }
 0xfe1   : > { %6486 = vmatpush1.msra.mxu1 %v6190_v22  ;;  %7028 = vrot.lane.b32.xlu0 %v17923_v36, %s17844_s25  ;;  %v14935_v17 = vsel %vm3804_vm8, %v6991_v11, %v6993_v33  ;;  %v6179_v33 = vsel %vm3424_vm7, %v17929_v15, %v17928_v47  ;;  %v17933_v22 = vld [vmem:[#allocation42_spill] sm:$0xff]  ;;  %v17937_v15 = vld [vmem:[#allocation15_spill] sm:$0xff] }
 0xfe2   : > { %6421 = vmatpush1.msra.mxu0 %v6170_v19  ;;  %6487 = vmatprep.subr.mxu1 %v6185_v29  ;;  %v6173_v11 = vsel %vm3424_vm7, %v17933_v22, %v17932_v41  ;;  %v6172_v19 = vsel %vm3424_vm7, %v17920_v60, %v17933_v22  ;;  %v17935_v29 = vld [vmem:[#allocation34_spill] sm:$0xff]  ;;  %v17939_v22 = vld [vmem:[#allocation32_spill] sm:$0xff] }
 0xfe3   : > { %6422 = vmatprep.subr.mxu0 %v6165_v9  ;;  %6488 = vmatpush1.msra.mxu1 %v6184_v5  ;;  %v6977_v12 = vpop.permute.xlu1 %6976  ;;  %v14986_v5 = vld [vmem:[#allocation5 + $0x30] sm:$0xff] }
 0xfe4   : > { %6423 = vmatpush1.msra.mxu0 %v6164_v52  ;;  %6489 = vmatprep.subr.mxu1 %v6179_v33  ;;  %v14953_v37 = vsel %vm3804_vm8, %v6977_v12, %v6979_v35  ;;  %v14955_v26 = vpop.permute.xlu0 %6980  ;;  %v17936_v52 = vld [vmem:[#allocation20_spill] sm:$0xff]  ;;  %v10268_v12 = vld [vmem:[#allocation5 + $0x238] sm:$0xff] }
 0xfe5   : > { %17930 = vst [vmem:[#allocation17_spill] sm:$0xff] %v14955_v26  ;;  %6918 = vrot.lane.b32.xlu1 %v14957_v50, %s17844_s25  ;;  %6490 = vmatpush1.msra.mxu1 %v6178_v53  ;;  %v14963_v57 = vsel %vm3804_vm8, %v6979_v35, %v14955_v26  ;;  %v17934_v35 = vld [vmem:[#allocation26_spill] sm:$0xff] }
 0xfe6   : > { %10120 = vmatprep.subr.mxu0 %v17897_v42  ;;  %7056 = vrot.lane.b32.xlu0 %v17931_v14, %s17844_s25  ;;  %v6167_v59 = vsel %vm3424_vm7, %v17935_v29, %v17934_v35  ;;  %v8244_v26 = vld [vmem:[#allocation6] sm:$0x1] }
 0xfe7   : > { %9758 = vmatmul.mubr.msk.f32.vlgmr.msra.gmra.mxu0 %vm3038_vm5, %v14696_v61  ;;  %6491 = vmatprep.subr.mxu1 %v6173_v11  ;;  %v14976_v20 = vpop.permute.xlu1 %6966  ;;  %v10269_v11 = vld [vmem:[#allocation5 + $0x230] sm:$0xff] }
 0xfe8   : > { %10121 = vmatpush3.msra.mxu0 %v14795_v32  ;;  %6492 = vmatpush1.msra.mxu1 %v6172_v19  ;;  %v14982_v9 = vpop.permute.xlu0 %6964  ;;  %v6166_v32 = vsel %vm3424_vm7, %v17926_v23, %v17935_v29  ;;  %v17938_v23 = vld [vmem:[#allocation14_spill] sm:$0xff]  ;;  %v17940_v19 = vld [vmem:[#allocation40_spill] sm:$0xff] }
 0xfe9   : > { %10122 = vmatprep.subr.mxu0 %v17897_v42  ;;  %6493 = vmatprep.subr.mxu1 %v6167_v59  ;;  %v10270_v29 = vld [vmem:[#allocation5 + $0x200] sm:$0xff] }
 0xfea   : > { %10123 = vmatpush3.msra.mxu0 %v14756_v45  ;;  %6904 = vrot.lane.b32.xlu1 %v14986_v5, %s17844_s25 }
 0xfeb   : > { %6494 = vmatpush1.msra.mxu1 %v6166_v32  ;;  %10124 = vmatprep.subr.mxu0 %v17897_v42  ;;  %v14994_v60 = vpop.permute.xlu1 %6950  ;;  %v10272_v32 = vld [vmem:[#allocation5 + $0x1c8] sm:$0xff] }
 0xfec   : > { %7014 = vrot.lane.b32.xlu0 %v17936_v52, %s17844_s25  ;;  %9759 = vmatmul.mubr.msk.f32.vlgmr.msra.gmra.mxu1 %vm3038_vm5, %v14696_v61  ;;  %v6963_v45 = vpop.permute.xlu0 %6962 }
 0xfed   : > { %10125 = vmatpush3.msra.mxu0 %v14728_v21  ;;  %6615 = vmatprep.subr.mxu1 %v17937_v15  ;;  %v15004_v33 = vsel %vm3804_vm8, %v6963_v45, %v14982_v9  ;;  %v17941_v45 = vld [vmem:[#allocation22_spill] sm:$0xff]  ;;  %v17942_v15 = vld [vmem:[#allocation28_spill] sm:$0xff] }
 0xfee   : > { %10126 = vmatprep.subr.mxu0 %v17897_v42  ;;  %6616 = vmatpush1.msra.mxu1 %v17938_v23  ;;  %v10274_v23 = vld [vmem:[#allocation5 + $0x190] sm:$0xff] }
 0xfef   : > { %10127 = vmatpush3.msra.mxu0 %v14671_v0  ;;  %6617 = vmatprep.subr.mxu1 %v10268_v12  ;;  %v15009_v53 = vpop.permute.xlu1 %6948  ;;  %v10271_v0 = vld [vmem:[#allocation5 + $0x1f8] sm:$0xff] }
 0xff0   : > { %6986 = vrot.lane.b32.xlu1 %v17939_v22, %s17844_s25  ;;  %10128 = vmatprep.subr.mxu0 %v17897_v42  ;;  %v15014_v21 = vpop.permute.xlu0 %6952 }
 0xff1   : > { %6618 = vmatpush1.msra.mxu1 %v10269_v11  ;;  %7000 = vrot.lane.b32.xlu0 %v17940_v19, %s17844_s25 }
 0xff2   : > { %10129 = vmatpush3.msra.mxu0 %v14774_v7  ;;  %6619 = vmatprep.subr.mxu1 %v10270_v29  ;;  %v10273_v7 = vld [vmem:[#allocation5 + $0x1c0] sm:$0xff]  ;;  %v10276_v29 = vld [vmem:[#allocation5 + $0x158] sm:$0xff] }
 0xff3   : > { %10130 = vmatprep.subr.mxu0 %v17897_v42  ;;  %6620 = vmatpush1.msra.mxu1 %v10271_v0  ;;  %v15020_v59 = vpop.permute.xlu1 %6938  ;;  %v15037_v0 = vld [vmem:[#allocation5 + $0x98] sm:$0xff] }
 0xff4   : > { %10131 = vmatpush3.msra.mxu0 %v14744_v13  ;;  %6621 = vmatprep.subr.mxu1 %v10272_v32  ;;  %v15023_v52 = vpop.permute.xlu0 %6936  ;;  %v10275_v13 = vld [vmem:[#allocation5 + $0x188] sm:$0xff]  ;;  %v15042_v32 = vld [vmem:[#allocation5 + $0xd0] sm:$0xff] }
 0xff5   : > { %6958 = vrot.lane.b32.xlu1 %v17941_v45, %s17844_s25  ;;  %10132 = vmatprep.subr.mxu0 %v17897_v42 }
 0xff6   : > { %6622 = vmatpush1.msra.mxu1 %v10273_v7  ;;  %6972 = vrot.lane.b32.xlu0 %v17942_v15, %s17844_s25 }
 0xff7   : > { %10133 = vmatpush3.msra.mxu0 %v14714_v16  ;;  %6623 = vmatprep.subr.mxu1 %v10274_v23  ;;  %v15031_v12 = vpop.permute.xlu1 %6922  ;;  %v10278_v16 = vld [vmem:[#allocation5 + $0x150] sm:$0xff]  ;;  %v10281_v23 = vld [vmem:[#allocation5 + $0x118] sm:$0xff] }
 0xff8   : > { %10134 = vmatprep.subr.mxu0 %v17897_v42  ;;  %6624 = vmatpush1.msra.mxu1 %v10275_v13  ;;  %v15034_v11 = vpop.permute.xlu0 %6934  ;;  %v10282_v13 = vld [vmem:[#allocation5 + $0xe8] sm:$0xff] }
 0xff9   : > { %10135 = vmatpush3.msra.mxu0 %v14632_v34  ;;  %6625 = vmatprep.subr.mxu1 %v10276_v29  ;;  %v10280_v34 = vld [vmem:[#allocation5 + $0x120] sm:$0xff]  ;;  %v15053_v29 = vld [vmem:[#allocation5 + $0x28] sm:$0xff] }
 0xffa   : > { %6930 = vrot.lane.b32.xlu1 %v15037_v0, %s17844_s25  ;;  %10136 = vmatprep.subr.mxu0 %v17897_v42 }
 0xffb   : > { %6626 = vmatpush1.msra.mxu1 %v10278_v16  ;;  %6944 = vrot.lane.b32.xlu0 %v15042_v32, %s17844_s25  ;;  %v15046_v45 = vpop.permute.xlu1 %6920  ;;  %v10284_v16 = vld [vmem:[#allocation5 + $0xe0] sm:$0xff] }
 0xffc   : > { %10137 = vmatpush3.msra.mxu0 %v17924_v27  ;;  %6627 = vmatprep.subr.mxu1 %v10280_v34  ;;  %v15049_v7 = vpop.permute.xlu0 %6924  ;;  %v15060_v34 = vld [vmem:[#allocation5 + $0x60] sm:$0xff] }
 0xffd   : > { %10138 = vmatprep.subr.mxu0 %v17897_v42  ;;  %6628 = vmatpush1.msra.mxu1 %v10281_v23 }
 0xffe   : > { %10139 = vmatpush3.msra.mxu0 %v17928_v47  ;;  %6629 = vmatprep.subr.mxu1 %v10282_v13  ;;  %v10286_v47 = vld [vmem:[#allocation5 + $0xb0] sm:$0xff]  ;;  %v10287_v13 = vld [vmem:[#allocation5 + $0xa8] sm:$0xff] }
 0xfff   : > { %6902 = vrot.lane.b32.xlu1 %v15053_v29, %s17844_s25  ;;  %10140 = vmatprep.subr.mxu0 %v17897_v42  ;;  %v15058_v27 = vpop.permute.xlu1 %6910 }
0x1000   : > { %6630 = vmatpush1.msra.mxu1 %v10284_v16  ;;  %6916 = vrot.lane.b32.xlu0 %v15060_v34, %s17844_s25  ;;  %v15064_v23 = vpop.permute.xlu0 %6908 }
0x1001   : > { %10141 = vmatpush3.msra.mxu0 %v17932_v41  ;;  %6631 = vmatprep.subr.mxu1 %v10286_v47  ;;  %v10290_v47 = vld [vmem:[#allocation5 + $0x40] sm:$0xff] }
0x1002   : > { %10142 = vmatprep.subr.mxu0 %v17897_v42  ;;  %6632 = vmatpush1.msra.mxu1 %v10287_v13 }
0x1003   : > { %10143 = vmatpush3.msra.mxu0 %v17934_v35  ;;  %6633 = vmatprep.subr.mxu1 %v10288_v43  ;;  %v15069_v16 = vpop.permute.xlu1 %6894  ;;  %v10291_v35 = vld [vmem:[#allocation5 + $0x278] sm:$0xff] }
0x1004   : > { %17943 = vst [vmem:[#allocation8_spill] sm:$0xff] %v15069_v16  ;;  %10144 = vmatprep.mubr.msk.f32.mxu0 %vm10339_vm14, %v17897_v42  ;;  %6634 = vmatpush1.msra.mxu1 %v10289_v38  ;;  %v15073_v41 = vpop.permute.xlu0 %6906  ;;  %v10292_v43 = vld [vmem:[#allocation5 + $0x38] sm:$0xff]  ;;  %v10293_v16 = vld [vmem:[#allocation5 + $0x8] sm:$0xff] }
0x1005   : > { %6686 = vmatprep.subr.mxu0 %v14442_v58  ;;  %8247 = vperm.xlu0 %10243, %v8244_v26   ;;  %v15084_v58 = vld [vmem:[%s17746_s17] sm:$0x1] }
0x1006   : > { %10145 = vmatmul.mubr.msk.f32.vlgmr.msra.gmra.mxu0 %vm3038_vm5, %v14696_v61  ;;  %6635 = vmatprep.subr.mxu1 %v10290_v47  ;;  %v10294_v61 = vld [vmem:[#allocation5 + $0x240] sm:$0xff] }
0x1007   : > { %6687 = vmatpush1.msra.mxu0 %v10291_v35  ;;  %6636 = vmatpush1.msra.mxu1 %v10292_v43  ;;  %v15078_v13 = vpop.permute.xlu1 %6892 }
0x1008   : > { %6688 = vmatprep.subr.mxu0 %v14400_v3  ;;  %6637 = vmatprep.subr.mxu1 %v10293_v16  ;;  %v15086_v38 = vpop.permute.xlu0 %6896  ;;  %v10295_v3 = vld [vmem:[#allocation5 + $0x208] sm:$0xff]  ;;  %v10296_v16 = vld [vmem:[#allocation5 + $0x1d8] sm:$0xff] }
0x1009   : > { %6689 = vmatpush1.msra.mxu0 %v10294_v61  ;;  %6638 = vmatpush1.msra.mxu1 %v14664_v6  ;;  %v10297_v6 = vld [vmem:[#allocation5 + $0x1d0] sm:$0xff]  ;;  %v10301_v61 = vld [vmem:[#allocation5 + $0x1e8] sm:$0xff] }
0x100a   : > { %6671 = vmatprep.mubr.f32.mxu1 %v17897_v42  ;;  %6690 = vmatprep.subr.mxu0 %v14351_v56  ;;  %v10298_v56 = vld [vmem:[#allocation5 + $0x198] sm:$0xff] }
0x100b   : > { %9761 = vmatmul.mubr.msk.f32.vlgmr.msra.gmra.mxu1 %vm3038_vm5, %v15084_v58  ;;  %6691 = vmatpush1.msra.mxu0 %v10295_v3  ;;  %v15093_v26 = vpop.permute.xlu1 %7040 }
0x100c   : > { %6757 = vmatprep.subr.mxu1 %v17931_v14  ;;  %6692 = vmatprep.subr.mxu0 %v10296_v16  ;;  %v15096_v47 = vpop.permute.xlu0 %7052  ;;  %v10299_v14 = vld [vmem:[#allocation5 + $0x168] sm:$0xff] }
0x100d   : > { %6758 = vmatpush1.msra.mxu1 %v14445_v24  ;;  %6693 = vmatpush1.msra.mxu0 %v10297_v6  ;;  %v10300_v24 = vld [vmem:[#allocation5 + $0x160] sm:$0xff]  ;;  %v10307_v6 = vld [vmem:[#allocation5 + $0x138] sm:$0xff] }
0x100e   : > { %6759 = vmatprep.subr.mxu1 %v17917_v51  ;;  %6694 = vmatprep.subr.mxu0 %v14464_v18  ;;  %v10302_v18 = vld [vmem:[#allocation5 + $0x1e0] sm:$0xff] }
0x100f   : > { %6760 = vmatpush1.msra.mxu1 %v14403_v48  ;;  %6695 = vmatpush1.msra.mxu0 %v10298_v56  ;;  %v15102_v35 = vpop.permute.xlu1 %7026  ;;  %v10303_v48 = vld [vmem:[#allocation5 + $0x128] sm:$0xff] }
0x1010   : > { %6761 = vmatprep.subr.mxu1 %v17923_v36  ;;  %6696 = vmatprep.subr.mxu0 %v10299_v14  ;;  %v15105_v43 = vpop.permute.xlu0 %7038  ;;  %v10304_v36 = vld [vmem:[#allocation5 + $0xf8] sm:$0xff]  ;;  %v10309_v56 = vld [vmem:[#allocation5 + $0x108] sm:$0xff] }
0x1011   : > { %6762 = vmatpush1.msra.mxu1 %v14354_v39  ;;  %6697 = vmatpush1.msra.mxu0 %v10300_v24  ;;  %v10305_v39 = vld [vmem:[#allocation5 + $0xf0] sm:$0xff]  ;;  %v17946_v24 = vld [vmem:[#allocation54_spill] sm:$0xff] }
0x1012   : > { %6763 = vmatprep.subr.mxu1 %v10301_v61  ;;  %6698 = vmatprep.subr.mxu0 %v14376_v44  ;;  %v10306_v44 = vld [vmem:[#allocation5 + $0xb8] sm:$0xff] }
0x1013   : > { %6764 = vmatpush1.msra.mxu1 %v10302_v18  ;;  %6699 = vmatpush1.msra.mxu0 %v10303_v48  ;;  %v15109_v51 = vpop.permute.xlu1 %7012  ;;  %v10315_v18 = vld [vmem:[#allocation5 + $0x1f0] sm:$0xff]  ;;  %v17948_v48 = vld [vmem:[#allocation50_spill] sm:$0xff] }
0x1014   : > { %6765 = vmatprep.subr.mxu1 %v17940_v19  ;;  %6700 = vmatprep.subr.mxu0 %v10304_v36  ;;  %v15112_v3 = vpop.permute.xlu0 %7024  ;;  %v17949_v36 = vld [vmem:[#allocation51_spill] sm:$0xff] }
0x1015   : > { %6766 = vmatpush1.msra.mxu1 %v14467_v31  ;;  %6701 = vmatpush1.msra.mxu0 %v10305_v39  ;;  %v10308_v31 = vld [vmem:[#allocation5 + $0x80] sm:$0xff]  ;;  %v7121_v39 = vsel %vm3804_vm8, %v17949_v36, %v17948_v48 }
0x1016   : > { %6767 = vmatprep.subr.mxu1 %v17939_v22  ;;  %6702 = vmatprep.subr.mxu0 %v14762_v63  ;;  %v10310_v63 = vld [vmem:[#allocation5 + $0x100] sm:$0xff] }
0x1017   : > { %6768 = vmatpush1.msra.mxu1 %v14421_v49  ;;  %6703 = vmatpush1.msra.mxu0 %v10306_v44  ;;  %v15118_v16 = vpop.permute.xlu1 %6984  ;;  %v10311_v49 = vld [vmem:[#allocation5 + $0x48] sm:$0xff] }
0x1018   : > { %6769 = vmatprep.subr.mxu1 %v17942_v15  ;;  %6704 = vmatprep.subr.mxu0 %v14770_v28  ;;  %v15122_v19 = vpop.permute.xlu0 %7010  ;;  %v10312_v15 = vld [vmem:[#allocation5 + $0xc8] sm:$0xff] }
0x1019   : > { %6770 = vmatpush1.msra.mxu1 %v10307_v6  ;;  %6705 = vmatpush1.msra.mxu0 %v10308_v31 }
0x101a   : > { %6771 = vmatprep.subr.mxu1 %v10309_v56  ;;  %6706 = vmatprep.subr.mxu0 %v14780_v55  ;;  %v10313_v55 = vld [vmem:[#allocation5 + $0x90] sm:$0xff] }
0x101b   : > { %6772 = vmatpush1.msra.mxu1 %v10310_v63  ;;  %6707 = vmatpush1.msra.mxu0 %v10311_v49  ;;  %v15125_v22 = vpop.permute.xlu1 %6970  ;;  %v17951_v56 = vld [vmem:[#allocation49_spill] sm:$0xff] }
0x101c   : > { %6773 = vmatprep.subr.mxu1 %v15042_v32  ;;  %6708 = vmatprep.subr.mxu0 %v14791_v40  ;;  %v15129_v28 = vpop.permute.xlu0 %6996  ;;  %v7115_v63 = vsel %vm3804_vm8, %v17951_v56, %v14808_v30  ;;  %v7114_v49 = vsel %vm3804_vm8, %v14825_v25, %v17951_v56  ;;  %v10318_v25 = vld [vmem:[#allocation5 + $0x110] sm:$0xff] }
0x101d   : > { %6774 = vmatpush1.msra.mxu1 %v10312_v15  ;;  %6709 = vmatpush1.msra.mxu0 %v14673_v4  ;;  %v10314_v4 = vld [vmem:[#allocation5 + $0x58] sm:$0xff]  ;;  %v10316_v15 = vld [vmem:[#allocation5 + $0x180] sm:$0xff] }
0x101e   : > { %6742 = vmatprep.mubr.f32.mxu0 %v17897_v42  ;;  %6775 = vmatprep.subr.mxu1 %v15037_v0  ;;  %v17944_v0 = vld [vmem:[#allocation10_spill] sm:$0xff] }
0x101f   : > { %9762 = vmatmul.mubr.msk.f32.vlgmr.msra.gmra.mxu0 %vm3038_vm5, %v15084_v58  ;;  %6776 = vmatpush1.msra.mxu1 %v10313_v55  ;;  %v15136_v14 = vpop.permute.xlu1 %6956 }
0x1020   : > { %10147 = vmatprep.subr.mxu0 %v17897_v42  ;;  %6777 = vmatprep.subr.mxu1 %v15060_v34  ;;  %v15140_v40 = vpop.permute.xlu0 %6982 }
0x1021   : > { %10148 = vmatpush3.msra.mxu0 %v17909_v54  ;;  %6778 = vmatpush1.msra.mxu1 %v10314_v4  ;;  %v17945_v54 = vld [vmem:[#allocation53_spill] sm:$0xff]  ;;  %v10317_v4 = vld [vmem:[#allocation5 + $0x148] sm:$0xff] }
0x1022   : > { %10149 = vmatprep.subr.mxu0 %v17897_v42  ;;  %6779 = vmatprep.subr.mxu1 %v15053_v29  ;;  %v7127_v29 = vsel %vm3804_vm8, %v17946_v24, %v17945_v54 }
0x1023   : > { %10150 = vmatpush3.msra.mxu0 %v17904_v2  ;;  %6780 = vmatpush1.msra.mxu1 %v17944_v0  ;;  %v15147_v32 = vpop.permute.xlu1 %6942  ;;  %v17947_v2 = vld [vmem:[#allocation55_spill] sm:$0xff] }
0x1024   : > { %6813 = vmatprep.mubr.f32.mxu1 %v17897_v42  ;;  %10151 = vmatprep.subr.mxu0 %v17897_v42  ;;  %v15151_v34 = vpop.permute.xlu0 %6968  ;;  %v7126_v61 = vsel %vm3804_vm8, %v17947_v2, %v17946_v24  ;;  %v7066_v2 = vsel %vm3804_vm8, %v15073_v41, %v15064_v23  ;;  %v7122_v41 = vsel %vm3804_vm8, %v17948_v48, %v15105_v43 }
0x1025   : > { %9763 = vmatmul.mubr.msk.f32.vlgmr.msra.gmra.mxu1 %vm3038_vm5, %v15084_v58  ;;  %10152 = vmatpush3.msra.mxu0 %v17905_v10  ;;  %v17950_v10 = vld [vmem:[#allocation52_spill] sm:$0xff] }
0x1026   : > { %7227 = vmatprep.subr.mxu1 %v7127_v29  ;;  %10153 = vmatprep.subr.mxu0 %v17897_v42  ;;  %v7120_v6 = vsel %vm3804_vm8, %v17950_v10, %v17949_v36  ;;  %v7078_v29 = vsel %vm3804_vm8, %v15034_v11, %v15023_v52  ;;  %v7117_v36 = vsel %vm3804_vm8, %v15112_v3, %v15102_v35  ;;  %v17953_v10 = vld [vmem:[#allocation21_spill] sm:$0xff] }
0x1027   : > { %7228 = vmatpush1.msra.mxu1 %v7126_v61  ;;  %10154 = vmatpush3.msra.mxu0 %v10315_v18  ;;  %v15166_v44 = vpop.permute.xlu1 %7054 }
0x1028   : > { %7229 = vmatprep.subr.mxu1 %v7121_v39  ;;  %10155 = vmatprep.subr.mxu0 %v17897_v42  ;;  %v15172_v31 = vpop.permute.xlu0 %6954 }
0x1029   : > { %7230 = vmatpush1.msra.mxu1 %v7120_v6  ;;  %10156 = vmatpush3.msra.mxu0 %v17907_v46  ;;  %v17954_v6 = vld [vmem:[#allocation9_spill] sm:$0xff] }
0x102a   : > { %7231 = vmatprep.subr.mxu1 %v7115_v63  ;;  %10157 = vmatprep.subr.mxu0 %v17897_v42  ;;  %v7104_v56 = vsel %vm3804_vm8, %v17954_v6, %v15129_v28  ;;  %v7099_v63 = vsel %vm3804_vm8, %v15140_v40, %v15118_v16 }
0x102b   : > { %7232 = vmatpush1.msra.mxu1 %v7114_v49  ;;  %10158 = vmatpush3.msra.mxu0 %v10316_v15  ;;  %v15182_v55 = vpop.permute.xlu1 %6928 }
0x102c   : > { %7233 = vmatprep.subr.mxu1 %v14882_v62  ;;  %10159 = vmatprep.subr.mxu0 %v17897_v42  ;;  %v15186_v46 = vpop.permute.xlu0 %6940 }
0x102d   : > { %7234 = vmatpush1.msra.mxu1 %v14867_v1  ;;  %10160 = vmatpush3.msra.mxu0 %v10317_v4  ;;  %v10319_v1 = vld [vmem:[#allocation5 + $0xd8] sm:$0xff] }
0x102e   : > { %7235 = vmatprep.subr.mxu1 %v14910_v8  ;;  %10161 = vmatprep.subr.mxu0 %v17897_v42  ;;  %v7091_v8 = vsel %vm3804_vm8, %v14982_v9, %v14976_v20 }
0x102f   : > { %7236 = vmatpush1.msra.mxu1 %v14935_v17  ;;  %10162 = vmatpush3.msra.mxu0 %v10318_v25  ;;  %v15192_v0 = vpop.permute.xlu1 %6998  ;;  %v10320_v17 = vld [vmem:[#allocation5 + $0xa0] sm:$0xff]  ;;  %v7093_v25 = vsel %vm3804_vm8, %v15151_v34, %v15125_v22 }
0x1030   : > { %7237 = vmatprep.subr.mxu1 %v14963_v57  ;;  %10163 = vmatprep.subr.mxu0 %v17897_v42  ;;  %v15196_v62 = vpop.permute.xlu0 %6926  ;;  %v7085_v57 = vsel %vm3804_vm8, %v14994_v60, %v15014_v21  ;;  %v7105_v48 = vsel %vm3804_vm8, %v15129_v28, %v15192_v0  ;;  %v7092_v28 = vsel %vm3804_vm8, %v14976_v20, %v15151_v34 }
0x1031   : > { %7238 = vmatpush1.msra.mxu1 %v14953_v37  ;;  %10164 = vmatpush3.msra.mxu0 %v10319_v1  ;;  %v7084_v37 = vsel %vm3804_vm8, %v15009_v53, %v14994_v60  ;;  %v7073_v60 = vsel %vm3804_vm8, %v15031_v12, %v15049_v7  ;;  %v7087_v1 = vsel %vm3804_vm8, %v15172_v31, %v15136_v14 }
0x1032   : > { %7239 = vmatprep.subr.mxu1 %v7091_v8  ;;  %10165 = vmatprep.subr.mxu0 %v17897_v42  ;;  %v7080_v20 = vsel %vm3804_vm8, %v15020_v59, %v15186_v46  ;;  %v7074_v34 = vsel %vm3804_vm8, %v15049_v7, %v15196_v62 }
0x1033   : > { %7240 = vmatpush1.msra.mxu1 %v15004_v33  ;;  %10166 = vmatpush3.msra.mxu0 %v10320_v17  ;;  %v15207_v24 = vpop.permute.xlu1 %6914  ;;  %v7079_v33 = vsel %vm3804_vm8, %v15023_v52, %v15020_v59  ;;  %v7072_v52 = vsel %vm3804_vm8, %v15046_v45, %v15031_v12  ;;  %v7128_v12 = vsel %vm3804_vm8, %v17945_v54, %v15096_v47 }
0x1034   : > { %7241 = vmatprep.subr.mxu1 %v7085_v57  ;;  %10167 = vmatprep.subr.mxu0 %v17897_v42  ;;  %v15213_v9 = vpop.permute.xlu0 %6912  ;;  %v7123_v45 = vsel %vm3804_vm8, %v15105_v43, %v15093_v26  ;;  %v7111_v43 = vsel %vm3804_vm8, %v15122_v19, %v15109_v51  ;;  %v7081_v17 = vsel %vm3804_vm8, %v15186_v46, %v15147_v32 }
0x1035   : > { %7242 = vmatpush1.msra.mxu1 %v7084_v37  ;;  %10168 = vmatpush3.msra.mxu0 %v14957_v50  ;;  %v7129_v50 = vsel %vm3804_vm8, %v15096_v47, %v15166_v44  ;;  %v15267_v47 = vld [vmem:[%s17746_s17 + $0x2] sm:$0x1]  ;;  %v7068_v59 = vsel %vm3804_vm8, %v15058_v27, %v15213_v9 }
0x1036   : > { %7243 = vmatprep.subr.mxu1 %v7079_v33  ;;  %10169 = vmatprep.subr.mxu0 %v17897_v42 }
0x1037   : > { %7244 = vmatpush1.msra.mxu1 %v7078_v29  ;;  %10170 = vmatpush3.msra.mxu0 %v14986_v5  ;;  %v15230_v53 = vpop.permute.xlu1 %6900  ;;  %v7067_v5 = vsel %vm3804_vm8, %v15064_v23, %v15058_v27 }
0x1038   : > { %10171 = vmatprep.mubr.msk.f32.mxu0 %vm10339_vm14, %v17897_v42  ;;  %7245 = vmatprep.subr.mxu1 %v7073_v60  ;;  %v15237_v11 = vpop.permute.xlu0 %6898 }
0x1039   : > { %10172 = vmatmul.mubr.msk.f32.vlgmr.msra.gmra.mxu0 %vm3038_vm5, %v15084_v58  ;;  %7246 = vmatpush1.msra.mxu1 %v7072_v52  ;;  %v17952_v58 = vld [vmem:[#allocation8_spill] sm:$0xff]  ;;  %v7063_v33 = vsel %vm3804_vm8, %v15237_v11, %v15230_v53  ;;  %v7062_v7 = vsel %vm3804_vm8, %v15086_v38, %v15237_v11 }
0x103a   : > { %7298 = vmatprep.subr.mxu0 %v7129_v50  ;;  %7247 = vmatprep.subr.mxu1 %v7067_v5  ;;  %v7061_v61 = vsel %vm3804_vm8, %v17952_v58, %v15086_v38  ;;  %v7060_v23 = vsel %vm3804_vm8, %v15078_v13, %v17952_v58  ;;  %v7116_v13 = vsel %vm3804_vm8, %v14808_v30, %v15112_v3 }
0x103b   : > { %7299 = vmatpush1.msra.mxu0 %v7128_v12  ;;  %7248 = vmatpush1.msra.mxu1 %v7066_v2  ;;  %v15256_v18 = vpop.permute.xlu1 %7044  ;;  %v7110_v30 = vsel %vm3804_vm8, %v17953_v10, %v15122_v19  ;;  %v17955_v19 = vld [vmem:[#allocation17_spill] sm:$0xff]  ;;  %v7825_v10 = vld [vmem:[%s17748_s19 + $0x9e0] sm:$0xff] }
0x103c   : > { %7300 = vmatprep.subr.mxu0 %v7123_v45  ;;  %7249 = vmatprep.subr.mxu1 %v7061_v61  ;;  %v15269_v54 = vpop.permute.xlu0 %7030  ;;  %v7098_v15 = vsel %vm3804_vm8, %v17955_v19, %v15140_v40  ;;  %v7086_v40 = vsel %vm3804_vm8, %v15014_v21, %v15172_v31  ;;  %v7075_v21 = vsel %vm3804_vm8, %v15196_v62, %v15182_v55 }
0x103d   : > { %7301 = vmatpush1.msra.mxu0 %v7122_v41  ;;  %7250 = vmatpush1.msra.mxu1 %v7060_v23  ;;  %v7069_v31 = vsel %vm3804_vm8, %v15213_v9, %v15207_v24  ;;  %v7839_v41 = vld [vmem:[%s17748_s19 + $0xa50] sm:$0xff] }
0x103e   : > { %7283 = vmatprep.mubr.f32.mxu1 %v17897_v42  ;;  %7302 = vmatprep.subr.mxu0 %v7117_v36 }
0x103f   : > { %9766 = vmatmul.mubr.msk.f32.vlgmr.msra.gmra.mxu1 %vm3038_vm5, %v15267_v47  ;;  %7303 = vmatpush1.msra.mxu0 %v7116_v13  ;;  %v15286_v39 = vpop.permute.xlu1 %7016  ;;  %v7832_v13 = vld [vmem:[%s17748_s19 + $0xa18] sm:$0xff] }
0x1040   : > { %7304 = vmatprep.subr.mxu0 %v7111_v43  ;;  %7354 = vmatprep.mubr.f32.mxu0 %v17897_v42  ;;  %v15292_v3 = vpop.permute.xlu0 %7002 }
0x1041   : > { %7305 = vmatpush1.msra.mxu0 %v7110_v30  ;;  %7425 = vmatprep.mubr.f32.mxu1 %v17897_v42 }
0x1042   : > { %7306 = vmatprep.subr.mxu0 %v7105_v48 }
0x1043   : > { %7307 = vmatpush1.msra.mxu0 %v7104_v56  ;;  %v15301_v49 = vpop.permute.xlu1 %6988  ;;  %v7818_v56 = vld [vmem:[%s17748_s19 + $0x9a8] sm:$0xff] }
0x1044   : > { %7308 = vmatprep.subr.mxu0 %v7099_v63  ;;  %v7059_v4 = vpop.permute.xlu0 %7058  ;;  %v7817_v63 = vld [vmem:[%s17748_s19 + $0x9a0] sm:$0xff] }
0x1045   : > { %7309 = vmatpush1.msra.mxu0 %v7098_v15  ;;  %v7810_v15 = vld [vmem:[%s17748_s19 + $0x968] sm:$0xff] }
0x1046   : > { %7310 = vmatprep.subr.mxu0 %v7093_v25 }
0x1047   : > { %7311 = vmatpush1.msra.mxu0 %v7092_v28  ;;  %v7804_v28 = vld [vmem:[%s17748_s19 + $0x938] sm:$0xff] }
0x1048   : > { %7312 = vmatprep.subr.mxu0 %v7087_v1  ;;  %v15318_v8 = vpop.permute.xlu1 %6960 }
0x1049   : > { %7313 = vmatpush1.msra.mxu0 %v7086_v40  ;;  %v15323_v57 = vpop.permute.xlu0 %6974  ;;  %v7803_v40 = vld [vmem:[%s17748_s19 + $0x930] sm:$0xff] }
0x104a   : > { %7314 = vmatprep.subr.mxu0 %v7081_v17 }
0x104b   : > { %7315 = vmatpush1.msra.mxu0 %v7080_v20  ;;  %v7614_v20 = vld [vmem:[%s17748_s19 + $0x348] sm:$0xff] }
0x104c   : > { %7316 = vmatprep.subr.mxu0 %v7075_v21  ;;  %v7796_v21 = vld [vmem:[%s17748_s19 + $0x8f8] sm:$0xff] }
0x104d   : > { %7317 = vmatpush1.msra.mxu0 %v7074_v34  ;;  %v15337_v37 = vpop.permute.xlu1 %6946  ;;  %v7608_v34 = vld [vmem:[%s17748_s19 + $0x318] sm:$0xff] }
0x104e   : > { %7318 = vmatprep.subr.mxu0 %v7069_v31  ;;  %v7043_v46 = vpop.permute.xlu0 %7042  ;;  %v7607_v31 = vld [vmem:[%s17748_s19 + $0x310] sm:$0xff] }
0x104f   : > { %7319 = vmatpush1.msra.mxu0 %v7068_v59  ;;  %v7125_v50 = vsel %vm3804_vm8, %v7043_v46, %v15256_v18  ;;  %v7124_v52 = vsel %vm3804_vm8, %v15093_v26, %v7043_v46  ;;  %v7601_v59 = vld [vmem:[%s17748_s19 + $0x2e0] sm:$0xff]  ;;  %v7783_v46 = vld [vmem:[%s17748_s19 + $0x890] sm:$0xff] }
0x1050   : > { %7320 = vmatprep.subr.mxu0 %v7063_v33  ;;  %v7782_v33 = vld [vmem:[%s17748_s19 + $0x888] sm:$0xff] }
0x1051   : > { %7321 = vmatpush1.msra.mxu0 %v7062_v7  ;;  %v7594_v7 = vld [vmem:[%s17748_s19 + $0x2a8] sm:$0xff] }
0x1052   : > { %9767 = vmatmul.mubr.msk.f32.vlgmr.msra.gmra.mxu0 %vm3038_vm5, %v15267_v47  ;;  %10174 = vmatprep.subr.mxu0 %v17897_v42  ;;  %v15351_v62 = vpop.permute.xlu1 %6932 }
0x1053   : > { %10175 = vmatpush3.msra.mxu0 %v7059_v4  ;;  %v7029_v27 = vpop.permute.xlu0 %7028  ;;  %10198 = vmatprep.mubr.msk.f32.mxu0 %vm10339_vm14, %v17897_v42 }
0x1054   : > { %10176 = vmatprep.subr.mxu0 %v17897_v42  ;;  %v7118_v5 = vsel %vm3804_vm8, %v15102_v35, %v7029_v27 }
0x1055   : > { %10177 = vmatpush3.msra.mxu0 %v15256_v18 }
0x1056   : > { %10178 = vmatprep.subr.mxu0 %v17897_v42 }
0x1057   : > { %10179 = vmatpush3.msra.mxu0 %v15269_v54  ;;  %v15359_v38 = vpop.permute.xlu1 %6918 }
0x1058   : > { %10180 = vmatprep.subr.mxu0 %v17897_v42  ;;  %v7057_v9 = vpop.permute.xlu0 %7056 }
0x1059   : > { %10181 = vmatpush3.msra.mxu0 %v15286_v39  ;;  %v7130_v29 = vsel %vm3804_vm8, %v15166_v44, %v7057_v9  ;;  %v7131_v60 = vsel %vm3804_vm8, %v7057_v9, %v7059_v4  ;;  %v7119_v44 = vsel %vm3804_vm8, %v7029_v27, %v15269_v54  ;;  %v7593_v27 = vld [vmem:[%s17748_s19 + $0x2a0] sm:$0xff]  ;;  %v7587_v9 = vld [vmem:[%s17748_s19 + $0x270] sm:$0xff] }
0x105a   : > { %10182 = vmatprep.subr.mxu0 %v17897_v42  ;;  %7369 = vmatprep.subr.mxu1 %v7131_v60  ;;  %v7586_v60 = vld [vmem:[%s17748_s19 + $0x268] sm:$0xff] }
0x105b   : > { %10183 = vmatpush3.msra.mxu0 %v15292_v3  ;;  %7370 = vmatpush1.msra.mxu1 %v7130_v29  ;;  %v7769_v29 = vld [vmem:[%s17748_s19 + $0x820] sm:$0xff] }
0x105c   : > { %10184 = vmatprep.subr.mxu0 %v17897_v42  ;;  %v15373_v11 = vpop.permute.xlu1 %6904  ;;  %7371 = vmatprep.subr.mxu1 %v7125_v50  ;;  %v7768_v50 = vld [vmem:[%s17748_s19 + $0x818] sm:$0xff] }
0x105d   : > { %10185 = vmatpush3.msra.mxu0 %v15301_v49  ;;  %7372 = vmatpush1.msra.mxu1 %v7124_v52  ;;  %v7580_v52 = vld [vmem:[%s17748_s19 + $0x238] sm:$0xff] }
0x105e   : > { %10186 = vmatprep.subr.mxu0 %v17897_v42  ;;  %v7015_v2 = vpop.permute.xlu0 %7014  ;;  %7373 = vmatprep.subr.mxu1 %v7119_v44  ;;  %v7579_v44 = vld [vmem:[%s17748_s19 + $0x230] sm:$0xff] }
0x105f   : > { %10187 = vmatpush3.msra.mxu0 %v15323_v57  ;;  %7374 = vmatpush1.msra.mxu1 %v7118_v5  ;;  %v7113_v26 = vsel %vm3804_vm8, %v7015_v2, %v15286_v39  ;;  %v7112_v12 = vsel %vm3804_vm8, %v15109_v51, %v7015_v2  ;;  %v7761_v5 = vld [vmem:[%s17748_s19 + $0x7e0] sm:$0xff] }
0x1060   : > { %10188 = vmatprep.subr.mxu0 %v17897_v42  ;;  %7375 = vmatprep.subr.mxu1 %v7113_v26  ;;  %v7573_v2 = vld [vmem:[%s17748_s19 + $0x200] sm:$0xff]  ;;  %v7755_v26 = vld [vmem:[%s17748_s19 + $0x7b0] sm:$0xff] }
0x1061   : > { %10189 = vmatpush3.msra.mxu0 %v15318_v8  ;;  %7376 = vmatpush1.msra.mxu1 %v7112_v12  ;;  %v7572_v12 = vld [vmem:[%s17748_s19 + $0x1f8] sm:$0xff] }
0x1062   : > { %10190 = vmatprep.subr.mxu0 %v17897_v42  ;;  %v6987_v35 = vpop.permute.xlu1 %6986 }
0x1063   : > { %10191 = vmatpush3.msra.mxu0 %v15337_v37  ;;  %v7001_v45 = vpop.permute.xlu0 %7000  ;;  %v7101_v51 = vsel %vm3804_vm8, %v6987_v35, %v15301_v49  ;;  %v7100_v18 = vsel %vm3804_vm8, %v15118_v16, %v6987_v35  ;;  %v7838_v16 = vld [vmem:[%s17748_s19 + $0xa48] sm:$0xff] }
0x1064   : > { %10192 = vmatprep.subr.mxu0 %v17897_v42  ;;  %v7106_v58 = vsel %vm3804_vm8, %v15192_v0, %v7001_v45  ;;  %v7107_v61 = vsel %vm3804_vm8, %v7001_v45, %v15292_v3  ;;  %v7824_v3 = vld [vmem:[%s17748_s19 + $0x9d8] sm:$0xff]  ;;  %v7754_v35 = vld [vmem:[%s17748_s19 + $0x7a8] sm:$0xff] }
0x1065   : > { %10193 = vmatpush3.msra.mxu0 %v15351_v62  ;;  %7377 = vmatprep.subr.mxu1 %v7107_v61  ;;  %v7566_v45 = vld [vmem:[%s17748_s19 + $0x1c8] sm:$0xff]  ;;  %v7565_v61 = vld [vmem:[%s17748_s19 + $0x1c0] sm:$0xff] }
0x1066   : > { %10194 = vmatprep.subr.mxu0 %v17897_v42  ;;  %7378 = vmatpush1.msra.mxu1 %v7106_v58  ;;  %v7748_v58 = vld [vmem:[%s17748_s19 + $0x778] sm:$0xff] }
0x1067   : > { %10195 = vmatpush3.msra.mxu0 %v15359_v38  ;;  %v6959_v23 = vpop.permute.xlu1 %6958  ;;  %7379 = vmatprep.subr.mxu1 %v7101_v51  ;;  %v7747_v51 = vld [vmem:[%s17748_s19 + $0x770] sm:$0xff] }
0x1068   : > { %10196 = vmatprep.subr.mxu0 %v17897_v42  ;;  %v6973_v0 = vpop.permute.xlu0 %6972  ;;  %7380 = vmatpush1.msra.mxu1 %v7100_v18  ;;  %v7089_v43 = vsel %vm3804_vm8, %v6959_v23, %v15318_v8  ;;  %v7088_v48 = vsel %vm3804_vm8, %v15136_v14, %v6959_v23  ;;  %v7797_v8 = vld [vmem:[%s17748_s19 + $0x900] sm:$0xff]  ;;  %v7559_v18 = vld [vmem:[%s17748_s19 + $0x190] sm:$0xff] }
0x1069   : > { %10197 = vmatpush3.msra.mxu0 %v15373_v11  ;;  %v7094_v54 = vsel %vm3804_vm8, %v15125_v22, %v6973_v0  ;;  %v7095_v36 = vsel %vm3804_vm8, %v6973_v0, %v15323_v57  ;;  %v7831_v22 = vld [vmem:[%s17748_s19 + $0xa10] sm:$0xff]  ;;  %v7741_v23 = vld [vmem:[%s17748_s19 + $0x740] sm:$0xff]  ;;  %v7558_v0 = vld [vmem:[%s17748_s19 + $0x188] sm:$0xff] }
0x106a   : > { %10199 = vmatmul.mubr.msk.f32.vlgmr.msra.gmra.mxu0 %vm3038_vm5, %v15267_v47  ;;  %7381 = vmatprep.subr.mxu1 %v7095_v36  ;;  %v7734_v36 = vld [vmem:[%s17748_s19 + $0x708] sm:$0xff] }
0x106b   : > { %7382 = vmatpush1.msra.mxu1 %v7094_v54  ;;  %8350 = vmatprep.subr.mxu0 %v7839_v41  ;;  %v7740_v41 = vld [vmem:[%s17748_s19 + $0x738] sm:$0xff] }
0x106c   : > { %v6931_v39 = vpop.permute.xlu1 %6930  ;;  %7383 = vmatprep.subr.mxu1 %v7089_v43  ;;  %8351 = vmatpush1.msra.mxu0 %v7838_v16  ;;  %v7552_v54 = vld [vmem:[%s17748_s19 + $0x158] sm:$0xff]  ;;  %v7551_v16 = vld [vmem:[%s17748_s19 + $0x150] sm:$0xff]  ;;  %v7545_v43 = vld [vmem:[%s17748_s19 + $0x120] sm:$0xff] }
0x106d   : > { %v6945_v30 = vpop.permute.xlu0 %6944  ;;  %7384 = vmatpush1.msra.mxu1 %v7088_v48  ;;  %8352 = vmatprep.subr.mxu0 %v7832_v13  ;;  %v7077_v49 = vsel %vm3804_vm8, %v6931_v39, %v15351_v62  ;;  %v7076_v19 = vsel %vm3804_vm8, %v15182_v55, %v6931_v39  ;;  %v7776_v62 = vld [vmem:[%s17748_s19 + $0x858] sm:$0xff]  ;;  %v7733_v13 = vld [vmem:[%s17748_s19 + $0x700] sm:$0xff]  ;;  %v7950_v39 = vld [vmem:[%s17748_s19 + $0xdc8] sm:$0xff] }
0x106e   : > { %v7082_v6 = vsel %vm3804_vm8, %v15147_v32, %v6945_v30  ;;  %v7083_v14 = vsel %vm3804_vm8, %v6945_v30, %v15337_v37  ;;  %8353 = vmatpush1.msra.mxu0 %v7831_v22  ;;  %v7811_v32 = vld [vmem:[%s17748_s19 + $0x970] sm:$0xff]  ;;  %v7789_v37 = vld [vmem:[%s17748_s19 + $0x8c0] sm:$0xff]  ;;  %v7544_v48 = vld [vmem:[%s17748_s19 + $0x118] sm:$0xff] }
0x106f   : > { %7385 = vmatprep.subr.mxu1 %v7083_v14  ;;  %8354 = vmatprep.subr.mxu0 %v7825_v10  ;;  %v7951_v22 = vld [vmem:[%s17748_s19 + $0xdd0] sm:$0xff]  ;;  %v7538_v10 = vld [vmem:[%s17748_s19 + $0xe8] sm:$0xff]  ;;  %v7944_v30 = vld [vmem:[%s17748_s19 + $0xd98] sm:$0xff] }
0x1070   : > { %7386 = vmatpush1.msra.mxu1 %v7082_v6  ;;  %8355 = vmatpush1.msra.mxu0 %v7824_v3  ;;  %v7537_v3 = vld [vmem:[%s17748_s19 + $0xe0] sm:$0xff]  ;;  %v7943_v6 = vld [vmem:[%s17748_s19 + $0xd90] sm:$0xff] }
0x1071   : > { %7387 = vmatprep.subr.mxu1 %v7077_v49  ;;  %8356 = vmatprep.subr.mxu0 %v7818_v56  ;;  %v6903_v4 = vpop.permute.xlu1 %6902  ;;  %v7531_v14 = vld [vmem:[%s17748_s19 + $0xb0] sm:$0xff]  ;;  %v7937_v56 = vld [vmem:[%s17748_s19 + $0xd60] sm:$0xff]  ;;  %v7936_v49 = vld [vmem:[%s17748_s19 + $0xd58] sm:$0xff] }
0x1072   : > { %v6917_v25 = vpop.permute.xlu0 %6916  ;;  %7388 = vmatpush1.msra.mxu1 %v7076_v19  ;;  %8357 = vmatpush1.msra.mxu0 %v7817_v63  ;;  %v7065_v17 = vsel %vm3804_vm8, %v6903_v4, %v15373_v11  ;;  %v7064_v57 = vsel %vm3804_vm8, %v15230_v53, %v6903_v4  ;;  %v7790_v53 = vld [vmem:[%s17748_s19 + $0x8c8] sm:$0xff]  ;;  %v7929_v4 = vld [vmem:[%s17748_s19 + $0xd20] sm:$0xff] }
0x1073   : > { %v7070_v1 = vsel %vm3804_vm8, %v15207_v24, %v6917_v25  ;;  %v7071_v55 = vsel %vm3804_vm8, %v6917_v25, %v15359_v38  ;;  %8358 = vmatprep.subr.mxu0 %v7811_v32  ;;  %v7615_v24 = vld [vmem:[%s17748_s19 + $0x350] sm:$0xff]  ;;  %v7762_v11 = vld [vmem:[%s17748_s19 + $0x7e8] sm:$0xff]  ;;  %v7524_v32 = vld [vmem:[%s17748_s19 + $0x78] sm:$0xff] }
0x1074   : > { %7389 = vmatprep.subr.mxu1 %v7071_v55  ;;  %8359 = vmatpush1.msra.mxu0 %v7810_v15  ;;  %v7775_v38 = vld [vmem:[%s17748_s19 + $0x850] sm:$0xff]  ;;  %v7530_v63 = vld [vmem:[%s17748_s19 + $0xa8] sm:$0xff]  ;;  %v7517_v25 = vld [vmem:[%s17748_s19 + $0x40] sm:$0xff] }
0x1075   : > { %7390 = vmatpush1.msra.mxu1 %v7070_v1  ;;  %8360 = vmatprep.subr.mxu0 %v7804_v28  ;;  %v7930_v19 = vld [vmem:[%s17748_s19 + $0xd28] sm:$0xff]  ;;  %v7523_v15 = vld [vmem:[%s17748_s19 + $0x70] sm:$0xff]  ;;  %v7516_v1 = vld [vmem:[%s17748_s19 + $0x38] sm:$0xff] }
0x1076   : > { %7391 = vmatprep.subr.mxu1 %v7065_v17  ;;  %8361 = vmatpush1.msra.mxu0 %v7803_v40  ;;  %v7923_v28 = vld [vmem:[%s17748_s19 + $0xcf0] sm:$0xff]  ;;  %v7922_v55 = vld [vmem:[%s17748_s19 + $0xce8] sm:$0xff]  ;;  %v7509_v17 = vld [vmem:[%s17748_s19] sm:$0xff] }
0x1077   : > { %7392 = vmatpush1.msra.mxu1 %v7064_v57  ;;  %8362 = vmatprep.subr.mxu0 %v7797_v8  ;;  %v7510_v40 = vld [vmem:[%s17748_s19 + $0x8] sm:$0xff]  ;;  %v7916_v8 = vld [vmem:[%s17748_s19 + $0xcb8] sm:$0xff]  ;;  %v7727_v57 = vld [vmem:[%s17748_s19 + $0x6d0] sm:$0xff] }
0x1078   : > { %9768 = vmatmul.mubr.msk.f32.vlgmr.msra.gmra.mxu1 %vm3038_vm5, %v15267_v47  ;;  %8279 = vmatprep.subr.mxu1 %v7615_v24  ;;  %v7600_v47 = vld [vmem:[%s17748_s19 + $0x2d8] sm:$0xff]  ;;  %v7915_v24 = vld [vmem:[%s17748_s19 + $0xcb0] sm:$0xff] }
0x1079   : > { %8280 = vmatpush1.msra.mxu1 %v7614_v20  ;;  %8363 = vmatpush1.msra.mxu0 %v7796_v21  ;;  %v7909_v20 = vld [vmem:[%s17748_s19 + $0xc80] sm:$0xff]  ;;  %v7726_v21 = vld [vmem:[%s17748_s19 + $0x6c8] sm:$0xff] }
0x107a   : > { %8281 = vmatprep.subr.mxu1 %v7608_v34  ;;  %8364 = vmatprep.subr.mxu0 %v7790_v53  ;;  %v7908_v34 = vld [vmem:[%s17748_s19 + $0xc78] sm:$0xff] }
0x107b   : > { %8282 = vmatpush1.msra.mxu1 %v7607_v31  ;;  %8365 = vmatpush1.msra.mxu0 %v7789_v37  ;;  %v7720_v53 = vld [vmem:[%s17748_s19 + $0x698] sm:$0xff]  ;;  %v7902_v31 = vld [vmem:[%s17748_s19 + $0xc48] sm:$0xff]  ;;  %v7719_v37 = vld [vmem:[%s17748_s19 + $0x690] sm:$0xff] }
0x107c   : > { %8283 = vmatprep.subr.mxu1 %v7601_v59  ;;  %8366 = vmatprep.subr.mxu0 %v7783_v46  ;;  %v7901_v59 = vld [vmem:[%s17748_s19 + $0xc40] sm:$0xff] }
0x107d   : > { %8284 = vmatpush1.msra.mxu1 %v7600_v47  ;;  %8367 = vmatpush1.msra.mxu0 %v7782_v33  ;;  %v7713_v46 = vld [vmem:[%s17748_s19 + $0x660] sm:$0xff]  ;;  %v7895_v47 = vld [vmem:[%s17748_s19 + $0xc10] sm:$0xff]  ;;  %v7712_v33 = vld [vmem:[%s17748_s19 + $0x658] sm:$0xff] }
0x107e   : > { %8285 = vmatprep.subr.mxu1 %v7594_v7  ;;  %8368 = vmatprep.subr.mxu0 %v7776_v62  ;;  %v7894_v7 = vld [vmem:[%s17748_s19 + $0xc08] sm:$0xff] }
0x107f   : > { %8286 = vmatpush1.msra.mxu1 %v7593_v27  ;;  %8369 = vmatpush1.msra.mxu0 %v7775_v38  ;;  %v7706_v62 = vld [vmem:[%s17748_s19 + $0x628] sm:$0xff]  ;;  %v7888_v27 = vld [vmem:[%s17748_s19 + $0xbd8] sm:$0xff]  ;;  %v7705_v38 = vld [vmem:[%s17748_s19 + $0x620] sm:$0xff] }
0x1080   : > { %8287 = vmatprep.subr.mxu1 %v7587_v9  ;;  %8370 = vmatprep.subr.mxu0 %v7769_v29  ;;  %v7887_v9 = vld [vmem:[%s17748_s19 + $0xbd0] sm:$0xff] }
0x1081   : > { %8288 = vmatpush1.msra.mxu1 %v7586_v60  ;;  %8371 = vmatpush1.msra.mxu0 %v7768_v50  ;;  %v7699_v29 = vld [vmem:[%s17748_s19 + $0x5f0] sm:$0xff]  ;;  %v7881_v60 = vld [vmem:[%s17748_s19 + $0xba0] sm:$0xff]  ;;  %v7698_v50 = vld [vmem:[%s17748_s19 + $0x5e8] sm:$0xff] }
0x1082   : > { %8289 = vmatprep.subr.mxu1 %v7580_v52  ;;  %8372 = vmatprep.subr.mxu0 %v7762_v11  ;;  %v7880_v52 = vld [vmem:[%s17748_s19 + $0xb98] sm:$0xff] }
0x1083   : > { %8290 = vmatpush1.msra.mxu1 %v7579_v44  ;;  %8373 = vmatpush1.msra.mxu0 %v7761_v5  ;;  %v7692_v11 = vld [vmem:[%s17748_s19 + $0x5b8] sm:$0xff]  ;;  %v7874_v44 = vld [vmem:[%s17748_s19 + $0xb68] sm:$0xff]  ;;  %v7691_v5 = vld [vmem:[%s17748_s19 + $0x5b0] sm:$0xff] }
0x1084   : > { %8291 = vmatprep.subr.mxu1 %v7573_v2  ;;  %8374 = vmatprep.subr.mxu0 %v7755_v26  ;;  %v7873_v2 = vld [vmem:[%s17748_s19 + $0xb60] sm:$0xff] }
0x1085   : > { %8292 = vmatpush1.msra.mxu1 %v7572_v12  ;;  %8375 = vmatpush1.msra.mxu0 %v7754_v35  ;;  %v7685_v26 = vld [vmem:[%s17748_s19 + $0x580] sm:$0xff]  ;;  %v7867_v12 = vld [vmem:[%s17748_s19 + $0xb30] sm:$0xff]  ;;  %v7684_v35 = vld [vmem:[%s17748_s19 + $0x578] sm:$0xff] }
0x1086   : > { %8293 = vmatprep.subr.mxu1 %v7566_v45  ;;  %8376 = vmatprep.subr.mxu0 %v7748_v58  ;;  %v7866_v45 = vld [vmem:[%s17748_s19 + $0xb28] sm:$0xff] }
0x1087   : > { %8294 = vmatpush1.msra.mxu1 %v7565_v61  ;;  %8377 = vmatpush1.msra.mxu0 %v7747_v51  ;;  %v7678_v58 = vld [vmem:[%s17748_s19 + $0x548] sm:$0xff]  ;;  %v7860_v61 = vld [vmem:[%s17748_s19 + $0xaf8] sm:$0xff]  ;;  %v7677_v51 = vld [vmem:[%s17748_s19 + $0x540] sm:$0xff] }
0x1088   : > { %8295 = vmatprep.subr.mxu1 %v7559_v18  ;;  %8378 = vmatprep.subr.mxu0 %v7741_v23  ;;  %v7859_v18 = vld [vmem:[%s17748_s19 + $0xaf0] sm:$0xff] }
0x1089   : > { %8296 = vmatpush1.msra.mxu1 %v7558_v0  ;;  %8379 = vmatpush1.msra.mxu0 %v7740_v41  ;;  %v7671_v23 = vld [vmem:[%s17748_s19 + $0x510] sm:$0xff]  ;;  %v7853_v0 = vld [vmem:[%s17748_s19 + $0xac0] sm:$0xff]  ;;  %v7670_v41 = vld [vmem:[%s17748_s19 + $0x508] sm:$0xff] }
0x108a   : > { %8297 = vmatprep.subr.mxu1 %v7552_v54  ;;  %8380 = vmatprep.subr.mxu0 %v7734_v36  ;;  %v7852_v54 = vld [vmem:[%s17748_s19 + $0xab8] sm:$0xff] }
0x108b   : > { %8298 = vmatpush1.msra.mxu1 %v7551_v16  ;;  %8381 = vmatpush1.msra.mxu0 %v7733_v13  ;;  %v7664_v36 = vld [vmem:[%s17748_s19 + $0x4d8] sm:$0xff]  ;;  %v7846_v16 = vld [vmem:[%s17748_s19 + $0xa88] sm:$0xff]  ;;  %v7663_v13 = vld [vmem:[%s17748_s19 + $0x4d0] sm:$0xff] }
0x108c   : > { %8299 = vmatprep.subr.mxu1 %v7545_v43  ;;  %8382 = vmatprep.subr.mxu0 %v7951_v22  ;;  %v7845_v43 = vld [vmem:[%s17748_s19 + $0xa80] sm:$0xff] }
0x108d   : > { %8300 = vmatpush1.msra.mxu1 %v7544_v48  ;;  %8383 = vmatpush2.msra.mxu0 %v7950_v39  ;;  %v7657_v22 = vld [vmem:[%s17748_s19 + $0x4a0] sm:$0xff]  ;;  %v8238_v48 = vld [vmem:[%s17748_s19 + $0x16c8] sm:$0x3f]  ;;  %v7656_v39 = vld [vmem:[%s17748_s19 + $0x498] sm:$0xff] }
0x108e   : > { %8301 = vmatprep.subr.mxu1 %v7538_v10  ;;  %8384 = vmatprep.subr.mxu0 %v7944_v30  ;;  %v7650_v10 = vld [vmem:[%s17748_s19 + $0x468] sm:$0xff]  ;;  %v7649_v30 = vld [vmem:[%s17748_s19 + $0x460] sm:$0xff] }
0x108f   : > { %8302 = vmatpush1.msra.mxu1 %v7537_v3  ;;  %8385 = vmatpush2.msra.mxu0 %v7943_v6  ;;  %v7643_v3 = vld [vmem:[%s17748_s19 + $0x430] sm:$0xff]  ;;  %v7642_v6 = vld [vmem:[%s17748_s19 + $0x428] sm:$0xff] }
0x1090   : > { %8303 = vmatprep.subr.mxu1 %v7531_v14  ;;  %8386 = vmatprep.subr.mxu0 %v7937_v56  ;;  %v7636_v14 = vld [vmem:[%s17748_s19 + $0x3f8] sm:$0xff]  ;;  %v7635_v56 = vld [vmem:[%s17748_s19 + $0x3f0] sm:$0xff] }
0x1091   : > { %8304 = vmatpush1.msra.mxu1 %v7530_v63  ;;  %8387 = vmatpush2.msra.mxu0 %v7936_v49  ;;  %v7629_v63 = vld [vmem:[%s17748_s19 + $0x3c0] sm:$0xff]  ;;  %v7628_v49 = vld [vmem:[%s17748_s19 + $0x3b8] sm:$0xff] }
0x1092   : > { %8305 = vmatprep.subr.mxu1 %v7524_v32  ;;  %8388 = vmatprep.subr.mxu0 %v7930_v19  ;;  %v7622_v32 = vld [vmem:[%s17748_s19 + $0x388] sm:$0xff]  ;;  %v7621_v19 = vld [vmem:[%s17748_s19 + $0x380] sm:$0xff] }
0x1093   : > { %8306 = vmatpush1.msra.mxu1 %v7523_v15  ;;  %8389 = vmatpush2.msra.mxu0 %v7929_v4  ;;  %v8063_v15 = vld [vmem:[%s17748_s19 + $0x1150] sm:$0xff] }
0x1094   : > { %8307 = vmatprep.subr.mxu1 %v7517_v25  ;;  %8390 = vmatprep.subr.mxu0 %v7923_v28 }
0x1095   : > { %8308 = vmatpush1.msra.mxu1 %v7516_v1  ;;  %8391 = vmatpush2.msra.mxu0 %v7922_v55  ;;  %v6387_v55 = vpop.f32.mrf.mxu1 }
0x1096   : > { %8309 = vmatprep.subr.mxu1 %v7510_v40  ;;  %8392 = vmatprep.subr.mxu0 %v7916_v8 }
0x1097   : > { %8310 = vmatpush1.msra.mxu1 %v7509_v17  ;;  %8393 = vmatpush2.msra.mxu0 %v7915_v24  ;;  %v6389_v40 = vpop.f32.mrf.mxu1 }
0x1098   : > { %8311 = vmatprep.subr.mxu1 %v7727_v57  ;;  %8394 = vmatprep.subr.mxu0 %v7909_v20 }
0x1099   : > { %8312 = vmatpush2.msra.mxu1 %v7726_v21  ;;  %8395 = vmatpush2.msra.mxu0 %v7908_v34 }
0x109a   : > { %8313 = vmatprep.subr.mxu1 %v7720_v53  ;;  %8396 = vmatprep.subr.mxu0 %v7902_v31 }
0x109b   : > { %8314 = vmatpush2.msra.mxu1 %v7719_v37  ;;  %8397 = vmatpush2.msra.mxu0 %v7901_v59 }
0x109c   : > { %8315 = vmatprep.subr.mxu1 %v7713_v46  ;;  %8398 = vmatprep.subr.mxu0 %v7895_v47 }
0x109d   : > { %8316 = vmatpush2.msra.mxu1 %v7712_v33  ;;  %8399 = vmatpush2.msra.mxu0 %v7894_v7 }
0x109e   : > { %8317 = vmatprep.subr.mxu1 %v7706_v62  ;;  %8400 = vmatprep.subr.mxu0 %v7888_v27 }
0x109f   : > { %8318 = vmatpush2.msra.mxu1 %v7705_v38  ;;  %8401 = vmatpush2.msra.mxu0 %v7887_v9  ;;  %v8062_v9 = vld [vmem:[%s17748_s19 + $0x1148] sm:$0xff] }
0x10a0   : > { %8319 = vmatprep.subr.mxu1 %v7699_v29  ;;  %8402 = vmatprep.subr.mxu0 %v7881_v60  ;;  %v8056_v29 = vld [vmem:[%s17748_s19 + $0x1118] sm:$0xff]  ;;  %v8055_v60 = vld [vmem:[%s17748_s19 + $0x1110] sm:$0xff] }
0x10a1   : > { %8320 = vmatpush2.msra.mxu1 %v7698_v50  ;;  %8403 = vmatpush2.msra.mxu0 %v7880_v52  ;;  %v8049_v50 = vld [vmem:[%s17748_s19 + $0x10e0] sm:$0xff]  ;;  %v8048_v52 = vld [vmem:[%s17748_s19 + $0x10d8] sm:$0xff] }
0x10a2   : > { %8321 = vmatprep.subr.mxu1 %v7692_v11  ;;  %8404 = vmatprep.subr.mxu0 %v7874_v44  ;;  %v8042_v11 = vld [vmem:[%s17748_s19 + $0x10a8] sm:$0xff]  ;;  %v8041_v44 = vld [vmem:[%s17748_s19 + $0x10a0] sm:$0xff] }
0x10a3   : > { %8322 = vmatpush2.msra.mxu1 %v7691_v5  ;;  %8405 = vmatpush2.msra.mxu0 %v7873_v2  ;;  %v8035_v5 = vld [vmem:[%s17748_s19 + $0x1070] sm:$0xff]  ;;  %v8034_v2 = vld [vmem:[%s17748_s19 + $0x1068] sm:$0xff] }
0x10a4   : > { %8323 = vmatprep.subr.mxu1 %v7685_v26  ;;  %8406 = vmatprep.subr.mxu0 %v7867_v12  ;;  %v8028_v26 = vld [vmem:[%s17748_s19 + $0x1038] sm:$0xff]  ;;  %v8027_v12 = vld [vmem:[%s17748_s19 + $0x1030] sm:$0xff] }
0x10a5   : > { %8324 = vmatpush2.msra.mxu1 %v7684_v35  ;;  %8407 = vmatpush2.msra.mxu0 %v7866_v45  ;;  %v8021_v35 = vld [vmem:[%s17748_s19 + $0x1000] sm:$0xff]  ;;  %v8020_v45 = vld [vmem:[%s17748_s19 + $0xff8] sm:$0xff] }
0x10a6   : > { %8325 = vmatprep.subr.mxu1 %v7678_v58  ;;  %8408 = vmatprep.subr.mxu0 %v7860_v61  ;;  %v8014_v58 = vld [vmem:[%s17748_s19 + $0xfc8] sm:$0xff]  ;;  %v8013_v61 = vld [vmem:[%s17748_s19 + $0xfc0] sm:$0xff] }
0x10a7   : > { %8326 = vmatpush2.msra.mxu1 %v7677_v51  ;;  %8409 = vmatpush2.msra.mxu0 %v7859_v18  ;;  %v6458_v4 = vpop.f32.mrf.mxu0  ;;  %v8007_v18 = vld [vmem:[%s17748_s19 + $0xf90] sm:$0xff] }
0x10a8   : > { %8327 = vmatprep.subr.mxu1 %v7671_v23  ;;  %8410 = vmatprep.subr.mxu0 %v7853_v0  ;;  %v8006_v0 = vld [vmem:[%s17748_s19 + $0xf88] sm:$0xff] }
0x10a9   : > { %8328 = vmatpush2.msra.mxu1 %v7670_v41  ;;  %8411 = vmatpush2.msra.mxu0 %v7852_v54  ;;  %v6460_v25 = vpop.f32.mrf.mxu0 }
0x10aa   : > { %8329 = vmatprep.subr.mxu1 %v7664_v36  ;;  %8412 = vmatprep.subr.mxu0 %v7846_v16  ;;  %v8000_v36 = vld [vmem:[%s17748_s19 + $0xf58] sm:$0xff] }
0x10ab   : > { %8330 = vmatpush2.msra.mxu1 %v7663_v13  ;;  %8413 = vmatpush2.msra.mxu0 %v7845_v43  ;;  %v7999_v13 = vld [vmem:[%s17748_s19 + $0xf50] sm:$0xff] }
0x10ac   : > { %8331 = vmatprep.subr.mxu1 %v7657_v22  ;;  %9770 = vmatprep.subr.msk.mxu0 %vm4095_vm9, %v8238_v48  ;;  %v6529_v8 = vpop.f32.mrf.mxu1  ;;  %v7993_v22 = vld [vmem:[%s17748_s19 + $0xf20] sm:$0xff] }
0x10ad   : > { %8332 = vmatpush2.msra.mxu1 %v7656_v39  ;;  %v8237_v48 = vld [vmem:[%s17748_s19 + $0x16c0] sm:$0x3f]  ;;  %v7992_v39 = vld [vmem:[%s17748_s19 + $0xf18] sm:$0xff] }
0x10ae   : > { %8333 = vmatprep.subr.mxu1 %v7650_v10  ;;  %v6531_v17 = vpop.f32.mrf.mxu1  ;;  %v8231_v10 = vld [vmem:[%s17748_s19 + $0x1690] sm:$0xff] }
0x10af   : > { %8334 = vmatpush2.msra.mxu1 %v7649_v30  ;;  %v7986_v30 = vld [vmem:[%s17748_s19 + $0xee8] sm:$0xff] }
0x10b0   : > { %8335 = vmatprep.subr.mxu1 %v7643_v3  ;;  %v8230_v3 = vld [vmem:[%s17748_s19 + $0x1688] sm:$0xff] }
0x10b1   : > { %8336 = vmatpush2.msra.mxu1 %v7642_v6  ;;  %v7985_v6 = vld [vmem:[%s17748_s19 + $0xee0] sm:$0xff] }
0x10b2   : > { %8337 = vmatprep.subr.mxu1 %v7636_v14  ;;  %v8224_v14 = vld [vmem:[%s17748_s19 + $0x1658] sm:$0xff] }
0x10b3   : > { %8338 = vmatpush2.msra.mxu1 %v7635_v56  ;;  %v7979_v56 = vld [vmem:[%s17748_s19 + $0xeb0] sm:$0xff] }
0x10b4   : > { %8339 = vmatprep.subr.mxu1 %v7629_v63  ;;  %v8223_v63 = vld [vmem:[%s17748_s19 + $0x1650] sm:$0xff] }
0x10b5   : > { %8340 = vmatpush2.msra.mxu1 %v7628_v49  ;;  %v7978_v49 = vld [vmem:[%s17748_s19 + $0xea8] sm:$0xff] }
0x10b6   : > { %8341 = vmatprep.subr.mxu1 %v7622_v32  ;;  %v8217_v32 = vld [vmem:[%s17748_s19 + $0x1620] sm:$0xff] }
0x10b7   : > { %8342 = vmatpush2.msra.mxu1 %v7621_v19  ;;  %v7972_v19 = vld [vmem:[%s17748_s19 + $0xe78] sm:$0xff] }
0x10b8   : > { %8421 = vmatprep.subr.mxu1 %v8063_v15  ;;  %v8216_v15 = vld [vmem:[%s17748_s19 + $0x1618] sm:$0xff] }
0x10c6   : > { %v15823_v28 = vpop.f32.mrf.mxu0 }
0x10c8   : > { %v10146_v1 = vpop.f32.mrf.mxu0 }
0x10c9   : > { %v7965_v1 = vld [vmem:[%s17748_s19 + $0xe40] sm:$0xff] }
0x10cb   : > { %v6673_v24 = vpop.f32.mrf.mxu1 }
0x10cc   : > { %v6674_v7 = vadd.f32 %v6673_v24, %v6387_v55  ;;  %v8209_v55 = vld [vmem:[%s17748_s19 + $0x15e0] sm:$0xff]  ;;  %v8202_v24 = vld [vmem:[%s17748_s19 + $0x15a8] sm:$0xff] }
0x10cd   : > { %v6675_v57 = vpop.f32.mrf.mxu1 }
0x10ce   : > { %v6676_v33 = vadd.f32 %v6675_v57, %v6389_v40  ;;  %v7964_v40 = vld [vmem:[%s17748_s19 + $0xe38] sm:$0xff]  ;;  %v7957_v57 = vld [vmem:[%s17748_s19 + $0xe00] sm:$0xff] }
0x10df   : > { %v6744_v31 = vpop.f32.mrf.mxu0 }
0x10e0   : > { %v6745_v41 = vadd.f32 %v6744_v31, %v6458_v4  ;;  %v7971_v4 = vld [vmem:[%s17748_s19 + $0xe70] sm:$0xff] }
0x10e1   : > { %v6746_v37 = vpop.f32.mrf.mxu0  ;;  %v8195_v31 = vld [vmem:[%s17748_s19 + $0x1570] sm:$0xff] }
0x10e2   : > { %v6747_v23 = vadd.f32 %v6746_v37, %v6460_v25  ;;  %v8210_v25 = vld [vmem:[%s17748_s19 + $0x15e8] sm:$0xff] }
0x10e3   : > { %v8174_v37 = vld [vmem:[%s17748_s19 + $0x14c8] sm:$0xff] }
0x10e5   : > { %v6815_v20 = vpop.f32.mrf.mxu1 }
0x10e6   : > { %v15825_v21 = vadd.f32 %v6815_v20, %v6529_v8  ;;  %v8203_v8 = vld [vmem:[%s17748_s19 + $0x15b0] sm:$0xff]  ;;  %v8196_v20 = vld [vmem:[%s17748_s19 + $0x1578] sm:$0xff] }
0x10e7   : > { %v6817_v34 = vpop.f32.mrf.mxu1 }
0x10e8   : > { %v15827_v53 = vadd.f32 %v6817_v34, %v6531_v17  ;;  %v7958_v17 = vld [vmem:[%s17748_s19 + $0xe08] sm:$0xff]  ;;  %v8175_v34 = vld [vmem:[%s17748_s19 + $0x14d0] sm:$0xff] }
0x10f9   : > { %v15829_v59 = vpop.f32.mrf.mxu0 }
0x10fb   : > { %v10173_v46 = vpop.f32.mrf.mxu0 }
0x10fc   : > { %v8189_v46 = vld [vmem:[%s17748_s19 + $0x1540] sm:$0xff] }
0x10ff   : > { %v7285_v47 = vpop.f32.mrf.mxu1 }
0x1100   : > { %v15833_v38 = vadd.f32 %v7285_v47, %v6674_v7  ;;  %v8168_v47 = vld [vmem:[%s17748_s19 + $0x1498] sm:$0xff]  ;;  %v8167_v7 = vld [vmem:[%s17748_s19 + $0x1490] sm:$0xff] }
0x1101   : > { %v7287_v62 = vpop.f32.mrf.mxu1 }
0x1102   : > { %v15831_v27 = vadd.f32 %v7287_v62, %v6676_v33  ;;  %v8188_v33 = vld [vmem:[%s17748_s19 + $0x1538] sm:$0xff]  ;;  %v8182_v62 = vld [vmem:[%s17748_s19 + $0x1508] sm:$0xff] }
0x1104   : > { %8343 = vmatprep.mubr.f32.mxu1 %v15831_v27 }
0x1105   : > { %8344 = vmatmul.mubr.f32.vlgmr.msra.gmra.mxu1 %v15833_v38 }
0x1106   : > { %8422 = vmatpush1.msra.mxu1 %v8062_v9  ;;  %v8161_v9 = vld [vmem:[%s17748_s19 + $0x1460] sm:$0xff] }
0x1107   : > { %8423 = vmatprep.subr.mxu1 %v8056_v29  ;;  %v8181_v29 = vld [vmem:[%s17748_s19 + $0x1500] sm:$0xff] }
0x1108   : > { %8424 = vmatpush1.msra.mxu1 %v8055_v60  ;;  %v8160_v60 = vld [vmem:[%s17748_s19 + $0x1458] sm:$0xff] }
0x1109   : > { %8425 = vmatprep.subr.mxu1 %v8049_v50  ;;  %v8154_v50 = vld [vmem:[%s17748_s19 + $0x1428] sm:$0xff] }
0x110a   : > { %8426 = vmatpush1.msra.mxu1 %v8048_v52  ;;  %v7617_v52 = vld [vmem:[%s17748_s19 + $0x360] sm:$0xff] }
0x110b   : > { %8427 = vmatprep.subr.mxu1 %v8042_v11  ;;  %v6887_v11 = vadd.f32 %v15829_v59, %v15823_v28  ;;  %v8146_v28 = vld [vmem:[%s17748_s19 + $0x13e8] sm:$0xff]  ;;  %v7616_v59 = vld [vmem:[%s17748_s19 + $0x358] sm:$0xff] }
0x110c   : > { %8428 = vmatpush1.msra.mxu1 %v8041_v44  ;;  %v8153_v44 = vld [vmem:[%s17748_s19 + $0x1420] sm:$0xff] }
0x110d   : > { %8429 = vmatprep.subr.mxu1 %v8035_v5  ;;  %v8147_v5 = vld [vmem:[%s17748_s19 + $0x13f0] sm:$0xff] }
0x110e   : > { %8430 = vmatpush1.msra.mxu1 %v8034_v2 }
0x110f   : > { %8431 = vmatprep.subr.mxu1 %v8028_v26 }
0x1110   : > { %8432 = vmatpush1.msra.mxu1 %v8027_v12  ;;  %v8140_v12 = vld [vmem:[%s17748_s19 + $0x13b8] sm:$0xff] }
0x1111   : > { %8433 = vmatprep.subr.mxu1 %v8021_v35 }
0x1112   : > { %8434 = vmatpush1.msra.mxu1 %v8020_v45  ;;  %v7356_v51 = vpop.f32.mrf.mxu0  ;;  %v7610_v45 = vld [vmem:[%s17748_s19 + $0x328] sm:$0xff] }
0x1113   : > { %8435 = vmatprep.subr.mxu1 %v8014_v58  ;;  %v15896_v43 = vadd.f32 %v7356_v51, %v6745_v41  ;;  %v8139_v58 = vld [vmem:[%s17748_s19 + $0x13b0] sm:$0xff]  ;;  %v7609_v51 = vld [vmem:[%s17748_s19 + $0x320] sm:$0xff]  ;;  %v7602_v41 = vld [vmem:[%s17748_s19 + $0x2e8] sm:$0xff] }
0x1114   : > { %8436 = vmatpush1.msra.mxu1 %v8013_v61  ;;  %v7358_v54 = vpop.f32.mrf.mxu0  ;;  %v8133_v61 = vld [vmem:[%s17748_s19 + $0x1380] sm:$0xff] }
0x1115   : > { %v15891_v16 = vadd.f32 %v7358_v54, %v6747_v23  ;;  %8437 = vmatprep.subr.mxu1 %v8007_v18  ;;  %v8132_v18 = vld [vmem:[%s17748_s19 + $0x1378] sm:$0xff]  ;;  %v7603_v23 = vld [vmem:[%s17748_s19 + $0x2f0] sm:$0xff]  ;;  %v8125_v54 = vld [vmem:[%s17748_s19 + $0x1340] sm:$0xff] }
0x1116   : > { %8438 = vmatpush1.msra.mxu1 %v8006_v0  ;;  %v8126_v0 = vld [vmem:[%s17748_s19 + $0x1348] sm:$0xff] }
0x1117   : > { %8439 = vmatprep.subr.mxu1 %v8000_v36  ;;  %8414 = vmatprep.mubr.f32.mxu0 %v15891_v16  ;;  %v7596_v36 = vld [vmem:[%s17748_s19 + $0x2b8] sm:$0xff] }
0x1118   : > { %8440 = vmatpush1.msra.mxu1 %v7999_v13  ;;  %8415 = vmatmul.mubr.f32.vlgmr.msra.gmra.mxu0 %v15896_v43  ;;  %v8119_v13 = vld [vmem:[%s17748_s19 + $0x1310] sm:$0xff] }
0x1119   : > { %8441 = vmatprep.subr.mxu1 %v7993_v22  ;;  %9771 = vmatpush1.msk.msra.mxu0 %vm4095_vm9, %v8237_v48  ;;  %v7595_v22 = vld [vmem:[%s17748_s19 + $0x2b0] sm:$0xff]  ;;  %v8118_v48 = vld [vmem:[%s17748_s19 + $0x1308] sm:$0xff] }
0x111a   : > { %8442 = vmatpush1.msra.mxu1 %v7992_v39  ;;  %8508 = vmatprep.subr.mxu0 %v8231_v10  ;;  %v7589_v39 = vld [vmem:[%s17748_s19 + $0x280] sm:$0xff]  ;;  %v8112_v10 = vld [vmem:[%s17748_s19 + $0x12d8] sm:$0xff] }
0x111b   : > { %8443 = vmatprep.subr.mxu1 %v7986_v30  ;;  %8509 = vmatpush1.msra.mxu0 %v8230_v3  ;;  %v7588_v30 = vld [vmem:[%s17748_s19 + $0x278] sm:$0xff]  ;;  %v8111_v3 = vld [vmem:[%s17748_s19 + $0x12d0] sm:$0xff] }
0x111c   : > { %8444 = vmatpush1.msra.mxu1 %v7985_v6  ;;  %8510 = vmatprep.subr.mxu0 %v8224_v14  ;;  %v7582_v6 = vld [vmem:[%s17748_s19 + $0x248] sm:$0xff]  ;;  %v8105_v14 = vld [vmem:[%s17748_s19 + $0x12a0] sm:$0xff] }
0x111d   : > { %8445 = vmatprep.subr.mxu1 %v7979_v56  ;;  %8511 = vmatpush1.msra.mxu0 %v8223_v63  ;;  %v7581_v56 = vld [vmem:[%s17748_s19 + $0x240] sm:$0xff]  ;;  %v8104_v63 = vld [vmem:[%s17748_s19 + $0x1298] sm:$0xff] }
0x111e   : > { %8446 = vmatpush1.msra.mxu1 %v7978_v49  ;;  %8512 = vmatprep.subr.mxu0 %v8217_v32  ;;  %v7575_v49 = vld [vmem:[%s17748_s19 + $0x210] sm:$0xff]  ;;  %v8098_v32 = vld [vmem:[%s17748_s19 + $0x1268] sm:$0xff] }
0x111f   : > { %8447 = vmatprep.subr.mxu1 %v7972_v19  ;;  %8513 = vmatpush1.msra.mxu0 %v8216_v15  ;;  %v7574_v19 = vld [vmem:[%s17748_s19 + $0x208] sm:$0xff] }
0x1120   : > { %8448 = vmatpush1.msra.mxu1 %v7971_v4  ;;  %8514 = vmatprep.subr.mxu0 %v8210_v25  ;;  %v8097_v4 = vld [vmem:[%s17748_s19 + $0x1260] sm:$0xff]  ;;  %v7568_v25 = vld [vmem:[%s17748_s19 + $0x1d8] sm:$0xff] }
0x1121   : > { %8449 = vmatprep.subr.mxu1 %v7965_v1  ;;  %8515 = vmatpush1.msra.mxu0 %v8209_v55  ;;  %v8091_v1 = vld [vmem:[%s17748_s19 + $0x1230] sm:$0xff] }
0x1122   : > { %8450 = vmatpush1.msra.mxu1 %v7964_v40  ;;  %8516 = vmatprep.subr.mxu0 %v8203_v8  ;;  %v7567_v55 = vld [vmem:[%s17748_s19 + $0x1d0] sm:$0xff]  ;;  %v8090_v40 = vld [vmem:[%s17748_s19 + $0x1228] sm:$0xff]  ;;  %v7561_v8 = vld [vmem:[%s17748_s19 + $0x1a0] sm:$0xff] }
0x1123   : > { %8451 = vmatprep.subr.mxu1 %v7958_v17  ;;  %8517 = vmatpush1.msra.mxu0 %v8202_v24  ;;  %v8084_v17 = vld [vmem:[%s17748_s19 + $0x11f8] sm:$0xff] }
0x1124   : > { %8452 = vmatpush1.msra.mxu1 %v7957_v57  ;;  %8518 = vmatprep.subr.mxu0 %v8196_v20  ;;  %v7560_v24 = vld [vmem:[%s17748_s19 + $0x198] sm:$0xff]  ;;  %v8083_v20 = vld [vmem:[%s17748_s19 + $0x11f0] sm:$0xff] }
0x1125   : > { %8453 = vmatprep.subr.mxu1 %v8175_v34  ;;  %8519 = vmatpush1.msra.mxu0 %v8195_v31  ;;  %v7554_v34 = vld [vmem:[%s17748_s19 + $0x168] sm:$0xff]  ;;  %v8077_v31 = vld [vmem:[%s17748_s19 + $0x11c0] sm:$0xff] }
0x1126   : > { %8454 = vmatpush2.msra.mxu1 %v8174_v37  ;;  %8520 = vmatprep.subr.mxu0 %v8189_v46  ;;  %v7553_v37 = vld [vmem:[%s17748_s19 + $0x160] sm:$0xff] }
0x1127   : > { %8455 = vmatprep.subr.mxu1 %v8168_v47  ;;  %8521 = vmatpush1.msra.mxu0 %v8188_v33  ;;  %v8076_v47 = vld [vmem:[%s17748_s19 + $0x11b8] sm:$0xff]  ;;  %v7547_v33 = vld [vmem:[%s17748_s19 + $0x130] sm:$0xff] }
0x1128   : > { %8456 = vmatpush2.msra.mxu1 %v8167_v7  ;;  %8522 = vmatprep.subr.mxu0 %v8182_v62  ;;  %v8070_v7 = vld [vmem:[%s17748_s19 + $0x1188] sm:$0xff] }
0x1129   : > { %8457 = vmatprep.subr.mxu1 %v8161_v9  ;;  %8523 = vmatpush1.msra.mxu0 %v8181_v29  ;;  %v7546_v62 = vld [vmem:[%s17748_s19 + $0x128] sm:$0xff]  ;;  %v7841_v9 = vld [vmem:[%s17748_s19 + $0xa60] sm:$0xff] }
0x112a   : > { %8458 = vmatpush2.msra.mxu1 %v8160_v60  ;;  %v7498_v2 = vpop.f32.mrf.mxu0  ;;  %8556 = vmatprep.mubr.f32.mxu0 %v17897_v42  ;;  %v7540_v60 = vld [vmem:[%s17748_s19 + $0xf8] sm:$0xff] }
0x112b   : > { %8459 = vmatprep.subr.mxu1 %v8154_v50  ;;  %v16021_v26 = vadd.f32 %v7498_v2, %v6887_v11  ;;  %8563 = vmatprep.subr.mxu0 %v7617_v52  ;;  %v7840_v50 = vld [vmem:[%s17748_s19 + $0xa58] sm:$0xff]  ;;  %v7539_v52 = vld [vmem:[%s17748_s19 + $0xf0] sm:$0xff]  ;;  %v7533_v11 = vld [vmem:[%s17748_s19 + $0xc0] sm:$0xff] }
0x112c   : > { %8460 = vmatpush2.msra.mxu1 %v8153_v44  ;;  %v10200_v35 = vpop.f32.mrf.mxu0  ;;  %v7833_v44 = vld [vmem:[%s17748_s19 + $0xa20] sm:$0xff]  ;;  %v7827_v2 = vld [vmem:[%s17748_s19 + $0x9f0] sm:$0xff] }
0x112d   : > { %8461 = vmatprep.subr.mxu1 %v8147_v5  ;;  %9772 = vmatmul.mubr.msk.f32.vlgmr.msra.gmra.mxu0 %vm8254_vm15, %v16021_v26  ;;  %v7532_v5 = vld [vmem:[%s17748_s19 + $0xb8] sm:$0xff] }
0x112e   : > { %8462 = vmatpush2.msra.mxu1 %v8146_v28  ;;  %8564 = vmatpush1.msra.mxu0 %v7616_v59  ;;  %v7526_v28 = vld [vmem:[%s17748_s19 + $0x88] sm:$0xff]  ;;  %v7820_v35 = vld [vmem:[%s17748_s19 + $0x9b8] sm:$0xff] }
0x112f   : > { %8463 = vmatprep.subr.mxu1 %v8140_v12  ;;  %8565 = vmatprep.subr.mxu0 %v7610_v45  ;;  %v7826_v59 = vld [vmem:[%s17748_s19 + $0x9e8] sm:$0xff]  ;;  %v7525_v12 = vld [vmem:[%s17748_s19 + $0x80] sm:$0xff]  ;;  %v7519_v45 = vld [vmem:[%s17748_s19 + $0x50] sm:$0xff] }
0x1130   : > { %8464 = vmatpush2.msra.mxu1 %v8139_v58  ;;  %8627 = vmatprep.mubr.f32.mxu0 %v15831_v27  ;;  %v7819_v58 = vld [vmem:[%s17748_s19 + $0x9b0] sm:$0xff] }
0x1131   : > { %8465 = vmatprep.subr.mxu1 %v8133_v61  ;;  %8566 = vmatpush1.msra.mxu0 %v7609_v51  ;;  %v7518_v61 = vld [vmem:[%s17748_s19 + $0x48] sm:$0xff]  ;;  %v7813_v51 = vld [vmem:[%s17748_s19 + $0x980] sm:$0xff] }
0x1132   : > { %8466 = vmatpush2.msra.mxu1 %v8132_v18  ;;  %8567 = vmatprep.subr.mxu0 %v7603_v23  ;;  %v7512_v18 = vld [vmem:[%s17748_s19 + $0x18] sm:$0xff] }
0x1133   : > { %8467 = vmatprep.subr.mxu1 %v8126_v0  ;;  %8568 = vmatpush1.msra.mxu0 %v7602_v41  ;;  %v7812_v23 = vld [vmem:[%s17748_s19 + $0x978] sm:$0xff]  ;;  %v7511_v0 = vld [vmem:[%s17748_s19 + $0x10] sm:$0xff]  ;;  %v7806_v41 = vld [vmem:[%s17748_s19 + $0x948] sm:$0xff] }
0x1134   : > { %8468 = vmatpush2.msra.mxu1 %v8125_v54  ;;  %8569 = vmatprep.subr.mxu0 %v7596_v36  ;;  %v7729_v54 = vld [vmem:[%s17748_s19 + $0x6e0] sm:$0xff] }
0x1135   : > { %8469 = vmatprep.subr.mxu1 %v8119_v13  ;;  %8570 = vmatpush1.msra.mxu0 %v7595_v22  ;;  %v7805_v36 = vld [vmem:[%s17748_s19 + $0x940] sm:$0xff]  ;;  %v7728_v13 = vld [vmem:[%s17748_s19 + $0x6d8] sm:$0xff]  ;;  %v7799_v22 = vld [vmem:[%s17748_s19 + $0x910] sm:$0xff] }
0x1136   : > { %8470 = vmatpush2.msra.mxu1 %v8118_v48  ;;  %8571 = vmatprep.subr.mxu0 %v7589_v39  ;;  %v7722_v48 = vld [vmem:[%s17748_s19 + $0x6a8] sm:$0xff] }
0x1137   : > { %8471 = vmatprep.subr.mxu1 %v8112_v10  ;;  %8572 = vmatpush1.msra.mxu0 %v7588_v30  ;;  %v7798_v39 = vld [vmem:[%s17748_s19 + $0x908] sm:$0xff]  ;;  %v7721_v10 = vld [vmem:[%s17748_s19 + $0x6a0] sm:$0xff]  ;;  %v7792_v30 = vld [vmem:[%s17748_s19 + $0x8d8] sm:$0xff] }
0x1138   : > { %8472 = vmatpush2.msra.mxu1 %v8111_v3  ;;  %8573 = vmatprep.subr.mxu0 %v7582_v6  ;;  %v7427_v15 = vpop.f32.mrf.mxu1  ;;  %v7715_v3 = vld [vmem:[%s17748_s19 + $0x670] sm:$0xff] }
0x1139   : > { %8473 = vmatprep.subr.mxu1 %v8105_v14  ;;  %8574 = vmatpush1.msra.mxu0 %v7581_v56  ;;  %v16165_v29 = vadd.f32 %v7427_v15, %v15825_v21  ;;  %v7834_v21 = vld [vmem:[%s17748_s19 + $0xa28] sm:$0xff]  ;;  %v7791_v6 = vld [vmem:[%s17748_s19 + $0x8d0] sm:$0xff]  ;;  %v7785_v56 = vld [vmem:[%s17748_s19 + $0x8a0] sm:$0xff] }
0x113a   : > { %8474 = vmatpush2.msra.mxu1 %v8104_v63  ;;  %8575 = vmatprep.subr.mxu0 %v7575_v49  ;;  %v7429_v57 = vpop.f32.mrf.mxu1  ;;  %v7714_v14 = vld [vmem:[%s17748_s19 + $0x668] sm:$0xff]  ;;  %v7708_v63 = vld [vmem:[%s17748_s19 + $0x638] sm:$0xff]  ;;  %v7701_v15 = vld [vmem:[%s17748_s19 + $0x600] sm:$0xff] }
0x113b   : > { %8475 = vmatprep.subr.mxu1 %v8098_v32  ;;  %8576 = vmatpush1.msra.mxu0 %v7574_v19  ;;  %v16144_v46 = vadd.f32 %v7429_v57, %v15827_v53  ;;  %v8069_v53 = vld [vmem:[%s17748_s19 + $0x1180] sm:$0xff]  ;;  %v7784_v49 = vld [vmem:[%s17748_s19 + $0x898] sm:$0xff]  ;;  %v7707_v32 = vld [vmem:[%s17748_s19 + $0x630] sm:$0xff] }
0x113c   : > { %8476 = vmatpush2.msra.mxu1 %v8097_v4  ;;  %8577 = vmatprep.subr.mxu0 %v7568_v25  ;;  %v7778_v19 = vld [vmem:[%s17748_s19 + $0x868] sm:$0xff]  ;;  %v7777_v4 = vld [vmem:[%s17748_s19 + $0x860] sm:$0xff]  ;;  %v7700_v25 = vld [vmem:[%s17748_s19 + $0x5f8] sm:$0xff] }
0x113d   : > { %8477 = vmatprep.subr.mxu1 %v8091_v1  ;;  %8578 = vmatpush1.msra.mxu0 %v7567_v55  ;;  %v7771_v1 = vld [vmem:[%s17748_s19 + $0x830] sm:$0xff]  ;;  %v7694_v55 = vld [vmem:[%s17748_s19 + $0x5c8] sm:$0xff] }
0x113e   : > { %8478 = vmatpush2.msra.mxu1 %v8090_v40  ;;  %8579 = vmatprep.subr.mxu0 %v7561_v8  ;;  %v7770_v40 = vld [vmem:[%s17748_s19 + $0x828] sm:$0xff]  ;;  %v7693_v8 = vld [vmem:[%s17748_s19 + $0x5c0] sm:$0xff]  ;;  %v7763_v57 = vld [vmem:[%s17748_s19 + $0x7f0] sm:$0xff] }
0x113f   : > { %8479 = vmatprep.subr.mxu1 %v8084_v17  ;;  %8580 = vmatpush1.msra.mxu0 %v7560_v24  ;;  %v7764_v17 = vld [vmem:[%s17748_s19 + $0x7f8] sm:$0xff]  ;;  %v7687_v24 = vld [vmem:[%s17748_s19 + $0x590] sm:$0xff] }
0x1140   : > { %8480 = vmatpush2.msra.mxu1 %v8083_v20  ;;  %8581 = vmatprep.subr.mxu0 %v7554_v34  ;;  %v7686_v20 = vld [vmem:[%s17748_s19 + $0x588] sm:$0xff]  ;;  %v7757_v34 = vld [vmem:[%s17748_s19 + $0x7c0] sm:$0xff] }
0x1141   : > { %8481 = vmatprep.subr.mxu1 %v8077_v31  ;;  %8582 = vmatpush1.msra.mxu0 %v7553_v37  ;;  %v7680_v31 = vld [vmem:[%s17748_s19 + $0x558] sm:$0xff] }
0x1142   : > { %8482 = vmatpush2.msra.mxu1 %v8076_v47  ;;  %8583 = vmatprep.subr.mxu0 %v7547_v33  ;;  %v7756_v37 = vld [vmem:[%s17748_s19 + $0x7b8] sm:$0xff]  ;;  %v7679_v47 = vld [vmem:[%s17748_s19 + $0x550] sm:$0xff]  ;;  %v7750_v33 = vld [vmem:[%s17748_s19 + $0x788] sm:$0xff] }
0x1143   : > { %8483 = vmatprep.subr.mxu1 %v8070_v7  ;;  %8485 = vmatprep.mubr.f32.mxu1 %v16144_v46  ;;  %v7673_v7 = vld [vmem:[%s17748_s19 + $0x520] sm:$0xff] }
0x1144   : > { %8484 = vmatpush2.msra.mxu1 %v8069_v53  ;;  %8584 = vmatpush1.msra.mxu0 %v7546_v62  ;;  %v7749_v53 = vld [vmem:[%s17748_s19 + $0x780] sm:$0xff]  ;;  %v7672_v62 = vld [vmem:[%s17748_s19 + $0x518] sm:$0xff] }
0x1145   : > { %8634 = vmatprep.subr.mxu1 %v7841_v9  ;;  %8486 = vmatmul.mubr.f32.vlgmr.msra.gmra.mxu1 %v16165_v29  ;;  %v7743_v9 = vld [vmem:[%s17748_s19 + $0x750] sm:$0xff] }
0x1146   : > { %8585 = vmatprep.subr.mxu0 %v7540_v60  ;;  %8635 = vmatpush1.msra.mxu1 %v7840_v50  ;;  %v7666_v60 = vld [vmem:[%s17748_s19 + $0x4e8] sm:$0xff] }
0x1147   : > { %8586 = vmatpush1.msra.mxu0 %v7539_v52  ;;  %8636 = vmatprep.subr.mxu1 %v7834_v21  ;;  %v7742_v50 = vld [vmem:[%s17748_s19 + $0x748] sm:$0xff]  ;;  %v7665_v52 = vld [vmem:[%s17748_s19 + $0x4e0] sm:$0xff]  ;;  %v7736_v21 = vld [vmem:[%s17748_s19 + $0x718] sm:$0xff] }
0x1148   : > { %8698 = vmatprep.mubr.f32.mxu1 %v15891_v16  ;;  %8587 = vmatprep.subr.mxu0 %v7533_v11  ;;  %v7659_v11 = vld [vmem:[%s17748_s19 + $0x4b0] sm:$0xff] }
0x1149   : > { %8637 = vmatpush1.msra.mxu1 %v7833_v44  ;;  %8588 = vmatpush1.msra.mxu0 %v7532_v5  ;;  %v7735_v44 = vld [vmem:[%s17748_s19 + $0x710] sm:$0xff]  ;;  %v7658_v5 = vld [vmem:[%s17748_s19 + $0x4a8] sm:$0xff] }
0x114a   : > { %8638 = vmatprep.subr.mxu1 %v7827_v2  ;;  %8589 = vmatprep.subr.mxu0 %v7526_v28  ;;  %v7953_v2 = vld [vmem:[%s17748_s19 + $0xde0] sm:$0xff]  ;;  %v7652_v28 = vld [vmem:[%s17748_s19 + $0x478] sm:$0xff] }
0x114b   : > { %8639 = vmatpush1.msra.mxu1 %v7826_v59  ;;  %8590 = vmatpush1.msra.mxu0 %v7525_v12  ;;  %v7952_v59 = vld [vmem:[%s17748_s19 + $0xdd8] sm:$0xff]  ;;  %v7651_v12 = vld [vmem:[%s17748_s19 + $0x470] sm:$0xff] }
0x114c   : > { %8640 = vmatprep.subr.mxu1 %v7820_v35  ;;  %8591 = vmatprep.subr.mxu0 %v7519_v45  ;;  %v7946_v35 = vld [vmem:[%s17748_s19 + $0xda8] sm:$0xff]  ;;  %v7645_v45 = vld [vmem:[%s17748_s19 + $0x440] sm:$0xff] }
0x114d   : > { %8641 = vmatpush1.msra.mxu1 %v7819_v58  ;;  %8592 = vmatpush1.msra.mxu0 %v7518_v61  ;;  %v7945_v58 = vld [vmem:[%s17748_s19 + $0xda0] sm:$0xff]  ;;  %v7644_v61 = vld [vmem:[%s17748_s19 + $0x438] sm:$0xff] }
0x114e   : > { %8642 = vmatprep.subr.mxu1 %v7813_v51  ;;  %8593 = vmatprep.subr.mxu0 %v7512_v18  ;;  %v7939_v51 = vld [vmem:[%s17748_s19 + $0xd70] sm:$0xff]  ;;  %v7638_v18 = vld [vmem:[%s17748_s19 + $0x408] sm:$0xff] }
0x114f   : > { %8643 = vmatpush1.msra.mxu1 %v7812_v23  ;;  %8594 = vmatpush1.msra.mxu0 %v7511_v0  ;;  %v7938_v23 = vld [vmem:[%s17748_s19 + $0xd68] sm:$0xff]  ;;  %v7637_v0 = vld [vmem:[%s17748_s19 + $0x400] sm:$0xff] }
0x1150   : > { %8644 = vmatprep.subr.mxu1 %v7806_v41  ;;  %8595 = vmatprep.subr.mxu0 %v7729_v54  ;;  %v7932_v41 = vld [vmem:[%s17748_s19 + $0xd38] sm:$0xff]  ;;  %v7631_v54 = vld [vmem:[%s17748_s19 + $0x3d0] sm:$0xff] }
0x1151   : > { %8645 = vmatpush1.msra.mxu1 %v7805_v36  ;;  %8596 = vmatpush2.msra.mxu0 %v7728_v13  ;;  %v7931_v36 = vld [vmem:[%s17748_s19 + $0xd30] sm:$0xff]  ;;  %v7630_v13 = vld [vmem:[%s17748_s19 + $0x3c8] sm:$0xff] }
0x1152   : > { %8646 = vmatprep.subr.mxu1 %v7799_v22  ;;  %8597 = vmatprep.subr.mxu0 %v7722_v48  ;;  %v7925_v22 = vld [vmem:[%s17748_s19 + $0xd00] sm:$0xff]  ;;  %v7624_v48 = vld [vmem:[%s17748_s19 + $0x398] sm:$0xff] }
0x1153   : > { %8647 = vmatpush1.msra.mxu1 %v7798_v39  ;;  %8598 = vmatpush2.msra.mxu0 %v7721_v10  ;;  %v7924_v39 = vld [vmem:[%s17748_s19 + $0xcf8] sm:$0xff]  ;;  %v7623_v10 = vld [vmem:[%s17748_s19 + $0x390] sm:$0xff] }
0x1154   : > { %8648 = vmatprep.subr.mxu1 %v7792_v30  ;;  %8599 = vmatprep.subr.mxu0 %v7715_v3  ;;  %v7918_v30 = vld [vmem:[%s17748_s19 + $0xcc8] sm:$0xff]  ;;  %v7917_v3 = vld [vmem:[%s17748_s19 + $0xcc0] sm:$0xff] }
0x1155   : > { %8649 = vmatpush1.msra.mxu1 %v7791_v6  ;;  %8600 = vmatpush2.msra.mxu0 %v7714_v14  ;;  %v8065_v6 = vld [vmem:[%s17748_s19 + $0x1160] sm:$0xff]  ;;  %v7911_v14 = vld [vmem:[%s17748_s19 + $0xc90] sm:$0xff] }
0x1156   : > { %8650 = vmatprep.subr.mxu1 %v7785_v56  ;;  %8601 = vmatprep.subr.mxu0 %v7708_v63  ;;  %v8064_v56 = vld [vmem:[%s17748_s19 + $0x1158] sm:$0xff]  ;;  %v7910_v63 = vld [vmem:[%s17748_s19 + $0xc88] sm:$0xff] }
0x1157   : > { %8651 = vmatpush1.msra.mxu1 %v7784_v49  ;;  %8602 = vmatpush2.msra.mxu0 %v7707_v32  ;;  %v8058_v49 = vld [vmem:[%s17748_s19 + $0x1128] sm:$0xff]  ;;  %v7904_v32 = vld [vmem:[%s17748_s19 + $0xc58] sm:$0xff] }
0x1158   : > { %8652 = vmatprep.subr.mxu1 %v7778_v19  ;;  %8603 = vmatprep.subr.mxu0 %v7701_v15  ;;  %v8057_v19 = vld [vmem:[%s17748_s19 + $0x1120] sm:$0xff]  ;;  %v7903_v15 = vld [vmem:[%s17748_s19 + $0xc50] sm:$0xff] }
0x1159   : > { %8653 = vmatpush1.msra.mxu1 %v7777_v4  ;;  %8604 = vmatpush2.msra.mxu0 %v7700_v25  ;;  %v8051_v4 = vld [vmem:[%s17748_s19 + $0x10f0] sm:$0xff]  ;;  %v7897_v25 = vld [vmem:[%s17748_s19 + $0xc20] sm:$0xff] }
0x115a   : > { %8654 = vmatprep.subr.mxu1 %v7771_v1  ;;  %8605 = vmatprep.subr.mxu0 %v7694_v55  ;;  %v8050_v1 = vld [vmem:[%s17748_s19 + $0x10e8] sm:$0xff]  ;;  %v7896_v55 = vld [vmem:[%s17748_s19 + $0xc18] sm:$0xff] }
0x115b   : > { %8655 = vmatpush1.msra.mxu1 %v7770_v40  ;;  %8606 = vmatpush2.msra.mxu0 %v7693_v8  ;;  %v8044_v40 = vld [vmem:[%s17748_s19 + $0x10b8] sm:$0xff]  ;;  %v7890_v8 = vld [vmem:[%s17748_s19 + $0xbe8] sm:$0xff] }
0x115c   : > { %8656 = vmatprep.subr.mxu1 %v7764_v17  ;;  %8607 = vmatprep.subr.mxu0 %v7687_v24  ;;  %v8043_v17 = vld [vmem:[%s17748_s19 + $0x10b0] sm:$0xff]  ;;  %v7889_v24 = vld [vmem:[%s17748_s19 + $0xbe0] sm:$0xff] }
0x115d   : > { %8657 = vmatpush1.msra.mxu1 %v7763_v57  ;;  %8608 = vmatpush2.msra.mxu0 %v7686_v20  ;;  %v8037_v57 = vld [vmem:[%s17748_s19 + $0x1080] sm:$0xff]  ;;  %v7883_v20 = vld [vmem:[%s17748_s19 + $0xbb0] sm:$0xff] }
0x115e   : > { %8658 = vmatprep.subr.mxu1 %v7757_v34  ;;  %8609 = vmatprep.subr.mxu0 %v7680_v31  ;;  %v8036_v34 = vld [vmem:[%s17748_s19 + $0x1078] sm:$0xff]  ;;  %v7882_v31 = vld [vmem:[%s17748_s19 + $0xba8] sm:$0xff] }
0x115f   : > { %8659 = vmatpush1.msra.mxu1 %v7756_v37  ;;  %8610 = vmatpush2.msra.mxu0 %v7679_v47  ;;  %v8030_v37 = vld [vmem:[%s17748_s19 + $0x1048] sm:$0xff]  ;;  %v7876_v47 = vld [vmem:[%s17748_s19 + $0xb78] sm:$0xff] }
0x1160   : > { %8660 = vmatprep.subr.mxu1 %v7750_v33  ;;  %8611 = vmatprep.subr.mxu0 %v7673_v7  ;;  %v8029_v33 = vld [vmem:[%s17748_s19 + $0x1040] sm:$0xff]  ;;  %v7875_v7 = vld [vmem:[%s17748_s19 + $0xb70] sm:$0xff] }
0x1161   : > { %8661 = vmatpush1.msra.mxu1 %v7749_v53  ;;  %8612 = vmatpush2.msra.mxu0 %v7672_v62  ;;  %v8023_v53 = vld [vmem:[%s17748_s19 + $0x1010] sm:$0xff]  ;;  %v7869_v62 = vld [vmem:[%s17748_s19 + $0xb40] sm:$0xff] }
0x1162   : > { %8662 = vmatprep.subr.mxu1 %v7743_v9  ;;  %8613 = vmatprep.subr.mxu0 %v7666_v60  ;;  %v8022_v9 = vld [vmem:[%s17748_s19 + $0x1008] sm:$0xff]  ;;  %v7868_v60 = vld [vmem:[%s17748_s19 + $0xb38] sm:$0xff] }
0x1163   : > { %8663 = vmatpush1.msra.mxu1 %v7742_v50  ;;  %8614 = vmatpush2.msra.mxu0 %v7665_v52  ;;  %v8016_v50 = vld [vmem:[%s17748_s19 + $0xfd8] sm:$0xff]  ;;  %v7862_v52 = vld [vmem:[%s17748_s19 + $0xb08] sm:$0xff] }
0x1164   : > { %8664 = vmatprep.subr.mxu1 %v7736_v21  ;;  %8615 = vmatprep.subr.mxu0 %v7659_v11  ;;  %v8015_v21 = vld [vmem:[%s17748_s19 + $0xfd0] sm:$0xff]  ;;  %v7861_v11 = vld [vmem:[%s17748_s19 + $0xb00] sm:$0xff] }
0x1165   : > { %8665 = vmatpush1.msra.mxu1 %v7735_v44  ;;  %8616 = vmatpush2.msra.mxu0 %v7658_v5  ;;  %v8009_v44 = vld [vmem:[%s17748_s19 + $0xfa0] sm:$0xff]  ;;  %v7855_v5 = vld [vmem:[%s17748_s19 + $0xad0] sm:$0xff] }
0x1166   : > { %8666 = vmatprep.subr.mxu1 %v7953_v2  ;;  %8617 = vmatprep.subr.mxu0 %v7652_v28  ;;  %v8008_v2 = vld [vmem:[%s17748_s19 + $0xf98] sm:$0xff]  ;;  %v7854_v28 = vld [vmem:[%s17748_s19 + $0xac8] sm:$0xff] }
0x1167   : > { %8667 = vmatpush2.msra.mxu1 %v7952_v59  ;;  %8618 = vmatpush2.msra.mxu0 %v7651_v12  ;;  %v8002_v59 = vld [vmem:[%s17748_s19 + $0xf68] sm:$0xff]  ;;  %v7848_v12 = vld [vmem:[%s17748_s19 + $0xa98] sm:$0xff] }
0x1168   : > { %8668 = vmatprep.subr.mxu1 %v7946_v35  ;;  %8619 = vmatprep.subr.mxu0 %v7645_v45  ;;  %v8001_v35 = vld [vmem:[%s17748_s19 + $0xf60] sm:$0xff]  ;;  %v7847_v45 = vld [vmem:[%s17748_s19 + $0xa90] sm:$0xff] }
0x1169   : > { %8669 = vmatpush2.msra.mxu1 %v7945_v58  ;;  %8620 = vmatpush2.msra.mxu0 %v7644_v61  ;;  %v7995_v58 = vld [vmem:[%s17748_s19 + $0xf30] sm:$0xff]  ;;  %v7994_v61 = vld [vmem:[%s17748_s19 + $0xf28] sm:$0xff] }
0x116a   : > { %8670 = vmatprep.subr.mxu1 %v7939_v51  ;;  %8621 = vmatprep.subr.mxu0 %v7638_v18  ;;  %v8240_v51 = vld [vmem:[%s17748_s19 + $0x16d8] sm:$0x3f] }
0x116b   : > { %8671 = vmatpush2.msra.mxu1 %v7938_v23  ;;  %8622 = vmatpush2.msra.mxu0 %v7637_v0  ;;  %v7988_v18 = vld [vmem:[%s17748_s19 + $0xef8] sm:$0xff]  ;;  %v8239_v23 = vld [vmem:[%s17748_s19 + $0x16d0] sm:$0x3f] }
0x116c   : > { %8672 = vmatprep.subr.mxu1 %v7932_v41  ;;  %8623 = vmatprep.subr.mxu0 %v7631_v54  ;;  %v7987_v0 = vld [vmem:[%s17748_s19 + $0xef0] sm:$0xff]  ;;  %v8233_v41 = vld [vmem:[%s17748_s19 + $0x16a0] sm:$0xff] }
0x116d   : > { %8673 = vmatpush2.msra.mxu1 %v7931_v36  ;;  %8624 = vmatpush2.msra.mxu0 %v7630_v13  ;;  %v7981_v54 = vld [vmem:[%s17748_s19 + $0xec0] sm:$0xff]  ;;  %v8232_v36 = vld [vmem:[%s17748_s19 + $0x1698] sm:$0xff] }
0x116e   : > { %8674 = vmatprep.subr.mxu1 %v7925_v22  ;;  %8625 = vmatprep.subr.mxu0 %v7624_v48  ;;  %v7980_v13 = vld [vmem:[%s17748_s19 + $0xeb8] sm:$0xff]  ;;  %v8226_v22 = vld [vmem:[%s17748_s19 + $0x1668] sm:$0xff] }
0x116f   : > { %8675 = vmatpush2.msra.mxu1 %v7924_v39  ;;  %8626 = vmatpush2.msra.mxu0 %v7623_v10  ;;  %v7974_v48 = vld [vmem:[%s17748_s19 + $0xe88] sm:$0xff]  ;;  %v8225_v39 = vld [vmem:[%s17748_s19 + $0x1660] sm:$0xff] }
0x1170   : > { %8676 = vmatprep.subr.mxu1 %v7918_v30  ;;  %8628 = vmatmul.mubr.f32.vlgmr.msra.gmra.mxu0 %v15833_v38  ;;  %v7973_v10 = vld [vmem:[%s17748_s19 + $0xe80] sm:$0xff]  ;;  %v8219_v30 = vld [vmem:[%s17748_s19 + $0x1630] sm:$0xff] }
0x1171   : > { %8677 = vmatpush2.msra.mxu1 %v7917_v3  ;;  %8705 = vmatprep.subr.mxu0 %v8065_v6  ;;  %v7967_v3 = vld [vmem:[%s17748_s19 + $0xe50] sm:$0xff]  ;;  %v8218_v6 = vld [vmem:[%s17748_s19 + $0x1628] sm:$0xff] }
0x1172   : > { %8678 = vmatprep.subr.mxu1 %v7911_v14  ;;  %8706 = vmatpush1.msra.mxu0 %v8064_v56  ;;  %v7966_v14 = vld [vmem:[%s17748_s19 + $0xe48] sm:$0xff]  ;;  %v8212_v56 = vld [vmem:[%s17748_s19 + $0x15f8] sm:$0xff] }
0x1173   : > { %8769 = vmatprep.mubr.f32.mxu0 %v16144_v46  ;;  %8679 = vmatpush2.msra.mxu1 %v7910_v63  ;;  %v7960_v63 = vld [vmem:[%s17748_s19 + $0xe18] sm:$0xff] }
0x1174   : > { %8707 = vmatprep.subr.mxu0 %v8058_v49  ;;  %8680 = vmatprep.subr.mxu1 %v7904_v32  ;;  %v8211_v49 = vld [vmem:[%s17748_s19 + $0x15f0] sm:$0xff] }
0x1175   : > { %8708 = vmatpush1.msra.mxu0 %v8057_v19  ;;  %8681 = vmatpush2.msra.mxu1 %v7903_v15  ;;  %v7959_v32 = vld [vmem:[%s17748_s19 + $0xe10] sm:$0xff]  ;;  %v8205_v19 = vld [vmem:[%s17748_s19 + $0x15c0] sm:$0xff] }
0x1176   : > { %8709 = vmatprep.subr.mxu0 %v8051_v4  ;;  %8682 = vmatprep.subr.mxu1 %v7897_v25  ;;  %v8177_v15 = vld [vmem:[%s17748_s19 + $0x14e0] sm:$0xff]  ;;  %v8204_v4 = vld [vmem:[%s17748_s19 + $0x15b8] sm:$0xff] }
0x1177   : > { %8710 = vmatpush1.msra.mxu0 %v8050_v1  ;;  %8683 = vmatpush2.msra.mxu1 %v7896_v55  ;;  %v8176_v25 = vld [vmem:[%s17748_s19 + $0x14d8] sm:$0xff]  ;;  %v8198_v1 = vld [vmem:[%s17748_s19 + $0x1588] sm:$0xff] }
0x1178   : > { %8711 = vmatprep.subr.mxu0 %v8044_v40  ;;  %8684 = vmatprep.subr.mxu1 %v7890_v8  ;;  %v8170_v55 = vld [vmem:[%s17748_s19 + $0x14a8] sm:$0xff]  ;;  %v8197_v40 = vld [vmem:[%s17748_s19 + $0x1580] sm:$0xff] }
0x1179   : > { %8712 = vmatpush1.msra.mxu0 %v8043_v17  ;;  %8685 = vmatpush2.msra.mxu1 %v7889_v24  ;;  %v8169_v8 = vld [vmem:[%s17748_s19 + $0x14a0] sm:$0xff]  ;;  %v8191_v17 = vld [vmem:[%s17748_s19 + $0x1550] sm:$0xff] }
0x117a   : > { %8713 = vmatprep.subr.mxu0 %v8037_v57  ;;  %8686 = vmatprep.subr.mxu1 %v7883_v20  ;;  %v8163_v24 = vld [vmem:[%s17748_s19 + $0x1470] sm:$0xff]  ;;  %v8190_v57 = vld [vmem:[%s17748_s19 + $0x1548] sm:$0xff] }
0x117b   : > { %8714 = vmatpush1.msra.mxu0 %v8036_v34  ;;  %8687 = vmatpush2.msra.mxu1 %v7882_v31  ;;  %v8162_v20 = vld [vmem:[%s17748_s19 + $0x1468] sm:$0xff]  ;;  %v8184_v34 = vld [vmem:[%s17748_s19 + $0x1518] sm:$0xff] }
0x117c   : > { %8715 = vmatprep.subr.mxu0 %v8030_v37  ;;  %8688 = vmatprep.subr.mxu1 %v7876_v47  ;;  %v8156_v31 = vld [vmem:[%s17748_s19 + $0x1438] sm:$0xff]  ;;  %v8183_v37 = vld [vmem:[%s17748_s19 + $0x1510] sm:$0xff] }
0x117d   : > { %8716 = vmatpush1.msra.mxu0 %v8029_v33  ;;  %8689 = vmatpush2.msra.mxu1 %v7875_v7  ;;  %v8155_v47 = vld [vmem:[%s17748_s19 + $0x1430] sm:$0xff]  ;;  %v8149_v7 = vld [vmem:[%s17748_s19 + $0x1400] sm:$0xff] }
0x117e   : > { %8717 = vmatprep.subr.mxu0 %v8023_v53  ;;  %8690 = vmatprep.subr.mxu1 %v7869_v62  ;;  %v7619_v33 = vld [vmem:[%s17748_s19 + $0x370] sm:$0xff]  ;;  %v7618_v53 = vld [vmem:[%s17748_s19 + $0x368] sm:$0xff]  ;;  %v8148_v62 = vld [vmem:[%s17748_s19 + $0x13f8] sm:$0xff] }
0x117f   : > { %8718 = vmatpush1.msra.mxu0 %v8022_v9  ;;  %8691 = vmatpush2.msra.mxu1 %v7868_v60  ;;  %v7612_v9 = vld [vmem:[%s17748_s19 + $0x338] sm:$0xff]  ;;  %v8142_v60 = vld [vmem:[%s17748_s19 + $0x13c8] sm:$0xff] }
0x1180   : > { %8719 = vmatprep.subr.mxu0 %v8016_v50  ;;  %8692 = vmatprep.subr.mxu1 %v7862_v52  ;;  %v7611_v50 = vld [vmem:[%s17748_s19 + $0x330] sm:$0xff]  ;;  %v8141_v52 = vld [vmem:[%s17748_s19 + $0x13c0] sm:$0xff] }
0x1181   : > { %8720 = vmatpush1.msra.mxu0 %v8015_v21  ;;  %8693 = vmatpush2.msra.mxu1 %v7861_v11  ;;  %v7605_v21 = vld [vmem:[%s17748_s19 + $0x300] sm:$0xff]  ;;  %v8135_v11 = vld [vmem:[%s17748_s19 + $0x1390] sm:$0xff] }
0x1182   : > { %8721 = vmatprep.subr.mxu0 %v8009_v44  ;;  %8694 = vmatprep.subr.mxu1 %v7855_v5  ;;  %v7604_v44 = vld [vmem:[%s17748_s19 + $0x2f8] sm:$0xff]  ;;  %v8134_v5 = vld [vmem:[%s17748_s19 + $0x1388] sm:$0xff] }
0x1183   : > { %8722 = vmatpush1.msra.mxu0 %v8008_v2  ;;  %8695 = vmatpush2.msra.mxu1 %v7854_v28  ;;  %v7598_v2 = vld [vmem:[%s17748_s19 + $0x2c8] sm:$0xff]  ;;  %v8128_v28 = vld [vmem:[%s17748_s19 + $0x1358] sm:$0xff] }
0x1184   : > { %8723 = vmatprep.subr.mxu0 %v8002_v59  ;;  %8696 = vmatprep.subr.mxu1 %v7848_v12  ;;  %v7597_v59 = vld [vmem:[%s17748_s19 + $0x2c0] sm:$0xff]  ;;  %v8127_v12 = vld [vmem:[%s17748_s19 + $0x1350] sm:$0xff] }
0x1185   : > { %8724 = vmatpush1.msra.mxu0 %v8001_v35  ;;  %8697 = vmatpush2.msra.mxu1 %v7847_v45  ;;  %v7591_v35 = vld [vmem:[%s17748_s19 + $0x290] sm:$0xff]  ;;  %v8121_v45 = vld [vmem:[%s17748_s19 + $0x1320] sm:$0xff] }
0x1186   : > { %8725 = vmatprep.subr.mxu0 %v7995_v58  ;;  %8699 = vmatmul.mubr.f32.vlgmr.msra.gmra.mxu1 %v15896_v43  ;;  %v7590_v58 = vld [vmem:[%s17748_s19 + $0x288] sm:$0xff] }
0x1187   : > { %8726 = vmatpush1.msra.mxu0 %v7994_v61  ;;  %9773 = vmatprep.subr.msk.mxu1 %vm4095_vm9, %v8240_v51  ;;  %v8120_v61 = vld [vmem:[%s17748_s19 + $0x1318] sm:$0xff] }
0x1188   : > { %8727 = vmatprep.subr.mxu0 %v7988_v18  ;;  %9774 = vmatpush1.msk.msra.mxu1 %vm4095_vm9, %v8239_v23  ;;  %v7584_v51 = vld [vmem:[%s17748_s19 + $0x258] sm:$0xff]  ;;  %v8114_v18 = vld [vmem:[%s17748_s19 + $0x12e8] sm:$0xff]  ;;  %v7583_v23 = vld [vmem:[%s17748_s19 + $0x250] sm:$0xff] }
0x1189   : > { %8728 = vmatpush1.msra.mxu0 %v7987_v0  ;;  %8792 = vmatprep.subr.mxu1 %v8233_v41  ;;  %v8113_v0 = vld [vmem:[%s17748_s19 + $0x12e0] sm:$0xff] }
0x118a   : > { %8729 = vmatprep.subr.mxu0 %v7981_v54  ;;  %8793 = vmatpush1.msra.mxu1 %v8232_v36  ;;  %v7577_v41 = vld [vmem:[%s17748_s19 + $0x220] sm:$0xff]  ;;  %v8107_v54 = vld [vmem:[%s17748_s19 + $0x12b0] sm:$0xff]  ;;  %v7576_v36 = vld [vmem:[%s17748_s19 + $0x218] sm:$0xff] }
0x118b   : > { %8730 = vmatpush1.msra.mxu0 %v7980_v13  ;;  %8794 = vmatprep.subr.mxu1 %v8226_v22  ;;  %v8106_v13 = vld [vmem:[%s17748_s19 + $0x12a8] sm:$0xff] }
0x118c   : > { %8731 = vmatprep.subr.mxu0 %v7974_v48  ;;  %8795 = vmatpush1.msra.mxu1 %v8225_v39  ;;  %v7570_v22 = vld [vmem:[%s17748_s19 + $0x1e8] sm:$0xff]  ;;  %v8100_v48 = vld [vmem:[%s17748_s19 + $0x1278] sm:$0xff]  ;;  %v7569_v39 = vld [vmem:[%s17748_s19 + $0x1e0] sm:$0xff] }
0x118d   : > { %8732 = vmatpush1.msra.mxu0 %v7973_v10  ;;  %8796 = vmatprep.subr.mxu1 %v8219_v30  ;;  %v8099_v10 = vld [vmem:[%s17748_s19 + $0x1270] sm:$0xff] }
0x118e   : > { %8733 = vmatprep.subr.mxu0 %v7967_v3  ;;  %8797 = vmatpush1.msra.mxu1 %v8218_v6  ;;  %v7563_v30 = vld [vmem:[%s17748_s19 + $0x1b0] sm:$0xff]  ;;  %v8093_v3 = vld [vmem:[%s17748_s19 + $0x1240] sm:$0xff]  ;;  %v7562_v6 = vld [vmem:[%s17748_s19 + $0x1a8] sm:$0xff] }
0x118f   : > { %8734 = vmatpush1.msra.mxu0 %v7966_v14  ;;  %8798 = vmatprep.subr.mxu1 %v8212_v56  ;;  %v8092_v14 = vld [vmem:[%s17748_s19 + $0x1238] sm:$0xff] }
0x1190   : > { %8735 = vmatprep.subr.mxu0 %v7960_v63  ;;  %8799 = vmatpush1.msra.mxu1 %v8211_v49  ;;  %v7556_v56 = vld [vmem:[%s17748_s19 + $0x178] sm:$0xff]  ;;  %v8086_v63 = vld [vmem:[%s17748_s19 + $0x1208] sm:$0xff]  ;;  %v7555_v49 = vld [vmem:[%s17748_s19 + $0x170] sm:$0xff] }
0x1191   : > { %8736 = vmatpush1.msra.mxu0 %v7959_v32  ;;  %8800 = vmatprep.subr.mxu1 %v8205_v19  ;;  %v8085_v32 = vld [vmem:[%s17748_s19 + $0x1200] sm:$0xff] }
0x1192   : > { %8737 = vmatprep.subr.mxu0 %v8177_v15  ;;  %8801 = vmatpush1.msra.mxu1 %v8204_v4  ;;  %v7549_v19 = vld [vmem:[%s17748_s19 + $0x140] sm:$0xff]  ;;  %v8079_v15 = vld [vmem:[%s17748_s19 + $0x11d0] sm:$0xff]  ;;  %v7548_v4 = vld [vmem:[%s17748_s19 + $0x138] sm:$0xff] }
0x1193   : > { %8738 = vmatpush2.msra.mxu0 %v8176_v25  ;;  %8802 = vmatprep.subr.mxu1 %v8198_v1  ;;  %v8078_v25 = vld [vmem:[%s17748_s19 + $0x11c8] sm:$0xff] }
0x1194   : > { %8739 = vmatprep.subr.mxu0 %v8170_v55  ;;  %8803 = vmatpush1.msra.mxu1 %v8197_v40  ;;  %v7542_v1 = vld [vmem:[%s17748_s19 + $0x108] sm:$0xff]  ;;  %v8072_v55 = vld [vmem:[%s17748_s19 + $0x1198] sm:$0xff]  ;;  %v7541_v40 = vld [vmem:[%s17748_s19 + $0x100] sm:$0xff] }
0x1195   : > { %8740 = vmatpush2.msra.mxu0 %v8169_v8  ;;  %8804 = vmatprep.subr.mxu1 %v8191_v17  ;;  %v8071_v8 = vld [vmem:[%s17748_s19 + $0x1190] sm:$0xff] }
0x1196   : > { %8741 = vmatprep.subr.mxu0 %v8163_v24  ;;  %8805 = vmatpush1.msra.mxu1 %v8190_v57  ;;  %v7535_v17 = vld [vmem:[%s17748_s19 + $0xd0] sm:$0xff]  ;;  %v7534_v24 = vld [vmem:[%s17748_s19 + $0xc8] sm:$0xff] }
0x1197   : > { %8742 = vmatpush2.msra.mxu0 %v8162_v20  ;;  %8806 = vmatprep.subr.mxu1 %v8184_v34  ;;  %v7843_v57 = vld [vmem:[%s17748_s19 + $0xa70] sm:$0xff]  ;;  %v7528_v20 = vld [vmem:[%s17748_s19 + $0x98] sm:$0xff]  ;;  %v7842_v34 = vld [vmem:[%s17748_s19 + $0xa68] sm:$0xff] }
0x1198   : > { %8743 = vmatprep.subr.mxu0 %v8156_v31  ;;  %8807 = vmatpush1.msra.mxu1 %v8183_v37  ;;  %v7527_v31 = vld [vmem:[%s17748_s19 + $0x90] sm:$0xff]  ;;  %v7836_v37 = vld [vmem:[%s17748_s19 + $0xa38] sm:$0xff] }
0x1199   : > { %8840 = vmatprep.mubr.f32.mxu1 %v17897_v42  ;;  %8744 = vmatpush2.msra.mxu0 %v8155_v47  ;;  %v7521_v47 = vld [vmem:[%s17748_s19 + $0x60] sm:$0xff] }
0x119a   : > { %9775 = vmatmul.mubr.msk.f32.vlgmr.msra.gmra.mxu1 %vm8254_vm15, %v16021_v26  ;;  %8847 = vmatprep.subr.mxu1 %v7619_v33  ;;  %v7835_v33 = vld [vmem:[%s17748_s19 + $0xa30] sm:$0xff] }
0x119b   : > { %8745 = vmatprep.subr.mxu0 %v8149_v7  ;;  %8848 = vmatpush1.msra.mxu1 %v7618_v53  ;;  %v7520_v7 = vld [vmem:[%s17748_s19 + $0x58] sm:$0xff]  ;;  %v7829_v53 = vld [vmem:[%s17748_s19 + $0xa00] sm:$0xff] }
0x119c   : > { %8911 = vmatprep.mubr.f32.mxu1 %v15831_v27  ;;  %8746 = vmatpush2.msra.mxu0 %v8148_v62  ;;  %v7514_v62 = vld [vmem:[%s17748_s19 + $0x28] sm:$0xff] }
0x119d   : > { %8849 = vmatprep.subr.mxu1 %v7612_v9  ;;  %8747 = vmatprep.subr.mxu0 %v8142_v60  ;;  %v7828_v9 = vld [vmem:[%s17748_s19 + $0x9f8] sm:$0xff]  ;;  %v7513_v60 = vld [vmem:[%s17748_s19 + $0x20] sm:$0xff] }
0x119e   : > { %8850 = vmatpush1.msra.mxu1 %v7611_v50  ;;  %8748 = vmatpush2.msra.mxu0 %v8141_v52  ;;  %v7822_v50 = vld [vmem:[%s17748_s19 + $0x9c8] sm:$0xff]  ;;  %v7731_v52 = vld [vmem:[%s17748_s19 + $0x6f0] sm:$0xff] }
0x119f   : > { %8851 = vmatprep.subr.mxu1 %v7605_v21  ;;  %8749 = vmatprep.subr.mxu0 %v8135_v11  ;;  %v7821_v21 = vld [vmem:[%s17748_s19 + $0x9c0] sm:$0xff]  ;;  %v7730_v11 = vld [vmem:[%s17748_s19 + $0x6e8] sm:$0xff] }
0x11a0   : > { %8852 = vmatpush1.msra.mxu1 %v7604_v44  ;;  %8750 = vmatpush2.msra.mxu0 %v8134_v5  ;;  %v7815_v44 = vld [vmem:[%s17748_s19 + $0x990] sm:$0xff]  ;;  %v7724_v5 = vld [vmem:[%s17748_s19 + $0x6b8] sm:$0xff] }
0x11a1   : > { %8853 = vmatprep.subr.mxu1 %v7598_v2  ;;  %8751 = vmatprep.subr.mxu0 %v8128_v28  ;;  %v7814_v2 = vld [vmem:[%s17748_s19 + $0x988] sm:$0xff]  ;;  %v7723_v28 = vld [vmem:[%s17748_s19 + $0x6b0] sm:$0xff] }
0x11a2   : > { %8854 = vmatpush1.msra.mxu1 %v7597_v59  ;;  %8752 = vmatpush2.msra.mxu0 %v8127_v12  ;;  %v7808_v59 = vld [vmem:[%s17748_s19 + $0x958] sm:$0xff]  ;;  %v7717_v12 = vld [vmem:[%s17748_s19 + $0x680] sm:$0xff] }
0x11a3   : > { %8855 = vmatprep.subr.mxu1 %v7591_v35  ;;  %8753 = vmatprep.subr.mxu0 %v8121_v45  ;;  %v7807_v35 = vld [vmem:[%s17748_s19 + $0x950] sm:$0xff]  ;;  %v7716_v45 = vld [vmem:[%s17748_s19 + $0x678] sm:$0xff] }
0x11a4   : > { %8856 = vmatpush1.msra.mxu1 %v7590_v58  ;;  %8754 = vmatpush2.msra.mxu0 %v8120_v61  ;;  %v7801_v58 = vld [vmem:[%s17748_s19 + $0x920] sm:$0xff]  ;;  %v7710_v61 = vld [vmem:[%s17748_s19 + $0x648] sm:$0xff] }
0x11a5   : > { %8857 = vmatprep.subr.mxu1 %v7584_v51  ;;  %8755 = vmatprep.subr.mxu0 %v8114_v18  ;;  %v7800_v51 = vld [vmem:[%s17748_s19 + $0x918] sm:$0xff]  ;;  %v7709_v18 = vld [vmem:[%s17748_s19 + $0x640] sm:$0xff] }
0x11a6   : > { %8858 = vmatpush1.msra.mxu1 %v7583_v23  ;;  %8756 = vmatpush2.msra.mxu0 %v8113_v0  ;;  %v7794_v23 = vld [vmem:[%s17748_s19 + $0x8e8] sm:$0xff]  ;;  %v7703_v0 = vld [vmem:[%s17748_s19 + $0x610] sm:$0xff] }
0x11a7   : > { %8859 = vmatprep.subr.mxu1 %v7577_v41  ;;  %8757 = vmatprep.subr.mxu0 %v8107_v54  ;;  %v7793_v41 = vld [vmem:[%s17748_s19 + $0x8e0] sm:$0xff]  ;;  %v7702_v54 = vld [vmem:[%s17748_s19 + $0x608] sm:$0xff] }
0x11a8   : > { %8860 = vmatpush1.msra.mxu1 %v7576_v36  ;;  %8758 = vmatpush2.msra.mxu0 %v8106_v13  ;;  %v7787_v36 = vld [vmem:[%s17748_s19 + $0x8b0] sm:$0xff]  ;;  %v7696_v13 = vld [vmem:[%s17748_s19 + $0x5d8] sm:$0xff] }
0x11a9   : > { %8861 = vmatprep.subr.mxu1 %v7570_v22  ;;  %8759 = vmatprep.subr.mxu0 %v8100_v48  ;;  %v7786_v22 = vld [vmem:[%s17748_s19 + $0x8a8] sm:$0xff]  ;;  %v7695_v48 = vld [vmem:[%s17748_s19 + $0x5d0] sm:$0xff] }
0x11aa   : > { %8862 = vmatpush1.msra.mxu1 %v7569_v39  ;;  %8760 = vmatpush2.msra.mxu0 %v8099_v10  ;;  %v7780_v39 = vld [vmem:[%s17748_s19 + $0x878] sm:$0xff]  ;;  %v7689_v10 = vld [vmem:[%s17748_s19 + $0x5a0] sm:$0xff] }
0x11ab   : > { %8863 = vmatprep.subr.mxu1 %v7563_v30  ;;  %8761 = vmatprep.subr.mxu0 %v8093_v3  ;;  %v7779_v30 = vld [vmem:[%s17748_s19 + $0x870] sm:$0xff]  ;;  %v7688_v3 = vld [vmem:[%s17748_s19 + $0x598] sm:$0xff] }
0x11ac   : > { %8864 = vmatpush1.msra.mxu1 %v7562_v6  ;;  %8762 = vmatpush2.msra.mxu0 %v8092_v14  ;;  %v7773_v6 = vld [vmem:[%s17748_s19 + $0x840] sm:$0xff]  ;;  %v7682_v14 = vld [vmem:[%s17748_s19 + $0x568] sm:$0xff] }
0x11ad   : > { %8865 = vmatprep.subr.mxu1 %v7556_v56  ;;  %8763 = vmatprep.subr.mxu0 %v8086_v63  ;;  %v7772_v56 = vld [vmem:[%s17748_s19 + $0x838] sm:$0xff]  ;;  %v7681_v63 = vld [vmem:[%s17748_s19 + $0x560] sm:$0xff] }
0x11ae   : > { %8866 = vmatpush1.msra.mxu1 %v7555_v49  ;;  %8764 = vmatpush2.msra.mxu0 %v8085_v32  ;;  %v7766_v49 = vld [vmem:[%s17748_s19 + $0x808] sm:$0xff]  ;;  %v7675_v32 = vld [vmem:[%s17748_s19 + $0x530] sm:$0xff] }
0x11af   : > { %8867 = vmatprep.subr.mxu1 %v7549_v19  ;;  %8765 = vmatprep.subr.mxu0 %v8079_v15  ;;  %v7765_v19 = vld [vmem:[%s17748_s19 + $0x800] sm:$0xff]  ;;  %v7674_v15 = vld [vmem:[%s17748_s19 + $0x528] sm:$0xff] }
0x11b0   : > { %8868 = vmatpush1.msra.mxu1 %v7548_v4  ;;  %8766 = vmatpush2.msra.mxu0 %v8078_v25  ;;  %v7759_v4 = vld [vmem:[%s17748_s19 + $0x7d0] sm:$0xff]  ;;  %v7668_v25 = vld [vmem:[%s17748_s19 + $0x4f8] sm:$0xff] }
0x11b1   : > { %8869 = vmatprep.subr.mxu1 %v7542_v1  ;;  %8767 = vmatprep.subr.mxu0 %v8072_v55  ;;  %v7758_v1 = vld [vmem:[%s17748_s19 + $0x7c8] sm:$0xff]  ;;  %v7667_v55 = vld [vmem:[%s17748_s19 + $0x4f0] sm:$0xff] }
0x11b2   : > { %8870 = vmatpush1.msra.mxu1 %v7541_v40  ;;  %8768 = vmatpush2.msra.mxu0 %v8071_v8  ;;  %v7752_v40 = vld [vmem:[%s17748_s19 + $0x798] sm:$0xff]  ;;  %v7661_v8 = vld [vmem:[%s17748_s19 + $0x4c0] sm:$0xff] }
0x11b3   : > { %8871 = vmatprep.subr.mxu1 %v7535_v17  ;;  %8770 = vmatmul.mubr.f32.vlgmr.msra.gmra.mxu0 %v16165_v29  ;;  %v7751_v17 = vld [vmem:[%s17748_s19 + $0x790] sm:$0xff] }
0x11b4   : > { %8872 = vmatpush1.msra.mxu1 %v7534_v24  ;;  %8918 = vmatprep.subr.mxu0 %v7843_v57  ;;  %v7660_v24 = vld [vmem:[%s17748_s19 + $0x4b8] sm:$0xff]  ;;  %v7745_v57 = vld [vmem:[%s17748_s19 + $0x760] sm:$0xff] }
0x11b5   : > { %8873 = vmatprep.subr.mxu1 %v7528_v20  ;;  %8919 = vmatpush1.msra.mxu0 %v7842_v34  ;;  %v7654_v20 = vld [vmem:[%s17748_s19 + $0x488] sm:$0xff]  ;;  %v7744_v34 = vld [vmem:[%s17748_s19 + $0x758] sm:$0xff] }
0x11b6   : > { %8982 = vmatprep.mubr.f32.mxu0 %v15891_v16  ;;  %8874 = vmatpush1.msra.mxu1 %v7527_v31  ;;  %v7653_v31 = vld [vmem:[%s17748_s19 + $0x480] sm:$0xff] }
0x11b7   : > { %8920 = vmatprep.subr.mxu0 %v7836_v37  ;;  %8875 = vmatprep.subr.mxu1 %v7521_v47  ;;  %v7738_v37 = vld [vmem:[%s17748_s19 + $0x728] sm:$0xff]  ;;  %v7647_v47 = vld [vmem:[%s17748_s19 + $0x450] sm:$0xff] }
0x11b8   : > { %8921 = vmatpush1.msra.mxu0 %v7835_v33  ;;  %8876 = vmatpush1.msra.mxu1 %v7520_v7  ;;  %v7737_v33 = vld [vmem:[%s17748_s19 + $0x720] sm:$0xff]  ;;  %v7646_v7 = vld [vmem:[%s17748_s19 + $0x448] sm:$0xff] }
0x11b9   : > { %8922 = vmatprep.subr.mxu0 %v7829_v53  ;;  %8877 = vmatprep.subr.mxu1 %v7514_v62  ;;  %v7955_v53 = vld [vmem:[%s17748_s19 + $0xdf0] sm:$0xff]  ;;  %v7640_v62 = vld [vmem:[%s17748_s19 + $0x418] sm:$0xff] }
0x11ba   : > { %8923 = vmatpush1.msra.mxu0 %v7828_v9  ;;  %8878 = vmatpush1.msra.mxu1 %v7513_v60  ;;  %v7954_v9 = vld [vmem:[%s17748_s19 + $0xde8] sm:$0xff]  ;;  %v7639_v60 = vld [vmem:[%s17748_s19 + $0x410] sm:$0xff] }
0x11bb   : > { %8924 = vmatprep.subr.mxu0 %v7822_v50  ;;  %8879 = vmatprep.subr.mxu1 %v7731_v52  ;;  %v7948_v50 = vld [vmem:[%s17748_s19 + $0xdb8] sm:$0xff]  ;;  %v7633_v52 = vld [vmem:[%s17748_s19 + $0x3e0] sm:$0xff] }
0x11bc   : > { %8925 = vmatpush1.msra.mxu0 %v7821_v21  ;;  %8880 = vmatpush2.msra.mxu1 %v7730_v11  ;;  %v7947_v21 = vld [vmem:[%s17748_s19 + $0xdb0] sm:$0xff]  ;;  %v7632_v11 = vld [vmem:[%s17748_s19 + $0x3d8] sm:$0xff] }
0x11bd   : > { %8926 = vmatprep.subr.mxu0 %v7815_v44  ;;  %8881 = vmatprep.subr.mxu1 %v7724_v5  ;;  %v7941_v44 = vld [vmem:[%s17748_s19 + $0xd80] sm:$0xff]  ;;  %v7626_v5 = vld [vmem:[%s17748_s19 + $0x3a8] sm:$0xff] }
0x11be   : > { %8927 = vmatpush1.msra.mxu0 %v7814_v2  ;;  %8882 = vmatpush2.msra.mxu1 %v7723_v28  ;;  %v7940_v2 = vld [vmem:[%s17748_s19 + $0xd78] sm:$0xff]  ;;  %v7625_v28 = vld [vmem:[%s17748_s19 + $0x3a0] sm:$0xff] }
0x11bf   : > { %8928 = vmatprep.subr.mxu0 %v7808_v59  ;;  %8883 = vmatprep.subr.mxu1 %v7717_v12  ;;  %v7934_v59 = vld [vmem:[%s17748_s19 + $0xd48] sm:$0xff]  ;;  %v7933_v12 = vld [vmem:[%s17748_s19 + $0xd40] sm:$0xff] }
0x11c0   : > { %8929 = vmatpush1.msra.mxu0 %v7807_v35  ;;  %8884 = vmatpush2.msra.mxu1 %v7716_v45  ;;  %v8067_v35 = vld [vmem:[%s17748_s19 + $0x1170] sm:$0xff] }
0x11c1   : > { %8930 = vmatprep.subr.mxu0 %v7801_v58  ;;  %8885 = vmatprep.subr.mxu1 %v7710_v61  ;;  %v7927_v45 = vld [vmem:[%s17748_s19 + $0xd10] sm:$0xff]  ;;  %v8066_v58 = vld [vmem:[%s17748_s19 + $0x1168] sm:$0xff] }
0x11c2   : > { %8931 = vmatpush1.msra.mxu0 %v7800_v51  ;;  %8886 = vmatpush2.msra.mxu1 %v7709_v18  ;;  %v7926_v61 = vld [vmem:[%s17748_s19 + $0xd08] sm:$0xff]  ;;  %v8060_v51 = vld [vmem:[%s17748_s19 + $0x1138] sm:$0xff] }
0x11c3   : > { %8932 = vmatprep.subr.mxu0 %v7794_v23  ;;  %8887 = vmatprep.subr.mxu1 %v7703_v0  ;;  %v7920_v18 = vld [vmem:[%s17748_s19 + $0xcd8] sm:$0xff]  ;;  %v8059_v23 = vld [vmem:[%s17748_s19 + $0x1130] sm:$0xff] }
0x11c4   : > { %8933 = vmatpush1.msra.mxu0 %v7793_v41  ;;  %8888 = vmatpush2.msra.mxu1 %v7702_v54  ;;  %v7919_v0 = vld [vmem:[%s17748_s19 + $0xcd0] sm:$0xff]  ;;  %v8053_v41 = vld [vmem:[%s17748_s19 + $0x1100] sm:$0xff] }
0x11c5   : > { %8934 = vmatprep.subr.mxu0 %v7787_v36  ;;  %8889 = vmatprep.subr.mxu1 %v7696_v13  ;;  %v7913_v54 = vld [vmem:[%s17748_s19 + $0xca0] sm:$0xff]  ;;  %v8052_v36 = vld [vmem:[%s17748_s19 + $0x10f8] sm:$0xff] }
0x11c6   : > { %8935 = vmatpush1.msra.mxu0 %v7786_v22  ;;  %8890 = vmatpush2.msra.mxu1 %v7695_v48  ;;  %v7912_v13 = vld [vmem:[%s17748_s19 + $0xc98] sm:$0xff]  ;;  %v8046_v22 = vld [vmem:[%s17748_s19 + $0x10c8] sm:$0xff] }
0x11c7   : > { %8936 = vmatprep.subr.mxu0 %v7780_v39  ;;  %8891 = vmatprep.subr.mxu1 %v7689_v10  ;;  %v7906_v48 = vld [vmem:[%s17748_s19 + $0xc68] sm:$0xff]  ;;  %v8045_v39 = vld [vmem:[%s17748_s19 + $0x10c0] sm:$0xff] }
0x11c8   : > { %8937 = vmatpush1.msra.mxu0 %v7779_v30  ;;  %8892 = vmatpush2.msra.mxu1 %v7688_v3  ;;  %v7905_v10 = vld [vmem:[%s17748_s19 + $0xc60] sm:$0xff]  ;;  %v8039_v30 = vld [vmem:[%s17748_s19 + $0x1090] sm:$0xff] }
0x11c9   : > { %8938 = vmatprep.subr.mxu0 %v7773_v6  ;;  %8893 = vmatprep.subr.mxu1 %v7682_v14  ;;  %v7899_v3 = vld [vmem:[%s17748_s19 + $0xc30] sm:$0xff]  ;;  %v8038_v6 = vld [vmem:[%s17748_s19 + $0x1088] sm:$0xff] }
0x11ca   : > { %8939 = vmatpush1.msra.mxu0 %v7772_v56  ;;  %8894 = vmatpush2.msra.mxu1 %v7681_v63  ;;  %v7898_v14 = vld [vmem:[%s17748_s19 + $0xc28] sm:$0xff]  ;;  %v8032_v56 = vld [vmem:[%s17748_s19 + $0x1058] sm:$0xff] }
0x11cb   : > { %8940 = vmatprep.subr.mxu0 %v7766_v49  ;;  %8895 = vmatprep.subr.mxu1 %v7675_v32  ;;  %v7892_v63 = vld [vmem:[%s17748_s19 + $0xbf8] sm:$0xff]  ;;  %v8031_v49 = vld [vmem:[%s17748_s19 + $0x1050] sm:$0xff] }
0x11cc   : > { %8941 = vmatpush1.msra.mxu0 %v7765_v19  ;;  %8896 = vmatpush2.msra.mxu1 %v7674_v15  ;;  %v7891_v32 = vld [vmem:[%s17748_s19 + $0xbf0] sm:$0xff]  ;;  %v8025_v19 = vld [vmem:[%s17748_s19 + $0x1020] sm:$0xff] }
0x11cd   : > { %8942 = vmatprep.subr.mxu0 %v7759_v4  ;;  %8897 = vmatprep.subr.mxu1 %v7668_v25  ;;  %v7885_v15 = vld [vmem:[%s17748_s19 + $0xbc0] sm:$0xff]  ;;  %v8024_v4 = vld [vmem:[%s17748_s19 + $0x1018] sm:$0xff] }
0x11ce   : > { %8943 = vmatpush1.msra.mxu0 %v7758_v1  ;;  %8898 = vmatpush2.msra.mxu1 %v7667_v55  ;;  %v7884_v25 = vld [vmem:[%s17748_s19 + $0xbb8] sm:$0xff]  ;;  %v8018_v1 = vld [vmem:[%s17748_s19 + $0xfe8] sm:$0xff] }
0x11cf   : > { %8944 = vmatprep.subr.mxu0 %v7752_v40  ;;  %8899 = vmatprep.subr.mxu1 %v7661_v8  ;;  %v7878_v55 = vld [vmem:[%s17748_s19 + $0xb88] sm:$0xff]  ;;  %v8017_v40 = vld [vmem:[%s17748_s19 + $0xfe0] sm:$0xff] }
0x11d0   : > { %8945 = vmatpush1.msra.mxu0 %v7751_v17  ;;  %8900 = vmatpush2.msra.mxu1 %v7660_v24  ;;  %v7877_v8 = vld [vmem:[%s17748_s19 + $0xb80] sm:$0xff]  ;;  %v8011_v17 = vld [vmem:[%s17748_s19 + $0xfb0] sm:$0xff] }
0x11d1   : > { %8946 = vmatprep.subr.mxu0 %v7745_v57  ;;  %8901 = vmatprep.subr.mxu1 %v7654_v20  ;;  %v7871_v24 = vld [vmem:[%s17748_s19 + $0xb50] sm:$0xff]  ;;  %v8010_v57 = vld [vmem:[%s17748_s19 + $0xfa8] sm:$0xff] }
0x11d2   : > { %8947 = vmatpush1.msra.mxu0 %v7744_v34  ;;  %8902 = vmatpush2.msra.mxu1 %v7653_v31  ;;  %v7870_v20 = vld [vmem:[%s17748_s19 + $0xb48] sm:$0xff]  ;;  %v8004_v34 = vld [vmem:[%s17748_s19 + $0xf78] sm:$0xff] }
0x11d3   : > { %8948 = vmatprep.subr.mxu0 %v7738_v37  ;;  %8903 = vmatprep.subr.mxu1 %v7647_v47  ;;  %v7864_v31 = vld [vmem:[%s17748_s19 + $0xb18] sm:$0xff]  ;;  %v8003_v37 = vld [vmem:[%s17748_s19 + $0xf70] sm:$0xff] }
0x11d4   : > { %8949 = vmatpush1.msra.mxu0 %v7737_v33  ;;  %8904 = vmatpush2.msra.mxu1 %v7646_v7  ;;  %v7863_v47 = vld [vmem:[%s17748_s19 + $0xb10] sm:$0xff]  ;;  %v7997_v33 = vld [vmem:[%s17748_s19 + $0xf40] sm:$0xff] }
0x11d5   : > { %8950 = vmatprep.subr.mxu0 %v7955_v53  ;;  %8905 = vmatprep.subr.mxu1 %v7640_v62  ;;  %v7857_v7 = vld [vmem:[%s17748_s19 + $0xae0] sm:$0xff]  ;;  %v7996_v53 = vld [vmem:[%s17748_s19 + $0xf38] sm:$0xff] }
0x11d6   : > { %8951 = vmatpush2.msra.mxu0 %v7954_v9  ;;  %8906 = vmatpush2.msra.mxu1 %v7639_v60  ;;  %v7856_v62 = vld [vmem:[%s17748_s19 + $0xad8] sm:$0xff]  ;;  %v7990_v9 = vld [vmem:[%s17748_s19 + $0xf08] sm:$0xff] }
0x11d7   : > { %8952 = vmatprep.subr.mxu0 %v7948_v50  ;;  %8907 = vmatprep.subr.mxu1 %v7633_v52  ;;  %v7850_v60 = vld [vmem:[%s17748_s19 + $0xaa8] sm:$0xff]  ;;  %v7989_v50 = vld [vmem:[%s17748_s19 + $0xf00] sm:$0xff] }
0x11d8   : > { %8953 = vmatpush2.msra.mxu0 %v7947_v21  ;;  %8908 = vmatpush2.msra.mxu1 %v7632_v11  ;;  %v7849_v52 = vld [vmem:[%s17748_s19 + $0xaa0] sm:$0xff]  ;;  %v7983_v21 = vld [vmem:[%s17748_s19 + $0xed0] sm:$0xff]  ;;  %v7982_v11 = vld [vmem:[%s17748_s19 + $0xec8] sm:$0xff] }
0x11d9   : > { %8954 = vmatprep.subr.mxu0 %v7941_v44  ;;  %8909 = vmatprep.subr.mxu1 %v7626_v5  ;;  %v8242_v44 = vld [vmem:[%s17748_s19 + $0x16e8] sm:$0x3f]  ;;  %v7976_v5 = vld [vmem:[%s17748_s19 + $0xe98] sm:$0xff] }
0x11da   : > { %8955 = vmatpush2.msra.mxu0 %v7940_v2  ;;  %8910 = vmatpush2.msra.mxu1 %v7625_v28  ;;  %v8241_v2 = vld [vmem:[%s17748_s19 + $0x16e0] sm:$0x3f]  ;;  %v7975_v28 = vld [vmem:[%s17748_s19 + $0xe90] sm:$0xff] }
0x11db   : > { %8956 = vmatprep.subr.mxu0 %v7934_v59  ;;  %8912 = vmatmul.mubr.f32.vlgmr.msra.gmra.mxu1 %v15833_v38  ;;  %v8235_v59 = vld [vmem:[%s17748_s19 + $0x16b0] sm:$0xff] }
0x11dc   : > { %8957 = vmatpush2.msra.mxu0 %v7933_v12  ;;  %8989 = vmatprep.subr.mxu1 %v8067_v35  ;;  %v7969_v12 = vld [vmem:[%s17748_s19 + $0xe60] sm:$0xff]  ;;  %v8234_v35 = vld [vmem:[%s17748_s19 + $0x16a8] sm:$0xff] }
0x11dd   : > { %8958 = vmatprep.subr.mxu0 %v7927_v45  ;;  %8990 = vmatpush1.msra.mxu1 %v8066_v58  ;;  %v7968_v45 = vld [vmem:[%s17748_s19 + $0xe58] sm:$0xff] }
0x11de   : > { %9053 = vmatprep.mubr.f32.mxu1 %v16144_v46  ;;  %8959 = vmatpush2.msra.mxu0 %v7926_v61  ;;  %v8228_v58 = vld [vmem:[%s17748_s19 + $0x1678] sm:$0xff]  ;;  %v7962_v61 = vld [vmem:[%s17748_s19 + $0xe28] sm:$0xff] }
0x11df   : > { %8991 = vmatprep.subr.mxu1 %v8060_v51  ;;  %8960 = vmatprep.subr.mxu0 %v7920_v18  ;;  %v8227_v51 = vld [vmem:[%s17748_s19 + $0x1670] sm:$0xff]  ;;  %v7961_v18 = vld [vmem:[%s17748_s19 + $0xe20] sm:$0xff] }
0x11e0   : > { %8992 = vmatpush1.msra.mxu1 %v8059_v23  ;;  %8961 = vmatpush2.msra.mxu0 %v7919_v0  ;;  %v8221_v23 = vld [vmem:[%s17748_s19 + $0x1640] sm:$0xff]  ;;  %v8179_v0 = vld [vmem:[%s17748_s19 + $0x14f0] sm:$0xff] }
0x11e1   : > { %8993 = vmatprep.subr.mxu1 %v8053_v41  ;;  %8962 = vmatprep.subr.mxu0 %v7913_v54  ;;  %v8220_v41 = vld [vmem:[%s17748_s19 + $0x1638] sm:$0xff]  ;;  %v8178_v54 = vld [vmem:[%s17748_s19 + $0x14e8] sm:$0xff] }
0x11e2   : > { %8994 = vmatpush1.msra.mxu1 %v8052_v36  ;;  %8963 = vmatpush2.msra.mxu0 %v7912_v13  ;;  %v8214_v36 = vld [vmem:[%s17748_s19 + $0x1608] sm:$0xff]  ;;  %v8172_v13 = vld [vmem:[%s17748_s19 + $0x14b8] sm:$0xff] }
0x11e3   : > { %8995 = vmatprep.subr.mxu1 %v8046_v22  ;;  %8964 = vmatprep.subr.mxu0 %v7906_v48  ;;  %v8213_v22 = vld [vmem:[%s17748_s19 + $0x1600] sm:$0xff]  ;;  %v8171_v48 = vld [vmem:[%s17748_s19 + $0x14b0] sm:$0xff] }
0x11e4   : > { %8996 = vmatpush1.msra.mxu1 %v8045_v39  ;;  %8965 = vmatpush2.msra.mxu0 %v7905_v10  ;;  %v8207_v39 = vld [vmem:[%s17748_s19 + $0x15d0] sm:$0xff]  ;;  %v8165_v10 = vld [vmem:[%s17748_s19 + $0x1480] sm:$0xff] }
0x11e5   : > { %8997 = vmatprep.subr.mxu1 %v8039_v30  ;;  %8966 = vmatprep.subr.mxu0 %v7899_v3  ;;  %v8206_v30 = vld [vmem:[%s17748_s19 + $0x15c8] sm:$0xff]  ;;  %v8164_v3 = vld [vmem:[%s17748_s19 + $0x1478] sm:$0xff] }
0x11e6   : > { %8998 = vmatpush1.msra.mxu1 %v8038_v6  ;;  %8967 = vmatpush2.msra.mxu0 %v7898_v14  ;;  %v8200_v6 = vld [vmem:[%s17748_s19 + $0x1598] sm:$0xff]  ;;  %v8158_v14 = vld [vmem:[%s17748_s19 + $0x1448] sm:$0xff] }
0x11e7   : > { %8999 = vmatprep.subr.mxu1 %v8032_v56  ;;  %8968 = vmatprep.subr.mxu0 %v7892_v63  ;;  %v8199_v56 = vld [vmem:[%s17748_s19 + $0x1590] sm:$0xff]  ;;  %v8157_v63 = vld [vmem:[%s17748_s19 + $0x1440] sm:$0xff] }
0x11e8   : > { %9000 = vmatpush1.msra.mxu1 %v8031_v49  ;;  %8969 = vmatpush2.msra.mxu0 %v7891_v32  ;;  %v8193_v49 = vld [vmem:[%s17748_s19 + $0x1560] sm:$0xff]  ;;  %v8151_v32 = vld [vmem:[%s17748_s19 + $0x1410] sm:$0xff] }
0x11e9   : > { %9001 = vmatprep.subr.mxu1 %v8025_v19  ;;  %8970 = vmatprep.subr.mxu0 %v7885_v15  ;;  %v8192_v19 = vld [vmem:[%s17748_s19 + $0x1558] sm:$0xff]  ;;  %v8150_v15 = vld [vmem:[%s17748_s19 + $0x1408] sm:$0xff] }
0x11ea   : > { %9002 = vmatpush1.msra.mxu1 %v8024_v4  ;;  %8971 = vmatpush2.msra.mxu0 %v7884_v25  ;;  %v8186_v4 = vld [vmem:[%s17748_s19 + $0x1528] sm:$0xff]  ;;  %v8144_v25 = vld [vmem:[%s17748_s19 + $0x13d8] sm:$0xff] }
0x11eb   : > { %9003 = vmatprep.subr.mxu1 %v8018_v1  ;;  %8972 = vmatprep.subr.mxu0 %v7878_v55  ;;  %v8185_v1 = vld [vmem:[%s17748_s19 + $0x1520] sm:$0xff]  ;;  %v8143_v55 = vld [vmem:[%s17748_s19 + $0x13d0] sm:$0xff] }
0x11ec   : > { %9004 = vmatpush1.msra.mxu1 %v8017_v40  ;;  %8973 = vmatpush2.msra.mxu0 %v7877_v8  ;;  %v7732_v40 = vld [vmem:[%s17748_s19 + $0x6f8] sm:$0xff]  ;;  %v8137_v8 = vld [vmem:[%s17748_s19 + $0x13a0] sm:$0xff] }
0x11ed   : > { %9005 = vmatprep.subr.mxu1 %v8011_v17  ;;  %8974 = vmatprep.subr.mxu0 %v7871_v24  ;;  %v7620_v17 = vld [vmem:[%s17748_s19 + $0x378] sm:$0xff] }
0x11ee   : > { %9006 = vmatpush1.msra.mxu1 %v8010_v57  ;;  %8975 = vmatpush2.msra.mxu0 %v7870_v20  ;;  %v8136_v24 = vld [vmem:[%s17748_s19 + $0x1398] sm:$0xff]  ;;  %v7725_v57 = vld [vmem:[%s17748_s19 + $0x6c0] sm:$0xff]  ;;  %v8130_v20 = vld [vmem:[%s17748_s19 + $0x1368] sm:$0xff] }
0x11ef   : > { %9007 = vmatprep.subr.mxu1 %v8004_v34  ;;  %8976 = vmatprep.subr.mxu0 %v7864_v31  ;;  %v7613_v34 = vld [vmem:[%s17748_s19 + $0x340] sm:$0xff] }
0x11f0   : > { %9008 = vmatpush1.msra.mxu1 %v8003_v37  ;;  %8977 = vmatpush2.msra.mxu0 %v7863_v47  ;;  %v8129_v31 = vld [vmem:[%s17748_s19 + $0x1360] sm:$0xff]  ;;  %v7718_v37 = vld [vmem:[%s17748_s19 + $0x688] sm:$0xff]  ;;  %v8123_v47 = vld [vmem:[%s17748_s19 + $0x1330] sm:$0xff] }
0x11f1   : > { %9009 = vmatprep.subr.mxu1 %v7997_v33  ;;  %8978 = vmatprep.subr.mxu0 %v7857_v7  ;;  %v7606_v33 = vld [vmem:[%s17748_s19 + $0x308] sm:$0xff] }
0x11f2   : > { %9010 = vmatpush1.msra.mxu1 %v7996_v53  ;;  %8979 = vmatpush2.msra.mxu0 %v7856_v62  ;;  %v8122_v7 = vld [vmem:[%s17748_s19 + $0x1328] sm:$0xff]  ;;  %v8116_v53 = vld [vmem:[%s17748_s19 + $0x12f8] sm:$0xff]  ;;  %v7599_v62 = vld [vmem:[%s17748_s19 + $0x2d0] sm:$0xff] }
0x11f3   : > { %9011 = vmatprep.subr.mxu1 %v7990_v9  ;;  %8980 = vmatprep.subr.mxu0 %v7850_v60  ;;  %v8115_v9 = vld [vmem:[%s17748_s19 + $0x12f0] sm:$0xff]  ;;  %v7704_v60 = vld [vmem:[%s17748_s19 + $0x618] sm:$0xff] }
0x11f4   : > { %9012 = vmatpush1.msra.mxu1 %v7989_v50  ;;  %8981 = vmatpush2.msra.mxu0 %v7849_v52  ;;  %v8109_v50 = vld [vmem:[%s17748_s19 + $0x12c0] sm:$0xff]  ;;  %v7592_v52 = vld [vmem:[%s17748_s19 + $0x298] sm:$0xff] }
0x11f5   : > { %9013 = vmatprep.subr.mxu1 %v7983_v21  ;;  %8983 = vmatmul.mubr.f32.vlgmr.msra.gmra.mxu0 %v15896_v43  ;;  %v8108_v21 = vld [vmem:[%s17748_s19 + $0x12b8] sm:$0xff] }
0x11f6   : > { %9014 = vmatpush1.msra.mxu1 %v7982_v11  ;;  %9776 = vmatprep.subr.msk.mxu0 %vm4095_vm9, %v8242_v44  ;;  %v7697_v11 = vld [vmem:[%s17748_s19 + $0x5e0] sm:$0xff]  ;;  %v8102_v44 = vld [vmem:[%s17748_s19 + $0x1288] sm:$0xff] }
0x11f7   : > { %9015 = vmatprep.subr.mxu1 %v7976_v5  ;;  %9777 = vmatpush1.msk.msra.mxu0 %vm4095_vm9, %v8241_v2  ;;  %v7585_v5 = vld [vmem:[%s17748_s19 + $0x260] sm:$0xff] }
0x11f8   : > { %9016 = vmatpush1.msra.mxu1 %v7975_v28  ;;  %9076 = vmatprep.subr.mxu0 %v8235_v59  ;;  %v8101_v2 = vld [vmem:[%s17748_s19 + $0x1280] sm:$0xff]  ;;  %v7690_v28 = vld [vmem:[%s17748_s19 + $0x5a8] sm:$0xff]  ;;  %v8095_v59 = vld [vmem:[%s17748_s19 + $0x1250] sm:$0xff] }
0x11f9   : > { %9017 = vmatprep.subr.mxu1 %v7969_v12  ;;  %9077 = vmatpush1.msra.mxu0 %v8234_v35  ;;  %v7578_v12 = vld [vmem:[%s17748_s19 + $0x228] sm:$0xff] }
0x11fa   : > { %9018 = vmatpush1.msra.mxu1 %v7968_v45  ;;  %9078 = vmatprep.subr.mxu0 %v8228_v58  ;;  %v8094_v35 = vld [vmem:[%s17748_s19 + $0x1248] sm:$0xff]  ;;  %v7683_v45 = vld [vmem:[%s17748_s19 + $0x570] sm:$0xff]  ;;  %v8088_v58 = vld [vmem:[%s17748_s19 + $0x1218] sm:$0xff] }
0x11fb   : > { %9019 = vmatprep.subr.mxu1 %v7962_v61  ;;  %9079 = vmatpush1.msra.mxu0 %v8227_v51  ;;  %v7571_v61 = vld [vmem:[%s17748_s19 + $0x1f0] sm:$0xff] }
0x11fc   : > { %9020 = vmatpush1.msra.mxu1 %v7961_v18  ;;  %9080 = vmatprep.subr.mxu0 %v8221_v23  ;;  %v8087_v51 = vld [vmem:[%s17748_s19 + $0x1210] sm:$0xff]  ;;  %v7676_v18 = vld [vmem:[%s17748_s19 + $0x538] sm:$0xff]  ;;  %v8081_v23 = vld [vmem:[%s17748_s19 + $0x11e0] sm:$0xff] }
0x11fd   : > { %9021 = vmatprep.subr.mxu1 %v8179_v0  ;;  %9081 = vmatpush1.msra.mxu0 %v8220_v41  ;;  %v7564_v0 = vld [vmem:[%s17748_s19 + $0x1b8] sm:$0xff] }
0x11fe   : > { %9022 = vmatpush2.msra.mxu1 %v8178_v54  ;;  %9082 = vmatprep.subr.mxu0 %v8214_v36  ;;  %v8080_v41 = vld [vmem:[%s17748_s19 + $0x11d8] sm:$0xff]  ;;  %v7669_v54 = vld [vmem:[%s17748_s19 + $0x500] sm:$0xff]  ;;  %v8074_v36 = vld [vmem:[%s17748_s19 + $0x11a8] sm:$0xff] }
0x11ff   : > { %9023 = vmatprep.subr.mxu1 %v8172_v13  ;;  %9083 = vmatpush1.msra.mxu0 %v8213_v22  ;;  %v7557_v13 = vld [vmem:[%s17748_s19 + $0x180] sm:$0xff] }
0x1200   : > { %9024 = vmatpush2.msra.mxu1 %v8171_v48  ;;  %9084 = vmatprep.subr.mxu0 %v8207_v39  ;;  %v8073_v22 = vld [vmem:[%s17748_s19 + $0x11a0] sm:$0xff]  ;;  %v7662_v48 = vld [vmem:[%s17748_s19 + $0x4c8] sm:$0xff] }
0x1201   : > { %9025 = vmatprep.subr.mxu1 %v8165_v10  ;;  %9085 = vmatpush1.msra.mxu0 %v8206_v30  ;;  %v7550_v39 = vld [vmem:[%s17748_s19 + $0x148] sm:$0xff]  ;;  %v7956_v10 = vld [vmem:[%s17748_s19 + $0xdf8] sm:$0xff]  ;;  %v7655_v30 = vld [vmem:[%s17748_s19 + $0x490] sm:$0xff] }
0x1202   : > { %9026 = vmatpush2.msra.mxu1 %v8164_v3  ;;  %9086 = vmatprep.subr.mxu0 %v8200_v6  ;;  %v7844_v3 = vld [vmem:[%s17748_s19 + $0xa78] sm:$0xff]  ;;  %v7543_v6 = vld [vmem:[%s17748_s19 + $0x110] sm:$0xff] }
0x1203   : > { %9027 = vmatprep.subr.mxu1 %v8158_v14  ;;  %9087 = vmatpush1.msra.mxu0 %v8199_v56  ;;  %v7949_v14 = vld [vmem:[%s17748_s19 + $0xdc0] sm:$0xff]  ;;  %v7648_v56 = vld [vmem:[%s17748_s19 + $0x458] sm:$0xff] }
0x1204   : > { %9028 = vmatpush2.msra.mxu1 %v8157_v63  ;;  %9088 = vmatprep.subr.mxu0 %v8193_v49  ;;  %v7837_v63 = vld [vmem:[%s17748_s19 + $0xa40] sm:$0xff]  ;;  %v7536_v49 = vld [vmem:[%s17748_s19 + $0xd8] sm:$0xff] }
0x1205   : > { %9029 = vmatprep.subr.mxu1 %v8151_v32  ;;  %9089 = vmatpush1.msra.mxu0 %v8192_v19  ;;  %v7942_v32 = vld [vmem:[%s17748_s19 + $0xd88] sm:$0xff]  ;;  %v7641_v19 = vld [vmem:[%s17748_s19 + $0x420] sm:$0xff] }
0x1206   : > { %9030 = vmatpush2.msra.mxu1 %v8150_v15  ;;  %9090 = vmatprep.subr.mxu0 %v8186_v4  ;;  %v7830_v15 = vld [vmem:[%s17748_s19 + $0xa08] sm:$0xff]  ;;  %v7529_v4 = vld [vmem:[%s17748_s19 + $0xa0] sm:$0xff] }
0x1207   : > { %9031 = vmatprep.subr.mxu1 %v8144_v25  ;;  %9091 = vmatpush1.msra.mxu0 %v8185_v1  ;;  %v7634_v25 = vld [vmem:[%s17748_s19 + $0x3e8] sm:$0xff]  ;;  %v7823_v1 = vld [vmem:[%s17748_s19 + $0x9d0] sm:$0xff] }
0x1208   : > { %9124 = vmatprep.mubr.f32.mxu0 %v17897_v42  ;;  %9032 = vmatpush2.msra.mxu1 %v8143_v55  ;;  %v7522_v55 = vld [vmem:[%s17748_s19 + $0x68] sm:$0xff] }
0x1209   : > { %9778 = vmatmul.mubr.msk.f32.vlgmr.msra.gmra.mxu0 %vm8254_vm15, %v16021_v26  ;;  %9961 = vmatprep.subr.mxu0 %v7732_v40  ;;  %v7928_v40 = vld [vmem:[%s17748_s19 + $0xd18] sm:$0xff] }
0x120a   : > { %9033 = vmatprep.subr.mxu1 %v8137_v8  ;;  %9962 = vmatpush3.msra.mxu0 %v7620_v17  ;;  %v7627_v8 = vld [vmem:[%s17748_s19 + $0x3b0] sm:$0xff]  ;;  %v7816_v17 = vld [vmem:[%s17748_s19 + $0x998] sm:$0xff] }
0x120b   : > { %9195 = vmatprep.mubr.f32.mxu0 %v15831_v27  ;;  %9034 = vmatpush2.msra.mxu1 %v8136_v24  ;;  %v7711_v27 = vld [vmem:[%s17748_s19 + $0x650] sm:$0xff] }
0x120c   : > { %9963 = vmatprep.subr.mxu0 %v7725_v57  ;;  %9035 = vmatprep.subr.mxu1 %v8130_v20  ;;  %v7515_v24 = vld [vmem:[%s17748_s19 + $0x30] sm:$0xff]  ;;  %v7921_v57 = vld [vmem:[%s17748_s19 + $0xce0] sm:$0xff] }
0x120d   : > { %9964 = vmatpush3.msra.mxu0 %v7613_v34  ;;  %9036 = vmatpush2.msra.mxu1 %v8129_v31  ;;  %v7809_v20 = vld [vmem:[%s17748_s19 + $0x960] sm:$0xff]  ;;  %v8180_v34 = vld [vmem:[%s17748_s19 + $0x14f8] sm:$0xff]  ;;  %v7914_v31 = vld [vmem:[%s17748_s19 + $0xca8] sm:$0xff] }
0x120e   : > { %9965 = vmatprep.subr.mxu0 %v7718_v37  ;;  %9037 = vmatprep.subr.mxu1 %v8123_v47  ;;  %v8068_v37 = vld [vmem:[%s17748_s19 + $0x1178] sm:$0xff]  ;;  %v7802_v47 = vld [vmem:[%s17748_s19 + $0x928] sm:$0xff] }
0x120f   : > { %9966 = vmatpush3.msra.mxu0 %v7606_v33  ;;  %9038 = vmatpush2.msra.mxu1 %v8122_v7  ;;  %v8173_v33 = vld [vmem:[%s17748_s19 + $0x14c0] sm:$0xff]  ;;  %v7907_v7 = vld [vmem:[%s17748_s19 + $0xc70] sm:$0xff] }
0x1210   : > { %9967 = vmatprep.subr.mxu0 %v7711_v27  ;;  %9039 = vmatprep.subr.mxu1 %v8116_v53  ;;  %v7795_v27 = vld [vmem:[%s17748_s19 + $0x8f0] sm:$0xff]  ;;  %v8166_v53 = vld [vmem:[%s17748_s19 + $0x1488] sm:$0xff] }
0x1211   : > { %9968 = vmatpush3.msra.mxu0 %v7599_v62  ;;  %9040 = vmatpush2.msra.mxu1 %v8115_v9  ;;  %v7900_v62 = vld [vmem:[%s17748_s19 + $0xc38] sm:$0xff]  ;;  %v8054_v9 = vld [vmem:[%s17748_s19 + $0x1108] sm:$0xff] }
0x1212   : > { %9969 = vmatprep.subr.mxu0 %v7704_v60  ;;  %9041 = vmatprep.subr.mxu1 %v8109_v50  ;;  %v7788_v60 = vld [vmem:[%s17748_s19 + $0x8b8] sm:$0xff]  ;;  %v7893_v50 = vld [vmem:[%s17748_s19 + $0xc00] sm:$0xff] }
0x1213   : > { %9970 = vmatpush3.msra.mxu0 %v7592_v52  ;;  %9042 = vmatpush2.msra.mxu1 %v8108_v21  ;;  %v8047_v52 = vld [vmem:[%s17748_s19 + $0x10d0] sm:$0xff]  ;;  %v7781_v21 = vld [vmem:[%s17748_s19 + $0x880] sm:$0xff] }
0x1214   : > { %9971 = vmatprep.subr.mxu0 %v7697_v11  ;;  %9043 = vmatprep.subr.mxu1 %v8102_v44  ;;  %v8152_v11 = vld [vmem:[%s17748_s19 + $0x1418] sm:$0xff]  ;;  %v7886_v44 = vld [vmem:[%s17748_s19 + $0xbc8] sm:$0xff] }
0x1215   : > { %9972 = vmatpush3.msra.mxu0 %v7585_v5  ;;  %9044 = vmatpush2.msra.mxu1 %v8101_v2  ;;  %v8040_v5 = vld [vmem:[%s17748_s19 + $0x1098] sm:$0xff]  ;;  %v7774_v2 = vld [vmem:[%s17748_s19 + $0x848] sm:$0xff] }
0x1216   : > { %9973 = vmatprep.subr.mxu0 %v7690_v28  ;;  %9045 = vmatprep.subr.mxu1 %v8095_v59  ;;  %v8145_v28 = vld [vmem:[%s17748_s19 + $0x13e0] sm:$0xff]  ;;  %v7879_v59 = vld [vmem:[%s17748_s19 + $0xb90] sm:$0xff] }
0x1217   : > { %9974 = vmatpush3.msra.mxu0 %v7578_v12  ;;  %9046 = vmatpush2.msra.mxu1 %v8094_v35  ;;  %v8033_v12 = vld [vmem:[%s17748_s19 + $0x1060] sm:$0xff]  ;;  %v7767_v35 = vld [vmem:[%s17748_s19 + $0x810] sm:$0xff] }
0x1218   : > { %9975 = vmatprep.subr.mxu0 %v7683_v45  ;;  %9047 = vmatprep.subr.mxu1 %v8088_v58  ;;  %v8138_v45 = vld [vmem:[%s17748_s19 + $0x13a8] sm:$0xff]  ;;  %v7872_v58 = vld [vmem:[%s17748_s19 + $0xb58] sm:$0xff] }
0x1219   : > { %9976 = vmatpush3.msra.mxu0 %v7571_v61  ;;  %9048 = vmatpush2.msra.mxu1 %v8087_v51  ;;  %v8026_v61 = vld [vmem:[%s17748_s19 + $0x1028] sm:$0xff]  ;;  %v7760_v51 = vld [vmem:[%s17748_s19 + $0x7d8] sm:$0xff] }
0x121a   : > { %9977 = vmatprep.subr.mxu0 %v7676_v18  ;;  %9049 = vmatprep.subr.mxu1 %v8081_v23  ;;  %v8131_v18 = vld [vmem:[%s17748_s19 + $0x1370] sm:$0xff]  ;;  %v7865_v23 = vld [vmem:[%s17748_s19 + $0xb20] sm:$0xff] }
0x121b   : > { %9978 = vmatpush3.msra.mxu0 %v7564_v0  ;;  %9050 = vmatpush2.msra.mxu1 %v8080_v41  ;;  %v8019_v0 = vld [vmem:[%s17748_s19 + $0xff0] sm:$0xff]  ;;  %v7753_v41 = vld [vmem:[%s17748_s19 + $0x7a0] sm:$0xff] }
0x121c   : > { %9979 = vmatprep.subr.mxu0 %v7669_v54  ;;  %9051 = vmatprep.subr.mxu1 %v8074_v36  ;;  %v8124_v54 = vld [vmem:[%s17748_s19 + $0x1338] sm:$0xff]  ;;  %v7858_v36 = vld [vmem:[%s17748_s19 + $0xae8] sm:$0xff] }
0x121d   : > { %9980 = vmatpush3.msra.mxu0 %v7557_v13  ;;  %9052 = vmatpush2.msra.mxu1 %v8073_v22  ;;  %v8012_v13 = vld [vmem:[%s17748_s19 + $0xfb8] sm:$0xff]  ;;  %v7746_v22 = vld [vmem:[%s17748_s19 + $0x768] sm:$0xff] }
0x121e   : > { %9981 = vmatprep.subr.mxu0 %v7662_v48  ;;  %9054 = vmatmul.mubr.f32.vlgmr.msra.gmra.mxu1 %v16165_v29  ;;  %v8117_v48 = vld [vmem:[%s17748_s19 + $0x1300] sm:$0xff] }
0x121f   : > { %9982 = vmatpush3.msra.mxu0 %v7550_v39  ;;  %9996 = vmatprep.subr.mxu1 %v7956_v10  ;;  %v7851_v39 = vld [vmem:[%s17748_s19 + $0xab0] sm:$0xff]  ;;  %v8005_v10 = vld [vmem:[%s17748_s19 + $0xf80] sm:$0xff] }
0x1220   : > { %9983 = vmatprep.subr.mxu0 %v7655_v30  ;;  %9997 = vmatpush3.msra.mxu1 %v7844_v3  ;;  %v7739_v30 = vld [vmem:[%s17748_s19 + $0x730] sm:$0xff]  ;;  %v8110_v3 = vld [vmem:[%s17748_s19 + $0x12c8] sm:$0xff] }
0x1221   : > { %9265 = vmatprep.mubr.f32.mxu1 %v15891_v16  ;;  %9984 = vmatpush3.msra.mxu0 %v7543_v6  ;;  %v7935_v16 = vld [vmem:[%s17748_s19 + $0xd50] sm:$0xff]  ;;  %v7998_v6 = vld [vmem:[%s17748_s19 + $0xf48] sm:$0xff] }
0x1222   : > { %9998 = vmatprep.subr.mxu1 %v7949_v14  ;;  %9985 = vmatprep.subr.mxu0 %v7648_v56  ;;  %v8103_v14 = vld [vmem:[%s17748_s19 + $0x1290] sm:$0xff] }
0x1223   : > { %9999 = vmatpush3.msra.mxu1 %v7837_v63  ;;  %9986 = vmatpush3.msra.mxu0 %v7536_v49  ;;  %v8243_v56 = vld [vmem:[%s17748_s19 + $0x16f0] sm:$0x3f]  ;;  %v8096_v49 = vld [vmem:[%s17748_s19 + $0x1258] sm:$0xff] }
0x1224   : > { %10000 = vmatprep.subr.mxu1 %v7942_v32  ;;  %9987 = vmatprep.subr.mxu0 %v7641_v19  ;;  %v7991_v63 = vld [vmem:[%s17748_s19 + $0xf10] sm:$0xff]  ;;  %v8236_v32 = vld [vmem:[%s17748_s19 + $0x16b8] sm:$0xff]  ;;  %v8089_v19 = vld [vmem:[%s17748_s19 + $0x1220] sm:$0xff] }
0x1225   : > { %10001 = vmatpush3.msra.mxu1 %v7830_v15  ;;  %9988 = vmatpush3.msra.mxu0 %v7529_v4  ;;  %v8229_v15 = vld [vmem:[%s17748_s19 + $0x1680] sm:$0xff] }
0x1226   : > { %10002 = vmatprep.subr.mxu1 %v7935_v16  ;;  %9989 = vmatprep.subr.mxu0 %v7634_v25  ;;  %v7977_v4 = vld [vmem:[%s17748_s19 + $0xea0] sm:$0xff]  ;;  %v8082_v16 = vld [vmem:[%s17748_s19 + $0x11e8] sm:$0xff] }
0x1227   : > { %10003 = vmatpush3.msra.mxu1 %v7823_v1  ;;  %9990 = vmatpush3.msra.mxu0 %v7522_v55  ;;  %v8222_v25 = vld [vmem:[%s17748_s19 + $0x1648] sm:$0xff]  ;;  %v8075_v55 = vld [vmem:[%s17748_s19 + $0x11b0] sm:$0xff] }
0x1228   : > { %10004 = vmatprep.subr.mxu1 %v7928_v40  ;;  %9991 = vmatprep.subr.mxu0 %v7627_v8  ;;  %v7970_v1 = vld [vmem:[%s17748_s19 + $0xe68] sm:$0xff]  ;;  %v8215_v40 = vld [vmem:[%s17748_s19 + $0x1610] sm:$0xff] }
0x1229   : > { %10005 = vmatpush3.msra.mxu1 %v7816_v17  ;;  %9992 = vmatpush3.msra.mxu0 %v7515_v24  ;;  %v7963_v8 = vld [vmem:[%s17748_s19 + $0xe30] sm:$0xff]  ;;  %v8208_v17 = vld [vmem:[%s17748_s19 + $0x15d8] sm:$0xff]  ;;  %v8201_v24 = vld [vmem:[%s17748_s19 + $0x15a0] sm:$0xff] }
0x122a   : > { %10006 = vmatprep.subr.mxu1 %v7921_v57  ;;  %9196 = vmatmul.mubr.f32.vlgmr.msra.gmra.mxu0 %v15833_v38  ;;  %v8061_v38 = vld [vmem:[%s17748_s19 + $0x1140] sm:$0xff]  ;;  %v8194_v57 = vld [vmem:[%s17748_s19 + $0x1568] sm:$0xff] }
0x122b   : > { %10007 = vmatpush3.msra.mxu1 %v7809_v20  ;;  %10031 = vmatprep.subr.mxu0 %v8180_v34  ;;  %v8187_v20 = vld [vmem:[%s17748_s19 + $0x1530] sm:$0xff]  ;;  %v8345_v34 = vpop.f32.mrf.mxu1 }
0x122c   : > { %10008 = vmatprep.subr.mxu1 %v7914_v31  ;;  %10032 = vmatpush3.msra.mxu0 %v8068_v37 }
0x122d   : > { %9335 = vmatprep.mubr.f32.mxu0 %v16144_v46  ;;  %10009 = vmatpush3.msra.mxu1 %v7802_v47  ;;  %v8159_v46 = vld [vmem:[%s17748_s19 + $0x1450] sm:$0xff]  ;;  %v8347_v37 = vpop.f32.mrf.mxu1 }
0x122e   : > { %10033 = vmatprep.subr.mxu0 %v8173_v33  ;;  %10010 = vmatprep.subr.mxu1 %v7907_v7 }
0x122f   : > { %10034 = vmatpush3.msra.mxu0 %v8061_v38  ;;  %10011 = vmatpush3.msra.mxu1 %v7795_v27  ;;  %v8487_v33 = vpop.f32.mrf.mxu1 }
0x1230   : > { %10035 = vmatprep.subr.mxu0 %v8166_v53  ;;  %10012 = vmatprep.subr.mxu1 %v7900_v62 }
0x1231   : > { %10036 = vmatpush3.msra.mxu0 %v8054_v9  ;;  %10013 = vmatpush3.msra.mxu1 %v7788_v60  ;;  %v8489_v38 = vpop.f32.mrf.mxu1 }
0x1232   : > { %10037 = vmatprep.subr.mxu0 %v8159_v46  ;;  %10014 = vmatprep.subr.mxu1 %v7893_v50  ;;  %v8250_v46 = vlaneseq }
0x1233   : > { %10038 = vmatpush3.msra.mxu0 %v8047_v52  ;;  %10015 = vmatpush3.msra.mxu1 %v7781_v21 }
0x1234   : > { %10039 = vmatprep.subr.mxu0 %v8152_v11  ;;  %10016 = vmatprep.subr.mxu1 %v7886_v44  ;;  %v17717_v52 = vshrl.u32 %v8250_v46, 7  ;;  %vm9476_vm0 = vcmp.lt.s32.totalorder %v8250_v46, 784 }
0x1235   : > { %10040 = vmatpush3.msra.mxu0 %v8040_v5  ;;  %10017 = vmatpush3.msra.mxu1 %v7774_v2  ;;  %v8248_v2 = vpop.permute.xlu0 %8247 }
0x1236   : > { %10041 = vmatprep.subr.mxu0 %v8145_v28  ;;  %10018 = vmatprep.subr.mxu1 %v7879_v59  ;;  %v8252_v44 = vsub.s32 0, %v17717_v52 }
0x1237   : > { %10042 = vmatpush3.msra.mxu0 %v8033_v12  ;;  %10019 = vmatpush3.msra.mxu1 %v7767_v35 }
0x1238   : > { %10043 = vmatprep.subr.mxu0 %v8138_v45  ;;  %10020 = vmatprep.subr.mxu1 %v7872_v58  ;;  %v8253_v12 = vrot.slane %v8248_v2, %v8252_v44 }
0x1239   : > { %10044 = vmatpush3.msra.mxu0 %v8026_v61  ;;  %10021 = vmatpush3.msra.mxu1 %v7760_v51 }
0x123a   : > { %10045 = vmatprep.subr.mxu0 %v8131_v18  ;;  %10022 = vmatprep.subr.mxu1 %v7865_v23  ;;  %v8348_v61 = vadd.f32 %v8347_v37, %v8253_v12 }
0x123b   : > { %10046 = vmatpush3.msra.mxu0 %v8019_v0  ;;  %10023 = vmatpush3.msra.mxu1 %v7753_v41  ;;  %v8346_v41 = vadd.f32 %v8345_v34, %v8253_v12 }
0x123c   : > { %10047 = vmatprep.subr.mxu0 %v8124_v54  ;;  %10024 = vmatprep.subr.mxu1 %v7858_v36 }
0x123d   : > { %10048 = vmatpush3.msra.mxu0 %v8012_v13  ;;  %10025 = vmatpush3.msra.mxu1 %v7746_v22 }
0x123e   : > { %10049 = vmatprep.subr.mxu0 %v8117_v48  ;;  %10026 = vmatprep.subr.mxu1 %v7851_v39 }
0x123f   : > { %10050 = vmatpush3.msra.mxu0 %v8005_v10  ;;  %10027 = vmatpush3.msra.mxu1 %v7739_v30 }
0x1240   : > { %10051 = vmatprep.subr.mxu0 %v8110_v3  ;;  %9266 = vmatmul.mubr.f32.vlgmr.msra.gmra.mxu1 %v15896_v43  ;;  %v7984_v43 = vld [vmem:[%s17748_s19 + $0xed8] sm:$0xff] }
0x1241   : > { %10052 = vmatpush3.msra.mxu0 %v7998_v6  ;;  %10201 = vmatprep.subr.mxu1 %v17897_v42 }
0x1242   : > { %10053 = vmatprep.subr.mxu0 %v8103_v14  ;;  %10202 = vmatpush3.msk.msra.mxu1 %vm4095_vm9, %v8243_v56 }
0x1243   : > { %10054 = vmatpush3.msra.mxu0 %v7991_v63  ;;  %10203 = vmatprep.subr.mxu1 %v17897_v42 }
0x1244   : > { %10055 = vmatprep.subr.mxu0 %v8096_v49  ;;  %10204 = vmatpush3.msra.mxu1 %v8236_v32 }
0x1245   : > { %10056 = vmatpush3.msra.mxu0 %v7984_v43  ;;  %10205 = vmatprep.subr.mxu1 %v17897_v42 }
0x1246   : > { %10057 = vmatprep.subr.mxu0 %v8089_v19  ;;  %10206 = vmatpush3.msra.mxu1 %v8229_v15  ;;  %v8700_v53 = vpop.f32.mrf.mxu1 }
0x1247   : > { %10058 = vmatpush3.msra.mxu0 %v7977_v4  ;;  %10207 = vmatprep.subr.mxu1 %v17897_v42 }
0x1248   : > { %10059 = vmatprep.subr.mxu0 %v8082_v16  ;;  %10208 = vmatpush3.msra.mxu1 %v8222_v25  ;;  %v8702_v9 = vpop.f32.mrf.mxu1 }
0x1249   : > { %10060 = vmatpush3.msra.mxu0 %v7970_v1  ;;  %10209 = vmatprep.subr.mxu1 %v17897_v42 }
0x124a   : > { %10061 = vmatprep.subr.mxu0 %v8075_v55  ;;  %10210 = vmatpush3.msra.mxu1 %v8215_v40 }
0x124b   : > { %10062 = vmatpush3.msra.mxu0 %v7963_v8  ;;  %10211 = vmatprep.subr.mxu1 %v17897_v42 }
0x124c   : > { %9336 = vmatmul.mubr.f32.vlgmr.msra.gmra.mxu0 %v16165_v29  ;;  %10212 = vmatpush3.msra.mxu1 %v8208_v17  ;;  %v8416_v29 = vpop.f32.mrf.mxu0 }
0x124d   : > { %10213 = vmatprep.subr.mxu1 %v17897_v42  ;;  %10219 = vmatprep.mubr.msk.f32.mxu1 %vm10339_vm14, %v17897_v42  ;;  %v8417_v39 = vadd.f32 %v8416_v29, %v8346_v41 }
0x124e   : > { %10214 = vmatpush3.msra.mxu1 %v8201_v24  ;;  %v8418_v31 = vpop.f32.mrf.mxu0 }
0x124f   : > { %10215 = vmatprep.subr.mxu1 %v17897_v42  ;;  %v8419_v54 = vadd.f32 %v8418_v31, %v8348_v61  ;;  %v8488_v56 = vadd.f32 %v8487_v33, %v8417_v39  ;;  %v10340_v33 = vmov 1966171168  }
0x1250   : > { %10216 = vmatpush3.msra.mxu1 %v8194_v57  ;;  %v8558_v47 = vpop.f32.mrf.mxu0 }
0x1251   : > { %10217 = vmatprep.subr.mxu1 %v17897_v42  ;;  %v8490_v10 = vadd.f32 %v8489_v38, %v8419_v54  ;;  %v8559_v25 = vadd.f32 %v8558_v47, %v8488_v56  ;;  %v9429_v47 = vunpack.c.l.s4 %v10340_v33 }
0x1252   : > { %10218 = vmatpush3.msra.mxu1 %v8187_v20  ;;  %v8560_v7 = vpop.f32.mrf.mxu0 }
0x1253   : > { %10220 = vmatmul.mubr.msk.f32.vlgmr.msra.gmra.mxu1 %vm8254_vm15, %v16021_v26  ;;  %v8561_v19 = vadd.f32 %v8560_v7, %v8490_v10 }
0x1254   : > { %v8629_v27 = vpop.f32.mrf.mxu0 }
0x1255   : > { %v8630_v51 = vadd.f32 %v8629_v27, %v8253_v12  ;;  %v9430_v27 = vunpack.c.0.s8 %v9429_v47 }
0x1256   : > { %v8631_v62 = vpop.f32.mrf.mxu0 }
0x1257   : > { %v8632_v45 = vadd.f32 %v8631_v62, %v8253_v12  ;;  %v8701_v36 = vadd.f32 %v8700_v53, %v8630_v51 }
0x1259   : > { %v8703_v18 = vadd.f32 %v8702_v9, %v8632_v45 }
0x125a   : > { %v8842_v50 = vpop.f32.mrf.mxu1 }
0x125c   : > { %v8844_v26 = vpop.f32.mrf.mxu1 }
0x1273   : > { %v8771_v60 = vpop.f32.mrf.mxu0 }
0x1274   : > { %v8772_v30 = vadd.f32 %v8771_v60, %v8701_v36 }
0x1275   : > { %v8773_v42 = vpop.f32.mrf.mxu0 }
0x1276   : > { %v8774_v13 = vadd.f32 %v8773_v42, %v8703_v18  ;;  %v8843_v4 = vadd.f32 %v8842_v50, %v8772_v30  ;;  %v9433_v50 = vsub.s32 %v9430_v27, %v17717_v52 }
0x1278   : > { %v8845_v63 = vadd.f32 %v8844_v26, %v8774_v13 }
0x127a   : > { %10245 = vtanh.f32 %v8845_v63 }
0x127b   : > { %10247 = vtanh.f32 %v8561_v19 }
0x127c   : > { %10249 = vtanh.f32 %v8843_v4 }
0x127d   : > { %10251 = vtanh.f32 %v8559_v25 }
0x1287   : > { %v10246_v7 = vpop.eup %10245 }
0x1288   : > { %v10248_v38 = vpop.eup %10247 }
0x1289   : > { %v10250_v53 = vpop.eup %10249 }
0x128a   : > { %v10252_v62 = vpop.eup %10251  ;;  %v9426_v9 = vcombine.low %v10250_v53, %v10246_v7 }
0x128b   : > { %v9425_v42 = vcombine.low %v10252_v62, %v10248_v38 }
0x128d   : > { %v9434_v44 = vrot.slane %v9425_v42, %v9433_v50 }
0x129b   : > { %v8913_v11 = vpop.f32.mrf.mxu1 }
0x129c   : > { %v8914_v3 = vadd.f32 %v8913_v11, %v8253_v12 }
0x129d   : > { %v8915_v28 = vpop.f32.mrf.mxu1 }
0x129e   : > { %v8916_v22 = vadd.f32 %v8915_v28, %v8253_v12 }
0x12b5   : > { %v8984_v21 = vpop.f32.mrf.mxu0 }
0x12b6   : > { %v8985_v49 = vadd.f32 %v8984_v21, %v8914_v3  ;;  %v9441_v21 = vrot.slane %v9426_v9, %v9433_v50 }
0x12b7   : > { %v8986_v5 = vpop.f32.mrf.mxu0 }
0x12b8   : > { %v8987_v6 = vadd.f32 %v8986_v5, %v8916_v22  ;;  %v9456_v2 = vcombine.low %v9434_v44, %v9441_v21 }
0x12c9   : > { %v9126_v59 = vpop.f32.mrf.mxu0 }
0x12cb   : > { %v9128_v58 = vpop.f32.mrf.mxu0 }
0x12de   : > { %v9055_v35 = vpop.f32.mrf.mxu1 }
0x12df   : > { %v9056_v16 = vadd.f32 %v9055_v35, %v8985_v49  ;;  %v9464_v35 = vrot.slane %v9456_v2, %v9433_v50 }
0x12e0   : > { %v9057_v23 = vpop.f32.mrf.mxu1 }
0x12e1   : > { %v9058_v32 = vadd.f32 %v9057_v23, %v8987_v6  ;;  %v9127_v17 = vadd.f32 %v9126_v59, %v9056_v16 }
0x12e3   : > { %v9129_v55 = vadd.f32 %v9128_v58, %v9058_v32 }
0x12e5   : > { %10253 = vtanh.f32 %v9129_v55 }
0x12e6   : > { %10255 = vtanh.f32 %v9127_v17 }
0x12ea   : > { %v9993_v0 = vpop.f32.mrf.mxu0 }
0x12ec   : > { %v9994_v14 = vpop.f32.mrf.mxu0 }
0x12ed   : > { %v9995_v15 = vadd.f32 %v9994_v14, %v9993_v0 }
0x12ef   : > { %v9198_v8 = vadd.f32 %v9995_v15, %v8253_v12 }
0x12f2   : > { %v10254_v60 = vpop.eup %10253 }
0x12f3   : > { %v10256_v26 = vpop.eup %10255 }
0x12f4   : > { %v9427_v11 = vcombine.low %v10256_v26, %v10254_v60 }
0x12f6   : > { %v9448_v28 = vrot.slane %v9427_v11, %v9433_v50 }
0x1300   : > { %v10028_v48 = vpop.f32.mrf.mxu1 }
0x1302   : > { %v10029_v43 = vpop.f32.mrf.mxu1 }
0x1303   : > { %v10030_v1 = vadd.f32 %v10029_v43, %v10028_v48 }
0x1305   : > { %v9268_v57 = vadd.f32 %v10030_v1, %v9198_v8 }
0x130c   : > { %v10063_v40 = vpop.f32.mrf.mxu0 }
0x130e   : > { %v10064_v24 = vpop.f32.mrf.mxu0 }
0x130f   : > { %v10065_v20 = vadd.f32 %v10064_v24, %v10063_v40 }
0x1311   : > { %v9338_v29 = vadd.f32 %v10065_v20, %v9268_v57 }
0x1313   : > { %v9407_v34 = vpop.f32.mrf.mxu1 }
0x1314   : > { %v9408_v31 = vadd.f32 %v9407_v34, %v9338_v29 }
0x1315   : > { %v10221_v37 = vpop.f32.mrf.mxu1 }
0x1316   : > { %10257 = vtanh.f32 %v9408_v31 }
0x1323   : > { %v10258_v5 = vpop.eup %10257 }
0x1324   : > { %v9455_v59 = vrot.slane %v10258_v5, %v9433_v50 }
0x1326   : > { %v9457_v12 = vcombine.low %v9448_v28, %v9455_v59 }
0x1328   : > { %v9471_v45 = vrot.slane %v9457_v12, %v9433_v50 }
0x132a   : > { %v9472_v52 = vcombine.low %v9464_v35, %v9471_v45 }
0x132c   : > { %9478 = vst.msk [vmem:[%s629_s29] sm:$0x7f] %vm9476_vm0, %v9472_v52 }
0x132d PF: > { %s32_s23 = sadd.s32 1, %s10327_s23  }
0x132e   : > { %p29_p4 = scmp.ge.s32.totalorder %s32_s23, 4  }
0x1330   :  { %31 = sbr.rel (!%p29_p4) target bundleno = 6 (0x6), region = 140 }

</bundles_post_ra>
